<compile_context>
chip_gen: v7x
topology: tpu7x:2x2x1
jax: 0.10.0
libtpu: 0.0.40
codegen_flags: <defaults>
</compile_context>

<pallas_src>
import functools

import jax
import jax.numpy as jnp
from jax.experimental import pallas as pl
from jax.experimental.pallas import tpu as pltpu

EPS = 1e-5                        # torch.nn.GroupNorm default eps
PREC = jax.lax.Precision.HIGHEST  # only used by the pure-JAX reference


def _round_up(n, m=128):
    return ((n + m - 1) // m) * m


# --------------------------- fused Pallas kernel ---------------------------

def resnet_block_kernel(x_ref, te_ref, mask_ref,
                        g1_ref, bt1_ref, gm1_ref, w1_ref, b1_ref,
                        mw_ref, mb_ref,
                        g2_ref, bt2_ref, gm2_ref, w2_ref, b2_ref,
                        wr_ref, br_ref,
                        o_ref,
                        pad1_ref, pad2_ref, acc1_ref, acc2_ref,
                        *, H, W, npad):
    """One batch element per grid step: the whole ResnetBlock forward."""
    f32, bf16 = jnp.float32, jnp.bfloat16
    R = W + 2                      # padded row width (one zero col each side)
    HR = H * R                     # rows of the flat interior block
    start = npad + R               # first interior row (8-aligned by design)
    nrows = pad1_ref.shape[0]
    tail = nrows - (start + HR)

    mask = mask_ref[...]           # (HR, 1): 1 at real pixels, 0 at pad cols

    def swish(v):
        # exp + approx reciprocal both go to the EUP; no VPU divide.
        return v * pl.reciprocal(1.0 + jnp.exp(-v), approx=True)

    def gn_swish(v, gamma, beta, gmat):
        # Per-channel sums -> block-diagonal group matrix broadcasts per-group
        # mean/var back to channels.  Centered variance, all f32.  `mask`
        # keeps the padding columns out of the statistics and re-zeroes them
        # in the produced activation (conv padding must be exactly zero).
        s = jnp.sum(v * mask, axis=0, keepdims=True)                  # (1, C)
        mean = jnp.dot(s, gmat, preferred_element_type=f32)           # (1, C)
        d = (v - mean) * mask
        ss = jnp.sum(d * d, axis=0, keepdims=True)
        var = jnp.dot(ss, gmat, preferred_element_type=f32)
        inv = jax.lax.rsqrt(jnp.maximum(var, 0.0) + EPS)
        return swish(d * inv * gamma + beta) * mask

    def conv3x3(act, pad_ref, w_ref, acc_ref):
        # Flat zero-ringed buffer: tap (dy, dx) is the contiguous row-range
        # slice at offset (dy-1)*R + (dx-1); 9 bf16 matmuls accumulate into
        # the f32 VMEM scratch `acc_ref`.
        c = pad_ref.shape[1]
        pad_ref[0:start, :] = jnp.zeros((start, c), bf16)           # top ring
        pad_ref[start + HR:nrows, :] = jnp.zeros((tail, c), bf16)   # bottom
        pad_ref[start:start + HR, :] = act.astype(bf16)             # interior
        for k in range(9):
            dy, dx = divmod(k, 3)
            off = start + (dy - 1) * R + (dx - 1)
            contrib = jnp.dot(pad_ref[off:off + HR, :], w_ref[k],
                              preferred_element_type=f32)
            if k == 0:
                acc_ref[...] = contrib
            else:
                acc_ref[...] += contrib
        return acc_ref[...]

    x = x_ref[0]                                              # (HR, Cip) f32

    # ---- block1: GroupNorm -> Swish -> Conv3x3 (+ bias) ----
    a1 = gn_swish(x, g1_ref[...], bt1_ref[...], gm1_ref[...])
    h = conv3x3(a1, pad1_ref, w1_ref, acc1_ref) + b1_ref[...]

    # ---- time-embedding MLP: Swish -> Linear, broadcast over spatial ----
    te = swish(te_ref[0])                                     # (1, Tp)
    h = h + (jnp.dot(te, mw_ref[...], preferred_element_type=f32) + mb_ref[...])

    # ---- block2: GroupNorm -> Swish -> Conv3x3 (+ bias) ----
    a2 = gn_swish(h, g2_ref[...], bt2_ref[...], gm2_ref[...])
    h2 = conv3x3(a2, pad2_ref, w2_ref, acc2_ref) + b2_ref[...]

    # ---- residual 1x1 conv on x (kept f32 for parity) ----
    res = jnp.dot(x, wr_ref[...], preferred_element_type=f32) + br_ref[...]

    o_ref[0] = h2 + res


# --------------------------- pallas_call plumbing ---------------------------

def _batch_spec(shape):
    nd = len(shape)
    return pl.BlockSpec(shape, lambda b: (b,) + (0,) * (nd - 1))


def _const_spec(shape):
    nd = len(shape)
    return pl.BlockSpec(shape, lambda b: (0,) * nd)


def _group_mat(c, c_pad, groups, n_spatial):
    # (c_pad, c_pad): 1/(N*cg) for real channels in the same group, else 0.
    cg = c // groups
    idx = jnp.arange(c_pad)
    grp = idx // cg
    valid = idx < c
    same = (grp[:, None] == grp[None, :]) & valid[:, None] & valid[None, :]
    return same.astype(jnp.float32) / float(n_spatial * cg)


def resnet_blocks_forward(x_nchw, time_emb, params, groups):
    B, Cin, H, W = x_nchw.shape
    Cout = params['b1'].shape[0]
    T = time_emb.shape[1]
    R = W + 2
    HR = H * R
    N = H * W
    Cip, Cop, Tp = _round_up(Cin), _round_up(Cout), _round_up(T)
    npad = (-R) % 8 or 8                    # front slack; keeps `start` 8-aligned
    start = npad + R
    nrows = _round_up(start + HR + R + 1, 8)
    f32, bf16 = jnp.float32, jnp.bfloat16

    # Activations: NCHW -> NHWC (channels on lanes), one zero column each side
    # of W (conv padding cols), channels padded to 128 -> (B, H*(W+2), Cip).
    x = jnp.transpose(x_nchw.astype(f32), (0, 2, 3, 1))
    x = jnp.pad(x, ((0, 0), (0, 0), (1, 1), (0, Cip - Cin))).reshape(B, HR, Cip)
    te = jnp.pad(time_emb.astype(f32), ((0, 0), (0, Tp - T))).reshape(B, 1, Tp)

    # Valid-pixel mask over the flat interior rows (zero at the pad columns).
    col = jnp.arange(HR) % R
    mask = ((col >= 1) & (col <= W)).astype(f32).reshape(HR, 1)

    def vec(p, n):
        return jnp.pad(p.astype(f32), (0, n - p.shape[0])).reshape(1, n)

    g1, bt1 = vec(params['gamma1'], Cip), vec(params['beta1'], Cip)
    g2, bt2 = vec(params['gamma2'], Cop), vec(params['beta2'], Cop)
    b1, b2 = vec(params['b1'], Cop), vec(params['b2'], Cop)
    br, mb = vec(params['br'], Cop), vec(params['mlp_b'], Cop)

    def conv_w(w, cip, cop):                 # (O, I, 3, 3) -> (9, cip, cop) bf16
        o, i = w.shape[0], w.shape[1]
        wt = jnp.transpose(w.astype(f32), (2, 3, 1, 0)).reshape(9, i, o)
        return jnp.pad(wt, ((0, 0), (0, cip - i), (0, cop - o))).astype(bf16)

    w1 = conv_w(params['w1'], Cip, Cop)
    w2 = conv_w(params['w2'], Cop, Cop)
    wr = jnp.pad(params['wr'][:, :, 0, 0].T.astype(f32),
                 ((0, Cip - Cin), (0, Cop - Cout)))          # f32 residual path
    mw = jnp.pad(params['mlp_w'].T.astype(f32), ((0, Tp - T), (0, Cop - Cout)))

    gm1 = _group_mat(Cin, Cip, groups, N)
    gm2 = _group_mat(Cout, Cop, groups, N)

    kernel = functools.partial(resnet_block_kernel, H=H, W=W, npad=npad)

    out_flat = pl.pallas_call(
        kernel,
        out_shape=jax.ShapeDtypeStruct((B, HR, Cop), f32),
        grid=(B,),
        in_specs=[
            _batch_spec((1, HR, Cip)),            # x
            _batch_spec((1, 1, Tp)),              # time_emb
            _const_spec((HR, 1)),                 # valid-pixel mask
            _const_spec((1, Cip)),                # gamma1
            _const_spec((1, Cip)),                # beta1
            _const_spec((Cip, Cip)),              # group matrix 1
            _const_spec((9, Cip, Cop)),           # conv1 weights (bf16)
            _const_spec((1, Cop)),                # conv1 bias
            _const_spec((Tp, Cop)),               # mlp weight
            _const_spec((1, Cop)),                # mlp bias
            _const_spec((1, Cop)),                # gamma2
            _const_spec((1, Cop)),                # beta2
            _const_spec((Cop, Cop)),              # group matrix 2
            _const_spec((9, Cop, Cop)),           # conv2 weights (bf16)
            _const_spec((1, Cop)),                # conv2 bias
            _const_spec((Cip, Cop)),              # residual 1x1 weight (f32)
            _const_spec((1, Cop)),                # residual bias
        ],
        out_specs=_batch_spec((1, HR, Cop)),
        scratch_shapes=[
            pltpu.VMEM((nrows, Cip), bf16),       # flat zero-ringed act, conv1
            pltpu.VMEM((nrows, Cop), bf16),       # flat zero-ringed act, conv2
            pltpu.VMEM((HR, Cop), f32),           # conv1 accumulator
            pltpu.VMEM((HR, Cop), f32),           # conv2 accumulator
        ],
        compiler_params=pltpu.CompilerParams(
            dimension_semantics=("parallel",)),
    )(x, te, mask, g1, bt1, gm1, w1, b1, mw, mb, g2, bt2, gm2, w2, b2, wr, br)

    out = out_flat.reshape(B, H, R, Cop)[:, :, 1:W + 1, :Cout]
    return jnp.transpose(out, (0, 3, 1, 2))                  # back to NCHW


# -------------- pure-JAX reference (matches the PyTorch module) --------------

def reference_forward(x, temb, params, groups):
    def gn(v, gamma, beta):
        B, C, H, W = v.shape
        vg = v.reshape(B, groups, C // groups, H, W)
        mean = vg.mean(axis=(2, 3, 4), keepdims=True)
        var = vg.var(axis=(2, 3, 4), keepdims=True)
        vn = ((vg - mean) / jnp.sqrt(var + EPS)).reshape(B, C, H, W)
        return vn * gamma[None, :, None, None] + beta[None, :, None, None]

    def conv(v, w, b, pad):
        y = jax.lax.conv_general_dilated(
            v, w, (1, 1), [(pad, pad), (pad, pad)],
            dimension_numbers=('NCHW', 'OIHW', 'NCHW'), precision=PREC)
        return y + b[None, :, None, None]

    swish = lambda v: v * jax.nn.sigmoid(v)
    h = conv(swish(gn(x, params['gamma1'], params['beta1'])),
             params['w1'], params['b1'], 1)
    tadd = swish(temb) @ params['mlp_w'].T + params['mlp_b']
    h = h + tadd[:, :, None, None]
    h = conv(swish(gn(h, params['gamma2'], params['beta2'])),
             params['w2'], params['b2'], 1)
    res = conv(x, params['wr'], params['br'], 0)
    return h + res


if __name__ == "__main__":
    # dim=8, dim_out=16, time_emb_dim=8, norm_groups=4, dropout=0
    B, Cin, Cout, H, W, T, G = 2, 8, 16, 16, 16, 8, 4

    ks = jax.random.split(jax.random.PRNGKey(0), 14)
    params = {
        'gamma1': 1.0 + 0.1 * jax.random.normal(ks[0], (Cin,), jnp.float32),
        'beta1':  0.1 * jax.random.normal(ks[1], (Cin,), jnp.float32),
        'w1':     0.1 * jax.random.normal(ks[2], (Cout, Cin, 3, 3), jnp.float32),
        'b1':     0.1 * jax.random.normal(ks[3], (Cout,), jnp.float32),
        'mlp_w':  0.1 * jax.random.normal(ks[4], (Cout, T), jnp.float32),
        'mlp_b':  0.1 * jax.random.normal(ks[5], (Cout,), jnp.float32),
        'gamma2': 1.0 + 0.1 * jax.random.normal(ks[6], (Cout,), jnp.float32),
        'beta2':  0.1 * jax.random.normal(ks[7], (Cout,), jnp.float32),
        'w2':     0.1 * jax.random.normal(ks[8], (Cout, Cout, 3, 3), jnp.float32),
        'b2':     0.1 * jax.random.normal(ks[9], (Cout,), jnp.float32),
        'wr':     0.1 * jax.random.normal(ks[10], (Cout, Cin, 1, 1), jnp.float32),
        'br':     0.1 * jax.random.normal(ks[11], (Cout,), jnp.float32),
    }
    x = jax.random.normal(ks[12], (B, Cin, H, W), jnp.float32)
    temb = jax.random.normal(ks[13], (B, T), jnp.float32)

    fwd = jax.jit(functools.partial(resnet_blocks_forward, groups=G))
    out = jax.block_until_ready(fwd(x, temb, params))

    ref = reference_forward(x, temb, params, G)
    assert out.shape == (B, Cout, H, W), out.shape
    max_err = float(jnp.max(jnp.abs(out - ref)))
    # bf16 MXU conv operands + approx-EUP swish vs. an all-f32 HIGHEST reference.
    assert jnp.allclose(out, ref, atol=5e-2, rtol=5e-2), max_err
    print("KERNEL_OK")
</pallas_src>

<mosaic_0001>
module attributes {stable_mosaic.version = 11 : i64} {
  func.func @resnet_block_kernel(%arg0: i32, %arg1: memref<1x288x128xf32, #tpu.memory_space<vmem>>, %arg2: memref<1x1x128xf32, #tpu.memory_space<vmem>>, %arg3: memref<288x1xf32, #tpu.memory_space<vmem>>, %arg4: memref<1x128xf32, #tpu.memory_space<vmem>>, %arg5: memref<1x128xf32, #tpu.memory_space<vmem>>, %arg6: memref<128x128xf32, #tpu.memory_space<vmem>>, %arg7: memref<9x128x128xbf16, #tpu.memory_space<vmem>>, %arg8: memref<1x128xf32, #tpu.memory_space<vmem>>, %arg9: memref<128x128xf32, #tpu.memory_space<vmem>>, %arg10: memref<1x128xf32, #tpu.memory_space<vmem>>, %arg11: memref<1x128xf32, #tpu.memory_space<vmem>>, %arg12: memref<1x128xf32, #tpu.memory_space<vmem>>, %arg13: memref<128x128xf32, #tpu.memory_space<vmem>>, %arg14: memref<9x128x128xbf16, #tpu.memory_space<vmem>>, %arg15: memref<1x128xf32, #tpu.memory_space<vmem>>, %arg16: memref<128x128xf32, #tpu.memory_space<vmem>>, %arg17: memref<1x128xf32, #tpu.memory_space<vmem>>, %arg18: memref<1x288x128xf32, #tpu.memory_space<vmem>>, %arg19: memref<336x128xbf16, #tpu.memory_space<vmem>>, %arg20: memref<336x128xbf16, #tpu.memory_space<vmem>>, %arg21: memref<288x128xf32, #tpu.memory_space<vmem>>, %arg22: memref<288x128xf32, #tpu.memory_space<vmem>>) attributes {dimension_semantics = [#tpu.dimension_semantics<parallel>], iteration_bounds = array<i64: 2>, scalar_prefetch = 0 : i64, scratch_operands = 4 : i64, tpu.core_type = #tpu.core_type<tc>, window_params = [{transform_indices = @transform_0, window_bounds = array<i64: 1, 288, 128>}, {transform_indices = @transform_1, window_bounds = array<i64: 1, 1, 128>}, {pipeline_mode = #tpu.pipeline_mode<synchronous>, transform_indices = @transform_2, window_bounds = array<i64: 288, 1>}, {pipeline_mode = #tpu.pipeline_mode<synchronous>, transform_indices = @transform_3, window_bounds = array<i64: 1, 128>}, {pipeline_mode = #tpu.pipeline_mode<synchronous>, transform_indices = @transform_4, window_bounds = array<i64: 1, 128>}, {pipeline_mode = #tpu.pipeline_mode<synchronous>, transform_indices = @transform_5, window_bounds = array<i64: 128, 128>}, {pipeline_mode = #tpu.pipeline_mode<synchronous>, transform_indices = @transform_6, window_bounds = array<i64: 9, 128, 128>}, {pipeline_mode = #tpu.pipeline_mode<synchronous>, transform_indices = @transform_7, window_bounds = array<i64: 1, 128>}, {pipeline_mode = #tpu.pipeline_mode<synchronous>, transform_indices = @transform_8, window_bounds = array<i64: 128, 128>}, {pipeline_mode = #tpu.pipeline_mode<synchronous>, transform_indices = @transform_9, window_bounds = array<i64: 1, 128>}, {pipeline_mode = #tpu.pipeline_mode<synchronous>, transform_indices = @transform_10, window_bounds = array<i64: 1, 128>}, {pipeline_mode = #tpu.pipeline_mode<synchronous>, transform_indices = @transform_11, window_bounds = array<i64: 1, 128>}, {pipeline_mode = #tpu.pipeline_mode<synchronous>, transform_indices = @transform_12, window_bounds = array<i64: 128, 128>}, {pipeline_mode = #tpu.pipeline_mode<synchronous>, transform_indices = @transform_13, window_bounds = array<i64: 9, 128, 128>}, {pipeline_mode = #tpu.pipeline_mode<synchronous>, transform_indices = @transform_14, window_bounds = array<i64: 1, 128>}, {pipeline_mode = #tpu.pipeline_mode<synchronous>, transform_indices = @transform_15, window_bounds = array<i64: 128, 128>}, {pipeline_mode = #tpu.pipeline_mode<synchronous>, transform_indices = @transform_16, window_bounds = array<i64: 1, 128>}, {transform_indices = @transform_17, window_bounds = array<i64: 1, 288, 128>}]} {
    %c0 = arith.constant 0 : index
    %c0_0 = arith.constant 0 : index
    %0 = vector.load %arg3[%c0, %c0_0] : memref<288x1xf32, #tpu.memory_space<vmem>>, vector<288x1xf32>
    %c0_1 = arith.constant 0 : index
    %c0_2 = arith.constant 0 : index
    %c0_3 = arith.constant 0 : index
    %1 = vector.load %arg1[%c0_1, %c0_2, %c0_3] : memref<1x288x128xf32, #tpu.memory_space<vmem>>, vector<1x288x128xf32>
    %2 = vector.shape_cast %1 : vector<1x288x128xf32> to vector<288x128xf32>
    %c0_4 = arith.constant 0 : index
    %c0_5 = arith.constant 0 : index
    %3 = vector.load %arg4[%c0_4, %c0_5] : memref<1x128xf32, #tpu.memory_space<vmem>>, vector<1x128xf32>
    %c0_6 = arith.constant 0 : index
    %c0_7 = arith.constant 0 : index
    %4 = vector.load %arg5[%c0_6, %c0_7] : memref<1x128xf32, #tpu.memory_space<vmem>>, vector<1x128xf32>
    %c0_8 = arith.constant 0 : index
    %c0_9 = arith.constant 0 : index
    %5 = vector.load %arg6[%c0_8, %c0_9] : memref<128x128xf32, #tpu.memory_space<vmem>>, vector<128x128xf32>
    %6 = vector.broadcast %0 : vector<288x1xf32> to vector<288x128xf32>
    %7 = arith.mulf %2, %6 : vector<288x128xf32>
    %cst = arith.constant dense<0.000000e+00> : vector<128xf32>
    %8 = vector.multi_reduction <add>, %7, %cst [0] : vector<288x128xf32> to vector<128xf32>
    %9 = vector.shape_cast %8 : vector<128xf32> to vector<1x128xf32>
    %cst_10 = arith.constant dense<0.000000e+00> : vector<1x128xf32>
    %10 = tpu.matmul %9, %5, %cst_10 {dimension_numbers = #tpu.dot_dimension_numbers<[1], [0], [0], [1], [0, 0, 1, 1], [], []>} : vector<1x128xf32>, vector<128x128xf32>, vector<1x128xf32> -> vector<1x128xf32>
    %11 = vector.broadcast %10 : vector<1x128xf32> to vector<288x128xf32>
    %12 = arith.subf %2, %11 : vector<288x128xf32>
    %13 = vector.broadcast %0 : vector<288x1xf32> to vector<288x128xf32>
    %14 = arith.mulf %12, %13 : vector<288x128xf32>
    %15 = arith.mulf %14, %14 : vector<288x128xf32>
    %cst_11 = arith.constant dense<0.000000e+00> : vector<128xf32>
    %16 = vector.multi_reduction <add>, %15, %cst_11 [0] : vector<288x128xf32> to vector<128xf32>
    %17 = vector.shape_cast %16 : vector<128xf32> to vector<1x128xf32>
    %cst_12 = arith.constant dense<0.000000e+00> : vector<1x128xf32>
    %18 = tpu.matmul %17, %5, %cst_12 {dimension_numbers = #tpu.dot_dimension_numbers<[1], [0], [0], [1], [0, 0, 1, 1], [], []>} : vector<1x128xf32>, vector<128x128xf32>, vector<1x128xf32> -> vector<1x128xf32>
    %cst_13 = arith.constant 0.000000e+00 : f32
    %19 = vector.broadcast %cst_13 : f32 to vector<1x128xf32>
    %20 = arith.maximumf %18, %19 : vector<1x128xf32>
    %cst_14 = arith.constant 9.99999974E-6 : f32
    %21 = vector.broadcast %cst_14 : f32 to vector<1x128xf32>
    %22 = arith.addf %20, %21 : vector<1x128xf32>
    %23 = math.rsqrt %22 : vector<1x128xf32>
    %24 = vector.broadcast %23 : vector<1x128xf32> to vector<288x128xf32>
    %25 = arith.mulf %14, %24 : vector<288x128xf32>
    %26 = vector.broadcast %3 : vector<1x128xf32> to vector<288x128xf32>
    %27 = arith.mulf %25, %26 : vector<288x128xf32>
    %28 = vector.broadcast %4 : vector<1x128xf32> to vector<288x128xf32>
    %29 = arith.addf %27, %28 : vector<288x128xf32>
    %cst_15 = arith.constant 0.000000e+00 : f32
    %30 = vector.broadcast %cst_15 : f32 to vector<288x128xf32>
    %31 = arith.subf %30, %29 : vector<288x128xf32>
    %32 = math.exp %31 : vector<288x128xf32>
    %cst_16 = arith.constant 1.000000e+00 : f32
    %33 = vector.broadcast %cst_16 : f32 to vector<288x128xf32>
    %34 = arith.addf %33, %32 : vector<288x128xf32>
    %35 = tpu.reciprocal %34 {approx = true} : vector<288x128xf32> -> vector<288x128xf32>
    %36 = arith.mulf %29, %35 : vector<288x128xf32>
    %37 = vector.broadcast %0 : vector<288x1xf32> to vector<288x128xf32>
    %38 = arith.mulf %36, %37 : vector<288x128xf32>
    %cst_17 = arith.constant 0.000000e+00 : bf16
    %39 = vector.broadcast %cst_17 : bf16 to vector<24x128xbf16>
    %c0_18 = arith.constant 0 : index
    %c0_19 = arith.constant 0 : index
    %40 = vector.load %arg19[%c0_18, %c0_19] : memref<336x128xbf16, #tpu.memory_space<vmem>>, vector<24x128xbf16>
    tpu.vector_store %arg19[%c0_18, %c0_19], %39 {strides = array<i32>} : memref<336x128xbf16, #tpu.memory_space<vmem>>, vector<24x128xbf16>,
    %cst_20 = arith.constant 0.000000e+00 : bf16
    %41 = vector.broadcast %cst_20 : bf16 to vector<24x128xbf16>
    %c312 = arith.constant 312 : index
    %c0_21 = arith.constant 0 : index
    %42 = vector.load %arg19[%c312, %c0_21] : memref<336x128xbf16, #tpu.memory_space<vmem>>, vector<24x128xbf16>
    tpu.vector_store %arg19[%c312, %c0_21], %41 {strides = array<i32>} : memref<336x128xbf16, #tpu.memory_space<vmem>>, vector<24x128xbf16>,
    %43 = arith.truncf %38 : vector<288x128xf32> to vector<288x128xbf16>
    %c24 = arith.constant 24 : index
    %c0_22 = arith.constant 0 : index
    %44 = vector.load %arg19[%c24, %c0_22] : memref<336x128xbf16, #tpu.memory_space<vmem>>, vector<288x128xbf16>
    tpu.vector_store %arg19[%c24, %c0_22], %43 {strides = array<i32>} : memref<336x128xbf16, #tpu.memory_space<vmem>>, vector<288x128xbf16>,
    %c5 = arith.constant 5 : index
    %c0_23 = arith.constant 0 : index
    %45 = vector.load %arg19[%c5, %c0_23] : memref<336x128xbf16, #tpu.memory_space<vmem>>, vector<288x128xbf16>
    %c0_24 = arith.constant 0 : index
    %c0_25 = arith.constant 0 : index
    %c0_26 = arith.constant 0 : index
    %46 = vector.load %arg7[%c0_24, %c0_25, %c0_26] : memref<9x128x128xbf16, #tpu.memory_space<vmem>>, vector<1x128x128xbf16>
    %47 = vector.shape_cast %46 : vector<1x128x128xbf16> to vector<128x128xbf16>
    %cst_27 = arith.constant dense<0.000000e+00> : vector<288x128xf32>
    %48 = tpu.matmul %45, %47, %cst_27 {dimension_numbers = #tpu.dot_dimension_numbers<[1], [0], [0], [1], [0, 0, 1, 1], [], []>} : vector<288x128xbf16>, vector<128x128xbf16>, vector<288x128xf32> -> vector<288x128xf32>
    %c0_28 = arith.constant 0 : index
    %c0_29 = arith.constant 0 : index
    %49 = vector.load %arg21[%c0_28, %c0_29] : memref<288x128xf32, #tpu.memory_space<vmem>>, vector<288x128xf32>
    tpu.vector_store %arg21[%c0_28, %c0_29], %48 {strides = array<i32>} : memref<288x128xf32, #tpu.memory_space<vmem>>, vector<288x128xf32>,
    %c6 = arith.constant 6 : index
    %c0_30 = arith.constant 0 : index
    %50 = vector.load %arg19[%c6, %c0_30] : memref<336x128xbf16, #tpu.memory_space<vmem>>, vector<288x128xbf16>
    %c1 = arith.constant 1 : index
    %c0_31 = arith.constant 0 : index
    %c0_32 = arith.constant 0 : index
    %51 = vector.load %arg7[%c1, %c0_31, %c0_32] : memref<9x128x128xbf16, #tpu.memory_space<vmem>>, vector<1x128x128xbf16>
    %52 = vector.shape_cast %51 : vector<1x128x128xbf16> to vector<128x128xbf16>
    %cst_33 = arith.constant dense<0.000000e+00> : vector<288x128xf32>
    %53 = tpu.matmul %50, %52, %cst_33 {dimension_numbers = #tpu.dot_dimension_numbers<[1], [0], [0], [1], [0, 0, 1, 1], [], []>} : vector<288x128xbf16>, vector<128x128xbf16>, vector<288x128xf32> -> vector<288x128xf32>
    %c0_34 = arith.constant 0 : index
    %c0_35 = arith.constant 0 : index
    %54 = vector.load %arg21[%c0_34, %c0_35] : memref<288x128xf32, #tpu.memory_space<vmem>>, vector<288x128xf32>
    %55 = arith.addf %54, %53 : vector<288x128xf32>
    %c0_36 = arith.constant 0 : index
    %c0_37 = arith.constant 0 : index
    %56 = vector.load %arg21[%c0_36, %c0_37] : memref<288x128xf32, #tpu.memory_space<vmem>>, vector<288x128xf32>
    tpu.vector_store %arg21[%c0_36, %c0_37], %55 {strides = array<i32>} : memref<288x128xf32, #tpu.memory_space<vmem>>, vector<288x128xf32>,
    %c7 = arith.constant 7 : index
    %c0_38 = arith.constant 0 : index
    %57 = vector.load %arg19[%c7, %c0_38] : memref<336x128xbf16, #tpu.memory_space<vmem>>, vector<288x128xbf16>
    %c2 = arith.constant 2 : index
    %c0_39 = arith.constant 0 : index
    %c0_40 = arith.constant 0 : index
    %58 = vector.load %arg7[%c2, %c0_39, %c0_40] : memref<9x128x128xbf16, #tpu.memory_space<vmem>>, vector<1x128x128xbf16>
    %59 = vector.shape_cast %58 : vector<1x128x128xbf16> to vector<128x128xbf16>
    %cst_41 = arith.constant dense<0.000000e+00> : vector<288x128xf32>
    %60 = tpu.matmul %57, %59, %cst_41 {dimension_numbers = #tpu.dot_dimension_numbers<[1], [0], [0], [1], [0, 0, 1, 1], [], []>} : vector<288x128xbf16>, vector<128x128xbf16>, vector<288x128xf32> -> vector<288x128xf32>
    %c0_42 = arith.constant 0 : index
    %c0_43 = arith.constant 0 : index
    %61 = vector.load %arg21[%c0_42, %c0_43] : memref<288x128xf32, #tpu.memory_space<vmem>>, vector<288x128xf32>
    %62 = arith.addf %61, %60 : vector<288x128xf32>
    %c0_44 = arith.constant 0 : index
    %c0_45 = arith.constant 0 : index
    %63 = vector.load %arg21[%c0_44, %c0_45] : memref<288x128xf32, #tpu.memory_space<vmem>>, vector<288x128xf32>
    tpu.vector_store %arg21[%c0_44, %c0_45], %62 {strides = array<i32>} : memref<288x128xf32, #tpu.memory_space<vmem>>, vector<288x128xf32>,
    %c23 = arith.constant 23 : index
    %c0_46 = arith.constant 0 : index
    %64 = vector.load %arg19[%c23, %c0_46] : memref<336x128xbf16, #tpu.memory_space<vmem>>, vector<288x128xbf16>
    %c3 = arith.constant 3 : index
    %c0_47 = arith.constant 0 : index
    %c0_48 = arith.constant 0 : index
    %65 = vector.load %arg7[%c3, %c0_47, %c0_48] : memref<9x128x128xbf16, #tpu.memory_space<vmem>>, vector<1x128x128xbf16>
    %66 = vector.shape_cast %65 : vector<1x128x128xbf16> to vector<128x128xbf16>
    %cst_49 = arith.constant dense<0.000000e+00> : vector<288x128xf32>
    %67 = tpu.matmul %64, %66, %cst_49 {dimension_numbers = #tpu.dot_dimension_numbers<[1], [0], [0], [1], [0, 0, 1, 1], [], []>} : vector<288x128xbf16>, vector<128x128xbf16>, vector<288x128xf32> -> vector<288x128xf32>
    %c0_50 = arith.constant 0 : index
    %c0_51 = arith.constant 0 : index
    %68 = vector.load %arg21[%c0_50, %c0_51] : memref<288x128xf32, #tpu.memory_space<vmem>>, vector<288x128xf32>
    %69 = arith.addf %68, %67 : vector<288x128xf32>
    %c0_52 = arith.constant 0 : index
    %c0_53 = arith.constant 0 : index
    %70 = vector.load %arg21[%c0_52, %c0_53] : memref<288x128xf32, #tpu.memory_space<vmem>>, vector<288x128xf32>
    tpu.vector_store %arg21[%c0_52, %c0_53], %69 {strides = array<i32>} : memref<288x128xf32, #tpu.memory_space<vmem>>, vector<288x128xf32>,
    %c24_54 = arith.constant 24 : index
    %c0_55 = arith.constant 0 : index
    %71 = vector.load %arg19[%c24_54, %c0_55] : memref<336x128xbf16, #tpu.memory_space<vmem>>, vector<288x128xbf16>
    %c4 = arith.constant 4 : index
    %c0_56 = arith.constant 0 : index
    %c0_57 = arith.constant 0 : index
    %72 = vector.load %arg7[%c4, %c0_56, %c0_57] : memref<9x128x128xbf16, #tpu.memory_space<vmem>>, vector<1x128x128xbf16>
    %73 = vector.shape_cast %72 : vector<1x128x128xbf16> to vector<128x128xbf16>
    %cst_58 = arith.constant dense<0.000000e+00> : vector<288x128xf32>
    %74 = tpu.matmul %71, %73, %cst_58 {dimension_numbers = #tpu.dot_dimension_numbers<[1], [0], [0], [1], [0, 0, 1, 1], [], []>} : vector<288x128xbf16>, vector<128x128xbf16>, vector<288x128xf32> -> vector<288x128xf32>
    %c0_59 = arith.constant 0 : index
    %c0_60 = arith.constant 0 : index
    %75 = vector.load %arg21[%c0_59, %c0_60] : memref<288x128xf32, #tpu.memory_space<vmem>>, vector<288x128xf32>
    %76 = arith.addf %75, %74 : vector<288x128xf32>
    %c0_61 = arith.constant 0 : index
    %c0_62 = arith.constant 0 : index
    %77 = vector.load %arg21[%c0_61, %c0_62] : memref<288x128xf32, #tpu.memory_space<vmem>>, vector<288x128xf32>
    tpu.vector_store %arg21[%c0_61, %c0_62], %76 {strides = array<i32>} : memref<288x128xf32, #tpu.memory_space<vmem>>, vector<288x128xf32>,
    %c25 = arith.constant 25 : index
    %c0_63 = arith.constant 0 : index
    %78 = vector.load %arg19[%c25, %c0_63] : memref<336x128xbf16, #tpu.memory_space<vmem>>, vector<288x128xbf16>
    %c5_64 = arith.constant 5 : index
    %c0_65 = arith.constant 0 : index
    %c0_66 = arith.constant 0 : index
    %79 = vector.load %arg7[%c5_64, %c0_65, %c0_66] : memref<9x128x128xbf16, #tpu.memory_space<vmem>>, vector<1x128x128xbf16>
    %80 = vector.shape_cast %79 : vector<1x128x128xbf16> to vector<128x128xbf16>
    %cst_67 = arith.constant dense<0.000000e+00> : vector<288x128xf32>
    %81 = tpu.matmul %78, %80, %cst_67 {dimension_numbers = #tpu.dot_dimension_numbers<[1], [0], [0], [1], [0, 0, 1, 1], [], []>} : vector<288x128xbf16>, vector<128x128xbf16>, vector<288x128xf32> -> vector<288x128xf32>
    %c0_68 = arith.constant 0 : index
    %c0_69 = arith.constant 0 : index
    %82 = vector.load %arg21[%c0_68, %c0_69] : memref<288x128xf32, #tpu.memory_space<vmem>>, vector<288x128xf32>
    %83 = arith.addf %82, %81 : vector<288x128xf32>
    %c0_70 = arith.constant 0 : index
    %c0_71 = arith.constant 0 : index
    %84 = vector.load %arg21[%c0_70, %c0_71] : memref<288x128xf32, #tpu.memory_space<vmem>>, vector<288x128xf32>
    tpu.vector_store %arg21[%c0_70, %c0_71], %83 {strides = array<i32>} : memref<288x128xf32, #tpu.memory_space<vmem>>, vector<288x128xf32>,
    %c41 = arith.constant 41 : index
    %c0_72 = arith.constant 0 : index
    %85 = vector.load %arg19[%c41, %c0_72] : memref<336x128xbf16, #tpu.memory_space<vmem>>, vector<288x128xbf16>
    %c6_73 = arith.constant 6 : index
    %c0_74 = arith.constant 0 : index
    %c0_75 = arith.constant 0 : index
    %86 = vector.load %arg7[%c6_73, %c0_74, %c0_75] : memref<9x128x128xbf16, #tpu.memory_space<vmem>>, vector<1x128x128xbf16>
    %87 = vector.shape_cast %86 : vector<1x128x128xbf16> to vector<128x128xbf16>
    %cst_76 = arith.constant dense<0.000000e+00> : vector<288x128xf32>
    %88 = tpu.matmul %85, %87, %cst_76 {dimension_numbers = #tpu.dot_dimension_numbers<[1], [0], [0], [1], [0, 0, 1, 1], [], []>} : vector<288x128xbf16>, vector<128x128xbf16>, vector<288x128xf32> -> vector<288x128xf32>
    %c0_77 = arith.constant 0 : index
    %c0_78 = arith.constant 0 : index
    %89 = vector.load %arg21[%c0_77, %c0_78] : memref<288x128xf32, #tpu.memory_space<vmem>>, vector<288x128xf32>
    %90 = arith.addf %89, %88 : vector<288x128xf32>
    %c0_79 = arith.constant 0 : index
    %c0_80 = arith.constant 0 : index
    %91 = vector.load %arg21[%c0_79, %c0_80] : memref<288x128xf32, #tpu.memory_space<vmem>>, vector<288x128xf32>
    tpu.vector_store %arg21[%c0_79, %c0_80], %90 {strides = array<i32>} : memref<288x128xf32, #tpu.memory_space<vmem>>, vector<288x128xf32>,
    %c42 = arith.constant 42 : index
    %c0_81 = arith.constant 0 : index
    %92 = vector.load %arg19[%c42, %c0_81] : memref<336x128xbf16, #tpu.memory_space<vmem>>, vector<288x128xbf16>
    %c7_82 = arith.constant 7 : index
    %c0_83 = arith.constant 0 : index
    %c0_84 = arith.constant 0 : index
    %93 = vector.load %arg7[%c7_82, %c0_83, %c0_84] : memref<9x128x128xbf16, #tpu.memory_space<vmem>>, vector<1x128x128xbf16>
    %94 = vector.shape_cast %93 : vector<1x128x128xbf16> to vector<128x128xbf16>
    %cst_85 = arith.constant dense<0.000000e+00> : vector<288x128xf32>
    %95 = tpu.matmul %92, %94, %cst_85 {dimension_numbers = #tpu.dot_dimension_numbers<[1], [0], [0], [1], [0, 0, 1, 1], [], []>} : vector<288x128xbf16>, vector<128x128xbf16>, vector<288x128xf32> -> vector<288x128xf32>
    %c0_86 = arith.constant 0 : index
    %c0_87 = arith.constant 0 : index
    %96 = vector.load %arg21[%c0_86, %c0_87] : memref<288x128xf32, #tpu.memory_space<vmem>>, vector<288x128xf32>
    %97 = arith.addf %96, %95 : vector<288x128xf32>
    %c0_88 = arith.constant 0 : index
    %c0_89 = arith.constant 0 : index
    %98 = vector.load %arg21[%c0_88, %c0_89] : memref<288x128xf32, #tpu.memory_space<vmem>>, vector<288x128xf32>
    tpu.vector_store %arg21[%c0_88, %c0_89], %97 {strides = array<i32>} : memref<288x128xf32, #tpu.memory_space<vmem>>, vector<288x128xf32>,
    %c43 = arith.constant 43 : index
    %c0_90 = arith.constant 0 : index
    %99 = vector.load %arg19[%c43, %c0_90] : memref<336x128xbf16, #tpu.memory_space<vmem>>, vector<288x128xbf16>
    %c8 = arith.constant 8 : index
    %c0_91 = arith.constant 0 : index
    %c0_92 = arith.constant 0 : index
    %100 = vector.load %arg7[%c8, %c0_91, %c0_92] : memref<9x128x128xbf16, #tpu.memory_space<vmem>>, vector<1x128x128xbf16>
    %101 = vector.shape_cast %100 : vector<1x128x128xbf16> to vector<128x128xbf16>
    %cst_93 = arith.constant dense<0.000000e+00> : vector<288x128xf32>
    %102 = tpu.matmul %99, %101, %cst_93 {dimension_numbers = #tpu.dot_dimension_numbers<[1], [0], [0], [1], [0, 0, 1, 1], [], []>} : vector<288x128xbf16>, vector<128x128xbf16>, vector<288x128xf32> -> vector<288x128xf32>
    %c0_94 = arith.constant 0 : index
    %c0_95 = arith.constant 0 : index
    %103 = vector.load %arg21[%c0_94, %c0_95] : memref<288x128xf32, #tpu.memory_space<vmem>>, vector<288x128xf32>
    %104 = arith.addf %103, %102 : vector<288x128xf32>
    %c0_96 = arith.constant 0 : index
    %c0_97 = arith.constant 0 : index
    %105 = vector.load %arg21[%c0_96, %c0_97] : memref<288x128xf32, #tpu.memory_space<vmem>>, vector<288x128xf32>
    tpu.vector_store %arg21[%c0_96, %c0_97], %104 {strides = array<i32>} : memref<288x128xf32, #tpu.memory_space<vmem>>, vector<288x128xf32>,
    %c0_98 = arith.constant 0 : index
    %c0_99 = arith.constant 0 : index
    %106 = vector.load %arg21[%c0_98, %c0_99] : memref<288x128xf32, #tpu.memory_space<vmem>>, vector<288x128xf32>
    %c0_100 = arith.constant 0 : index
    %c0_101 = arith.constant 0 : index
    %107 = vector.load %arg8[%c0_100, %c0_101] : memref<1x128xf32, #tpu.memory_space<vmem>>, vector<1x128xf32>
    %108 = vector.broadcast %107 : vector<1x128xf32> to vector<288x128xf32>
    %109 = arith.addf %106, %108 : vector<288x128xf32>
    %c0_102 = arith.constant 0 : index
    %c0_103 = arith.constant 0 : index
    %c0_104 = arith.constant 0 : index
    %110 = vector.load %arg2[%c0_102, %c0_103, %c0_104] : memref<1x1x128xf32, #tpu.memory_space<vmem>>, vector<1x1x128xf32>
    %111 = vector.shape_cast %110 : vector<1x1x128xf32> to vector<1x128xf32>
    %cst_105 = arith.constant 0.000000e+00 : f32
    %112 = vector.broadcast %cst_105 : f32 to vector<1x128xf32>
    %113 = arith.subf %112, %111 : vector<1x128xf32>
    %114 = math.exp %113 : vector<1x128xf32>
    %cst_106 = arith.constant 1.000000e+00 : f32
    %115 = vector.broadcast %cst_106 : f32 to vector<1x128xf32>
    %116 = arith.addf %115, %114 : vector<1x128xf32>
    %117 = tpu.reciprocal %116 {approx = true} : vector<1x128xf32> -> vector<1x128xf32>
    %118 = arith.mulf %111, %117 : vector<1x128xf32>
    %c0_107 = arith.constant 0 : index
    %c0_108 = arith.constant 0 : index
    %119 = vector.load %arg9[%c0_107, %c0_108] : memref<128x128xf32, #tpu.memory_space<vmem>>, vector<128x128xf32>
    %cst_109 = arith.constant dense<0.000000e+00> : vector<1x128xf32>
    %120 = tpu.matmul %118, %119, %cst_109 {dimension_numbers = #tpu.dot_dimension_numbers<[1], [0], [0], [1], [0, 0, 1, 1], [], []>} : vector<1x128xf32>, vector<128x128xf32>, vector<1x128xf32> -> vector<1x128xf32>
    %c0_110 = arith.constant 0 : index
    %c0_111 = arith.constant 0 : index
    %121 = vector.load %arg10[%c0_110, %c0_111] : memref<1x128xf32, #tpu.memory_space<vmem>>, vector<1x128xf32>
    %122 = arith.addf %120, %121 : vector<1x128xf32>
    %123 = vector.broadcast %122 : vector<1x128xf32> to vector<288x128xf32>
    %124 = arith.addf %109, %123 : vector<288x128xf32>
    %c0_112 = arith.constant 0 : index
    %c0_113 = arith.constant 0 : index
    %125 = vector.load %arg11[%c0_112, %c0_113] : memref<1x128xf32, #tpu.memory_space<vmem>>, vector<1x128xf32>
    %c0_114 = arith.constant 0 : index
    %c0_115 = arith.constant 0 : index
    %126 = vector.load %arg12[%c0_114, %c0_115] : memref<1x128xf32, #tpu.memory_space<vmem>>, vector<1x128xf32>
    %c0_116 = arith.constant 0 : index
    %c0_117 = arith.constant 0 : index
    %127 = vector.load %arg13[%c0_116, %c0_117] : memref<128x128xf32, #tpu.memory_space<vmem>>, vector<128x128xf32>
    %128 = vector.broadcast %0 : vector<288x1xf32> to vector<288x128xf32>
    %129 = arith.mulf %124, %128 : vector<288x128xf32>
    %cst_118 = arith.constant dense<0.000000e+00> : vector<128xf32>
    %130 = vector.multi_reduction <add>, %129, %cst_118 [0] : vector<288x128xf32> to vector<128xf32>
    %131 = vector.shape_cast %130 : vector<128xf32> to vector<1x128xf32>
    %cst_119 = arith.constant dense<0.000000e+00> : vector<1x128xf32>
    %132 = tpu.matmul %131, %127, %cst_119 {dimension_numbers = #tpu.dot_dimension_numbers<[1], [0], [0], [1], [0, 0, 1, 1], [], []>} : vector<1x128xf32>, vector<128x128xf32>, vector<1x128xf32> -> vector<1x128xf32>
    %133 = vector.broadcast %132 : vector<1x128xf32> to vector<288x128xf32>
    %134 = arith.subf %124, %133 : vector<288x128xf32>
    %135 = vector.broadcast %0 : vector<288x1xf32> to vector<288x128xf32>
    %136 = arith.mulf %134, %135 : vector<288x128xf32>
    %137 = arith.mulf %136, %136 : vector<288x128xf32>
    %cst_120 = arith.constant dense<0.000000e+00> : vector<128xf32>
    %138 = vector.multi_reduction <add>, %137, %cst_120 [0] : vector<288x128xf32> to vector<128xf32>
    %139 = vector.shape_cast %138 : vector<128xf32> to vector<1x128xf32>
    %cst_121 = arith.constant dense<0.000000e+00> : vector<1x128xf32>
    %140 = tpu.matmul %139, %127, %cst_121 {dimension_numbers = #tpu.dot_dimension_numbers<[1], [0], [0], [1], [0, 0, 1, 1], [], []>} : vector<1x128xf32>, vector<128x128xf32>, vector<1x128xf32> -> vector<1x128xf32>
    %cst_122 = arith.constant 0.000000e+00 : f32
    %141 = vector.broadcast %cst_122 : f32 to vector<1x128xf32>
    %142 = arith.maximumf %140, %141 : vector<1x128xf32>
    %cst_123 = arith.constant 9.99999974E-6 : f32
    %143 = vector.broadcast %cst_123 : f32 to vector<1x128xf32>
    %144 = arith.addf %142, %143 : vector<1x128xf32>
    %145 = math.rsqrt %144 : vector<1x128xf32>
    %146 = vector.broadcast %145 : vector<1x128xf32> to vector<288x128xf32>
    %147 = arith.mulf %136, %146 : vector<288x128xf32>
    %148 = vector.broadcast %125 : vector<1x128xf32> to vector<288x128xf32>
    %149 = arith.mulf %147, %148 : vector<288x128xf32>
    %150 = vector.broadcast %126 : vector<1x128xf32> to vector<288x128xf32>
    %151 = arith.addf %149, %150 : vector<288x128xf32>
    %cst_124 = arith.constant 0.000000e+00 : f32
    %152 = vector.broadcast %cst_124 : f32 to vector<288x128xf32>
    %153 = arith.subf %152, %151 : vector<288x128xf32>
    %154 = math.exp %153 : vector<288x128xf32>
    %cst_125 = arith.constant 1.000000e+00 : f32
    %155 = vector.broadcast %cst_125 : f32 to vector<288x128xf32>
    %156 = arith.addf %155, %154 : vector<288x128xf32>
    %157 = tpu.reciprocal %156 {approx = true} : vector<288x128xf32> -> vector<288x128xf32>
    %158 = arith.mulf %151, %157 : vector<288x128xf32>
    %159 = vector.broadcast %0 : vector<288x1xf32> to vector<288x128xf32>
    %160 = arith.mulf %158, %159 : vector<288x128xf32>
    %cst_126 = arith.constant 0.000000e+00 : bf16
    %161 = vector.broadcast %cst_126 : bf16 to vector<24x128xbf16>
    %c0_127 = arith.constant 0 : index
    %c0_128 = arith.constant 0 : index
    %162 = vector.load %arg20[%c0_127, %c0_128] : memref<336x128xbf16, #tpu.memory_space<vmem>>, vector<24x128xbf16>
    tpu.vector_store %arg20[%c0_127, %c0_128], %161 {strides = array<i32>} : memref<336x128xbf16, #tpu.memory_space<vmem>>, vector<24x128xbf16>,
    %cst_129 = arith.constant 0.000000e+00 : bf16
    %163 = vector.broadcast %cst_129 : bf16 to vector<24x128xbf16>
    %c312_130 = arith.constant 312 : index
    %c0_131 = arith.constant 0 : index
    %164 = vector.load %arg20[%c312_130, %c0_131] : memref<336x128xbf16, #tpu.memory_space<vmem>>, vector<24x128xbf16>
    tpu.vector_store %arg20[%c312_130, %c0_131], %163 {strides = array<i32>} : memref<336x128xbf16, #tpu.memory_space<vmem>>, vector<24x128xbf16>,
    %165 = arith.truncf %160 : vector<288x128xf32> to vector<288x128xbf16>
    %c24_132 = arith.constant 24 : index
    %c0_133 = arith.constant 0 : index
    %166 = vector.load %arg20[%c24_132, %c0_133] : memref<336x128xbf16, #tpu.memory_space<vmem>>, vector<288x128xbf16>
    tpu.vector_store %arg20[%c24_132, %c0_133], %165 {strides = array<i32>} : memref<336x128xbf16, #tpu.memory_space<vmem>>, vector<288x128xbf16>,
    %c5_134 = arith.constant 5 : index
    %c0_135 = arith.constant 0 : index
    %167 = vector.load %arg20[%c5_134, %c0_135] : memref<336x128xbf16, #tpu.memory_space<vmem>>, vector<288x128xbf16>
    %c0_136 = arith.constant 0 : index
    %c0_137 = arith.constant 0 : index
    %c0_138 = arith.constant 0 : index
    %168 = vector.load %arg14[%c0_136, %c0_137, %c0_138] : memref<9x128x128xbf16, #tpu.memory_space<vmem>>, vector<1x128x128xbf16>
    %169 = vector.shape_cast %168 : vector<1x128x128xbf16> to vector<128x128xbf16>
    %cst_139 = arith.constant dense<0.000000e+00> : vector<288x128xf32>
    %170 = tpu.matmul %167, %169, %cst_139 {dimension_numbers = #tpu.dot_dimension_numbers<[1], [0], [0], [1], [0, 0, 1, 1], [], []>} : vector<288x128xbf16>, vector<128x128xbf16>, vector<288x128xf32> -> vector<288x128xf32>
    %c0_140 = arith.constant 0 : index
    %c0_141 = arith.constant 0 : index
    %171 = vector.load %arg22[%c0_140, %c0_141] : memref<288x128xf32, #tpu.memory_space<vmem>>, vector<288x128xf32>
    tpu.vector_store %arg22[%c0_140, %c0_141], %170 {strides = array<i32>} : memref<288x128xf32, #tpu.memory_space<vmem>>, vector<288x128xf32>,
    %c6_142 = arith.constant 6 : index
    %c0_143 = arith.constant 0 : index
    %172 = vector.load %arg20[%c6_142, %c0_143] : memref<336x128xbf16, #tpu.memory_space<vmem>>, vector<288x128xbf16>
    %c1_144 = arith.constant 1 : index
    %c0_145 = arith.constant 0 : index
    %c0_146 = arith.constant 0 : index
    %173 = vector.load %arg14[%c1_144, %c0_145, %c0_146] : memref<9x128x128xbf16, #tpu.memory_space<vmem>>, vector<1x128x128xbf16>
    %174 = vector.shape_cast %173 : vector<1x128x128xbf16> to vector<128x128xbf16>
    %cst_147 = arith.constant dense<0.000000e+00> : vector<288x128xf32>
    %175 = tpu.matmul %172, %174, %cst_147 {dimension_numbers = #tpu.dot_dimension_numbers<[1], [0], [0], [1], [0, 0, 1, 1], [], []>} : vector<288x128xbf16>, vector<128x128xbf16>, vector<288x128xf32> -> vector<288x128xf32>
    %c0_148 = arith.constant 0 : index
    %c0_149 = arith.constant 0 : index
    %176 = vector.load %arg22[%c0_148, %c0_149] : memref<288x128xf32, #tpu.memory_space<vmem>>, vector<288x128xf32>
    %177 = arith.addf %176, %175 : vector<288x128xf32>
    %c0_150 = arith.constant 0 : index
    %c0_151 = arith.constant 0 : index
    %178 = vector.load %arg22[%c0_150, %c0_151] : memref<288x128xf32, #tpu.memory_space<vmem>>, vector<288x128xf32>
    tpu.vector_store %arg22[%c0_150, %c0_151], %177 {strides = array<i32>} : memref<288x128xf32, #tpu.memory_space<vmem>>, vector<288x128xf32>,
    %c7_152 = arith.constant 7 : index
    %c0_153 = arith.constant 0 : index
    %179 = vector.load %arg20[%c7_152, %c0_153] : memref<336x128xbf16, #tpu.memory_space<vmem>>, vector<288x128xbf16>
    %c2_154 = arith.constant 2 : index
    %c0_155 = arith.constant 0 : index
    %c0_156 = arith.constant 0 : index
    %180 = vector.load %arg14[%c2_154, %c0_155, %c0_156] : memref<9x128x128xbf16, #tpu.memory_space<vmem>>, vector<1x128x128xbf16>
    %181 = vector.shape_cast %180 : vector<1x128x128xbf16> to vector<128x128xbf16>
    %cst_157 = arith.constant dense<0.000000e+00> : vector<288x128xf32>
    %182 = tpu.matmul %179, %181, %cst_157 {dimension_numbers = #tpu.dot_dimension_numbers<[1], [0], [0], [1], [0, 0, 1, 1], [], []>} : vector<288x128xbf16>, vector<128x128xbf16>, vector<288x128xf32> -> vector<288x128xf32>
    %c0_158 = arith.constant 0 : index
    %c0_159 = arith.constant 0 : index
    %183 = vector.load %arg22[%c0_158, %c0_159] : memref<288x128xf32, #tpu.memory_space<vmem>>, vector<288x128xf32>
    %184 = arith.addf %183, %182 : vector<288x128xf32>
    %c0_160 = arith.constant 0 : index
    %c0_161 = arith.constant 0 : index
    %185 = vector.load %arg22[%c0_160, %c0_161] : memref<288x128xf32, #tpu.memory_space<vmem>>, vector<288x128xf32>
    tpu.vector_store %arg22[%c0_160, %c0_161], %184 {strides = array<i32>} : memref<288x128xf32, #tpu.memory_space<vmem>>, vector<288x128xf32>,
    %c23_162 = arith.constant 23 : index
    %c0_163 = arith.constant 0 : index
    %186 = vector.load %arg20[%c23_162, %c0_163] : memref<336x128xbf16, #tpu.memory_space<vmem>>, vector<288x128xbf16>
    %c3_164 = arith.constant 3 : index
    %c0_165 = arith.constant 0 : index
    %c0_166 = arith.constant 0 : index
    %187 = vector.load %arg14[%c3_164, %c0_165, %c0_166] : memref<9x128x128xbf16, #tpu.memory_space<vmem>>, vector<1x128x128xbf16>
    %188 = vector.shape_cast %187 : vector<1x128x128xbf16> to vector<128x128xbf16>
    %cst_167 = arith.constant dense<0.000000e+00> : vector<288x128xf32>
    %189 = tpu.matmul %186, %188, %cst_167 {dimension_numbers = #tpu.dot_dimension_numbers<[1], [0], [0], [1], [0, 0, 1, 1], [], []>} : vector<288x128xbf16>, vector<128x128xbf16>, vector<288x128xf32> -> vector<288x128xf32>
    %c0_168 = arith.constant 0 : index
    %c0_169 = arith.constant 0 : index
    %190 = vector.load %arg22[%c0_168, %c0_169] : memref<288x128xf32, #tpu.memory_space<vmem>>, vector<288x128xf32>
    %191 = arith.addf %190, %189 : vector<288x128xf32>
    %c0_170 = arith.constant 0 : index
    %c0_171 = arith.constant 0 : index
    %192 = vector.load %arg22[%c0_170, %c0_171] : memref<288x128xf32, #tpu.memory_space<vmem>>, vector<288x128xf32>
    tpu.vector_store %arg22[%c0_170, %c0_171], %191 {strides = array<i32>} : memref<288x128xf32, #tpu.memory_space<vmem>>, vector<288x128xf32>,
    %c24_172 = arith.constant 24 : index
    %c0_173 = arith.constant 0 : index
    %193 = vector.load %arg20[%c24_172, %c0_173] : memref<336x128xbf16, #tpu.memory_space<vmem>>, vector<288x128xbf16>
    %c4_174 = arith.constant 4 : index
    %c0_175 = arith.constant 0 : index
    %c0_176 = arith.constant 0 : index
    %194 = vector.load %arg14[%c4_174, %c0_175, %c0_176] : memref<9x128x128xbf16, #tpu.memory_space<vmem>>, vector<1x128x128xbf16>
    %195 = vector.shape_cast %194 : vector<1x128x128xbf16> to vector<128x128xbf16>
    %cst_177 = arith.constant dense<0.000000e+00> : vector<288x128xf32>
    %196 = tpu.matmul %193, %195, %cst_177 {dimension_numbers = #tpu.dot_dimension_numbers<[1], [0], [0], [1], [0, 0, 1, 1], [], []>} : vector<288x128xbf16>, vector<128x128xbf16>, vector<288x128xf32> -> vector<288x128xf32>
    %c0_178 = arith.constant 0 : index
    %c0_179 = arith.constant 0 : index
    %197 = vector.load %arg22[%c0_178, %c0_179] : memref<288x128xf32, #tpu.memory_space<vmem>>, vector<288x128xf32>
    %198 = arith.addf %197, %196 : vector<288x128xf32>
    %c0_180 = arith.constant 0 : index
    %c0_181 = arith.constant 0 : index
    %199 = vector.load %arg22[%c0_180, %c0_181] : memref<288x128xf32, #tpu.memory_space<vmem>>, vector<288x128xf32>
    tpu.vector_store %arg22[%c0_180, %c0_181], %198 {strides = array<i32>} : memref<288x128xf32, #tpu.memory_space<vmem>>, vector<288x128xf32>,
    %c25_182 = arith.constant 25 : index
    %c0_183 = arith.constant 0 : index
    %200 = vector.load %arg20[%c25_182, %c0_183] : memref<336x128xbf16, #tpu.memory_space<vmem>>, vector<288x128xbf16>
    %c5_184 = arith.constant 5 : index
    %c0_185 = arith.constant 0 : index
    %c0_186 = arith.constant 0 : index
    %201 = vector.load %arg14[%c5_184, %c0_185, %c0_186] : memref<9x128x128xbf16, #tpu.memory_space<vmem>>, vector<1x128x128xbf16>
    %202 = vector.shape_cast %201 : vector<1x128x128xbf16> to vector<128x128xbf16>
    %cst_187 = arith.constant dense<0.000000e+00> : vector<288x128xf32>
    %203 = tpu.matmul %200, %202, %cst_187 {dimension_numbers = #tpu.dot_dimension_numbers<[1], [0], [0], [1], [0, 0, 1, 1], [], []>} : vector<288x128xbf16>, vector<128x128xbf16>, vector<288x128xf32> -> vector<288x128xf32>
    %c0_188 = arith.constant 0 : index
    %c0_189 = arith.constant 0 : index
    %204 = vector.load %arg22[%c0_188, %c0_189] : memref<288x128xf32, #tpu.memory_space<vmem>>, vector<288x128xf32>
    %205 = arith.addf %204, %203 : vector<288x128xf32>
    %c0_190 = arith.constant 0 : index
    %c0_191 = arith.constant 0 : index
    %206 = vector.load %arg22[%c0_190, %c0_191] : memref<288x128xf32, #tpu.memory_space<vmem>>, vector<288x128xf32>
    tpu.vector_store %arg22[%c0_190, %c0_191], %205 {strides = array<i32>} : memref<288x128xf32, #tpu.memory_space<vmem>>, vector<288x128xf32>,
    %c41_192 = arith.constant 41 : index
    %c0_193 = arith.constant 0 : index
    %207 = vector.load %arg20[%c41_192, %c0_193] : memref<336x128xbf16, #tpu.memory_space<vmem>>, vector<288x128xbf16>
    %c6_194 = arith.constant 6 : index
    %c0_195 = arith.constant 0 : index
    %c0_196 = arith.constant 0 : index
    %208 = vector.load %arg14[%c6_194, %c0_195, %c0_196] : memref<9x128x128xbf16, #tpu.memory_space<vmem>>, vector<1x128x128xbf16>
    %209 = vector.shape_cast %208 : vector<1x128x128xbf16> to vector<128x128xbf16>
    %cst_197 = arith.constant dense<0.000000e+00> : vector<288x128xf32>
    %210 = tpu.matmul %207, %209, %cst_197 {dimension_numbers = #tpu.dot_dimension_numbers<[1], [0], [0], [1], [0, 0, 1, 1], [], []>} : vector<288x128xbf16>, vector<128x128xbf16>, vector<288x128xf32> -> vector<288x128xf32>
    %c0_198 = arith.constant 0 : index
    %c0_199 = arith.constant 0 : index
    %211 = vector.load %arg22[%c0_198, %c0_199] : memref<288x128xf32, #tpu.memory_space<vmem>>, vector<288x128xf32>
    %212 = arith.addf %211, %210 : vector<288x128xf32>
    %c0_200 = arith.constant 0 : index
    %c0_201 = arith.constant 0 : index
    %213 = vector.load %arg22[%c0_200, %c0_201] : memref<288x128xf32, #tpu.memory_space<vmem>>, vector<288x128xf32>
    tpu.vector_store %arg22[%c0_200, %c0_201], %212 {strides = array<i32>} : memref<288x128xf32, #tpu.memory_space<vmem>>, vector<288x128xf32>,
    %c42_202 = arith.constant 42 : index
    %c0_203 = arith.constant 0 : index
    %214 = vector.load %arg20[%c42_202, %c0_203] : memref<336x128xbf16, #tpu.memory_space<vmem>>, vector<288x128xbf16>
    %c7_204 = arith.constant 7 : index
    %c0_205 = arith.constant 0 : index
    %c0_206 = arith.constant 0 : index
    %215 = vector.load %arg14[%c7_204, %c0_205, %c0_206] : memref<9x128x128xbf16, #tpu.memory_space<vmem>>, vector<1x128x128xbf16>
    %216 = vector.shape_cast %215 : vector<1x128x128xbf16> to vector<128x128xbf16>
    %cst_207 = arith.constant dense<0.000000e+00> : vector<288x128xf32>
    %217 = tpu.matmul %214, %216, %cst_207 {dimension_numbers = #tpu.dot_dimension_numbers<[1], [0], [0], [1], [0, 0, 1, 1], [], []>} : vector<288x128xbf16>, vector<128x128xbf16>, vector<288x128xf32> -> vector<288x128xf32>
    %c0_208 = arith.constant 0 : index
    %c0_209 = arith.constant 0 : index
    %218 = vector.load %arg22[%c0_208, %c0_209] : memref<288x128xf32, #tpu.memory_space<vmem>>, vector<288x128xf32>
    %219 = arith.addf %218, %217 : vector<288x128xf32>
    %c0_210 = arith.constant 0 : index
    %c0_211 = arith.constant 0 : index
    %220 = vector.load %arg22[%c0_210, %c0_211] : memref<288x128xf32, #tpu.memory_space<vmem>>, vector<288x128xf32>
    tpu.vector_store %arg22[%c0_210, %c0_211], %219 {strides = array<i32>} : memref<288x128xf32, #tpu.memory_space<vmem>>, vector<288x128xf32>,
    %c43_212 = arith.constant 43 : index
    %c0_213 = arith.constant 0 : index
    %221 = vector.load %arg20[%c43_212, %c0_213] : memref<336x128xbf16, #tpu.memory_space<vmem>>, vector<288x128xbf16>
    %c8_214 = arith.constant 8 : index
    %c0_215 = arith.constant 0 : index
    %c0_216 = arith.constant 0 : index
    %222 = vector.load %arg14[%c8_214, %c0_215, %c0_216] : memref<9x128x128xbf16, #tpu.memory_space<vmem>>, vector<1x128x128xbf16>
    %223 = vector.shape_cast %222 : vector<1x128x128xbf16> to vector<128x128xbf16>
    %cst_217 = arith.constant dense<0.000000e+00> : vector<288x128xf32>
    %224 = tpu.matmul %221, %223, %cst_217 {dimension_numbers = #tpu.dot_dimension_numbers<[1], [0], [0], [1], [0, 0, 1, 1], [], []>} : vector<288x128xbf16>, vector<128x128xbf16>, vector<288x128xf32> -> vector<288x128xf32>
    %c0_218 = arith.constant 0 : index
    %c0_219 = arith.constant 0 : index
    %225 = vector.load %arg22[%c0_218, %c0_219] : memref<288x128xf32, #tpu.memory_space<vmem>>, vector<288x128xf32>
    %226 = arith.addf %225, %224 : vector<288x128xf32>
    %c0_220 = arith.constant 0 : index
    %c0_221 = arith.constant 0 : index
    %227 = vector.load %arg22[%c0_220, %c0_221] : memref<288x128xf32, #tpu.memory_space<vmem>>, vector<288x128xf32>
    tpu.vector_store %arg22[%c0_220, %c0_221], %226 {strides = array<i32>} : memref<288x128xf32, #tpu.memory_space<vmem>>, vector<288x128xf32>,
    %c0_222 = arith.constant 0 : index
    %c0_223 = arith.constant 0 : index
    %228 = vector.load %arg22[%c0_222, %c0_223] : memref<288x128xf32, #tpu.memory_space<vmem>>, vector<288x128xf32>
    %c0_224 = arith.constant 0 : index
    %c0_225 = arith.constant 0 : index
    %229 = vector.load %arg15[%c0_224, %c0_225] : memref<1x128xf32, #tpu.memory_space<vmem>>, vector<1x128xf32>
    %230 = vector.broadcast %229 : vector<1x128xf32> to vector<288x128xf32>
    %231 = arith.addf %228, %230 : vector<288x128xf32>
    %c0_226 = arith.constant 0 : index
    %c0_227 = arith.constant 0 : index
    %232 = vector.load %arg16[%c0_226, %c0_227] : memref<128x128xf32, #tpu.memory_space<vmem>>, vector<128x128xf32>
    %cst_228 = arith.constant dense<0.000000e+00> : vector<288x128xf32>
    %233 = tpu.matmul %2, %232, %cst_228 {dimension_numbers = #tpu.dot_dimension_numbers<[1], [0], [0], [1], [0, 0, 1, 1], [], []>} : vector<288x128xf32>, vector<128x128xf32>, vector<288x128xf32> -> vector<288x128xf32>
    %c0_229 = arith.constant 0 : index
    %c0_230 = arith.constant 0 : index
    %234 = vector.load %arg17[%c0_229, %c0_230] : memref<1x128xf32, #tpu.memory_space<vmem>>, vector<1x128xf32>
    %235 = vector.broadcast %234 : vector<1x128xf32> to vector<288x128xf32>
    %236 = arith.addf %233, %235 : vector<288x128xf32>
    %237 = arith.addf %231, %236 : vector<288x128xf32>
    %c0_231 = arith.constant 0 : index
    %c0_232 = arith.constant 0 : index
    %c0_233 = arith.constant 0 : index
    %238 = vector.load %arg18[%c0_231, %c0_232, %c0_233] : memref<1x288x128xf32, #tpu.memory_space<vmem>>, vector<1x288x128xf32>
    %239 = vector.shape_cast %238 : vector<1x288x128xf32> to vector<288x128xf32>
    %240 = vector.shape_cast %237 : vector<288x128xf32> to vector<1x288x128xf32>
    tpu.vector_store %arg18[%c0_231, %c0_232, %c0_233], %240 {strides = array<i32>} : memref<1x288x128xf32, #tpu.memory_space<vmem>>, vector<1x288x128xf32>,
    return
  }
  func.func @transform_0(%arg0: i32) -> (i32, i32, i32) {
    %c0_i32 = arith.constant 0 : i32
    %c0_i32_0 = arith.constant 0 : i32
    %c0_i32_1 = arith.constant 0 : i32
    return %arg0, %c0_i32, %c0_i32_0 : i32, i32, i32
  }
  func.func @transform_1(%arg0: i32) -> (i32, i32, i32) {
    %c0_i32 = arith.constant 0 : i32
    %c0_i32_0 = arith.constant 0 : i32
    %c0_i32_1 = arith.constant 0 : i32
    return %arg0, %c0_i32, %c0_i32_0 : i32, i32, i32
  }
  func.func @transform_2(%arg0: i32) -> (i32, i32) {
    %c0_i32 = arith.constant 0 : i32
    %c0_i32_0 = arith.constant 0 : i32
    %c0_i32_1 = arith.constant 0 : i32
    return %c0_i32, %c0_i32_0 : i32, i32
  }
  func.func @transform_3(%arg0: i32) -> (i32, i32) {
    %c0_i32 = arith.constant 0 : i32
    %c0_i32_0 = arith.constant 0 : i32
    %c0_i32_1 = arith.constant 0 : i32
    return %c0_i32, %c0_i32_0 : i32, i32
  }
  func.func @transform_4(%arg0: i32) -> (i32, i32) {
    %c0_i32 = arith.constant 0 : i32
    %c0_i32_0 = arith.constant 0 : i32
    %c0_i32_1 = arith.constant 0 : i32
    return %c0_i32, %c0_i32_0 : i32, i32
  }
  func.func @transform_5(%arg0: i32) -> (i32, i32) {
    %c0_i32 = arith.constant 0 : i32
    %c0_i32_0 = arith.constant 0 : i32
    %c0_i32_1 = arith.constant 0 : i32
    return %c0_i32, %c0_i32_0 : i32, i32
  }
  func.func @transform_6(%arg0: i32) -> (i32, i32, i32) {
    %c0_i32 = arith.constant 0 : i32
    %c0_i32_0 = arith.constant 0 : i32
    %c0_i32_1 = arith.constant 0 : i32
    %c0_i32_2 = arith.constant 0 : i32
    return %c0_i32, %c0_i32_0, %c0_i32_1 : i32, i32, i32
  }
  func.func @transform_7(%arg0: i32) -> (i32, i32) {
    %c0_i32 = arith.constant 0 : i32
    %c0_i32_0 = arith.constant 0 : i32
    %c0_i32_1 = arith.constant 0 : i32
    return %c0_i32, %c0_i32_0 : i32, i32
  }
  func.func @transform_8(%arg0: i32) -> (i32, i32) {
    %c0_i32 = arith.constant 0 : i32
    %c0_i32_0 = arith.constant 0 : i32
    %c0_i32_1 = arith.constant 0 : i32
    return %c0_i32, %c0_i32_0 : i32, i32
  }
  func.func @transform_9(%arg0: i32) -> (i32, i32) {
    %c0_i32 = arith.constant 0 : i32
    %c0_i32_0 = arith.constant 0 : i32
    %c0_i32_1 = arith.constant 0 : i32
    return %c0_i32, %c0_i32_0 : i32, i32
  }
  func.func @transform_10(%arg0: i32) -> (i32, i32) {
    %c0_i32 = arith.constant 0 : i32
    %c0_i32_0 = arith.constant 0 : i32
    %c0_i32_1 = arith.constant 0 : i32
    return %c0_i32, %c0_i32_0 : i32, i32
  }
  func.func @transform_11(%arg0: i32) -> (i32, i32) {
    %c0_i32 = arith.constant 0 : i32
    %c0_i32_0 = arith.constant 0 : i32
    %c0_i32_1 = arith.constant 0 : i32
    return %c0_i32, %c0_i32_0 : i32, i32
  }
  func.func @transform_12(%arg0: i32) -> (i32, i32) {
    %c0_i32 = arith.constant 0 : i32
    %c0_i32_0 = arith.constant 0 : i32
    %c0_i32_1 = arith.constant 0 : i32
    return %c0_i32, %c0_i32_0 : i32, i32
  }
  func.func @transform_13(%arg0: i32) -> (i32, i32, i32) {
    %c0_i32 = arith.constant 0 : i32
    %c0_i32_0 = arith.constant 0 : i32
    %c0_i32_1 = arith.constant 0 : i32
    %c0_i32_2 = arith.constant 0 : i32
    return %c0_i32, %c0_i32_0, %c0_i32_1 : i32, i32, i32
  }
  func.func @transform_14(%arg0: i32) -> (i32, i32) {
    %c0_i32 = arith.constant 0 : i32
    %c0_i32_0 = arith.constant 0 : i32
    %c0_i32_1 = arith.constant 0 : i32
    return %c0_i32, %c0_i32_0 : i32, i32
  }
  func.func @transform_15(%arg0: i32) -> (i32, i32) {
    %c0_i32 = arith.constant 0 : i32
    %c0_i32_0 = arith.constant 0 : i32
    %c0_i32_1 = arith.constant 0 : i32
    return %c0_i32, %c0_i32_0 : i32, i32
  }
  func.func @transform_16(%arg0: i32) -> (i32, i32) {
    %c0_i32 = arith.constant 0 : i32
    %c0_i32_0 = arith.constant 0 : i32
    %c0_i32_1 = arith.constant 0 : i32
    return %c0_i32, %c0_i32_0 : i32, i32
  }
  func.func @transform_17(%arg0: i32) -> (i32, i32, i32) {
    %c0_i32 = arith.constant 0 : i32
    %c0_i32_0 = arith.constant 0 : i32
    %c0_i32_1 = arith.constant 0 : i32
    return %arg0, %c0_i32, %c0_i32_0 : i32, i32, i32
  }
}

</mosaic_0001>

<bundles_post_ra>
// kernel: resnet_blocks_forward.1
= control target key start
LH: loop header
LB: loop body
LE: loop exit
PB: predicated region body
PF: predicated region fallthrough
CT: control target
= control target key end

     0   :  { %s16041_s24 = smov 0   ;;  %s21093_s0 = inlined_call_operand.vmem [shape: f32[2,288,128], index: 0, kind: input, shape index: {}]   ;;  %s21094_s1 = inlined_call_operand.vmem [shape: f32[2,1,128], index: 1, kind: input, shape index: {}]   ;;  %s21095_s2 = inlined_call_operand.vmem [shape: f32[288,1], index: 2, kind: input, shape index: {}]   ;;  %s21096_s3 = inlined_call_operand.vmem [shape: f32[1,128], index: 3, kind: input, shape index: {}]   ;;  %s21097_s4 = inlined_call_operand.vmem [shape: f32[1,128], index: 4, kind: input, shape index: {}]   ;;  %s21098_s5 = inlined_call_operand.vmem [shape: f32[128,128], index: 5, kind: input, shape index: {}]   ;;  %s21099_s6 = inlined_call_operand.vmem [shape: bf16[9,128,128], index: 6, kind: input, shape index: {}]   ;;  %s21100_s7 = inlined_call_operand.vmem [shape: f32[1,128], index: 7, kind: input, shape index: {}]   ;;  %s21101_s8 = inlined_call_operand.vmem [shape: f32[128,128], index: 8, kind: input, shape index: {}]   ;;  %s21102_s9 = inlined_call_operand.vmem [shape: f32[1,128], index: 9, kind: input, shape index: {}]   ;;  %s21103_s10 = inlined_call_operand.vmem [shape: f32[1,128], index: 10, kind: input, shape index: {}]   ;;  %s21104_s11 = inlined_call_operand.vmem [shape: f32[1,128], index: 11, kind: input, shape index: {}]   ;;  %s21105_s12 = inlined_call_operand.vmem [shape: f32[128,128], index: 12, kind: input, shape index: {}]   ;;  %s21106_s13 = inlined_call_operand.vmem [shape: bf16[9,128,128], index: 13, kind: input, shape index: {}]   ;;  %s21107_s14 = inlined_call_operand.vmem [shape: f32[1,128], index: 14, kind: input, shape index: {}]   ;;  %s21108_s15 = inlined_call_operand.vmem [shape: f32[128,128], index: 15, kind: input, shape index: {}]   ;;  %s21109_s16 = inlined_call_operand.vmem [shape: f32[1,128], index: 16, kind: input, shape index: {}]   ;;  %s21110_s17 = inlined_call_operand.vmem [shape: f32[2,288,128], index: 17, kind: output, shape index: {}]  }
   0x1   :  { %21354 = sst [smem:[#allocation87_spill]] %s21093_s0 }
   0x2   :  { %21355 = sst [smem:[#allocation88_spill]] %s21094_s1 }
   0x3 LB: > { %s12475_s25 = sadd.s32 4294967295, %s15945_s24   ;;  %p12479_p0 = scmp.ge.s32.totalorder %s15945_s24, 1  ;;  %s15945_s24 = sphi %s16041_s24, %s27_s24  }
   0x4   : > { %p495_p1 = scmp.lt.s32.totalorder %s15945_s24, 3 }
   0x6   : > { %p496_p2 = pnand %p12479_p0, %p495_p1 }
   0x8   : > { %499 = sbr.rel (%p496_p2) target bundleno = 3273 (0xcc9), region = 88 }
   0xf   : > { %v566_v0 = vld [vmem:[%s21095_s2 + $0x10] sm:$0xff]  ;;  %v564_v1 = vld [vmem:[%s21095_s2] sm:$0xff]  ;;  %v15947_v2 = vmov 0   ;;  %v567_v3 = vld [vmem:[%s21095_s2 + $0x18] sm:$0xff]  ;;  %v21111_v36 = vmov 0.0|0.0   ;;  %p550_p3 = scmp.lt.s32.totalorder %s12475_s25, 1 }
  0x10   : > { %15435 = vset.pattern.permute.xlu1 %v15947_v2  ;;  %1583 = vst [vmem:[#allocation2] sm:$0xff] %v15947_v2  ;;  %1584 = vst [vmem:[#allocation2 + $0x8] sm:$0xf] %v15947_v2  ;;  %15434 = vset.pattern.permute.xlu0 %v15947_v2  ;;  %v565_v4 = vld [vmem:[%s21095_s2 + $0x8] sm:$0xff]  ;;  %v568_v6 = vld [vmem:[%s21095_s2 + $0x20] sm:$0xff]  ;;  %vm15949_vm0 = vmmov 0  }
  0x11   : > { %1585 = vst [vmem:[#allocation2 + $0x98] sm:$0xf0] %v15947_v2  ;;  %1586 = vst [vmem:[#allocation2 + $0xa0] sm:$0xff] %v15947_v2  ;;  %666 = vperm.xlu1 %15435, %v566_v0   ;;  %656 = vperm.xlu0 %15434, %v564_v1   ;;  %v569_v5 = vld [vmem:[%s21095_s2 + $0x28] sm:$0xff]  ;;  %v571_v7 = vld [vmem:[%s21095_s2 + $0x38] sm:$0xff]  ;;  %s22061_s25 = smov (!%p550_p3, %s12475_s25), 1 }
  0x12   : > { %7281 = vst [vmem:[#allocation3] sm:$0xff] %v15947_v2  ;;  %7282 = vst [vmem:[#allocation3 + $0x8] sm:$0xf] %v15947_v2  ;;  %v570_v8 = vld [vmem:[%s21095_s2 + $0x30] sm:$0xff]  ;;  %v573_v9 = vld [vmem:[%s21095_s2 + $0x48] sm:$0xff]  ;;  %14693 = vmatprep.subr.bf16.mxu0 %v21111_v36  ;;  %14717 = vmatprep.subr.bf16.mxu1 %v21111_v36  ;;  %s15421_s30 = smul.u32 288, %s22061_s25 }
  0x13   : > { %7283 = vst [vmem:[#allocation3 + $0x98] sm:$0xf0] %v15947_v2  ;;  %7284 = vst [vmem:[#allocation3 + $0xa0] sm:$0xff] %v15947_v2  ;;  %v572_v10 = vld [vmem:[%s21095_s2 + $0x40] sm:$0xff]  ;;  %v575_v11 = vld [vmem:[%s21095_s2 + $0x58] sm:$0xff]  ;;  %v21113_v57 = vmov 0.0  }
  0x14   : > { %v574_v12 = vld [vmem:[%s21095_s2 + $0x50] sm:$0xff]  ;;  %v577_v13 = vld [vmem:[%s21095_s2 + $0x68] sm:$0xff]  ;;  %v576_v14 = vld [vmem:[%s21095_s2 + $0x60] sm:$0xff]  ;;  %13528 = vmatprep.mubr.msk.f32.mxu0 %vm15949_vm0, %v21113_v57  ;;  %13563 = vmatprep.mubr.msk.f32.mxu1 %vm15949_vm0, %v21113_v57  ;;  %s21356_s29 = sld [smem:[#allocation87_spill]]  ;;  %vm1623_vm1 = vcmask 1043456   ;;  %vm2237_vm3 = vcmask 1044480  }
  0x15   : > { %671 = vperm.xlu1 %15435, %v567_v3   ;;  %661 = vperm.xlu0 %15434, %v565_v4   ;;  %v579_v15 = vld [vmem:[%s21095_s2 + $0x78] sm:$0xff]  ;;  %v578_v16 = vld [vmem:[%s21095_s2 + $0x70] sm:$0xff]  ;;  %v581_v17 = vld [vmem:[%s21095_s2 + $0x88] sm:$0xff]  ;;  %vm1732_vm2 = vsmask.f32 5376  ;;  %s21704_s23 = sld [smem:[#allocation88_spill]] }
  0x16   : > { %v580_v18 = vld [vmem:[%s21095_s2 + $0x80] sm:$0xff]  ;;  %v583_v19 = vld [vmem:[%s21095_s2 + $0x98] sm:$0xff]  ;;  %v582_v20 = vld [vmem:[%s21095_s2 + $0x90] sm:$0xff]  ;;  %vm2662_vm4 = vsmask.f32 4352  ;;  %vm5354_vm7 = vcmask 1042432  }
  0x17   : > { %v585_v21 = vld [vmem:[%s21095_s2 + $0xa8] sm:$0xff]  ;;  %v584_v22 = vld [vmem:[%s21095_s2 + $0xa0] sm:$0xff]  ;;  %v587_v23 = vld [vmem:[%s21095_s2 + $0xb8] sm:$0xff]  ;;  %vm4220_vm5 = vsmask.f32 3328 }
  0x18   : > { %v586_v24 = vld [vmem:[%s21095_s2 + $0xb0] sm:$0xff]  ;;  %v589_v25 = vld [vmem:[%s21095_s2 + $0xc8] sm:$0xff]  ;;  %v588_v26 = vld [vmem:[%s21095_s2 + $0xc0] sm:$0xff]  ;;  %vm5779_vm6 = vsmask.f32 2304 }
  0x19   : > { %681 = vperm.xlu1 %15435, %v569_v5   ;;  %676 = vperm.xlu0 %15434, %v568_v6   ;;  %v591_v27 = vld [vmem:[%s21095_s2 + $0xd8] sm:$0xff]  ;;  %v590_v28 = vld [vmem:[%s21095_s2 + $0xd0] sm:$0xff]  ;;  %v593_v29 = vld [vmem:[%s21095_s2 + $0xe8] sm:$0xff] }
  0x1a   : > { %v592_v30 = vld [vmem:[%s21095_s2 + $0xe0] sm:$0xff]  ;;  %v639_v32 = vld [vmem:[%s21098_s5 + $0x8] sm:$0xff]  ;;  %v595_v33 = vld [vmem:[%s21095_s2 + $0xf8] sm:$0xff]  ;;  %s16238_s0 = scalar_lea.vmem %s21356_s29, %s15421_s30 }
  0x1b   : > { %v638_v31 = vld [vmem:[%s21098_s5] sm:$0xff]  ;;  %v594_v34 = vld [vmem:[%s21095_s2 + $0xf0] sm:$0xff]  ;;  %v641_v38 = vld [vmem:[%s21098_s5 + $0x18] sm:$0xff]  ;;  %s557_s26 = scalar_lea.vmem %s21704_s23, %s22061_s25 }
  0x1c   : > { %v14694_v35 = vpack.c.bf16 %v639_v32, %v638_v31  ;;  %v640_v37 = vld [vmem:[%s21098_s5 + $0x10] sm:$0xff]  ;;  %v597_v39 = vld [vmem:[%s21095_s2 + $0x108] sm:$0xff]  ;;  %v596_v40 = vld [vmem:[%s21095_s2 + $0x100] sm:$0xff] }
  0x1d   : > { %691 = vperm.xlu1 %15435, %v571_v7   ;;  %686 = vperm.xlu0 %15434, %v570_v8   ;;  %v14697_v41 = vpack.c.bf16 %v641_v38, %v640_v37  ;;  %v642_v42 = vld [vmem:[%s21098_s5 + $0x20] sm:$0xff]  ;;  %v643_v43 = vld [vmem:[%s21098_s5 + $0x28] sm:$0xff]  ;;  %v599_v44 = vld [vmem:[%s21095_s2 + $0x118] sm:$0xff] }
  0x1e   : > { %14695 = vmatpush3.bf16.msra.mxu0 %v14694_v35  ;;  %14719 = vmatpush3.bf16.msra.mxu1 %v14694_v35  ;;  %v598_v45 = vld [vmem:[%s21095_s2 + $0x110] sm:$0xff]  ;;  %v14700_v46 = vpack.c.bf16 %v643_v43, %v642_v42  ;;  %v645_v48 = vld [vmem:[%s21098_s5 + $0x38] sm:$0xff]  ;;  %v646_v50 = vld [vmem:[%s21098_s5 + $0x40] sm:$0xff] }
  0x1f   : > { %14696 = vmatprep.subr.bf16.mxu0 %v21111_v36  ;;  %14720 = vmatprep.subr.bf16.mxu1 %v21111_v36  ;;  %v644_v47 = vld [vmem:[%s21098_s5 + $0x30] sm:$0xff]  ;;  %v647_v51 = vld [vmem:[%s21098_s5 + $0x48] sm:$0xff]  ;;  %v649_v54 = vld [vmem:[%s21098_s5 + $0x58] sm:$0xff] }
  0x20   : > { %v14703_v49 = vpack.c.bf16 %v645_v48, %v644_v47  ;;  %v14706_v52 = vpack.c.bf16 %v647_v51, %v646_v50  ;;  %v648_v53 = vld [vmem:[%s21098_s5 + $0x50] sm:$0xff]  ;;  %v650_v55 = vld [vmem:[%s21098_s5 + $0x60] sm:$0xff]  ;;  %v651_v56 = vld [vmem:[%s21098_s5 + $0x68] sm:$0xff] }
  0x21   : > { %701 = vperm.xlu1 %15435, %v573_v9   ;;  %696 = vperm.xlu0 %15434, %v572_v10   ;;  %v14709_v58 = vpack.c.bf16 %v649_v54, %v648_v53  ;;  %v652_v59 = vld [vmem:[%s21098_s5 + $0x70] sm:$0xff]  ;;  %v653_v60 = vld [vmem:[%s21098_s5 + $0x78] sm:$0xff]  ;;  %v14712_v61 = vpack.c.bf16 %v651_v56, %v650_v55  ;;  %v16245_v1 = vld [vmem:[%s16238_s0] sm:$0xff] }
  0x22   : > { %14698 = vmatpush3.bf16.msra.mxu0 %v14697_v41  ;;  %14722 = vmatpush3.bf16.msra.mxu1 %v14697_v41  ;;  %v14715_v62 = vpack.c.bf16 %v653_v60, %v652_v59  ;;  %v16248_v2 = vld [vmem:[%s16238_s0 + $0x8] sm:$0xff]  ;;  %v16251_v3 = vld [vmem:[%s16238_s0 + $0x10] sm:$0xff]  ;;  %v16262_v8 = vld [vmem:[%s16238_s0 + $0x18] sm:$0xff] }
  0x23   : > { %14699 = vmatprep.subr.bf16.mxu0 %v21111_v36  ;;  %14723 = vmatprep.subr.bf16.mxu1 %v21111_v36  ;;  %v16304_v32 = vld [vmem:[%s16238_s0 + $0x48] sm:$0xff]  ;;  %v16313_v38 = vld [vmem:[%s16238_s0 + $0x50] sm:$0xff]  ;;  %v16318_v41 = vld [vmem:[%s16238_s0 + $0x58] sm:$0xff] }
  0x24   : > { %v16341_v54 = vld [vmem:[%s16238_s0 + $0x70] sm:$0xff]  ;;  %v16430_v57 = vld [vmem:[%s16238_s0 + $0xd8] sm:$0xff] }
  0x25   : > { %711 = vperm.xlu1 %15435, %v575_v11   ;;  %706 = vperm.xlu0 %15434, %v574_v12   ;;  %21390 = vst [vmem:[#allocation39_spill] sm:$0xff] %v16430_v57 }
  0x26   : > { %14701 = vmatpush3.bf16.msra.mxu0 %v14700_v46  ;;  %14725 = vmatpush3.bf16.msra.mxu1 %v14700_v46  ;;  %v16327_v46 = vld [vmem:[%s16238_s0 + $0x60] sm:$0xff] }
  0x27   : > { %14702 = vmatprep.subr.bf16.mxu0 %v21111_v36  ;;  %14726 = vmatprep.subr.bf16.mxu1 %v21111_v36 }
  0x29   : > { %721 = vperm.xlu1 %15435, %v577_v13   ;;  %716 = vperm.xlu0 %15434, %v576_v14   ;;  %v16271_v13 = vld [vmem:[%s16238_s0 + $0x20] sm:$0xff] }
  0x2a   : > { %14704 = vmatpush3.bf16.msra.mxu0 %v14703_v49  ;;  %14728 = vmatpush3.bf16.msra.mxu1 %v14703_v49  ;;  %v16332_v49 = vld [vmem:[%s16238_s0 + $0x68] sm:$0xff] }
  0x2b   : > { %14705 = vmatprep.subr.bf16.mxu0 %v21111_v36  ;;  %14729 = vmatprep.subr.bf16.mxu1 %v21111_v36 }
  0x2d   : > { %731 = vperm.xlu1 %15435, %v579_v15   ;;  %726 = vperm.xlu0 %15434, %v578_v16   ;;  %v16276_v16 = vld [vmem:[%s16238_s0 + $0x28] sm:$0xff] }
  0x2e   : > { %14707 = vmatpush3.bf16.msra.mxu0 %v14706_v52  ;;  %14731 = vmatpush3.bf16.msra.mxu1 %v14706_v52 }
  0x2f   : > { %14708 = vmatprep.subr.bf16.mxu0 %v21111_v36  ;;  %14732 = vmatprep.subr.bf16.mxu1 %v21111_v36 }
  0x31   : > { %741 = vperm.xlu1 %15435, %v581_v17   ;;  %736 = vperm.xlu0 %15434, %v580_v18  }
  0x32   : > { %14710 = vmatpush3.bf16.msra.mxu0 %v14709_v58  ;;  %14734 = vmatpush3.bf16.msra.mxu1 %v14709_v58  ;;  %v16346_v58 = vld [vmem:[%s16238_s0 + $0x78] sm:$0xff] }
  0x33   : > { %14711 = vmatprep.subr.bf16.mxu0 %v21111_v36  ;;  %14735 = vmatprep.subr.bf16.mxu1 %v21111_v36 }
  0x35   : > { %751 = vperm.xlu1 %15435, %v583_v19   ;;  %746 = vperm.xlu0 %15434, %v582_v20  }
  0x36   : > { %14713 = vmatpush3.bf16.msra.mxu0 %v14712_v61  ;;  %14737 = vmatpush3.bf16.msra.mxu1 %v14712_v61 }
  0x37   : > { %14714 = vmatprep.subr.bf16.mxu0 %v21111_v36  ;;  %14738 = vmatprep.subr.bf16.mxu1 %v21111_v36 }
  0x39   : > { %761 = vperm.xlu1 %15435, %v585_v21   ;;  %756 = vperm.xlu0 %15434, %v584_v22   ;;  %v16285_v21 = vld [vmem:[%s16238_s0 + $0x30] sm:$0xff] }
  0x3a   : > { %14716 = vmatpush3.bf16.msra.mxu0 %v14715_v62  ;;  %14740 = vmatpush3.bf16.msra.mxu1 %v14715_v62 }
  0x3b   : > { %14741 = vmatprep.subr.bf16.mxu1 %v21111_v36 }
  0x3d   : > { %771 = vperm.xlu1 %15435, %v587_v23   ;;  %766 = vperm.xlu0 %15434, %v586_v24   ;;  %v16290_v24 = vld [vmem:[%s16238_s0 + $0x38] sm:$0xff] }
  0x41   : > { %781 = vperm.xlu1 %15435, %v589_v25   ;;  %776 = vperm.xlu0 %15434, %v588_v26  }
  0x45   : > { %791 = vperm.xlu1 %15435, %v591_v27   ;;  %786 = vperm.xlu0 %15434, %v590_v28  }
  0x49   : > { %801 = vperm.xlu1 %15435, %v593_v29   ;;  %796 = vperm.xlu0 %15434, %v592_v30   ;;  %v16299_v29 = vld [vmem:[%s16238_s0 + $0x40] sm:$0xff] }
  0x4d   : > { %811 = vperm.xlu1 %15435, %v595_v33   ;;  %806 = vperm.xlu0 %15434, %v594_v34  }
  0x51   : > { %821 = vperm.xlu1 %15435, %v597_v39   ;;  %816 = vperm.xlu0 %15434, %v596_v40  }
  0x55   : > { %831 = vperm.xlu1 %15435, %v599_v44   ;;  %826 = vperm.xlu0 %15434, %v598_v45  }
  0x90   : > { %v16240_v63 = vpop.permute.xlu1 %666  ;;  %v16242_v0 = vpop.permute.xlu0 %656 }
  0x91   : > { %21357 = vst [vmem:[#allocation6_spill] sm:$0xff] %v16240_v63  ;;  %21358 = vst [vmem:[#allocation7_spill] sm:$0xff] %v16242_v0  ;;  %v834_v6 = vmul.f32 %v16242_v0, %v16245_v1  ;;  %v836_v9 = vmul.f32 %v16240_v63, %v16251_v3 }
  0x94   : > { %v16253_v4 = vpop.permute.xlu1 %671  ;;  %v16255_v5 = vpop.permute.xlu0 %661 }
  0x95   : > { %21359 = vst [vmem:[#allocation8_spill] sm:$0xff] %v16253_v4  ;;  %21360 = vst [vmem:[#allocation9_spill] sm:$0xff] %v16255_v5  ;;  %v835_v7 = vmul.f32 %v16255_v5, %v16248_v2  ;;  %v837_v14 = vmul.f32 %v16253_v4, %v16262_v8 }
  0x97   : > { %v870_v10 = vadd.f32 %v835_v7, %v834_v6  ;;  %v16355_v6 = vld [vmem:[%s16238_s0 + $0x80] sm:$0xff] }
  0x98   : > { %v16266_v11 = vpop.permute.xlu1 %681  ;;  %v16268_v12 = vpop.permute.xlu0 %676 }
  0x99   : > { %21361 = vst [vmem:[#allocation10_spill] sm:$0xff] %v16266_v11  ;;  %21362 = vst [vmem:[#allocation11_spill] sm:$0xff] %v16268_v12  ;;  %v871_v15 = vadd.f32 %v870_v10, %v836_v9  ;;  %v838_v17 = vmul.f32 %v16268_v12, %v16271_v13  ;;  %v839_v22 = vmul.f32 %v16266_v11, %v16276_v16  ;;  %v16360_v10 = vld [vmem:[%s16238_s0 + $0x88] sm:$0xff] }
  0x9b   : > { %v872_v18 = vadd.f32 %v871_v15, %v837_v14 }
  0x9c   : > { %v16280_v19 = vpop.permute.xlu1 %691  ;;  %v16282_v20 = vpop.permute.xlu0 %686 }
  0x9d   : > { %21363 = vst [vmem:[#allocation12_spill] sm:$0xff] %v16280_v19  ;;  %21364 = vst [vmem:[#allocation13_spill] sm:$0xff] %v16282_v20  ;;  %v873_v23 = vadd.f32 %v872_v18, %v838_v17  ;;  %v840_v25 = vmul.f32 %v16282_v20, %v16285_v21  ;;  %v841_v30 = vmul.f32 %v16280_v19, %v16290_v24 }
  0x9f   : > { %v874_v26 = vadd.f32 %v873_v23, %v839_v22  ;;  %v16369_v22 = vld [vmem:[%s16238_s0 + $0x90] sm:$0xff] }
  0xa0   : > { %v16294_v27 = vpop.permute.xlu1 %701  ;;  %v16296_v28 = vpop.permute.xlu0 %696 }
  0xa1   : > { %21365 = vst [vmem:[#allocation14_spill] sm:$0xff] %v16294_v27  ;;  %21366 = vst [vmem:[#allocation15_spill] sm:$0xff] %v16296_v28  ;;  %v875_v31 = vadd.f32 %v874_v26, %v840_v25  ;;  %v842_v33 = vmul.f32 %v16296_v28, %v16299_v29  ;;  %v843_v39 = vmul.f32 %v16294_v27, %v16304_v32  ;;  %v16374_v26 = vld [vmem:[%s16238_s0 + $0x98] sm:$0xff] }
  0xa3   : > { %v876_v34 = vadd.f32 %v875_v31, %v841_v30 }
  0xa4   : > { %v16308_v35 = vpop.permute.xlu1 %711  ;;  %v16310_v37 = vpop.permute.xlu0 %706 }
  0xa5   : > { %21367 = vst [vmem:[#allocation16_spill] sm:$0xff] %v16308_v35  ;;  %21368 = vst [vmem:[#allocation17_spill] sm:$0xff] %v16310_v37  ;;  %v877_v40 = vadd.f32 %v876_v34, %v842_v33  ;;  %v844_v42 = vmul.f32 %v16310_v37, %v16313_v38  ;;  %v845_v47 = vmul.f32 %v16308_v35, %v16318_v41 }
  0xa7   : > { %v878_v43 = vadd.f32 %v877_v40, %v843_v39  ;;  %v16383_v39 = vld [vmem:[%s16238_s0 + $0xa0] sm:$0xff] }
  0xa8   : > { %v16322_v44 = vpop.permute.xlu1 %721  ;;  %v16324_v45 = vpop.permute.xlu0 %716 }
  0xa9   : > { %21369 = vst [vmem:[#allocation18_spill] sm:$0xff] %v16322_v44  ;;  %21370 = vst [vmem:[#allocation19_spill] sm:$0xff] %v16324_v45  ;;  %v879_v48 = vadd.f32 %v878_v43, %v844_v42  ;;  %v846_v50 = vmul.f32 %v16324_v45, %v16327_v46  ;;  %v847_v55 = vmul.f32 %v16322_v44, %v16332_v49  ;;  %v16388_v43 = vld [vmem:[%s16238_s0 + $0xa8] sm:$0xff] }
  0xab   : > { %v880_v51 = vadd.f32 %v879_v48, %v845_v47 }
  0xac   : > { %v16336_v52 = vpop.permute.xlu1 %731  ;;  %v16338_v53 = vpop.permute.xlu0 %726 }
  0xad   : > { %21371 = vst [vmem:[#allocation20_spill] sm:$0xff] %v16336_v52  ;;  %21372 = vst [vmem:[#allocation21_spill] sm:$0xff] %v16338_v53  ;;  %v881_v56 = vadd.f32 %v880_v51, %v846_v50  ;;  %v848_v59 = vmul.f32 %v16338_v53, %v16341_v54  ;;  %v849_v7 = vmul.f32 %v16336_v52, %v16346_v58 }
  0xaf   : > { %v882_v60 = vadd.f32 %v881_v56, %v847_v55  ;;  %v16397_v55 = vld [vmem:[%s16238_s0 + $0xb0] sm:$0xff] }
  0xb0   : > { %v16350_v61 = vpop.permute.xlu1 %741  ;;  %v16352_v62 = vpop.permute.xlu0 %736  ;;  %21381 = vst [vmem:[#allocation30_spill] sm:$0xff] %v16397_v55 }
  0xb1   : > { %21373 = vst [vmem:[#allocation22_spill] sm:$0xff] %v16350_v61  ;;  %21374 = vst [vmem:[#allocation23_spill] sm:$0xff] %v16352_v62  ;;  %v883_v9 = vadd.f32 %v882_v60, %v848_v59  ;;  %v850_v14 = vmul.f32 %v16352_v62, %v16355_v6  ;;  %v851_v23 = vmul.f32 %v16350_v61, %v16360_v10  ;;  %v16402_v60 = vld [vmem:[%s16238_s0 + $0xb8] sm:$0xff] }
  0xb2   : > { %21382 = vst [vmem:[#allocation31_spill] sm:$0xff] %v16402_v60 }
  0xb3   : > { %v884_v15 = vadd.f32 %v883_v9, %v849_v7 }
  0xb4   : > { %v16364_v17 = vpop.permute.xlu1 %751  ;;  %v16366_v18 = vpop.permute.xlu0 %746 }
  0xb5   : > { %21375 = vst [vmem:[#allocation24_spill] sm:$0xff] %v16364_v17  ;;  %21376 = vst [vmem:[#allocation25_spill] sm:$0xff] %v16366_v18  ;;  %v885_v25 = vadd.f32 %v884_v15, %v850_v14  ;;  %v852_v30 = vmul.f32 %v16366_v18, %v16369_v22  ;;  %v853_v40 = vmul.f32 %v16364_v17, %v16374_v26 }
  0xb7   : > { %v886_v31 = vadd.f32 %v885_v25, %v851_v23  ;;  %v16411_v23 = vld [vmem:[%s16238_s0 + $0xc0] sm:$0xff] }
  0xb8   : > { %v16378_v33 = vpop.permute.xlu1 %761  ;;  %v16380_v34 = vpop.permute.xlu0 %756  ;;  %21385 = vst [vmem:[#allocation34_spill] sm:$0xff] %v16411_v23 }
  0xb9   : > { %21377 = vst [vmem:[#allocation26_spill] sm:$0xff] %v16378_v33  ;;  %21378 = vst [vmem:[#allocation27_spill] sm:$0xff] %v16380_v34  ;;  %v887_v42 = vadd.f32 %v886_v31, %v852_v30  ;;  %v854_v47 = vmul.f32 %v16380_v34, %v16383_v39  ;;  %v855_v56 = vmul.f32 %v16378_v33, %v16388_v43  ;;  %v16416_v31 = vld [vmem:[%s16238_s0 + $0xc8] sm:$0xff] }
  0xba   : > { %21386 = vst [vmem:[#allocation35_spill] sm:$0xff] %v16416_v31 }
  0xbb   : > { %v888_v48 = vadd.f32 %v887_v42, %v853_v40 }
  0xbc   : > { %v16392_v50 = vpop.permute.xlu1 %771  ;;  %v16394_v51 = vpop.permute.xlu0 %766 }
  0xbd   : > { %21379 = vst [vmem:[#allocation28_spill] sm:$0xff] %v16392_v50  ;;  %21380 = vst [vmem:[#allocation29_spill] sm:$0xff] %v16394_v51  ;;  %v889_v59 = vadd.f32 %v888_v48, %v854_v47  ;;  %v856_v7 = vmul.f32 %v16394_v51, %v16397_v55  ;;  %v857_v25 = vmul.f32 %v16392_v50, %v16402_v60 }
  0xbf   : > { %v890_v9 = vadd.f32 %v889_v59, %v855_v56  ;;  %v16425_v56 = vld [vmem:[%s16238_s0 + $0xd0] sm:$0xff] }
  0xc0   : > { %v16406_v14 = vpop.permute.xlu1 %781  ;;  %v16408_v15 = vpop.permute.xlu0 %776  ;;  %21389 = vst [vmem:[#allocation38_spill] sm:$0xff] %v16425_v56 }
  0xc1   : > { %21383 = vst [vmem:[#allocation32_spill] sm:$0xff] %v16406_v14  ;;  %21384 = vst [vmem:[#allocation33_spill] sm:$0xff] %v16408_v15  ;;  %v891_v30 = vadd.f32 %v890_v9, %v856_v7  ;;  %v858_v40 = vmul.f32 %v16408_v15, %v16411_v23  ;;  %v859_v59 = vmul.f32 %v16406_v14, %v16416_v31  ;;  %v16444_v14 = vld [vmem:[%s16238_s0 + $0xe8] sm:$0xff] }
  0xc2   : > { %21394 = vst [vmem:[#allocation43_spill] sm:$0xff] %v16444_v14  ;;  %v16472_v23 = vld [vmem:[%s16238_s0 + $0x108] sm:$0xff] }
  0xc3   : > { %v892_v42 = vadd.f32 %v891_v30, %v857_v25  ;;  %v16439_v30 = vld [vmem:[%s16238_s0 + $0xe0] sm:$0xff]  ;;  %21402 = vst [vmem:[#allocation51_spill] sm:$0xff] %v16472_v23 }
  0xc4   : > { %v16420_v47 = vpop.permute.xlu1 %791  ;;  %v16422_v48 = vpop.permute.xlu0 %786  ;;  %21393 = vst [vmem:[#allocation42_spill] sm:$0xff] %v16439_v30 }
  0xc5   : > { %21387 = vst [vmem:[#allocation36_spill] sm:$0xff] %v16420_v47  ;;  %21388 = vst [vmem:[#allocation37_spill] sm:$0xff] %v16422_v48  ;;  %v893_v36 = vadd.f32 %v892_v42, %v858_v40  ;;  %v860_v7 = vmul.f32 %v16422_v48, %v16425_v56  ;;  %v861_v50 = vmul.f32 %v16420_v47, %v16430_v57  ;;  %v16458_v47 = vld [vmem:[%s16238_s0 + $0xf8] sm:$0xff] }
  0xc6   : > { %21398 = vst [vmem:[#allocation47_spill] sm:$0xff] %v16458_v47 }
  0xc7   : > { %v894_v9 = vadd.f32 %v893_v36, %v859_v59  ;;  %v16453_v59 = vld [vmem:[%s16238_s0 + $0xf0] sm:$0xff] }
  0xc8   : > { %v16434_v15 = vpop.permute.xlu1 %801  ;;  %v16436_v25 = vpop.permute.xlu0 %796  ;;  %21397 = vst [vmem:[#allocation46_spill] sm:$0xff] %v16453_v59 }
  0xc9   : > { %21391 = vst [vmem:[#allocation40_spill] sm:$0xff] %v16434_v15  ;;  %21392 = vst [vmem:[#allocation41_spill] sm:$0xff] %v16436_v25  ;;  %v895_v51 = vadd.f32 %v894_v9, %v860_v7  ;;  %v862_v40 = vmul.f32 %v16436_v25, %v16439_v30  ;;  %v863_v56 = vmul.f32 %v16434_v15, %v16444_v14  ;;  %v16486_v14 = vld [vmem:[%s16238_s0 + $0x118] sm:$0xff] }
  0xcb   : > { %v896_v42 = vadd.f32 %v895_v51, %v861_v50  ;;  %v16467_v51 = vld [vmem:[%s16238_s0 + $0x100] sm:$0xff] }
  0xcc   : > { %v16448_v48 = vpop.permute.xlu1 %811  ;;  %v16450_v36 = vpop.permute.xlu0 %806  ;;  %21401 = vst [vmem:[#allocation50_spill] sm:$0xff] %v16467_v51 }
  0xcd   : > { %21395 = vst [vmem:[#allocation44_spill] sm:$0xff] %v16448_v48  ;;  %21396 = vst [vmem:[#allocation45_spill] sm:$0xff] %v16450_v36  ;;  %v897_v31 = vadd.f32 %v896_v42, %v862_v40  ;;  %v864_v7 = vmul.f32 %v16450_v36, %v16453_v59  ;;  %v865_v30 = vmul.f32 %v16448_v48, %v16458_v47  ;;  %v16479_v36 = vld [vmem:[%s16238_s0 + $0x110] sm:$0xff] }
  0xcf   : > { %v898_v9 = vadd.f32 %v897_v31, %v863_v56 }
  0xd0   : > { %v16462_v25 = vpop.permute.xlu1 %821  ;;  %v16464_v50 = vpop.permute.xlu0 %816 }
  0xd1   : > { %21399 = vst [vmem:[#allocation48_spill] sm:$0xff] %v16462_v25  ;;  %21400 = vst [vmem:[#allocation49_spill] sm:$0xff] %v16464_v50  ;;  %v899_v57 = vadd.f32 %v898_v9, %v864_v7  ;;  %v866_v40 = vmul.f32 %v16464_v50, %v16467_v51  ;;  %v867_v31 = vmul.f32 %v16462_v25, %v16472_v23  ;;  %v981_v23 = vlaneseq }
  0xd3   : > { %v900_v42 = vadd.f32 %v899_v57, %v865_v30  ;;  %v982_v34 = vshrl.u32 %v981_v23, 7 }
  0xd4   : > { %v16476_v15 = vpop.permute.xlu0 %826  ;;  %v16483_v59 = vpop.permute.xlu1 %831 }
  0xd5   : > { %21403 = vst [vmem:[#allocation52_spill] sm:$0xff] %v16476_v15  ;;  %v901_v56 = vadd.f32 %v900_v42, %v866_v40  ;;  %21404 = vst [vmem:[#allocation53_spill] sm:$0xff] %v16483_v59  ;;  %v868_v7 = vmul.f32 %v16476_v15, %v16479_v36  ;;  %v869_v50 = vmul.f32 %v16483_v59, %v16486_v14  ;;  %v16492_v55 = vsub.s32 0, %v982_v34 }
  0xd7   : > { %v902_v9 = vadd.f32 %v901_v56, %v867_v31  ;;  %21405 = vst [vmem:[#allocation54_spill] sm:$0xff] %v16492_v55 }
  0xd9   : > { %v903_v57 = vadd.f32 %v902_v9, %v868_v7 }
  0xdb   : > { %v904_v30 = vadd.f32 %v903_v57, %v869_v50 }
  0xdd   : > { %v905_v48 = vrot.slane %v904_v30, 4 }
  0xdf   : > { %v906_v51 = vadd.f32 %v905_v48, %v904_v30 }
  0xe1   : > { %v907_v47 = vrot.slane %v906_v51, 2 }
  0xe3   : > { %v908_v33 = vadd.f32 %v907_v47, %v906_v51 }
  0xe5   : > { %v909_v60 = vrot.slane %v908_v33, 1 }
  0xe7   : > { %v910_v25 = vadd.f32 %v909_v60, %v908_v33 }
  0xe9   : > { %13529 = vmatmul.mubr.f32.vlgmr.msra.gmra.mrb[0].mxu0 %v910_v25 }
 0x1bc   : > { %v977_v40 = vpop.f32.mrb[0].mxu0 }
 0x1bd   : > { %v13530_v42 = vpop.f32.mrb[1].mxu0  ;;  %v16495_v31 = vrot.slane %v977_v40, %v16492_v55 }
 0x1bf   : > { %v985_v56 = vsub.f32 %v16245_v1, %v16495_v31  ;;  %v986_v48 = vsub.f32 %v16248_v2, %v16495_v31  ;;  %v987_v47 = vsub.f32 %v16251_v3, %v16495_v31  ;;  %v988_v34 = vsub.f32 %v16262_v8, %v16495_v31 }
 0x1c0   : > { %v989_v23 = vsub.f32 %v16271_v13, %v16495_v31  ;;  %v990_v25 = vsub.f32 %v16276_v16, %v16495_v31  ;;  %v991_v8 = vsub.f32 %v16285_v21, %v16495_v31  ;;  %v992_v9 = vsub.f32 %v16290_v24, %v16495_v31 }
 0x1c1   : > { %v16504_v33 = vmul.f32 %v985_v56, %v16242_v0  ;;  %v16507_v60 = vmul.f32 %v986_v48, %v16255_v5  ;;  %v16514_v1 = vmul.f32 %v987_v47, %v16240_v63  ;;  %v16523_v50 = vmul.f32 %v988_v34, %v16253_v4 }
 0x1c2   : > { %v16528_v13 = vmul.f32 %v989_v23, %v16268_v12  ;;  %v16535_v57 = vmul.f32 %v990_v25, %v16266_v11  ;;  %v993_v21 = vsub.f32 %v16299_v29, %v16495_v31  ;;  %v16542_v40 = vmul.f32 %v991_v8, %v16282_v20 }
 0x1c3   : > { %v1057_v2 = vmul.f32 %v16504_v33, %v16504_v33  ;;  %v1058_v3 = vmul.f32 %v16507_v60, %v16507_v60  ;;  %v1059_v51 = vmul.f32 %v16514_v1, %v16514_v1  ;;  %v1060_v16 = vmul.f32 %v16523_v50, %v16523_v50 }
 0x1c4   : > { %v1061_v42 = vmul.f32 %v16528_v13, %v16528_v13  ;;  %v994_v24 = vsub.f32 %v16304_v32, %v16495_v31  ;;  %v16549_v48 = vmul.f32 %v992_v9, %v16280_v19  ;;  %v1062_v47 = vmul.f32 %v16535_v57, %v16535_v57 }
 0x1c5   : > { %v1093_v7 = vadd.f32 %v1058_v3, %v1057_v2  ;;  %v995_v29 = vsub.f32 %v16313_v38, %v16495_v31  ;;  %v16556_v23 = vmul.f32 %v993_v21, %v16296_v28  ;;  %v1063_v2 = vmul.f32 %v16542_v40, %v16542_v40 }
 0x1c6   : > { %v996_v32 = vsub.f32 %v16318_v41, %v16495_v31  ;;  %v16563_v25 = vmul.f32 %v994_v24, %v16294_v27  ;;  %v1064_v8 = vmul.f32 %v16549_v48, %v16549_v48  ;;  %v997_v38 = vsub.f32 %v16327_v46, %v16495_v31 }
 0x1c7   : > { %v1094_v30 = vadd.f32 %v1093_v7, %v1059_v51  ;;  %v16570_v7 = vmul.f32 %v995_v29, %v16310_v37  ;;  %v1065_v9 = vmul.f32 %v16556_v23, %v16556_v23  ;;  %v998_v41 = vsub.f32 %v16332_v49, %v16495_v31 }
 0x1c8   : > { %v1066_v21 = vmul.f32 %v16563_v25, %v16563_v25  ;;  %v999_v46 = vsub.f32 %v16341_v54, %v16495_v31  ;;  %v1000_v49 = vsub.f32 %v16346_v58, %v16495_v31  ;;  %v1001_v54 = vsub.f32 %v16355_v6, %v16495_v31 }
 0x1c9   : > { %v1095_v56 = vadd.f32 %v1094_v30, %v1060_v16  ;;  %v16577_v30 = vmul.f32 %v996_v32, %v16308_v35  ;;  %v1067_v24 = vmul.f32 %v16570_v7, %v16570_v7  ;;  %v1002_v58 = vsub.f32 %v16360_v10, %v16495_v31  ;;  %v21429_v35 = vld [vmem:[#allocation44_spill] sm:$0xff] }
 0x1ca   : > { %v1003_v6 = vsub.f32 %v16369_v22, %v16495_v31  ;;  %v1004_v10 = vsub.f32 %v16374_v26, %v16495_v31  ;;  %v1005_v22 = vsub.f32 %v16383_v39, %v16495_v31  ;;  %v1006_v26 = vsub.f32 %v16388_v43, %v16495_v31 }
 0x1cb   : > { %v1096_v34 = vadd.f32 %v1095_v56, %v1061_v42  ;;  %v16584_v56 = vmul.f32 %v997_v38, %v16324_v45  ;;  %v1068_v29 = vmul.f32 %v16577_v30, %v16577_v30  ;;  %v21427_v45 = vld [vmem:[#allocation45_spill] sm:$0xff] }
 0x1cd   : > { %v1097_v3 = vadd.f32 %v1096_v34, %v1062_v47  ;;  %v16591_v34 = vmul.f32 %v998_v41, %v16322_v44  ;;  %v1069_v32 = vmul.f32 %v16584_v56, %v16584_v56  ;;  %v21425_v44 = vld [vmem:[#allocation40_spill] sm:$0xff] }
 0x1cf   : > { %v1098_v51 = vadd.f32 %v1097_v3, %v1063_v2  ;;  %v16598_v3 = vmul.f32 %v999_v46, %v16338_v53  ;;  %v1070_v38 = vmul.f32 %v16591_v34, %v16591_v34  ;;  %v21423_v53 = vld [vmem:[#allocation41_spill] sm:$0xff] }
 0x1d1   : > { %v1099_v16 = vadd.f32 %v1098_v51, %v1064_v8  ;;  %v16605_v51 = vmul.f32 %v1000_v49, %v16336_v52  ;;  %v1071_v41 = vmul.f32 %v16598_v3, %v16598_v3  ;;  %v21421_v52 = vld [vmem:[#allocation36_spill] sm:$0xff] }
 0x1d3   : > { %v1100_v42 = vadd.f32 %v1099_v16, %v1065_v9  ;;  %v16612_v16 = vmul.f32 %v1001_v54, %v16352_v62  ;;  %v1072_v46 = vmul.f32 %v16605_v51, %v16605_v51  ;;  %v21419_v62 = vld [vmem:[#allocation37_spill] sm:$0xff] }
 0x1d5   : > { %v1101_v47 = vadd.f32 %v1100_v42, %v1066_v21  ;;  %v16619_v42 = vmul.f32 %v1002_v58, %v16350_v61  ;;  %v1073_v49 = vmul.f32 %v16612_v16, %v16612_v16  ;;  %v21407_v58 = vld [vmem:[#allocation27_spill] sm:$0xff]  ;;  %v21417_v61 = vld [vmem:[#allocation32_spill] sm:$0xff] }
 0x1d7   : > { %v1102_v2 = vadd.f32 %v1101_v47, %v1067_v24  ;;  %v16626_v47 = vmul.f32 %v1003_v6, %v16366_v18  ;;  %v1074_v54 = vmul.f32 %v16619_v42, %v16619_v42  ;;  %v21415_v18 = vld [vmem:[#allocation33_spill] sm:$0xff] }
 0x1d9   : > { %v1103_v8 = vadd.f32 %v1102_v2, %v1068_v29  ;;  %v16633_v2 = vmul.f32 %v1004_v10, %v16364_v17  ;;  %v21413_v17 = vld [vmem:[#allocation28_spill] sm:$0xff] }
 0x1db   : > { %v1104_v9 = vadd.f32 %v1103_v8, %v1069_v32  ;;  %v21406_v8 = vld [vmem:[#allocation30_spill] sm:$0xff] }
 0x1dc   : > { %v1007_v39 = vsub.f32 %v21406_v8, %v16495_v31  ;;  %v21411_v8 = vld [vmem:[#allocation29_spill] sm:$0xff] }
 0x1dd   : > { %v1105_v21 = vadd.f32 %v1104_v9, %v1070_v38  ;;  %v16640_v38 = vmul.f32 %v1005_v22, %v21407_v58  ;;  %v1075_v9 = vmul.f32 %v16626_v47, %v16626_v47 }
 0x1de   : > { %v16654_v22 = vmul.f32 %v1007_v39, %v21411_v8 }
 0x1df   : > { %v1106_v24 = vadd.f32 %v1105_v21, %v1071_v41  ;;  %v21408_v41 = vld [vmem:[#allocation31_spill] sm:$0xff]  ;;  %v21409_v21 = vld [vmem:[#allocation26_spill] sm:$0xff]  ;;  %v1077_v58 = vmul.f32 %v16640_v38, %v16640_v38 }
 0x1e0   : > { %v1008_v43 = vsub.f32 %v21408_v41, %v16495_v31  ;;  %v16647_v10 = vmul.f32 %v1006_v26, %v21409_v21  ;;  %v1079_v8 = vmul.f32 %v16654_v22, %v16654_v22 }
 0x1e1   : > { %v1107_v29 = vadd.f32 %v1106_v24, %v1072_v46  ;;  %v1076_v46 = vmul.f32 %v16633_v2, %v16633_v2 }
 0x1e2   : > { %v16661_v26 = vmul.f32 %v1008_v43, %v21413_v17  ;;  %v1078_v21 = vmul.f32 %v16647_v10, %v16647_v10 }
 0x1e3   : > { %v1108_v32 = vadd.f32 %v1107_v29, %v1073_v49  ;;  %v21410_v49 = vld [vmem:[#allocation34_spill] sm:$0xff] }
 0x1e4   : > { %v1009_v29 = vsub.f32 %v21410_v49, %v16495_v31  ;;  %v1080_v17 = vmul.f32 %v16661_v26, %v16661_v26 }
 0x1e5   : > { %v1109_v6 = vadd.f32 %v1108_v32, %v1074_v54  ;;  %v21412_v32 = vld [vmem:[#allocation35_spill] sm:$0xff] }
 0x1e6   : > { %v1010_v41 = vsub.f32 %v21412_v32, %v16495_v31  ;;  %v16668_v39 = vmul.f32 %v1009_v29, %v21415_v18 }
 0x1e7   : > { %v1110_v24 = vadd.f32 %v1109_v6, %v1075_v9  ;;  %v21414_v6 = vld [vmem:[#allocation38_spill] sm:$0xff] }
 0x1e8   : > { %v1011_v49 = vsub.f32 %v21414_v6, %v16495_v31  ;;  %v16675_v43 = vmul.f32 %v1010_v41, %v21417_v61  ;;  %v1081_v18 = vmul.f32 %v16668_v39, %v16668_v39 }
 0x1e9   : > { %v1111_v54 = vadd.f32 %v1110_v24, %v1076_v46  ;;  %v21416_v24 = vld [vmem:[#allocation39_spill] sm:$0xff] }
 0x1ea   : > { %v1012_v32 = vsub.f32 %v21416_v24, %v16495_v31  ;;  %v16682_v29 = vmul.f32 %v1011_v49, %v21419_v62  ;;  %v1082_v61 = vmul.f32 %v16675_v43, %v16675_v43 }
 0x1eb   : > { %v1112_v9 = vadd.f32 %v1111_v54, %v1077_v58  ;;  %v21418_v54 = vld [vmem:[#allocation42_spill] sm:$0xff] }
 0x1ec   : > { %v1013_v6 = vsub.f32 %v21418_v54, %v16495_v31  ;;  %v16689_v41 = vmul.f32 %v1012_v32, %v21421_v52  ;;  %v1083_v62 = vmul.f32 %v16682_v29, %v16682_v29 }
 0x1ed   : > { %v1113_v46 = vadd.f32 %v1112_v9, %v1078_v21  ;;  %v21420_v9 = vld [vmem:[#allocation43_spill] sm:$0xff] }
 0x1ee   : > { %v1014_v24 = vsub.f32 %v21420_v9, %v16495_v31  ;;  %v16696_v49 = vmul.f32 %v1013_v6, %v21423_v53  ;;  %v1084_v52 = vmul.f32 %v16689_v41, %v16689_v41 }
 0x1ef   : > { %v1114_v58 = vadd.f32 %v1113_v46, %v1079_v8  ;;  %v21422_v46 = vld [vmem:[#allocation46_spill] sm:$0xff] }
 0x1f0   : > { %v1015_v54 = vsub.f32 %v21422_v46, %v16495_v31  ;;  %v16703_v32 = vmul.f32 %v1014_v24, %v21425_v44  ;;  %v1085_v53 = vmul.f32 %v16696_v49, %v16696_v49 }
 0x1f1   : > { %v1115_v21 = vadd.f32 %v1114_v58, %v1080_v17  ;;  %v21424_v58 = vld [vmem:[#allocation47_spill] sm:$0xff] }
 0x1f2   : > { %v1016_v9 = vsub.f32 %v21424_v58, %v16495_v31  ;;  %v16710_v6 = vmul.f32 %v1015_v54, %v21427_v45  ;;  %v1086_v44 = vmul.f32 %v16703_v32, %v16703_v32 }
 0x1f3   : > { %v1116_v8 = vadd.f32 %v1115_v21, %v1081_v18  ;;  %v21426_v21 = vld [vmem:[#allocation50_spill] sm:$0xff] }
 0x1f4   : > { %v1017_v46 = vsub.f32 %v21426_v21, %v16495_v31  ;;  %v16717_v24 = vmul.f32 %v1016_v9, %v21429_v35  ;;  %v21430_v21 = vld [vmem:[#allocation49_spill] sm:$0xff]  ;;  %v1087_v45 = vmul.f32 %v16710_v6, %v16710_v6 }
 0x1f5   : > { %v1117_v17 = vadd.f32 %v1116_v8, %v1082_v61  ;;  %v21428_v8 = vld [vmem:[#allocation51_spill] sm:$0xff] }
 0x1f6   : > { %v1018_v58 = vsub.f32 %v21428_v8, %v16495_v31  ;;  %v16724_v54 = vmul.f32 %v1017_v46, %v21430_v21  ;;  %v21431_v8 = vld [vmem:[#allocation48_spill] sm:$0xff]  ;;  %v1088_v35 = vmul.f32 %v16717_v24, %v16717_v24 }
 0x1f7   : > { %v1118_v18 = vadd.f32 %v1117_v17, %v1083_v62  ;;  %v1019_v17 = vsub.f32 %v16479_v36, %v16495_v31 }
 0x1f8   : > { %v16731_v9 = vmul.f32 %v1018_v58, %v21431_v8  ;;  %v1089_v36 = vmul.f32 %v16724_v54, %v16724_v54 }
 0x1f9   : > { %v1119_v61 = vadd.f32 %v1118_v18, %v1084_v52  ;;  %v1020_v18 = vsub.f32 %v16486_v14, %v16495_v31 }
 0x1fb   : > { %v1120_v62 = vadd.f32 %v1119_v61, %v1085_v53  ;;  %v16736_v61 = vmul.f32 %v1019_v17, %v16476_v15  ;;  %v16741_v21 = vmul.f32 %v1020_v18, %v16483_v59  ;;  %v21432_v59 = vmov 0.0  }
 0x1fd   : > { %v1121_v52 = vadd.f32 %v1120_v62, %v1086_v44  ;;  %v1090_v44 = vmul.f32 %v16731_v9, %v16731_v9  ;;  %v1091_v31 = vmul.f32 %v16736_v61, %v16736_v61 }
 0x1ff   : > { %v1122_v53 = vadd.f32 %v1121_v52, %v1087_v45  ;;  %v1092_v45 = vmul.f32 %v16741_v21, %v16741_v21 }
 0x201   : > { %v1123_v46 = vadd.f32 %v1122_v53, %v1088_v35 }
 0x203   : > { %v1124_v14 = vadd.f32 %v1123_v46, %v1089_v36  ;;  %v15436_v46 = vld [vmem:[%s21099_s6] sm:$0xff]  }
 0x204   : > { %13566 = vmatprep.subr.bf16.mxu0 %v15436_v46 }
 0x205   : > { %v1125_v58 = vadd.f32 %v1124_v14, %v1090_v44  ;;  %13567 = vmatpush3.bf16.msra.mxu0 %v15436_v46  ;;  %v15437_v14 = vld [vmem:[%s21099_s6 + $0x8] sm:$0xff]  }
 0x206   : > { %13568 = vmatprep.subr.bf16.mxu0 %v15437_v14 }
 0x207   : > { %v1126_v62 = vadd.f32 %v1125_v58, %v1091_v31  ;;  %v15439_v58 = vld [vmem:[%s21099_s6 + $0x18] sm:$0xff]  }
 0x209   : > { %v1127_v17 = vadd.f32 %v1126_v62, %v1092_v45  ;;  %13569 = vmatpush3.bf16.msra.mxu0 %v15437_v14  ;;  %v15440_v45 = vld [vmem:[%s21099_s6 + $0x20] sm:$0xff]   ;;  %v15441_v62 = vld [vmem:[%s21099_s6 + $0x28] sm:$0xff]  }
 0x20b   : > { %v1128_v52 = vrot.slane %v1127_v17, 4 }
 0x20d   : > { %v1129_v15 = vadd.f32 %v1128_v52, %v1127_v17  ;;  %v15442_v17 = vld [vmem:[%s21099_s6 + $0x30] sm:$0xff]   ;;  %v15443_v52 = vld [vmem:[%s21099_s6 + $0x38] sm:$0xff]  }
 0x20f   : > { %v1130_v8 = vrot.slane %v1129_v15, 2 }
 0x211   : > { %v1131_v35 = vadd.f32 %v1130_v8, %v1129_v15  ;;  %v15438_v8 = vld [vmem:[%s21099_s6 + $0x10] sm:$0xff]  }
 0x212   : > { %13570 = vmatprep.subr.bf16.mxu0 %v15438_v8 }
 0x213   : > { %v1132_v53 = vrot.slane %v1131_v35, 1  ;;  %13571 = vmatpush3.bf16.msra.mxu0 %v15438_v8 }
 0x214   : > { %13572 = vmatprep.subr.bf16.mxu0 %v15439_v58 }
 0x215   : > { %v1133_v18 = vadd.f32 %v1132_v53, %v1131_v35 }
 0x217   : > { %13564 = vmatmul.mubr.f32.vlgmr.msra.gmra.mrb[0].mxu1 %v1133_v18  ;;  %13573 = vmatpush3.bf16.msra.mxu0 %v15439_v58  ;;  %v15444_v18 = vld [vmem:[%s21099_s6 + $0x40] sm:$0xff]  }
 0x218   : > { %14066 = vmatprep.mubr.msk.f32.mxu1 %vm15949_vm0, %v21432_v59  ;;  %13574 = vmatprep.subr.bf16.mxu0 %v15440_v45 }
 0x21b   : > { %13575 = vmatpush3.bf16.msra.mxu0 %v15440_v45 }
 0x21c   : > { %13576 = vmatprep.subr.bf16.mxu0 %v15441_v62 }
 0x21f   : > { %13577 = vmatpush3.bf16.msra.mxu0 %v15441_v62 }
 0x220   : > { %13578 = vmatprep.subr.bf16.mxu0 %v15442_v17 }
 0x223   : > { %13579 = vmatpush3.bf16.msra.mxu0 %v15442_v17 }
 0x224   : > { %13580 = vmatprep.subr.bf16.mxu0 %v15443_v52 }
 0x227   : > { %13581 = vmatpush3.bf16.msra.mxu0 %v15443_v52 }
 0x228   : > { %13618 = vmatprep.subr.bf16.mxu0 %v15444_v18 }
 0x2ea   : > { %v1200_v36 = vpop.f32.mrb[0].mxu1 }
 0x2eb   : > { %v13565_v44 = vpop.f32.mrb[1].mxu1  ;;  %v1204_v15 = vmax.f32 %v1200_v36, 0.0 }
 0x2ed   : > { %v1205_v31 = vadd.f32 1e-05, %v1204_v15 }
 0x2ef   : > { %15580 = vrsqrt.f32 %v1205_v31 }
 0x2f9   : > { %v15581_v35 = vpop.eup %15580 }
 0x2fa   : > { %v1210_v53 = vrot.slane %v15581_v35, %v16492_v55 }
 0x2fc   : > { %v1211_v36 = vmul.f32 %v1210_v53, %v16504_v33  ;;  %v1212_v46 = vmul.f32 %v1210_v53, %v16507_v60  ;;  %v1213_v44 = vmul.f32 %v1210_v53, %v16514_v1  ;;  %v1214_v14 = vmul.f32 %v1210_v53, %v16523_v50 }
 0x2fd   : > { %v1215_v15 = vmul.f32 %v1210_v53, %v16528_v13  ;;  %v1216_v8 = vmul.f32 %v1210_v53, %v16535_v57  ;;  %v1217_v31 = vmul.f32 %v1210_v53, %v16542_v40  ;;  %v1218_v58 = vmul.f32 %v1210_v53, %v16549_v48 }
 0x2fe   : > { %v1219_v45 = vmul.f32 %v1210_v53, %v16556_v23  ;;  %v1220_v62 = vmul.f32 %v1210_v53, %v16563_v25  ;;  %v1221_v33 = vmul.f32 %v1210_v53, %v16570_v7  ;;  %v1222_v60 = vmul.f32 %v1210_v53, %v16577_v30 }
 0x2ff   : > { %v1223_v1 = vmul.f32 %v1210_v53, %v16584_v56  ;;  %v1224_v50 = vmul.f32 %v1210_v53, %v16591_v34  ;;  %v1225_v13 = vmul.f32 %v1210_v53, %v16598_v3  ;;  %v1226_v57 = vmul.f32 %v1210_v53, %v16605_v51  ;;  %v16806_v3 = vld [vmem:[%s21096_s3] ss:$0 sm:$0xff] }
 0x300   : > { %v1227_v40 = vmul.f32 %v1210_v53, %v16612_v16  ;;  %v1228_v48 = vmul.f32 %v1210_v53, %v16619_v42  ;;  %v1229_v23 = vmul.f32 %v1210_v53, %v16626_v47  ;;  %v1230_v25 = vmul.f32 %v1210_v53, %v16633_v2 }
 0x301   : > { %v1231_v7 = vmul.f32 %v1210_v53, %v16640_v38  ;;  %v1232_v30 = vmul.f32 %v1210_v53, %v16647_v10  ;;  %v1233_v56 = vmul.f32 %v1210_v53, %v16654_v22  ;;  %v1234_v34 = vmul.f32 %v1210_v53, %v16661_v26 }
 0x302   : > { %v1235_v51 = vmul.f32 %v1210_v53, %v16668_v39  ;;  %v1236_v16 = vmul.f32 %v1210_v53, %v16675_v43  ;;  %v1237_v42 = vmul.f32 %v1210_v53, %v16682_v29  ;;  %v1238_v47 = vmul.f32 %v1210_v53, %v16689_v41 }
 0x303   : > { %v1239_v2 = vmul.f32 %v1210_v53, %v16696_v49  ;;  %v1240_v38 = vmul.f32 %v1210_v53, %v16703_v32  ;;  %v1241_v10 = vmul.f32 %v1210_v53, %v16710_v6  ;;  %v1242_v22 = vmul.f32 %v1210_v53, %v16717_v24 }
 0x304   : > { %v1243_v26 = vmul.f32 %v1210_v53, %v16724_v54  ;;  %v1244_v17 = vmul.f32 %v1210_v53, %v16731_v9  ;;  %v1245_v39 = vmul.f32 %v1210_v53, %v16736_v61  ;;  %v1246_v43 = vmul.f32 %v1210_v53, %v16741_v21  ;;  %v16831_v21 = vld [vmem:[%s21097_s4] ss:$0 sm:$0xff] }
 0x305   : > { %v1253_v29 = vmul.f32 %v16806_v3, %v1211_v36  ;;  %v1254_v41 = vmul.f32 %v16806_v3, %v1212_v46  ;;  %v1255_v49 = vmul.f32 %v16806_v3, %v1213_v44  ;;  %v1256_v32 = vmul.f32 %v16806_v3, %v1214_v14 }
 0x306   : > { %v1257_v6 = vmul.f32 %v16806_v3, %v1215_v15  ;;  %v1258_v24 = vmul.f32 %v16806_v3, %v1216_v8  ;;  %v1259_v54 = vmul.f32 %v16806_v3, %v1217_v31  ;;  %v1260_v9 = vmul.f32 %v16806_v3, %v1218_v58 }
 0x307   : > { %v1261_v61 = vmul.f32 %v16806_v3, %v1219_v45  ;;  %v1262_v52 = vmul.f32 %v16806_v3, %v1220_v62  ;;  %v1263_v35 = vmul.f32 %v16806_v3, %v1221_v33  ;;  %v1264_v53 = vmul.f32 %v16806_v3, %v1222_v60 }
 0x308   : > { %v1265_v18 = vmul.f32 %v16806_v3, %v1223_v1  ;;  %v1266_v36 = vmul.f32 %v16806_v3, %v1224_v50  ;;  %v1267_v46 = vmul.f32 %v16806_v3, %v1225_v13  ;;  %v1268_v44 = vmul.f32 %v16806_v3, %v1226_v57 }
 0x309   : > { %v1269_v14 = vmul.f32 %v16806_v3, %v1227_v40  ;;  %v16843_v15 = vmul.f32 %v16806_v3, %v1228_v48  ;;  %v16846_v8 = vmul.f32 %v16806_v3, %v1229_v23  ;;  %v16849_v31 = vmul.f32 %v16806_v3, %v1230_v25 }
 0x30a   : > { %v16852_v58 = vmul.f32 %v16806_v3, %v1231_v7  ;;  %v16855_v45 = vadd.f32 %v16831_v21, %v1253_v29  ;;  %v16858_v62 = vadd.f32 %v16831_v21, %v1254_v41  ;;  %v16861_v33 = vadd.f32 %v16831_v21, %v1255_v49 }
 0x30b   : > { %v16864_v60 = vmul.f32 %v16806_v3, %v1232_v30  ;;  %v16867_v1 = vmul.f32 %v16806_v3, %v1233_v56  ;;  %v16870_v50 = vmul.f32 %v16806_v3, %v1234_v34  ;;  %v16873_v13 = vadd.f32 %v16831_v21, %v1256_v32 }
 0x30c   : > { %v16876_v57 = vmul.f32 %v16806_v3, %v1235_v51  ;;  %v16879_v40 = vmul.f32 %v16806_v3, %v1236_v16  ;;  %v16882_v48 = vmul.f32 %v16806_v3, %v1237_v42  ;;  %v16885_v23 = vadd.f32 %v16831_v21, %v1257_v6 }
 0x30d   : > { %v16888_v25 = vmul.f32 %v16806_v3, %v1238_v47  ;;  %v16891_v7 = vmul.f32 %v16806_v3, %v1239_v2  ;;  %v16894_v30 = vadd.f32 %v16831_v21, %v1258_v24  ;;  %v16897_v56 = vadd.f32 %v16831_v21, %v1259_v54 }
 0x30e   : > { %v16900_v34 = vmul.f32 %v16806_v3, %v1240_v38  ;;  %v1331_v51 = vsub.f32 0.0, %v16855_v45  ;;  %v1332_v16 = vsub.f32 0.0, %v16858_v62  ;;  %v1333_v42 = vsub.f32 0.0, %v16861_v33 }
 0x30f   : > { %v16906_v47 = vmul.f32 %v16806_v3, %v1241_v10  ;;  %v16909_v2 = vmul.f32 %v16806_v3, %v1242_v22  ;;  %v16912_v29 = vadd.f32 %v16831_v21, %v1260_v9  ;;  %v1334_v41 = vsub.f32 0.0, %v16873_v13 }
 0x310   : > { %v16916_v38 = vmul.f32 %v16806_v3, %v1243_v26  ;;  %v16919_v49 = vmul.f32 %v16806_v3, %v1244_v17  ;;  %v16922_v32 = vadd.f32 %v16831_v21, %v1261_v61  ;;  %v1335_v10 = vsub.f32 0.0, %v16885_v23 }
 0x311   : > { %v16926_v6 = vmul.f32 %v16806_v3, %v1245_v39  ;;  %v16929_v22 = vadd.f32 %v16831_v21, %v1262_v52  ;;  %v1336_v24 = vsub.f32 0.0, %v16894_v30  ;;  %v1337_v54 = vsub.f32 0.0, %v16897_v56 }
 0x312   : > { %v16934_v26 = vadd.f32 %v16831_v21, %v1263_v35  ;;  %v1367_v17 = vmul.f32 1.442695, %v1331_v51  ;;  %v1369_v9 = vmul.f32 1.442695, %v1332_v16  ;;  %v1371_v55 = vmul.f32 1.442695, %v1333_v42 }
 0x313   : > { %v16937_v61 = vmul.f32 %v16806_v3, %v1246_v43  ;;  %v16940_v59 = vadd.f32 %v16831_v21, %v1264_v53  ;;  %v1338_v39 = vsub.f32 0.0, %v16912_v29  ;;  %v1373_v52 = vmul.f32 1.442695, %v1334_v41 }
 0x314   : > { %v16944_v37 = vadd.f32 %v16831_v21, %v1265_v18  ;;  %v1339_v27 = vsub.f32 0.0, %v16922_v32  ;;  %15582 = vpow2.f32 %v1367_v17  ;;  %v1375_v35 = vmul.f32 1.442695, %v1335_v10 }
 0x315   : > { %v16948_v51 = vadd.f32 %v16831_v21, %v1266_v36  ;;  %v1340_v16 = vsub.f32 0.0, %v16929_v22  ;;  %15584 = vpow2.f32 %v1369_v9  ;;  %v1377_v3 = vmul.f32 1.442695, %v1336_v24 }
 0x316   : > { %v16952_v43 = vadd.f32 %v16831_v21, %v1267_v46  ;;  %v1341_v53 = vsub.f32 0.0, %v16934_v26  ;;  %15586 = vpow2.f32 %v1371_v55  ;;  %v1379_v42 = vmul.f32 1.442695, %v1337_v54 }
 0x317   : > { %v16956_v18 = vadd.f32 %v16831_v21, %v1268_v44  ;;  %v1342_v41 = vsub.f32 0.0, %v16940_v59  ;;  %15588 = vpow2.f32 %v1373_v52  ;;  %v1381_v10 = vmul.f32 1.442695, %v1338_v39 }
 0x318   : > { %v16960_v36 = vadd.f32 %v16831_v21, %v1269_v14  ;;  %v1343_v17 = vsub.f32 0.0, %v16944_v37  ;;  %15590 = vpow2.f32 %v1375_v35  ;;  %v1383_v24 = vmul.f32 1.442695, %v1339_v27 }
 0x319   : > { %21433 = vst [vmem:[#allocation30_spill] sm:$0xff] %v16956_v18  ;;  %v16965_v46 = vadd.f32 %v16831_v21, %v16843_v15  ;;  %v1344_v55 = vsub.f32 0.0, %v16948_v51  ;;  %15592 = vpow2.f32 %v1377_v3  ;;  %v1385_v44 = vmul.f32 1.442695, %v1340_v16 }
 0x31a   : > { %21434 = vst [vmem:[#allocation31_spill] sm:$0xff] %v16960_v36  ;;  %v16970_v54 = vadd.f32 %v16831_v21, %v16846_v8  ;;  %v1345_v9 = vsub.f32 0.0, %v16952_v43  ;;  %15594 = vpow2.f32 %v1379_v42  ;;  %v1387_v14 = vmul.f32 1.442695, %v1341_v53 }
 0x31b   : > { %21435 = vst [vmem:[#allocation34_spill] sm:$0xff] %v16965_v46  ;;  %v16975_v39 = vadd.f32 %v16831_v21, %v16849_v31  ;;  %v1346_v27 = vsub.f32 0.0, %v16956_v18  ;;  %15596 = vpow2.f32 %v1381_v10  ;;  %v1389_v15 = vmul.f32 1.442695, %v1342_v41 }
 0x31c   : > { %21436 = vst [vmem:[#allocation35_spill] sm:$0xff] %v16970_v54  ;;  %v16980_v52 = vadd.f32 %v16831_v21, %v16852_v58  ;;  %v1347_v35 = vsub.f32 0.0, %v16960_v36  ;;  %15598 = vpow2.f32 %v1383_v24  ;;  %v1391_v8 = vmul.f32 1.442695, %v1343_v17 }
 0x31d   : > { %21437 = vst [vmem:[#allocation38_spill] sm:$0xff] %v16975_v39  ;;  %v16985_v16 = vadd.f32 %v16831_v21, %v16864_v60  ;;  %v1348_v3 = vsub.f32 0.0, %v16965_v46  ;;  %15600 = vpow2.f32 %v1385_v44  ;;  %v1393_v31 = vmul.f32 1.442695, %v1344_v55 }
 0x31e   : > { %21438 = vst [vmem:[#allocation39_spill] sm:$0xff] %v16980_v52  ;;  %v16988_v53 = vpop.eup %15582  ;;  %v16992_v42 = vadd.f32 %v16831_v21, %v16867_v1  ;;  %v1349_v58 = vsub.f32 0.0, %v16970_v54  ;;  %15602 = vpow2.f32 %v1387_v14  ;;  %v1395_v41 = vmul.f32 1.442695, %v1345_v9 }
 0x31f   : > { %21439 = vst [vmem:[#allocation42_spill] sm:$0xff] %v16985_v16  ;;  %v16995_v10 = vpop.eup %15584  ;;  %v16999_v60 = vadd.f32 %v16831_v21, %v16870_v50  ;;  %v1350_v17 = vsub.f32 0.0, %v16975_v39  ;;  %15604 = vpow2.f32 %v1389_v15  ;;  %v1397_v24 = vmul.f32 1.442695, %v1346_v27 }
 0x320   : > { %21440 = vst [vmem:[#allocation43_spill] sm:$0xff] %v16992_v42  ;;  %v17002_v55 = vpop.eup %15586  ;;  %v17006_v1 = vadd.f32 %v16831_v21, %v16876_v57  ;;  %v1351_v44 = vsub.f32 0.0, %v16980_v52  ;;  %15606 = vpow2.f32 %v1391_v8  ;;  %v1399_v9 = vmul.f32 1.442695, %v1347_v35 }
 0x321   : > { %21441 = vst [vmem:[#allocation46_spill] sm:$0xff] %v16999_v60  ;;  %v17009_v14 = vpop.eup %15588  ;;  %v17013_v50 = vadd.f32 %v16831_v21, %v16879_v40  ;;  %v1352_v39 = vsub.f32 0.0, %v16985_v16  ;;  %15608 = vpow2.f32 %v1393_v31  ;;  %v1401_v27 = vmul.f32 1.442695, %v1348_v3 }
 0x322   : > { %21442 = vst [vmem:[#allocation47_spill] sm:$0xff] %v17006_v1  ;;  %v17016_v15 = vpop.eup %15590  ;;  %v17020_v57 = vadd.f32 %v16831_v21, %v16882_v48  ;;  %v1353_v52 = vsub.f32 0.0, %v16992_v42  ;;  %15610 = vpow2.f32 %v1395_v41  ;;  %v1403_v35 = vmul.f32 1.442695, %v1349_v58 }
 0x323   : > { %21443 = vst [vmem:[#allocation50_spill] sm:$0xff] %v17013_v50  ;;  %v17023_v8 = vpop.eup %15592  ;;  %v17027_v40 = vadd.f32 %v16831_v21, %v16888_v25  ;;  %v1354_v16 = vsub.f32 0.0, %v16999_v60  ;;  %15612 = vpow2.f32 %v1397_v24  ;;  %v1405_v3 = vmul.f32 1.442695, %v1350_v17 }
 0x324   : > { %21444 = vst [vmem:[#allocation51_spill] sm:$0xff] %v17020_v57  ;;  %v17030_v31 = vpop.eup %15594  ;;  %v17034_v48 = vadd.f32 %v16831_v21, %v16891_v7  ;;  %v1355_v42 = vsub.f32 0.0, %v17006_v1  ;;  %15614 = vpow2.f32 %v1399_v9  ;;  %v1407_v58 = vmul.f32 1.442695, %v1351_v44 }
 0x325   : > { %21445 = vst [vmem:[#allocation55_spill] sm:$0xff] %v17027_v40  ;;  %v17037_v41 = vpop.eup %15596  ;;  %v17041_v25 = vadd.f32 %v16831_v21, %v16900_v34  ;;  %v1356_v60 = vsub.f32 0.0, %v17013_v50  ;;  %15616 = vpow2.f32 %v1401_v27  ;;  %v1409_v17 = vmul.f32 1.442695, %v1352_v39 }
 0x326   : > { %21446 = vst [vmem:[#allocation56_spill] sm:$0xff] %v17034_v48  ;;  %v17044_v24 = vpop.eup %15598  ;;  %v17048_v7 = vadd.f32 %v16831_v21, %v16906_v47  ;;  %v1357_v1 = vsub.f32 0.0, %v17020_v57  ;;  %15618 = vpow2.f32 %v1403_v35  ;;  %v1411_v44 = vmul.f32 1.442695, %v1353_v52 }
 0x327   : > { %21447 = vst [vmem:[#allocation57_spill] sm:$0xff] %v17041_v25  ;;  %v17051_v9 = vpop.eup %15600  ;;  %v17055_v34 = vadd.f32 %v16831_v21, %v16909_v2  ;;  %v1358_v50 = vsub.f32 0.0, %v17027_v40  ;;  %15620 = vpow2.f32 %v1405_v3  ;;  %v1413_v39 = vmul.f32 1.442695, %v1354_v16 }
 0x328   : > { %21448 = vst [vmem:[#allocation58_spill] sm:$0xff] %v17048_v7  ;;  %v17058_v27 = vpop.eup %15602  ;;  %v17062_v47 = vadd.f32 %v16831_v21, %v16916_v38  ;;  %v1359_v57 = vsub.f32 0.0, %v17034_v48  ;;  %15622 = vpow2.f32 %v1407_v58  ;;  %v1415_v52 = vmul.f32 1.442695, %v1355_v42 }
 0x329   : > { %21449 = vst [vmem:[#allocation59_spill] sm:$0xff] %v17055_v34  ;;  %v17065_v35 = vpop.eup %15604  ;;  %v17069_v2 = vadd.f32 %v16831_v21, %v16919_v49  ;;  %v1360_v40 = vsub.f32 0.0, %v17041_v25  ;;  %15624 = vpow2.f32 %v1409_v17  ;;  %v1417_v16 = vmul.f32 1.442695, %v1356_v60 }
 0x32a   : > { %21450 = vst [vmem:[#allocation60_spill] sm:$0xff] %v17062_v47  ;;  %v17072_v3 = vpop.eup %15606  ;;  %v17076_v38 = vadd.f32 %v16831_v21, %v16926_v6  ;;  %v1361_v48 = vsub.f32 0.0, %v17048_v7  ;;  %15626 = vpow2.f32 %v1411_v44  ;;  %v1419_v42 = vmul.f32 1.442695, %v1357_v1 }
 0x32b   : > { %21451 = vst [vmem:[#allocation61_spill] sm:$0xff] %v17069_v2  ;;  %v17079_v58 = vpop.eup %15608  ;;  %v17083_v49 = vadd.f32 %v16831_v21, %v16937_v61  ;;  %v1362_v25 = vsub.f32 0.0, %v17055_v34  ;;  %15628 = vpow2.f32 %v1413_v39  ;;  %v1421_v60 = vmul.f32 1.442695, %v1358_v50 }
 0x32c   : > { %21452 = vst [vmem:[#allocation62_spill] sm:$0xff] %v17076_v38  ;;  %v17086_v17 = vpop.eup %15610  ;;  %v1363_v54 = vsub.f32 0.0, %v17062_v47  ;;  %15630 = vpow2.f32 %v1415_v52  ;;  %v1423_v6 = vmul.f32 1.442695, %v1359_v57  ;;  %v1364_v1 = vsub.f32 0.0, %v17069_v2 }
 0x32d   : > { %21453 = vst [vmem:[#allocation63_spill] sm:$0xff] %v17083_v49  ;;  %v17089_v46 = vpop.eup %15612  ;;  %15632 = vpow2.f32 %v1417_v16  ;;  %v1425_v44 = vmul.f32 1.442695, %v1360_v40  ;;  %v1365_v21 = vsub.f32 0.0, %v17076_v38  ;;  %v1427_v61 = vmul.f32 1.442695, %v1361_v48 }
 0x32e   : > { %v17092_v7 = vpop.eup %15614  ;;  %15634 = vpow2.f32 %v1419_v42  ;;  %v1366_v50 = vsub.f32 0.0, %v17083_v49  ;;  %v1429_v34 = vmul.f32 1.442695, %v1362_v25  ;;  %v1431_v57 = vmul.f32 1.442695, %v1363_v54 }
 0x32f   : > { %v15617_v39 = vpop.eup %15616  ;;  %15636 = vpow2.f32 %v1421_v60  ;;  %v1433_v36 = vmul.f32 1.442695, %v1364_v1  ;;  %v1697_v2 = vld [vmem:[#allocation2] sm:$0xfc]  ;;  %v1435_v40 = vmul.f32 1.442695, %v1365_v21 }
 0x330   : > { %v15619_v47 = vpop.eup %15618  ;;  %15638 = vpow2.f32 %v1423_v6  ;;  %v1437_v38 = vmul.f32 1.442695, %v1366_v50  ;;  %v1439_v48 = vadd.f32 1.0, %v16988_v53  ;;  %v1734_v49 = vshrl.u32 %v1697_v2, 16 }
 0x331   : > { %v15621_v52 = vpop.eup %15620  ;;  %15640 = vpow2.f32 %v1425_v44  ;;  %v1737_v60 = vshll.u32 %v1697_v2, 16  ;;  %v1440_v54 = vadd.f32 1.0, %v16995_v10  ;;  %v1441_v1 = vadd.f32 1.0, %v17002_v55 }
 0x332   : > { %v15623_v16 = vpop.eup %15622  ;;  %15642 = vpow2.f32 %v1427_v61  ;;  %v1442_v21 = vadd.f32 1.0, %v17009_v14  ;;  %v1443_v61 = vadd.f32 1.0, %v17016_v15  ;;  %v17101_v50 = vrot.slane %v1734_v49, 2 }
 0x333   : > { %v15625_v18 = vpop.eup %15624  ;;  %15644 = vpow2.f32 %v1429_v34  ;;  %v17103_v53 = vrot.slane %v1737_v60, 3  ;;  %v1447_v15 = vadd.f32 1.0, %v17044_v24  ;;  %v1448_v49 = vadd.f32 1.0, %v17051_v9 }
 0x334   : > { %v15627_v42 = vpop.eup %15626  ;;  %15646 = vpow2.f32 %v1431_v57  ;;  %21454 = vst [vmem:[#allocation64_spill] sm:$0xff] %v17101_v50  ;;  %v1445_v57 = vadd.f32 1.0, %v17030_v31  ;;  %v1450_v60 = vadd.f32 1.0, %v17065_v35  ;;  %v1451_v31 = vadd.f32 1.0, %v17072_v3 }
 0x335   : > { %v15629_v25 = vpop.eup %15628  ;;  %15648 = vpow2.f32 %v1433_v36  ;;  %21455 = vst [vmem:[#allocation65_spill] sm:$0xff] %v17103_v53  ;;  %v1444_v36 = vadd.f32 1.0, %v17023_v8  ;;  %v1449_v8 = vadd.f32 1.0, %v17058_v27  ;;  %v1454_v24 = vadd.f32 1.0, %v17089_v46 }
 0x336   : > { %v15631_v6 = vpop.eup %15630  ;;  %15650 = vpow2.f32 %v1435_v40  ;;  %v1457_v40 = vadd.f32 1.0, %v15619_v47  ;;  %v1458_v50 = vadd.f32 1.0, %v15621_v52  ;;  %v1459_v35 = vadd.f32 1.0, %v15623_v16 }
 0x337   : > { %v15633_v44 = vpop.eup %15632  ;;  %15652 = vpow2.f32 %v1437_v38  ;;  %v1446_v38 = vadd.f32 1.0, %v17037_v41  ;;  %v1452_v41 = vadd.f32 1.0, %v17079_v58  ;;  %v17119_v53 = vadd.f32 1.0, %v15625_v18 }
 0x338   : > { %v15635_v34 = vpop.eup %15634  ;;  %15654 = vrcp.f32 %v1439_v48  ;;  %v17123_v58 = vadd.f32 1.0, %v15629_v25 }
 0x339   : > { %v15637_v2 = vpop.eup %15636  ;;  %15656 = vrcp.f32 %v1440_v54 }
 0x33a   : > { %v15639_v10 = vpop.eup %15638  ;;  %15658 = vrcp.f32 %v1441_v1  ;;  %v1453_v1 = vadd.f32 1.0, %v17086_v17  ;;  %v17125_v17 = vadd.f32 1.0, %v15631_v6  ;;  %v17131_v47 = vadd.f32 1.0, %v15637_v2 }
 0x33b   : > { %v15641_v55 = vpop.eup %15640  ;;  %15660 = vrcp.f32 %v1442_v21  ;;  %v1455_v21 = vadd.f32 1.0, %v17092_v7  ;;  %v17129_v7 = vadd.f32 1.0, %v15635_v34  ;;  %v17133_v18 = vadd.f32 1.0, %v15639_v10 }
 0x33c   : > { %v15643_v14 = vpop.eup %15642  ;;  %15662 = vrcp.f32 %v1443_v61  ;;  %v1456_v61 = vadd.f32 1.0, %v15617_v39  ;;  %v17135_v52 = vadd.f32 1.0, %v15641_v55 }
 0x33d   : > { %v15645_v48 = vpop.eup %15644  ;;  %15664 = vrcp.f32 %v1444_v36  ;;  %v17121_v36 = vadd.f32 1.0, %v15627_v42  ;;  %v17138_v25 = vadd.f32 1.0, %v15643_v14 }
 0x33e   : > { %v15647_v54 = vpop.eup %15646  ;;  %15666 = vrcp.f32 %v1445_v57  ;;  %v17127_v57 = vadd.f32 1.0, %v15633_v44  ;;  %v17140_v6 = vadd.f32 1.0, %v15645_v48 }
 0x33f   : > { %v15649_v9 = vpop.eup %15648  ;;  %15668 = vrcp.f32 %v1446_v38  ;;  %v17143_v2 = vadd.f32 1.0, %v15647_v54 }
 0x340   : > { %v15651_v27 = vpop.eup %15650  ;;  %15670 = vrcp.f32 %v1447_v15  ;;  %v17147_v15 = vadd.f32 1.0, %v15649_v9 }
 0x341   : > { %v15653_v3 = vpop.eup %15652  ;;  %15672 = vrcp.f32 %v1448_v49  ;;  %v17151_v48 = vadd.f32 1.0, %v15651_v27 }
 0x342   : > { %v15655_v46 = vpop.eup %15654  ;;  %15674 = vrcp.f32 %v1449_v8 }
 0x343   : > { %v15657_v39 = vpop.eup %15656  ;;  %15676 = vrcp.f32 %v1450_v60  ;;  %v1511_v16 = vmul.f32 %v15655_v46, %v16855_v45 }
 0x344   : > { %v15659_v42 = vpop.eup %15658  ;;  %15678 = vrcp.f32 %v1451_v31  ;;  %v1512_v44 = vmul.f32 %v15657_v39, %v16858_v62 }
 0x345   : > { %v15661_v34 = vpop.eup %15660  ;;  %15680 = vrcp.f32 %v1452_v41  ;;  %v1513_v10 = vmul.f32 %v15659_v42, %v16861_v33  ;;  %v1547_v55 = vmul.f32 %v1511_v16, %v16242_v0 }
 0x346   : > { %v15663_v38 = vpop.eup %15662  ;;  %15682 = vrcp.f32 %v1453_v1  ;;  %v1514_v45 = vmul.f32 %v15661_v34, %v16873_v13  ;;  %v1548_v14 = vmul.f32 %v1512_v44, %v16255_v5  ;;  %v17157_v1 = vadd.f32 1.0, %v15653_v3  ;;  %v21456_v34 = vld [vmem:[#allocation14_spill] sm:$0xff] }
 0x347   : > { %v15665_v49 = vpop.eup %15664  ;;  %15684 = vrcp.f32 %v1454_v24  ;;  %v1515_v62 = vmul.f32 %v15663_v38, %v16885_v23  ;;  %v1549_v8 = vmul.f32 %v1513_v10, %v16240_v63  ;;  %v21457_v38 = vld [vmem:[#allocation17_spill] sm:$0xff] }
 0x348   : > { %v15667_v60 = vpop.eup %15666  ;;  %15686 = vrcp.f32 %v1455_v21  ;;  %v1516_v33 = vmul.f32 %v15665_v49, %v16894_v30  ;;  %v1550_v31 = vmul.f32 %v1514_v45, %v16253_v4  ;;  %v1587_v54 = vpack.c.bf16 %v1548_v14, %v1547_v55 }
 0x349   : > { %v15669_v41 = vpop.eup %15668  ;;  %15688 = vrcp.f32 %v1456_v61  ;;  %v1517_v13 = vmul.f32 %v15667_v60, %v16897_v56  ;;  %v1551_v9 = vmul.f32 %v1515_v62, %v16268_v12 }
 0x34a   : > { %v15671_v24 = vpop.eup %15670  ;;  %15690 = vrcp.f32 %v1457_v40  ;;  %v1518_v23 = vmul.f32 %v15669_v41, %v16912_v29  ;;  %v1552_v27 = vmul.f32 %v1516_v33, %v16266_v11  ;;  %v1588_v21 = vpack.c.bf16 %v1550_v31, %v1549_v8  ;;  %v21459_v8 = vld [vmem:[#allocation19_spill] sm:$0xff] }
 0x34b   : > { %v15673_v46 = vpop.eup %15672  ;;  %15692 = vrcp.f32 %v1458_v50  ;;  %v1519_v30 = vmul.f32 %v15671_v24, %v16922_v32  ;;  %v1553_v39 = vmul.f32 %v1517_v13, %v16282_v20  ;;  %v1624_v3 = vrot.slane %v1587_v54, 4  ;;  %v21461_v54 = vld [vmem:[#allocation18_spill] sm:$0xff] }
 0x34c   : > { %v15675_v16 = vpop.eup %15674  ;;  %15694 = vrcp.f32 %v1459_v35  ;;  %v1520_v56 = vmul.f32 %v15673_v46, %v16929_v22  ;;  %v1554_v61 = vmul.f32 %v1518_v23, %v16280_v19  ;;  %v1589_v42 = vpack.c.bf16 %v1552_v27, %v1551_v9 }
 0x34d   : > { %v15677_v40 = vpop.eup %15676  ;;  %15696 = vrcp.f32 %v17119_v53  ;;  %v1521_v29 = vmul.f32 %v15675_v16, %v16934_v26  ;;  %v17170_v44 = vmul.f32 %v1519_v30, %v16296_v28  ;;  %v1625_v50 = vrot.slane %v1588_v21, 4  ;;  %1678 = vst [vmem:[#allocation2 + $0x8] sm:$0xf0] %v1624_v3  ;;  %v21465_v30 = vld [vmem:[#allocation20_spill] sm:$0xff] }
 0x34e   : > { %v15679_v32 = vpop.eup %15678  ;;  %15698 = vrcp.f32 %v17121_v36  ;;  %v1522_v35 = vmul.f32 %v15677_v40, %v16940_v59  ;;  %v1556_v22 = vmul.f32 %v1520_v56, %v21456_v34  ;;  %v1590_v10 = vpack.c.bf16 %v1554_v61, %v1553_v39  ;;  %v21458_v59 = vld [vmem:[#allocation16_spill] sm:$0xff]  ;;  %v21467_v61 = vld [vmem:[#allocation23_spill] sm:$0xff] }
 0x34f   : > { %v15681_v55 = vpop.eup %15680  ;;  %15700 = vrcp.f32 %v17123_v58  ;;  %v1523_v53 = vmul.f32 %v15679_v32, %v16944_v37  ;;  %v17178_v26 = vmul.f32 %v1521_v29, %v21457_v38  ;;  %v17181_v45 = vsel %vm1623_vm1, %v1624_v3, %v1625_v50 }
 0x350   : > { %v15683_v14 = vpop.eup %15682  ;;  %15702 = vrcp.f32 %v17125_v17  ;;  %v1524_v36 = vmul.f32 %v15681_v55, %v16948_v51  ;;  %v17186_v49 = vmul.f32 %v1522_v35, %v21458_v59  ;;  %v1591_v62 = vpack.c.bf16 %v1556_v22, %v17170_v44  ;;  %1679 = vst [vmem:[#allocation2 + $0x10] sm:$0xff] %v17181_v45  ;;  %v21460_v51 = vld [vmem:[#allocation30_spill] sm:$0xff]  ;;  %v21470_v55 = vld [vmem:[#allocation39_spill] sm:$0xff] }
 0x351   : > { %v15685_v58 = vpop.eup %15684  ;;  %15704 = vrcp.f32 %v17127_v57  ;;  %v1525_v37 = vmul.f32 %v15683_v14, %v16952_v43  ;;  %v17193_v60 = vmul.f32 %v1523_v53, %v21459_v8  ;;  %v1627_v33 = vrot.slane %v1589_v42, 4  ;;  %v21462_v57 = vld [vmem:[#allocation31_spill] sm:$0xff]  ;;  %v21463_v43 = vld [vmem:[#allocation21_spill] sm:$0xff] }
 0x352   : > { %v15687_v31 = vpop.eup %15686  ;;  %15706 = vrcp.f32 %v17129_v7  ;;  %v1526_v17 = vmul.f32 %v15685_v58, %v21460_v51  ;;  %v1560_v41 = vmul.f32 %v1524_v36, %v21461_v54  ;;  %v1592_v13 = vpack.c.bf16 %v17186_v49, %v17178_v26  ;;  %v21464_v7 = vld [vmem:[#allocation34_spill] sm:$0xff]  ;;  %v21471_v26 = vld [vmem:[#allocation25_spill] sm:$0xff]  ;;  %v21473_v49 = vld [vmem:[#allocation24_spill] sm:$0xff] }
 0x353   : > { %v15689_v9 = vpop.eup %15688  ;;  %15708 = vrcp.f32 %v17131_v47  ;;  %v1527_v24 = vmul.f32 %v15687_v31, %v21462_v57  ;;  %v1561_v23 = vmul.f32 %v1525_v37, %v21463_v43  ;;  %v17204_v27 = vsel %vm1623_vm1, %v1625_v50, %v1627_v33  ;;  %v21466_v47 = vld [vmem:[#allocation35_spill] sm:$0xff]  ;;  %v21469_v50 = vld [vmem:[#allocation22_spill] sm:$0xff] }
 0x354   : > { %v15691_v21 = vpop.eup %15690  ;;  %15710 = vrcp.f32 %v17133_v18  ;;  %v1528_v46 = vmul.f32 %v15689_v9, %v21464_v7  ;;  %v1562_v39 = vmul.f32 %v1526_v17, %v21465_v30  ;;  %v1593_v3 = vpack.c.bf16 %v1560_v41, %v17193_v60  ;;  %1680 = vst [vmem:[#allocation2 + $0x18] sm:$0xff] %v17204_v27  ;;  %v21468_v18 = vld [vmem:[#allocation38_spill] sm:$0xff]  ;;  %v21475_v51 = vld [vmem:[#allocation27_spill] sm:$0xff] }
 0x355   : > { %v15693_v16 = vpop.eup %15692  ;;  %15712 = vrcp.f32 %v17135_v52  ;;  %v1529_v56 = vmul.f32 %v15691_v21, %v21466_v47  ;;  %v1563_v42 = vmul.f32 %v1527_v24, %v21467_v61  ;;  %v1629_v40 = vrot.slane %v1590_v10, 4  ;;  %v21472_v10 = vld [vmem:[#allocation42_spill] sm:$0xff]  ;;  %v21478_v7 = vld [vmem:[#allocation47_spill] sm:$0xff] }
 0x356   : > { %v15695_v29 = vpop.eup %15694  ;;  %15714 = vrcp.f32 %v17138_v25  ;;  %v1530_v44 = vmul.f32 %v15693_v16, %v21468_v18  ;;  %v1564_v32 = vmul.f32 %v1528_v46, %v21469_v50  ;;  %v1594_v35 = vpack.c.bf16 %v1562_v39, %v1561_v23  ;;  %v21476_v9 = vld [vmem:[#allocation46_spill] sm:$0xff]  ;;  %v21479_v39 = vld [vmem:[#allocation29_spill] sm:$0xff] }
 0x357   : > { %v15697_v22 = vpop.eup %15696  ;;  %15716 = vrcp.f32 %v17140_v6  ;;  %v1531_v53 = vmul.f32 %v15695_v29, %v21470_v55  ;;  %v1565_v52 = vmul.f32 %v1529_v56, %v21471_v26  ;;  %v17221_v14 = vsel %vm1623_vm1, %v1627_v33, %v1629_v40  ;;  %v21474_v6 = vld [vmem:[#allocation43_spill] sm:$0xff]  ;;  %v21477_v57 = vld [vmem:[#allocation26_spill] sm:$0xff] }
 0x358   : > { %v15699_v36 = vpop.eup %15698  ;;  %15718 = vrcp.f32 %v17143_v2  ;;  %v1532_v25 = vmul.f32 %v15697_v22, %v21472_v10  ;;  %v1566_v58 = vmul.f32 %v1530_v44, %v21473_v49  ;;  %v1595_v37 = vpack.c.bf16 %v1564_v32, %v1563_v42  ;;  %1681 = vst [vmem:[#allocation2 + $0x20] sm:$0xff] %v17221_v14  ;;  %v21481_v42 = vld [vmem:[#allocation28_spill] sm:$0xff]  ;;  %v21482_v32 = vld [vmem:[#allocation51_spill] sm:$0xff] }
 0x359   : > { %v15701_v60 = vpop.eup %15700  ;;  %15720 = vrcp.f32 %v17147_v15  ;;  %v1533_v31 = vmul.f32 %v15699_v36, %v21474_v6  ;;  %v1567_v17 = vmul.f32 %v1531_v53, %v21475_v51  ;;  %v1631_v41 = vrot.slane %v1591_v62, 4  ;;  %v21480_v62 = vld [vmem:[#allocation50_spill] sm:$0xff]  ;;  %v21484_v10 = vld [vmem:[#allocation55_spill] sm:$0xff]  ;;  %v17504_v49 = vld [vmem:[%s21099_s6 + $0x80] sm:$0xff]  }
 0x35a   : > { %v15703_v33 = vpop.eup %15702  ;;  %15722 = vrcp.f32 %v17151_v48  ;;  %v1534_v2 = vmul.f32 %v15701_v60, %v21476_v9  ;;  %v1568_v24 = vmul.f32 %v1532_v25, %v21477_v57  ;;  %v1596_v23 = vpack.c.bf16 %v1566_v58, %v1565_v52  ;;  %v21485_v25 = vld [vmem:[#allocation32_spill] sm:$0xff] }
 0x35b   : > { %v15705_v21 = vpop.eup %15704  ;;  %15724 = vrcp.f32 %v17157_v1  ;;  %v1535_v46 = vmul.f32 %v15703_v33, %v21478_v7  ;;  %v1569_v15 = vmul.f32 %v1533_v31, %v21479_v39  ;;  %v17237_v16 = vsel %vm1623_vm1, %v1629_v40, %v1631_v41  ;;  %v21483_v1 = vld [vmem:[#allocation33_spill] sm:$0xff]  ;;  %v21489_v7 = vld [vmem:[#allocation36_spill] sm:$0xff] }
 0x35c   : > { %v15707_v47 = vpop.eup %15706  ;;  %v1536_v56 = vmul.f32 %v15705_v21, %v21480_v62  ;;  %v1570_v48 = vmul.f32 %v1534_v2, %v21481_v42  ;;  %v1597_v29 = vpack.c.bf16 %v1568_v24, %v1567_v17  ;;  %v1633_v18 = vrot.slane %v1592_v13, 4  ;;  %1682 = vst [vmem:[#allocation2 + $0x28] sm:$0xff] %v17237_v16  ;;  %v21486_v13 = vld [vmem:[#allocation56_spill] sm:$0xff]  ;;  %v21487_v33 = vld [vmem:[#allocation37_spill] sm:$0xff]  ;;  %v21490_v62 = vld [vmem:[#allocation58_spill] sm:$0xff] }
 0x35d   : > { %v15709_v44 = vpop.eup %15708  ;;  %v1537_v22 = vmul.f32 %v15707_v47, %v21482_v32  ;;  %v1571_v55 = vmul.f32 %v1535_v46, %v21483_v1  ;;  %v1635_v53 = vrot.slane %v1593_v3, 4  ;;  %v1637_v52 = vrot.slane %v1594_v35, 4  ;;  %v21488_v24 = vld [vmem:[#allocation57_spill] sm:$0xff] }
 0x35e   : > { %v15711_v36 = vpop.eup %15710  ;;  %v1538_v40 = vmul.f32 %v15709_v44, %v21484_v10  ;;  %v1572_v58 = vmul.f32 %v1536_v56, %v21485_v25  ;;  %v1598_v60 = vpack.c.bf16 %v1570_v48, %v1569_v15  ;;  %v17247_v6 = vsel %vm1623_vm1, %v1631_v41, %v1633_v18  ;;  %v21491_v48 = vld [vmem:[#allocation41_spill] sm:$0xff]  ;;  %v21493_v10 = vld [vmem:[#allocation40_spill] sm:$0xff] }
 0x35f   : > { %v15713_v31 = vpop.eup %15712  ;;  %v1539_v17 = vmul.f32 %v15711_v36, %v21486_v13  ;;  %v1573_v9 = vmul.f32 %v1537_v22, %v21487_v33  ;;  %v17252_v2 = vsel %vm1623_vm1, %v1633_v18, %v1635_v53  ;;  %v17255_v3 = vsel %vm1623_vm1, %v1635_v53, %v1637_v52  ;;  %1683 = vst [vmem:[#allocation2 + $0x30] sm:$0xff] %v17247_v6  ;;  %v21492_v53 = vld [vmem:[#allocation59_spill] sm:$0xff] }
 0x360   : > { %v15715_v35 = vpop.eup %15714  ;;  %v1540_v21 = vmul.f32 %v15713_v31, %v21488_v24  ;;  %v1574_v46 = vmul.f32 %v1538_v40, %v21489_v7  ;;  %v1599_v41 = vpack.c.bf16 %v1572_v58, %v1571_v55  ;;  %v1639_v15 = vrot.slane %v1595_v37, 4  ;;  %1684 = vst [vmem:[#allocation2 + $0x38] sm:$0xff] %v17252_v2  ;;  %1685 = vst [vmem:[#allocation2 + $0x40] sm:$0xff] %v17255_v3  ;;  %v21494_v40 = vld [vmem:[#allocation60_spill] sm:$0xff]  ;;  %v21495_v24 = vld [vmem:[#allocation45_spill] sm:$0xff] }
 0x361   : > { %v15717_v47 = vpop.eup %15716  ;;  %v1541_v56 = vmul.f32 %v15715_v35, %v21490_v62  ;;  %v1575_v18 = vmul.f32 %v1539_v17, %v21491_v48  ;;  %v1641_v44 = vrot.slane %v1596_v23, 4  ;;  %v1643_v32 = vrot.slane %v1597_v29, 4  ;;  %v21496_v17 = vld [vmem:[#allocation61_spill] sm:$0xff] }
 0x362   : > { %v15719_v22 = vpop.eup %15718  ;;  %v1542_v36 = vmul.f32 %v15717_v47, %v21492_v53  ;;  %v1576_v31 = vmul.f32 %v1540_v21, %v21493_v10  ;;  %v1600_v13 = vpack.c.bf16 %v1574_v46, %v1573_v9  ;;  %v17267_v55 = vsel %vm1623_vm1, %v1637_v52, %v1639_v15  ;;  %v21497_v9 = vld [vmem:[#allocation44_spill] sm:$0xff]  ;;  %v21500_v10 = vld [vmem:[#allocation63_spill] sm:$0xff] }
 0x363   : > { %v15721_v37 = vpop.eup %15720  ;;  %v1543_v58 = vmul.f32 %v15719_v22, %v21494_v40  ;;  %v1577_v7 = vmul.f32 %v1541_v56, %v21495_v24  ;;  %v17272_v35 = vsel %vm1623_vm1, %v1639_v15, %v1641_v44  ;;  %v17275_v23 = vsel %vm1623_vm1, %v1641_v44, %v1643_v32  ;;  %1686 = vst [vmem:[#allocation2 + $0x48] sm:$0xff] %v17267_v55  ;;  %v21498_v56 = vld [vmem:[#allocation62_spill] sm:$0xff]  ;;  %v21499_v22 = vld [vmem:[#allocation49_spill] sm:$0xff] }
 0x364   : > { %v15723_v29 = vpop.eup %15722  ;;  %v1544_v21 = vmul.f32 %v15721_v37, %v21496_v17  ;;  %v1578_v46 = vmul.f32 %v1542_v36, %v21497_v9  ;;  %v1601_v52 = vpack.c.bf16 %v1576_v31, %v1575_v18  ;;  %v1645_v47 = vrot.slane %v1598_v60, 4  ;;  %1687 = vst [vmem:[#allocation2 + $0x50] sm:$0xff] %v17272_v35  ;;  %1688 = vst [vmem:[#allocation2 + $0x58] sm:$0xff] %v17275_v23  ;;  %v17284_v24 = vld [vmem:[#allocation2 + $0x8] sm:$0xff]  ;;  %v21501_v37 = vld [vmem:[#allocation48_spill] sm:$0xff] }
 0x365   : > { %v15725_v62 = vpop.eup %15724  ;;  %v1545_v15 = vmul.f32 %v15723_v29, %v21498_v56  ;;  %v1579_v53 = vmul.f32 %v1543_v58, %v21499_v22  ;;  %v1647_v44 = vrot.slane %v1599_v41, 4  ;;  %v1649_v40 = vrot.slane %v1600_v13, 4  ;;  %v21502_v18 = vld [vmem:[#allocation52_spill] sm:$0xff]  ;;  %v21503_v13 = vld [vmem:[#allocation53_spill] sm:$0xff] }
 0x366   : > { %v1546_v48 = vmul.f32 %v15725_v62, %v21500_v10  ;;  %v1580_v17 = vmul.f32 %v1544_v21, %v21501_v37  ;;  %v1602_v36 = vpack.c.bf16 %v1578_v46, %v1577_v7  ;;  %v17289_v60 = vsel %vm1623_vm1, %v1643_v32, %v1645_v47 }
 0x367   : > { %v1581_v31 = vmul.f32 %v1545_v15, %v21502_v18  ;;  %v17293_v9 = vsel %vm1623_vm1, %v1645_v47, %v1647_v44  ;;  %v17296_v58 = vsel %vm1623_vm1, %v1647_v44, %v1649_v40  ;;  %v1651_v41 = vrot.slane %v1601_v52, 4  ;;  %1689 = vst [vmem:[#allocation2 + $0x60] sm:$0xff] %v17289_v60  ;;  %v21504_v18 = vld [vmem:[#allocation65_spill] sm:$0xff] }
 0x368   : > { %v1582_v10 = vmul.f32 %v1546_v48, %v21503_v13  ;;  %v1603_v29 = vpack.c.bf16 %v1580_v17, %v1579_v53  ;;  %v1653_v21 = vrot.slane %v1602_v36, 4  ;;  %1690 = vst [vmem:[#allocation2 + $0x68] sm:$0xff] %v17293_v9  ;;  %1691 = vst [vmem:[#allocation2 + $0x70] sm:$0xff] %v17296_v58  ;;  %v21208_v7 = vshrl.u32 %v17284_v24, 16 }
 0x369   : > { %v17304_v32 = vsel %vm1623_vm1, %v1649_v40, %v1651_v41  ;;  %v21206_v46 = vshll.u32 %v17284_v24, 16  ;;  %v21207_v47 = vshrl.u32 %v17181_v45, 16  ;;  %v21209_v52 = vshll.u32 %v17181_v45, 16 }
 0x36a   : > { %v1604_v62 = vpack.c.bf16 %v1582_v10, %v1581_v31  ;;  %v17310_v48 = vsel %vm1623_vm1, %v1651_v41, %v1653_v21  ;;  %v1655_v56 = vrot.slane %v1603_v29, 4  ;;  %1692 = vst [vmem:[#allocation2 + $0x78] sm:$0xff] %v17304_v32  ;;  %v1744_v15 = vrot.slane %v21208_v7, 2 }
 0x36b   : > { %1693 = vst [vmem:[#allocation2 + $0x80] sm:$0xff] %v17310_v48  ;;  %v1747_v53 = vrot.slane %v21206_v46, 3  ;;  %v1753_v44 = vrot.slane %v21207_v47, 2  ;;  %v1756_v40 = vrot.slane %v21209_v52, 3  ;;  %v21215_v17 = vshrl.u32 %v17204_v27, 16 }
 0x36c   : > { %v17324_v36 = vsel %vm1623_vm1, %v1653_v21, %v1655_v56  ;;  %v1657_v31 = vrot.slane %v1604_v62, 4  ;;  %v21210_v41 = vshll.u32 %v17204_v27, 16  ;;  %v21211_v10 = vshrl.u32 %v17221_v14, 16 }
 0x36d   : > { %1694 = vst [vmem:[#allocation2 + $0x88] sm:$0xff] %v17324_v36  ;;  %v1748_v29 = vor.u32 %v1747_v53, %v1744_v15  ;;  %v1757_v46 = vor.u32 %v1756_v40, %v1753_v44  ;;  %v1762_v47 = vrot.slane %v21215_v17, 2  ;;  %v21212_v7 = vshll.u32 %v17221_v14, 16  ;;  %v21505_v15 = vld [vmem:[#allocation64_spill] sm:$0xff] }
 0x36e   : > { %v1658_v52 = vsel %vm1623_vm1, %v1655_v56, %v1657_v31  ;;  %1696 = vst [vmem:[#allocation2 + $0x98] sm:$0xf] %v1657_v31  ;;  %v1765_v21 = vrot.slane %v21210_v41, 3  ;;  %v1771_v62 = vrot.slane %v21211_v10, 2  ;;  %v21214_v13 = vshrl.u32 %v17237_v16, 16  ;;  %v15445_v31 = vld [vmem:[%s21099_s6 + $0x48] sm:$0xff]  }
 0x36f   : > { %1695 = vst [vmem:[#allocation2 + $0x90] sm:$0xff] %v1658_v52  ;;  %v21506_v53 = vor.u32 %v21504_v18, %v21505_v15  ;;  %v1758_v40 = vsel %vm1732_vm2, %v1748_v29, %v1757_v46  ;;  %v1774_v56 = vrot.slane %v21212_v7, 3  ;;  %v21213_v41 = vshll.u32 %v17237_v16, 16 }
 0x370   : > { %v1766_v10 = vor.u32 %v1765_v21, %v1762_v47  ;;  %v1780_v52 = vrot.slane %v21214_v13, 2  ;;  %v21217_v7 = vshll.u32 %v17247_v6, 16  ;;  %v15446_v21 = vld [vmem:[%s21099_s6 + $0x50] sm:$0xff]   ;;  %v21509_v22 = vshll.u32 %v17267_v55, 16 }
 0x371   : > { %v1749_v44 = vsel %vm1732_vm2, %v21506_v53, %v1748_v29  ;;  %v1783_v18 = vrot.slane %v21213_v41, 3  ;;  %v15876_v29 = vld [vmem:[%s21099_s6 + $0x40] sm:$0xff]   ;;  %v21216_v53 = vshrl.u32 %v17247_v6, 16  ;;  %v1775_v47 = vor.u32 %v1774_v56, %v1771_v62  ;;  %v17759_v11 = vld [vmem:[#allocation2 + $0x78] sm:$0xff] }
 0x372   : > { %13582 = vmatprep.mubr.bf16.mxu0 %v1749_v44  ;;  %v1767_v15 = vsel %vm1732_vm2, %v1757_v46, %v1766_v10  ;;  %v21218_v44 = vshrl.u32 %v17252_v2, 16  ;;  %v21220_v41 = vshrl.u32 %v17255_v3, 16  ;;  %v1792_v62 = vrot.slane %v21217_v7, 3 }
 0x373   : > { %13583 = vmatmul.mubr.bf16.vlgmr.msra.gmra.mrb[4].mxu0 %v1758_v40  ;;  %v21219_v40 = vshll.u32 %v17252_v2, 16  ;;  %v1789_v13 = vrot.slane %v21216_v53, 2  ;;  %v1776_v17 = vsel %vm1732_vm2, %v1766_v10, %v1775_v47  ;;  %v21513_v53 = vshll.u32 %v17275_v23, 16 }
 0x374   : > { %13619 = vmatpush3.bf16.msra.mxu0 %v15876_v29  ;;  %13586 = vmatprep.mubr.bf16.mxu0 %v1767_v15  ;;  %v1784_v29 = vor.u32 %v1783_v18, %v1780_v52  ;;  %v15447_v52 = vld [vmem:[%s21099_s6 + $0x58] sm:$0xff]   ;;  %v1798_v7 = vrot.slane %v21218_v44, 2  ;;  %v1807_v10 = vrot.slane %v21220_v41, 2  ;;  %v21507_v18 = vshll.u32 %v17255_v3, 16 }
 0x375   : > { %13620 = vmatprep.subr.bf16.mxu0 %v15445_v31  ;;  %v1801_v56 = vrot.slane %v21219_v40, 3  ;;  %v21508_v44 = vshrl.u32 %v17267_v55, 16  ;;  %v1819_v41 = vrot.slane %v21509_v22, 3  ;;  %v21514_v1 = vshrl.u32 %v17289_v60, 16 }
 0x376   : > { %v1785_v46 = vsel %vm1732_vm2, %v1775_v47, %v1784_v29  ;;  %v1810_v37 = vrot.slane %v21507_v18, 3  ;;  %v21511_v47 = vshll.u32 %v17272_v35, 16  ;;  %v21512_v18 = vshrl.u32 %v17275_v23, 16  ;;  %v17770_v5 = vld [vmem:[#allocation2 + $0x90] sm:$0xff] }
 0x377   : > { %v1816_v40 = vrot.slane %v21508_v44, 2  ;;  %v1793_v44 = vor.u32 %v1792_v62, %v1789_v13  ;;  %v1802_v25 = vor.u32 %v1801_v56, %v1798_v7  ;;  %v1843_v42 = vrot.slane %v21514_v1, 2  ;;  %v15449_v13 = vld [vmem:[%s21099_s6 + $0x68] sm:$0xff]  }
 0x378   : > { %13621 = vmatpush3.bf16.msra.mxu0 %v15445_v31  ;;  %v1828_v33 = vrot.slane %v21511_v47, 3  ;;  %v1834_v31 = vrot.slane %v21512_v18, 2  ;;  %v1811_v22 = vor.u32 %v1810_v37, %v1807_v10  ;;  %v21227_v18 = vshrl.u32 %v17293_v9, 16 }
 0x379   : > { %13622 = vmatprep.subr.bf16.mxu0 %v15446_v21  ;;  %v1820_v47 = vor.u32 %v1819_v41, %v1816_v40  ;;  %v21226_v57 = vshll.u32 %v17293_v9, 16  ;;  %v1794_v37 = vsel %vm1732_vm2, %v1784_v29, %v1793_v44  ;;  %v21225_v1 = vshrl.u32 %v17296_v58, 16 }
 0x37a   : > { %v21221_v7 = vshll.u32 %v17296_v58, 16  ;;  %v1803_v41 = vsel %vm1732_vm2, %v1793_v44, %v1802_v25  ;;  %v1812_v40 = vsel %vm1732_vm2, %v1802_v25, %v1811_v22  ;;  %v1852_v56 = vrot.slane %v21227_v18, 2 }
 0x37b   : > { %13587 = vmatmul.mubr.bf16.gmra.mrb[8].mxu0 %v1776_v17  ;;  %v21510_v17 = vshrl.u32 %v17272_v35, 16  ;;  %v1855_v29 = vrot.slane %v21226_v57, 3  ;;  %v1861_v10 = vrot.slane %v21225_v1, 2  ;;  %v2243_v44 = vrot.slane %v17204_v27, 3 }
 0x37c   : > { %13590 = vmatprep.mubr.bf16.mxu0 %v1785_v46  ;;  %13623 = vmatpush3.bf16.msra.mxu0 %v15446_v21  ;;  %v1837_v46 = vrot.slane %v21513_v53, 3  ;;  %v15448_v21 = vld [vmem:[%s21099_s6 + $0x60] sm:$0xff]   ;;  %v2255_v1 = vrot.slane %v17267_v55, 3  ;;  %v2259_v18 = vrot.slane %v17275_v23, 3  ;;  %v2267_v26 = vrot.slane %v17304_v32, 3 }
 0x37d   : > { %13624 = vmatprep.subr.bf16.mxu0 %v15447_v52  ;;  %v1825_v15 = vrot.slane %v21510_v17, 2  ;;  %v21515_v17 = vshll.u32 %v17289_v60, 16  ;;  %v2269_v50 = vrot.slane %v17310_v48, 3  ;;  %v21230_v61 = vrot.slane %v17324_v36, 3 }
 0x37e   : > { %v1838_v51 = vor.u32 %v1837_v46, %v1834_v31  ;;  %v21222_v31 = vrot.slane %v17284_v24, 3  ;;  %v1864_v46 = vrot.slane %v21221_v7, 3  ;;  %v21517_v43 = vshll.u32 %v17284_v24, 16 }
 0x37f   : > { %v1846_v39 = vrot.slane %v21515_v17, 3  ;;  %v1829_v53 = vor.u32 %v1828_v33, %v1825_v15  ;;  %v1821_v33 = vsel %vm1732_vm2, %v1811_v22, %v1820_v47  ;;  %v21223_v15 = vshrl.u32 %v17304_v32, 16 }
 0x380   : > { %13625 = vmatpush3.bf16.msra.mxu0 %v15447_v52  ;;  %v2677_v54 = vrot.slane %v21517_v43, 4  ;;  %v17534_v8 = vsel %vm2237_vm3, %v2267_v26, %v2269_v50  ;;  %v21521_v34 = vshll.u32 %v17204_v27, 16 }
 0x381   : > { %13626 = vmatprep.subr.bf16.mxu0 %v15448_v21  ;;  %v17420_v62 = vor.u32 %v1846_v39, %v1843_v42  ;;  %v17429_v52 = vsel %vm1732_vm2, %v1820_v47, %v1829_v53  ;;  %v17432_v25 = vsel %vm1732_vm2, %v1829_v53, %v1838_v51  ;;  %v21224_v39 = vshll.u32 %v17304_v32, 16  ;;  %v15450_v42 = vld [vmem:[%s21099_s6 + $0x70] sm:$0xff]  }
 0x382   : > { %v2245_v47 = vrot.slane %v17221_v14, 3  ;;  %v2247_v53 = vrot.slane %v17237_v16, 3  ;;  %v2695_v28 = vrot.slane %v21521_v34, 4  ;;  %v21526_v34 = vshrl.u32 %v17247_v6, 16 }
 0x383   : > { %13591 = vmatmul.mubr.bf16.gmra.mrb[12].mxu0 %v1794_v37  ;;  %v17447_v22 = vsel %vm1732_vm2, %v1838_v51, %v17420_v62  ;;  %v17452_v37 = vor.u32 %v1855_v29, %v1852_v56  ;;  %v17468_v17 = vrot.slane %v21224_v39, 3  ;;  %v2253_v39 = vrot.slane %v17255_v3, 3 }
 0x384   : > { %13594 = vmatprep.mubr.bf16.mxu0 %v1803_v41  ;;  %13627 = vmatpush3.bf16.msra.mxu0 %v15448_v21  ;;  %v2241_v21 = vrot.slane %v17181_v45, 3  ;;  %v17456_v41 = vrot.slane %v21223_v15, 2  ;;  %v17474_v56 = vsel %vm2237_vm3, %v2243_v44, %v2245_v47  ;;  %v17477_v29 = vsel %vm2237_vm3, %v2245_v47, %v2247_v53 }
 0x385   : > { %13628 = vmatprep.subr.bf16.mxu0 %v15449_v13  ;;  %v17480_v15 = vor.u32 %v1864_v46, %v1861_v10  ;;  %v2261_v47 = vrot.slane %v17289_v60, 3 }
 0x386   : > { %v17461_v7 = vsel %vm2237_vm3, %v21222_v31, %v2241_v21  ;;  %v17464_v51 = vsel %vm2237_vm3, %v2241_v21, %v2243_v44  ;;  %v2249_v31 = vrot.slane %v17247_v6, 3  ;;  %v2251_v21 = vrot.slane %v17252_v2, 3 }
 0x387   : > { %v2257_v44 = vrot.slane %v17272_v35, 3 }
 0x388   : > { %13629 = vmatpush3.bf16.msra.mxu0 %v15449_v13  ;;  %v15451_v13 = vld [vmem:[%s21099_s6 + $0x78] sm:$0xff]   ;;  %v17486_v57 = vsel %vm2237_vm3, %v2247_v53, %v2249_v31  ;;  %v17492_v10 = vsel %vm2237_vm3, %v2249_v31, %v2251_v21  ;;  %v17495_v46 = vsel %vm2237_vm3, %v2251_v21, %v2253_v39  ;;  %v2263_v53 = vrot.slane %v17293_v9, 3 }
 0x389   : > { %13630 = vmatprep.subr.bf16.mxu0 %v15450_v42  ;;  %v17513_v31 = vsel %vm2237_vm3, %v2259_v18, %v2261_v47 }
 0x38a   : > { %v17517_v21 = vsel %vm2237_vm3, %v2261_v47, %v2263_v53 }
 0x38b   : > { %13595 = vmatmul.mubr.bf16.gmra.mrb[16].mxu0 %v1812_v40  ;;  %v17498_v40 = vsel %vm2237_vm3, %v2253_v39, %v2255_v1  ;;  %v2265_v39 = vrot.slane %v17296_v58, 3 }
 0x38c   : > { %13598 = vmatprep.mubr.bf16.mxu0 %v1821_v33  ;;  %13631 = vmatpush3.bf16.msra.mxu0 %v15450_v42  ;;  %v17507_v33 = vsel %vm2237_vm3, %v2255_v1, %v2257_v44  ;;  %v17510_v42 = vsel %vm2237_vm3, %v2257_v44, %v2259_v18  ;;  %v21516_v44 = vshrl.u32 %v17284_v24, 16  ;;  %v17539_v1 = vsel %vm2237_vm3, %v2269_v50, %v21230_v61 }
 0x38d   : > { %13632 = vmatprep.subr.bf16.mxu0 %v15451_v13  ;;  %v17524_v30 = vsel %vm2237_vm3, %v2263_v53, %v2265_v39  ;;  %v17531_v47 = vsel %vm2237_vm3, %v2265_v39, %v2267_v26  ;;  %v21518_v53 = vshrl.u32 %v17181_v45, 16  ;;  %v21520_v26 = vshrl.u32 %v17204_v27, 16 }
 0x38e   : > { %v2674_v18 = vrot.slane %v21516_v44, 3  ;;  %v21522_v50 = vshrl.u32 %v17221_v14, 16  ;;  %v21524_v44 = vshrl.u32 %v17237_v16, 16 }
 0x38f   : > { %v2683_v59 = vrot.slane %v21518_v53, 3  ;;  %v2692_v38 = vrot.slane %v21520_v26, 3  ;;  %v21523_v53 = vshll.u32 %v17221_v14, 16 }
 0x390   : > { %13633 = vmatpush3.bf16.msra.mxu0 %v15451_v13  ;;  %v17545_v43 = vor.u32 %v2677_v54, %v2674_v18  ;;  %v21519_v13 = vshll.u32 %v17181_v45, 16  ;;  %v2701_v61 = vrot.slane %v21522_v50, 3  ;;  %v2710_v20 = vrot.slane %v21524_v44, 3 }
 0x391   : > { %13670 = vmatprep.subr.bf16.mxu0 %v17504_v49  ;;  %v2704_v19 = vrot.slane %v21523_v53, 4  ;;  %v1857_v45 = vsel %vm1732_vm2, %v17420_v62, %v17452_v37  ;;  %v21525_v18 = vshll.u32 %v17237_v16, 16  ;;  %v2696_v14 = vor.u32 %v2695_v28, %v2692_v38 }
 0x392   : > { %v2686_v39 = vrot.slane %v21519_v13, 4  ;;  %v2719_v13 = vrot.slane %v21526_v34, 3  ;;  %v21527_v50 = vshll.u32 %v17247_v6, 16  ;;  %v21529_v16 = vshll.u32 %v17252_v2, 16 }
 0x393   : > { %13599 = vmatmul.mubr.bf16.gmra.mrb[20].mxu0 %v17429_v52  ;;  %v2713_v27 = vrot.slane %v21525_v18, 4  ;;  %v2705_v26 = vor.u32 %v2704_v19, %v2701_v61  ;;  %v21528_v52 = vshrl.u32 %v17252_v2, 16  ;;  %v21530_v18 = vshrl.u32 %v17255_v3, 16 }
 0x394   : > { %v2687_v54 = vor.u32 %v2686_v39, %v2683_v59  ;;  %13602 = vmatprep.mubr.bf16.mxu0 %v17432_v25  ;;  %v2722_v44 = vrot.slane %v21527_v50, 4  ;;  %v2731_v39 = vrot.slane %v21529_v16, 4  ;;  %v21531_v61 = vshll.u32 %v17255_v3, 16 }
 0x395   : > { %v2728_v53 = vrot.slane %v21528_v52, 3  ;;  %v2714_v59 = vor.u32 %v2713_v27, %v2710_v20  ;;  %v2737_v34 = vrot.slane %v21530_v18, 3  ;;  %v17584_v19 = vsel %vm2662_vm4, %v2696_v14, %v2705_v26 }
 0x396   : > { %v17574_v62 = vsel %vm2662_vm4, %v17545_v43, %v2687_v54  ;;  %v17581_v28 = vsel %vm2662_vm4, %v2687_v54, %v2696_v14  ;;  %v2723_v38 = vor.u32 %v2722_v44, %v2719_v13  ;;  %v2740_v6 = vrot.slane %v21531_v61, 4 }
 0x397   : > { %v17589_v25 = vsel %vm2662_vm4, %v2705_v26, %v2714_v59  ;;  %v2732_v20 = vor.u32 %v2731_v39, %v2728_v53  ;;  %v21532_v2 = vshrl.u32 %v17267_v55, 16  ;;  %v21533_v50 = vshll.u32 %v17267_v55, 16 }
 0x398   : > { %v17596_v54 = vsel %vm2662_vm4, %v2714_v59, %v2723_v38  ;;  %v2741_v16 = vor.u32 %v2740_v6, %v2737_v34  ;;  %v21534_v14 = vshrl.u32 %v17272_v35, 16  ;;  %v21535_v3 = vshll.u32 %v17272_v35, 16 }
 0x399   : > { %v2746_v27 = vrot.slane %v21532_v2, 3  ;;  %v2749_v52 = vrot.slane %v21533_v50, 4  ;;  %v17603_v26 = vsel %vm2662_vm4, %v2723_v38, %v2732_v20  ;;  %v21536_v39 = vshrl.u32 %v17275_v23, 16 }
 0x39a   : > { %v2755_v13 = vrot.slane %v21534_v14, 3  ;;  %v2758_v44 = vrot.slane %v21535_v3, 4  ;;  %v21537_v55 = vshll.u32 %v17275_v23, 16  ;;  %v17610_v59 = vsel %vm2662_vm4, %v2732_v20, %v2741_v16 }
 0x39b   : > { %v2750_v53 = vor.u32 %v2749_v52, %v2746_v27  ;;  %v2764_v18 = vrot.slane %v21536_v39, 3  ;;  %v21538_v6 = vshrl.u32 %v17289_v60, 16  ;;  %v21539_v35 = vshll.u32 %v17289_v60, 16  ;;  %13603 = vmatmul.mubr.bf16.gmra.mrb[24].mxu0 %v17447_v22 }
 0x39c   : > { %v2767_v61 = vrot.slane %v21537_v55, 4  ;;  %v2759_v34 = vor.u32 %v2758_v44, %v2755_v13  ;;  %v21540_v52 = vshrl.u32 %v17293_v9, 16  ;;  %v21541_v14 = vshll.u32 %v17293_v9, 16  ;;  %13606 = vmatprep.mubr.bf16.mxu0 %v1857_v45 }
 0x39d   : > { %v2773_v2 = vrot.slane %v21538_v6, 3  ;;  %v2776_v50 = vrot.slane %v21539_v35, 4  ;;  %v17618_v38 = vsel %vm2662_vm4, %v2741_v16, %v2750_v53  ;;  %v21542_v60 = vshrl.u32 %v17296_v58, 16 }
 0x39e   : > { %v2768_v27 = vor.u32 %v2767_v61, %v2764_v18  ;;  %v2782_v23 = vrot.slane %v21540_v52, 3  ;;  %v2785_v20 = vrot.slane %v21541_v14, 4  ;;  %v17625_v13 = vsel %vm2662_vm4, %v2750_v53, %v2759_v34 }
 0x39f   : > { %v2777_v3 = vor.u32 %v2776_v50, %v2773_v2  ;;  %v2791_v44 = vrot.slane %v21542_v60, 3  ;;  %v21543_v22 = vshll.u32 %v17296_v58, 16  ;;  %v21544_v55 = vshrl.u32 %v17304_v32, 16 }
 0x3a0   : > { %v17632_v16 = vsel %vm2662_vm4, %v2759_v34, %v2768_v27  ;;  %v2786_v18 = vor.u32 %v2785_v20, %v2782_v23  ;;  %v21545_v9 = vshll.u32 %v17304_v32, 16  ;;  %v21546_v2 = vshrl.u32 %v17310_v48, 16 }
 0x3a1   : > { %v2794_v39 = vrot.slane %v21543_v22, 4  ;;  %v2800_v61 = vrot.slane %v21544_v55, 3  ;;  %v17639_v53 = vsel %vm2662_vm4, %v2768_v27, %v2777_v3  ;;  %v21547_v58 = vshll.u32 %v17310_v48, 16 }
 0x3a2   : > { %v2803_v45 = vrot.slane %v21545_v9, 4  ;;  %v2809_v35 = vrot.slane %v21546_v2, 3  ;;  %v1874_v34 = vor.u32 %v17468_v17, %v17456_v41  ;;  %v1889_v52 = vshll.u32 %v17324_v36, 16  ;;  %v1715_v9 = vld [vmem:[#allocation2 + $0x90] sm:$0x7] }
 0x3a3   : > { %v2795_v6 = vor.u32 %v2794_v39, %v2791_v44  ;;  %v2812_v50 = vrot.slane %v21547_v58, 4  ;;  %v17649_v23 = vsel %vm2662_vm4, %v2777_v3, %v2786_v18  ;;  %v1866_v60 = vsel %vm1732_vm2, %v17452_v37, %v17480_v15 }
 0x3a4   : > { %v2804_v32 = vor.u32 %v2803_v45, %v2800_v61  ;;  %v21549_v17 = vmov %v21546_v2  ;;  %v21550_v44 = vmov %v21547_v58  ;;  %13607 = vmatmul.mubr.bf16.gmra.mrb[28].mxu0 %v1866_v60  ;;  %v1875_v39 = vsel %vm1732_vm2, %v17480_v15, %v1874_v34 }
 0x3a5   : > { %v17652_v14 = vsel %vm2662_vm4, %v2786_v18, %v2795_v6  ;;  %v17654_v27 = vor.u32 %v2812_v50, %v2809_v35  ;;  %v1879_v41 = vrot.slane %v21549_v17, 2  ;;  %v1882_v3 = vrot.slane %v21550_v44, 3  ;;  %13610 = vmatprep.mubr.bf16.mxu0 %v1875_v39  ;;  %v17680_v44 = vld [vmem:[#allocation2 + $0x88] sm:$0xff]  ;;  %v17686_v39 = vld [vmem:[#allocation2 + $0x20] sm:$0xff] }
 0x3a6   : > { %v17657_v20 = vsel %vm2662_vm4, %v2795_v6, %v2804_v32  ;;  %v21551_v18 = vshrl.u32 %v17324_v36, 16  ;;  %v1891_v61 = vrot.slane %v1889_v52, 3  ;;  %v1895_v45 = vshrl.u32 %v1715_v9, 16 }
 0x3a7   : > { %21548 = vst [vmem:[#allocation30_spill] sm:$0xff] %v17654_v27  ;;  %v17668_v22 = vsel %vm2662_vm4, %v2804_v32, %v17654_v27  ;;  %v1883_v37 = vor.u32 %v1882_v3, %v1879_v41  ;;  %v1898_v6 = vshll.u32 %v1715_v9, 16  ;;  %v2182_v32 = vld [vmem:[#allocation2] sm:$0xf8]  ;;  %v21552_v52 = vrot.slane %v17284_v24, 3  ;;  %v17684_v3 = vld [vmem:[#allocation2 + $0x18] sm:$0xff] }
 0x3a8   : > { %v1888_v55 = vrot.slane %v21551_v18, 2  ;;  %v1897_v35 = vrot.slane %v1895_v45, 2  ;;  %v2238_v60 = vrot.slane %v2182_v32, 3  ;;  %v17688_v18 = vld [vmem:[#allocation2 + $0x28] sm:$0xff]  ;;  %v17692_v9 = vld [vmem:[#allocation2 + $0x30] sm:$0xff]  ;;  %v17694_v24 = vld [vmem:[#allocation2 + $0x38] sm:$0xff] }
 0x3a9   : > { %v1884_v48 = vsel %vm1732_vm2, %v1874_v34, %v1883_v37  ;;  %v1900_v58 = vrot.slane %v1898_v6, 3  ;;  %v17682_v34 = vld [vmem:[#allocation2 + $0x10] sm:$0xff]  ;;  %21553 = vst [vmem:[#allocation31_spill] sm:$0xff] %v17692_v9  ;;  %21554 = vst [vmem:[#allocation34_spill] sm:$0xff] %v17694_v24  ;;  %v17726_v32 = vld [vmem:[#allocation2 + $0x68] sm:$0xff] }
 0x3aa   : > { %v1892_v2 = vor.u32 %v1891_v61, %v1888_v55  ;;  %v2240_v41 = vsel %vm2237_vm3, %v2238_v60, %v21552_v52  ;;  %v17709_v60 = vld [vmem:[#allocation2 + $0x48] sm:$0xff]  ;;  %v3799_v61 = vrot.slane %v17684_v3, 4  ;;  %v15454_v55 = vld [vmem:[%s21099_s6 + $0x90] sm:$0xff]  }
 0x3ab   : > { %v1901_v15 = vor.u32 %v1900_v58, %v1897_v35  ;;  %v17703_v35 = vld [vmem:[#allocation2 + $0x40] sm:$0xff]  ;;  %v17718_v58 = vld [vmem:[#allocation2 + $0x58] sm:$0xff]  ;;  %v17757_v45 = vld [vmem:[#allocation2 + $0x70] sm:$0xff] }
 0x3ac   : > { %13611 = vmatmul.mubr.bf16.gmra.mrb[32].mxu0 %v1884_v48  ;;  %v1893_v50 = vsel %vm1732_vm2, %v1883_v37, %v1892_v2  ;;  %v15453_v37 = vld [vmem:[%s21099_s6 + $0x88] sm:$0xff]   ;;  %v15455_v48 = vld [vmem:[%s21099_s6 + $0x98] sm:$0xff]  }
 0x3ad   : > { %13614 = vmatprep.mubr.bf16.mxu0 %v1893_v50  ;;  %v1902_v17 = vsel %vm1732_vm2, %v1892_v2, %v1901_v15  ;;  %v17720_v50 = vld [vmem:[#allocation2 + $0x60] sm:$0xff]  ;;  %v3805_v2 = vrot.slane %v17692_v9, 4  ;;  %v3811_v15 = vrot.slane %v17709_v60, 4 }
 0x3b4   : > { %13615 = vmatmul.mubr.bf16.gmra.mrb[36].mxu0 %v1902_v17  ;;  %v17711_v17 = vld [vmem:[#allocation2 + $0x50] sm:$0xff] }
 0x3b5   : > { %13634 = vmatprep.mubr.bf16.mxu0 %v2240_v41  ;;  %v21235_v41 = vrot.slane %v17682_v34, 4  ;;  %v3813_v63 = vrot.slane %v17711_v17, 4 }
 0x3b7   : > { %v17743_v6 = vsel %vm1623_vm1, %v21235_v41, %v3799_v61  ;;  %v3809_v41 = vrot.slane %v17703_v35, 4 }
 0x3b8   : > { %21555 = vst [vmem:[#allocation35_spill] sm:$0xff] %v17743_v6 }
 0x3b9   : > { %v17782_v27 = vsel %vm1623_vm1, %v3809_v41, %v3811_v15 }
 0x3ba   : > { %21561 = vst [vmem:[#allocation47_spill] sm:$0xff] %v17782_v27 }
 0x3bc   : > { %13635 = vmatmul.mubr.bf16.vlgmr.msra.gmra.mrb[4].mxu0 %v17461_v7  ;;  %v3807_v7 = vrot.slane %v17694_v24, 4 }
 0x3bd   : > { %13671 = vmatpush3.bf16.msra.mxu0 %v17504_v49  ;;  %13638 = vmatprep.mubr.bf16.mxu0 %v17464_v51  ;;  %v3801_v49 = vrot.slane %v17686_v39, 4  ;;  %v3803_v51 = vrot.slane %v17688_v18, 4 }
 0x3be   : > { %13672 = vmatprep.subr.bf16.mxu0 %v15453_v37  ;;  %v17776_v52 = vsel %vm1623_vm1, %v3805_v2, %v3807_v7  ;;  %v17779_v6 = vsel %vm1623_vm1, %v3807_v7, %v3809_v41  ;;  %v3823_v7 = vrot.slane %v17759_v11, 4 }
 0x3bf   : > { %v17764_v12 = vsel %vm1623_vm1, %v3799_v61, %v3801_v49  ;;  %v17767_v4 = vsel %vm1623_vm1, %v3801_v49, %v3803_v51  ;;  %v17773_v0 = vsel %vm1623_vm1, %v3803_v51, %v3805_v2  ;;  %21559 = vst [vmem:[#allocation43_spill] sm:$0xff] %v17776_v52  ;;  %21560 = vst [vmem:[#allocation46_spill] sm:$0xff] %v17779_v6  ;;  %v3815_v49 = vrot.slane %v17718_v58, 4 }
 0x3c0   : > { %21556 = vst [vmem:[#allocation38_spill] sm:$0xff] %v17764_v12  ;;  %21557 = vst [vmem:[#allocation39_spill] sm:$0xff] %v17767_v4  ;;  %v17786_v61 = vsel %vm1623_vm1, %v3811_v15, %v3813_v63  ;;  %v3817_v4 = vrot.slane %v17720_v50, 4  ;;  %v3819_v51 = vrot.slane %v17726_v32, 4  ;;  %v3821_v2 = vrot.slane %v17757_v45, 4  ;;  %v15456_v15 = vld [vmem:[%s21099_s6 + $0xa0] sm:$0xff]  }
 0x3c1   : > { %13673 = vmatpush3.bf16.msra.mxu0 %v15453_v37  ;;  %v17761_v37 = vld [vmem:[#allocation2 + $0x80] sm:$0xff]  ;;  %21558 = vst [vmem:[#allocation42_spill] sm:$0xff] %v17773_v0  ;;  %21562 = vst [vmem:[#allocation50_spill] sm:$0xff] %v17786_v61  ;;  %v17800_v61 = vsel %vm1623_vm1, %v3813_v63, %v3815_v49 }
 0x3c2   : > { %13674 = vmatprep.subr.bf16.mxu0 %v15454_v55  ;;  %v3825_v41 = vrot.slane %v17761_v37, 4  ;;  %21563 = vst [vmem:[#allocation51_spill] sm:$0xff] %v17800_v61  ;;  %v17803_v27 = vsel %vm1623_vm1, %v3815_v49, %v3817_v4  ;;  %v17810_v6 = vsel %vm1623_vm1, %v3819_v51, %v3821_v2  ;;  %v17813_v52 = vsel %vm1623_vm1, %v3821_v2, %v3823_v7 }
 0x3c3   : > { %21564 = vst [vmem:[#allocation55_spill] sm:$0xff] %v17803_v27  ;;  %21566 = vst [vmem:[#allocation57_spill] sm:$0xff] %v17810_v6  ;;  %v21573_v49 = vshrl.u32 %v17684_v3, 16  ;;  %v21577_v6 = vshrl.u32 %v17688_v18, 16 }
 0x3c4   : > { %13639 = vmatmul.mubr.bf16.gmra.mrb[8].mxu0 %v17474_v56  ;;  %v3827_v56 = vrot.slane %v17680_v44, 4  ;;  %21567 = vst [vmem:[#allocation58_spill] sm:$0xff] %v17813_v52  ;;  %v17816_v0 = vsel %vm1623_vm1, %v3823_v7, %v3825_v41  ;;  %v21571_v7 = vshrl.u32 %v17682_v34, 16 }
 0x3c5   : > { %13642 = vmatprep.mubr.bf16.mxu0 %v17477_v29  ;;  %13675 = vmatpush3.bf16.msra.mxu0 %v15454_v55  ;;  %v17806_v29 = vsel %vm1623_vm1, %v3817_v4, %v3819_v51  ;;  %v21249_v55 = vrot.slane %v17770_v5, 4  ;;  %21568 = vst [vmem:[#allocation59_spill] sm:$0xff] %v17816_v0  ;;  %v4241_v52 = vrot.slane %v21573_v49, 4  ;;  %v15457_v4 = vld [vmem:[%s21099_s6 + $0xa8] sm:$0xff]   ;;  %v21576_v49 = vshll.u32 %v17686_v39, 16 }
 0x3c6   : > { %13676 = vmatprep.subr.bf16.mxu0 %v15455_v48  ;;  %21565 = vst [vmem:[#allocation56_spill] sm:$0xff] %v17806_v29  ;;  %v17819_v63 = vsel %vm1623_vm1, %v3825_v41, %v3827_v56  ;;  %v4232_v0 = vrot.slane %v21571_v7, 4  ;;  %v21572_v41 = vshll.u32 %v17682_v34, 16  ;;  %v21575_v7 = vshrl.u32 %v17686_v39, 16 }
 0x3c7   : > { %21569 = vst [vmem:[#allocation60_spill] sm:$0xff] %v17819_v63  ;;  %v17827_v51 = vsel %vm1623_vm1, %v3827_v56, %v21249_v55  ;;  %v21574_v55 = vshll.u32 %v17684_v3, 16  ;;  %v4259_v29 = vrot.slane %v21577_v6, 4  ;;  %v21582_v6 = vshrl.u32 %v17694_v24, 16 }
 0x3c8   : > { %21570 = vst [vmem:[#allocation61_spill] sm:$0xff] %v17827_v51  ;;  %v4235_v63 = vrot.slane %v21572_v41, 5  ;;  %v4250_v27 = vrot.slane %v21575_v7, 4  ;;  %v4253_v51 = vrot.slane %v21576_v49, 5  ;;  %v21581_v7 = vshll.u32 %v17692_v9, 16 }
 0x3c9   : > { %13677 = vmatpush3.bf16.msra.mxu0 %v15455_v48  ;;  %v4244_v2 = vrot.slane %v21574_v55, 5  ;;  %v21579_v48 = vshll.u32 %v17688_v18, 16  ;;  %v21580_v55 = vshrl.u32 %v17692_v9, 16 }
 0x3ca   : > { %13678 = vmatprep.subr.bf16.mxu0 %v15456_v15  ;;  %v17845_v41 = vor.u32 %v4235_v63, %v4232_v0  ;;  %v4271_v0 = vrot.slane %v21581_v7, 5  ;;  %v4254_v49 = vor.u32 %v4253_v51, %v4250_v27  ;;  %v21585_v27 = vshrl.u32 %v17703_v35, 16 }
 0x3cb   : > { %v17852_v56 = vor.u32 %v4244_v2, %v4241_v52  ;;  %v4262_v61 = vrot.slane %v21579_v48, 5  ;;  %v4268_v12 = vrot.slane %v21580_v55, 4  ;;  %v21583_v52 = vshll.u32 %v17694_v24, 16  ;;  %v15458_v48 = vld [vmem:[%s21099_s6 + $0xb0] sm:$0xff]  }
 0x3cc   : > { %13643 = vmatmul.mubr.bf16.gmra.mrb[12].mxu0 %v17486_v57  ;;  %v4277_v57 = vrot.slane %v21582_v6, 4  ;;  %v4286_v51 = vrot.slane %v21585_v27, 4  ;;  %v21587_v63 = vshll.u32 %v17703_v35, 16 }
 0x3cd   : > { %21578 = vst [vmem:[#allocation62_spill] sm:$0xff] %v17852_v56  ;;  %13646 = vmatprep.mubr.bf16.mxu0 %v17492_v10  ;;  %13679 = vmatpush3.bf16.msra.mxu0 %v15456_v15  ;;  %v4280_v2 = vrot.slane %v21583_v52, 5  ;;  %v17872_v55 = vsel %vm4220_vm5, %v17845_v41, %v17852_v56  ;;  %v4263_v10 = vor.u32 %v4262_v61, %v4259_v29  ;;  %v21591_v29 = vshll.u32 %v17709_v60, 16 }
 0x3ce   : > { %13680 = vmatprep.subr.bf16.mxu0 %v15457_v4  ;;  %21584 = vst [vmem:[#allocation63_spill] sm:$0xff] %v17872_v55  ;;  %v4272_v15 = vor.u32 %v4271_v0, %v4268_v12  ;;  %v17879_v6 = vsel %vm4220_vm5, %v17852_v56, %v4254_v49  ;;  %v4289_v24 = vrot.slane %v21587_v63, 5  ;;  %v21590_v12 = vshrl.u32 %v17709_v60, 16 }
 0x3cf   : > { %21586 = vst [vmem:[#allocation65_spill] sm:$0xff] %v17879_v6  ;;  %v4281_v52 = vor.u32 %v4280_v2, %v4277_v57  ;;  %v17884_v9 = vsel %vm4220_vm5, %v4254_v49, %v4263_v10  ;;  %v4298_v0 = vrot.slane %v21591_v29, 5  ;;  %v21593_v2 = vshrl.u32 %v17711_v17, 16 }
 0x3d0   : > { %21588 = vst [vmem:[#allocation64_spill] sm:$0xff] %v17884_v9  ;;  %v17887_v55 = vsel %vm4220_vm5, %v4263_v10, %v4272_v15  ;;  %v4295_v61 = vrot.slane %v21590_v12, 4  ;;  %v4290_v57 = vor.u32 %v4289_v24, %v4286_v51  ;;  %v21594_v49 = vshll.u32 %v17711_v17, 16  ;;  %v15459_v10 = vld [vmem:[%s21099_s6 + $0xb8] sm:$0xff]  }
 0x3d1   : > { %21589 = vst [vmem:[#allocation66_spill] sm:$0xff] %v17887_v55  ;;  %13681 = vmatpush3.bf16.msra.mxu0 %v15457_v4  ;;  %v17894_v27 = vsel %vm4220_vm5, %v4272_v15, %v4281_v52  ;;  %v4304_v63 = vrot.slane %v21593_v2, 4  ;;  %v21595_v56 = vshrl.u32 %v17718_v58, 16  ;;  %v21596_v4 = vshll.u32 %v17718_v58, 16 }
 0x3d2   : > { %21592 = vst [vmem:[#allocation67_spill] sm:$0xff] %v17894_v27  ;;  %v4307_v7 = vrot.slane %v21594_v49, 5  ;;  %13682 = vmatprep.subr.bf16.mxu0 %v15458_v48  ;;  %v4299_v12 = vor.u32 %v4298_v0, %v4295_v61  ;;  %v21597_v24 = vshrl.u32 %v17720_v50, 16  ;;  %v17910_v2 = vsel %vm4220_vm5, %v4281_v52, %v4290_v57 }
 0x3d3   : > { %v4313_v29 = vrot.slane %v21595_v56, 4  ;;  %v4316_v15 = vrot.slane %v21596_v4, 5  ;;  %v21598_v49 = vshll.u32 %v17720_v50, 16  ;;  %v21599_v9 = vshrl.u32 %v17726_v32, 16 }
 0x3d4   : > { %v4322_v51 = vrot.slane %v21597_v24, 4  ;;  %v4308_v27 = vor.u32 %v4307_v7, %v4304_v63  ;;  %13647 = vmatmul.mubr.bf16.gmra.mrb[16].mxu0 %v17495_v46  ;;  %v17918_v56 = vsel %vm4220_vm5, %v4290_v57, %v4299_v12  ;;  %v21601_v0 = vshll.u32 %v17726_v32, 16 }
 0x3d5   : > { %v4325_v55 = vrot.slane %v21598_v49, 5  ;;  %v4331_v6 = vrot.slane %v21599_v9, 4  ;;  %21600 = vst [vmem:[#allocation68_spill] sm:$0xff] %v17918_v56  ;;  %v4317_v61 = vor.u32 %v4316_v15, %v4313_v29  ;;  %v21602_v24 = vshrl.u32 %v17757_v45, 16  ;;  %13650 = vmatprep.mubr.bf16.mxu0 %v17498_v40  ;;  %13683 = vmatpush3.bf16.msra.mxu0 %v15458_v48  ;;  %v17935_v29 = vld [vmem:[%s21099_s6 + $0xc0] sm:$0xff]  }
 0x3d6   : > { %v4334_v4 = vrot.slane %v21601_v0, 5  ;;  %v17926_v7 = vsel %vm4220_vm5, %v4299_v12, %v4308_v27  ;;  %v21604_v9 = vshll.u32 %v17757_v45, 16  ;;  %v21605_v57 = vshrl.u32 %v17759_v11, 16  ;;  %13684 = vmatprep.subr.bf16.mxu0 %v15459_v10 }
 0x3d7   : > { %v4340_v52 = vrot.slane %v21602_v24, 4  ;;  %21603 = vst [vmem:[#allocation69_spill] sm:$0xff] %v17926_v7  ;;  %v4326_v63 = vor.u32 %v4325_v55, %v4322_v51  ;;  %v17938_v15 = vsel %vm4220_vm5, %v4308_v27, %v4317_v61  ;;  %v21607_v48 = vshll.u32 %v17759_v11, 16 }
 0x3d8   : > { %v4343_v46 = vrot.slane %v21604_v9, 5  ;;  %v4349_v49 = vrot.slane %v21605_v57, 4  ;;  %21606 = vst [vmem:[#allocation70_spill] sm:$0xff] %v17938_v15  ;;  %v4335_v40 = vor.u32 %v4334_v4, %v4331_v6  ;;  %v21608_v55 = vshrl.u32 %v17761_v37, 16 }
 0x3d9   : > { %v4352_v12 = vrot.slane %v21607_v48, 5  ;;  %v17945_v0 = vsel %vm4220_vm5, %v4317_v61, %v4326_v63  ;;  %v21609_v9 = vshll.u32 %v17761_v37, 16  ;;  %v21610_v7 = vshrl.u32 %v17680_v44, 16  ;;  %13685 = vmatpush3.bf16.msra.mxu0 %v15459_v10 }
 0x3da   : > { %v4358_v51 = vrot.slane %v21608_v55, 4  ;;  %v4344_v24 = vor.u32 %v4343_v46, %v4340_v52  ;;  %v17952_v27 = vsel %vm4220_vm5, %v4326_v63, %v4335_v40  ;;  %v21611_v4 = vshll.u32 %v17680_v44, 16  ;;  %13722 = vmatprep.subr.bf16.mxu0 %v17935_v29 }
 0x3db   : > { %v4361_v57 = vrot.slane %v21609_v9, 5  ;;  %v4367_v56 = vrot.slane %v21610_v7, 4  ;;  %v4353_v6 = vor.u32 %v4352_v12, %v4349_v49  ;;  %v21612_v15 = vshrl.u32 %v17770_v5, 16 }
 0x3dc   : > { %v4370_v48 = vrot.slane %v21611_v4, 5  ;;  %v17959_v61 = vsel %vm4220_vm5, %v4335_v40, %v4344_v24  ;;  %v21614_v46 = vshll.u32 %v17770_v5, 16  ;;  %13651 = vmatmul.mubr.bf16.gmra.mrb[20].mxu0 %v17507_v33  ;;  %v5300_v4 = vld [vmem:[#allocation2 + $0x18] sm:$0xff] }
 0x3dd   : > { %v4376_v55 = vrot.slane %v21612_v15, 4  ;;  %v17961_v52 = vor.u32 %v4361_v57, %v4358_v51  ;;  %v17967_v7 = vsel %vm4220_vm5, %v4344_v24, %v4353_v6  ;;  %13654 = vmatprep.mubr.bf16.mxu0 %v17510_v42  ;;  %v2200_v42 = vld [vmem:[#allocation2 + $0x90] sm:$0x7] }
 0x3de   : > { %v4379_v9 = vrot.slane %v21614_v46, 5  ;;  %v4371_v63 = vor.u32 %v4370_v48, %v4367_v56  ;;  %v2626_v56 = vld [vmem:[#allocation2] sm:$0xf8]  ;;  %v2273_v57 = vrot.slane %v2200_v42, 3  ;;  %v5302_v48 = vld [vmem:[#allocation2 + $0x28] sm:$0xff] }
 0x3df   : > { %21613 = vst [vmem:[#allocation71_spill] sm:$0xff] %v17961_v52  ;;  %v17971_v49 = vsel %vm4220_vm5, %v4353_v6, %v17961_v52  ;;  %v2664_v33 = vshrl.u32 %v2626_v56, 16  ;;  %v2667_v12 = vshll.u32 %v2626_v56, 16 }
 0x3e0   : > { %21615 = vst [vmem:[#allocation72_spill] sm:$0xff] %v17971_v49  ;;  %v17973_v15 = vor.u32 %v4379_v9, %v4376_v55  ;;  %v17978_v10 = vsel %vm4220_vm5, %v17961_v52, %v4371_v63  ;;  %v5789_v55 = vshrl.u32 %v5300_v4, 16  ;;  %v5810_v52 = vshll.u32 %v5302_v48, 16 }
 0x3e1   : > { %21617 = vst [vmem:[#allocation74_spill] sm:$0xff] %v17978_v10  ;;  %v2666_v51 = vrot.slane %v2664_v33, 3  ;;  %v2669_v24 = vrot.slane %v2667_v12, 4  ;;  %v5792_v12 = vshll.u32 %v5300_v4, 16 }
 0x3e2   : > { %21616 = vst [vmem:[#allocation73_spill] sm:$0xff] %v17973_v15  ;;  %v17983_v40 = vsel %vm4220_vm5, %v4371_v63, %v17973_v15  ;;  %v5791_v33 = vrot.slane %v5789_v55, 5 }
 0x3e3   : > { %21618 = vst [vmem:[#allocation75_spill] sm:$0xff] %v17983_v40  ;;  %v2670_v6 = vor.u32 %v2669_v24, %v2666_v51  ;;  %v5304_v51 = vld [vmem:[#allocation2 + $0x38] sm:$0xff]  ;;  %v5812_v40 = vrot.slane %v5810_v52, 6 }
 0x3e4   : > { %13655 = vmatmul.mubr.bf16.gmra.mrb[24].mxu0 %v17513_v31  ;;  %v17991_v31 = vld [vmem:[#allocation2 + $0x88] sm:$0xff]  ;;  %v5825_v4 = vshrl.u32 %v5304_v51, 16  ;;  %v5828_v49 = vshll.u32 %v5304_v51, 16 }
 0x3e5   : > { %13658 = vmatprep.mubr.bf16.mxu0 %v17517_v21  ;;  %v17993_v21 = vld [vmem:[#allocation2 + $0x98] sm:$0xff] }
 0x3ec   : > { %13659 = vmatmul.mubr.bf16.gmra.mrb[28].mxu0 %v17524_v30  ;;  %v5301_v30 = vld [vmem:[#allocation2 + $0x20] sm:$0xff] }
 0x3ed   : > { %13662 = vmatprep.mubr.bf16.mxu0 %v17531_v47  ;;  %v21619_v47 = vrot.slane %v17324_v36, 3  ;;  %v5798_v24 = vshrl.u32 %v5301_v30, 16  ;;  %v5801_v42 = vshll.u32 %v5301_v30, 16  ;;  %v5807_v36 = vshrl.u32 %v5302_v48, 16 }
 0x3ef   : > { %v2274_v46 = vsel %vm2237_vm3, %v21619_v47, %v2273_v57  ;;  %v5305_v57 = vld [vmem:[#allocation2 + $0x40] sm:$0xff]  ;;  %v5794_v47 = vrot.slane %v5792_v12, 6  ;;  %v5800_v9 = vrot.slane %v5798_v24, 5  ;;  %v5803_v15 = vrot.slane %v5801_v42, 6  ;;  %v15461_v12 = vld [vmem:[%s21099_s6 + $0xc8] sm:$0xff]   ;;  %v5307_v24 = vld [vmem:[#allocation2 + $0x50] sm:$0xff] }
 0x3f0   : > { %v5834_v48 = vshrl.u32 %v5305_v57, 16  ;;  %v5308_v42 = vld [vmem:[#allocation2 + $0x58] sm:$0xff] }
 0x3f1   : > { %v18003_v63 = vor.u32 %v5794_v47, %v5791_v33  ;;  %v5804_v10 = vor.u32 %v5803_v15, %v5800_v9  ;;  %v5827_v33 = vrot.slane %v5825_v4, 5  ;;  %v18031_v4 = vld [vmem:[#allocation2 + $0x68] sm:$0xff] }
 0x3f2   : > { %v5836_v9 = vrot.slane %v5834_v48, 5 }
 0x3f3   : > { %21620 = vst [vmem:[#allocation76_spill] sm:$0xff] %v18003_v63  ;;  %v18013_v47 = vsel %vm5779_vm6, %v18003_v63, %v5804_v10 }
 0x3f4   : > { %13663 = vmatmul.mubr.bf16.gmra.mrb[32].mxu0 %v17534_v8  ;;  %v2679_v8 = vsel %vm2662_vm4, %v2670_v6, %v17545_v43  ;;  %21621 = vst [vmem:[#allocation77_spill] sm:$0xff] %v18013_v47 }
 0x3f5   : > { %13666 = vmatprep.mubr.bf16.mxu0 %v17539_v1  ;;  %v5303_v1 = vld [vmem:[#allocation2 + $0x30] sm:$0xff] }
 0x3f6   : > { %v5816_v43 = vshrl.u32 %v5303_v1, 16  ;;  %v5819_v6 = vshll.u32 %v5303_v1, 16  ;;  %v5864_v1 = vshll.u32 %v5308_v42, 16 }
 0x3f8   : > { %v5818_v56 = vrot.slane %v5816_v43, 5  ;;  %v5821_v55 = vrot.slane %v5819_v6, 6  ;;  %v5866_v47 = vrot.slane %v5864_v1, 6 }
 0x3fa   : > { %v5822_v52 = vor.u32 %v5821_v55, %v5818_v56  ;;  %v5861_v55 = vshrl.u32 %v5308_v42, 16 }
 0x3fc   : > { %13667 = vmatmul.mubr.bf16.gmra.mrb[36].mxu0 %v2274_v46  ;;  %v5809_v46 = vrot.slane %v5807_v36, 5  ;;  %v5837_v36 = vshll.u32 %v5305_v57, 16  ;;  %v18026_v57 = vld [vmem:[#allocation2 + $0x60] sm:$0xff] }
 0x3fd   : > { %13686 = vmatprep.mubr.bf16.mxu0 %v2679_v8  ;;  %v18005_v8 = vld [vmem:[#allocation2 + $0x48] sm:$0xff]  ;;  %v5870_v63 = vshrl.u32 %v18026_v57, 16  ;;  %v5873_v42 = vshll.u32 %v18026_v57, 16 }
 0x3fe   : > { %v5813_v30 = vor.u32 %v5812_v40, %v5809_v46  ;;  %v5830_v40 = vrot.slane %v5828_v49, 6  ;;  %v5839_v43 = vrot.slane %v5837_v36, 6  ;;  %v5843_v6 = vshrl.u32 %v18005_v8, 16 }
 0x3ff   : > { %v5846_v56 = vshll.u32 %v18005_v8, 16  ;;  %v5852_v46 = vshrl.u32 %v5307_v24, 16  ;;  %v5855_v49 = vshll.u32 %v5307_v24, 16  ;;  %v5863_v24 = vrot.slane %v5861_v55, 5 }
 0x400   : > { %v18016_v15 = vsel %vm5779_vm6, %v5804_v10, %v5813_v30  ;;  %v18020_v51 = vsel %vm5779_vm6, %v5813_v30, %v5822_v52  ;;  %v5831_v10 = vor.u32 %v5830_v40, %v5827_v33  ;;  %v5840_v30 = vor.u32 %v5839_v43, %v5836_v9  ;;  %v18042_v9 = vld [vmem:[#allocation2 + $0x78] sm:$0xff] }
 0x401   : > { %21622 = vst [vmem:[#allocation78_spill] sm:$0xff] %v18016_v15  ;;  %21623 = vst [vmem:[#allocation79_spill] sm:$0xff] %v18020_v51  ;;  %v5845_v48 = vrot.slane %v5843_v6, 5  ;;  %v5848_v36 = vrot.slane %v5846_v56, 6  ;;  %v5854_v33 = vrot.slane %v5852_v46, 5  ;;  %v5857_v40 = vrot.slane %v5855_v49, 6 }
 0x402   : > { %v18039_v51 = vsel %vm5779_vm6, %v5831_v10, %v5840_v30  ;;  %v5879_v6 = vshrl.u32 %v18031_v4, 16  ;;  %v15463_v56 = vld [vmem:[%s21099_s6 + $0xd8] sm:$0xff]   ;;  %v5872_v46 = vrot.slane %v5870_v63, 5  ;;  %v18066_v63 = vld [vmem:[#allocation2 + $0x90] sm:$0xff] }
 0x403   : > { %21625 = vst [vmem:[#allocation81_spill] sm:$0xff] %v18039_v51  ;;  %v5849_v15 = vor.u32 %v5848_v36, %v5845_v48  ;;  %v5858_v43 = vor.u32 %v5857_v40, %v5854_v33  ;;  %v5875_v48 = vrot.slane %v5873_v42, 6 }
 0x404   : > { %13687 = vmatmul.mubr.bf16.vlgmr.msra.gmra.mrb[4].mxu0 %v17574_v62  ;;  %v15462_v62 = vld [vmem:[%s21099_s6 + $0xd0] sm:$0xff]   ;;  %v5881_v36 = vrot.slane %v5879_v6, 5 }
 0x405   : > { %13723 = vmatpush3.bf16.msra.mxu0 %v17935_v29  ;;  %13690 = vmatprep.mubr.bf16.mxu0 %v17581_v28  ;;  %v18033_v29 = vld [vmem:[#allocation2 + $0x70] sm:$0xff]  ;;  %v18036_v28 = vsel %vm5779_vm6, %v5822_v52, %v5831_v10  ;;  %v5882_v52 = vshll.u32 %v18031_v4, 16  ;;  %v18050_v10 = vld [vmem:[#allocation2 + $0x80] sm:$0xff]  ;;  %v18053_v1 = vsel %vm5779_vm6, %v5840_v30, %v5849_v15  ;;  %v18057_v55 = vsel %vm5779_vm6, %v5849_v15, %v5858_v43 }
 0x406   : > { %13724 = vmatprep.subr.bf16.mxu0 %v15461_v12  ;;  %21624 = vst [vmem:[#allocation80_spill] sm:$0xff] %v18036_v28  ;;  %21626 = vst [vmem:[#allocation82_spill] sm:$0xff] %v18050_v10  ;;  %v5888_v49 = vshrl.u32 %v18033_v29, 16  ;;  %v5891_v28 = vshll.u32 %v18033_v29, 16  ;;  %v5897_v30 = vshrl.u32 %v18042_v9, 16  ;;  %v5906_v42 = vshrl.u32 %v18050_v10, 16 }
 0x407   : > { %21627 = vst [vmem:[#allocation83_spill] sm:$0xff] %v18053_v1  ;;  %21628 = vst [vmem:[#allocation84_spill] sm:$0xff] %v18057_v55  ;;  %v5884_v33 = vrot.slane %v5882_v52, 6  ;;  %v5909_v52 = vshll.u32 %v18050_v10, 16  ;;  %v21632_v55 = vshll.u32 %v17991_v31, 16  ;;  %v5927_v10 = vshll.u32 %v18066_v63, 16 }
 0x408   : > { %v5890_v51 = vrot.slane %v5888_v49, 5  ;;  %v5899_v6 = vrot.slane %v5897_v30, 5 }
 0x409   : > { %13725 = vmatpush3.bf16.msra.mxu0 %v15461_v12  ;;  %v5867_v12 = vor.u32 %v5866_v47, %v5863_v24  ;;  %v5876_v47 = vor.u32 %v5875_v48, %v5872_v46  ;;  %v5885_v15 = vor.u32 %v5884_v33, %v5881_v36  ;;  %v5900_v24 = vshll.u32 %v18042_v9, 16 }
 0x40a   : > { %13726 = vmatprep.subr.bf16.mxu0 %v15462_v62  ;;  %v5908_v36 = vrot.slane %v5906_v42, 5  ;;  %v5920_v1 = vrot.slane %v21632_v55, 6 }
 0x40b   : > { %v18061_v40 = vsel %vm5779_vm6, %v5858_v43, %v5867_v12  ;;  %v5893_v43 = vrot.slane %v5891_v28, 6  ;;  %v18077_v49 = vsel %vm5779_vm6, %v5867_v12, %v5876_v47  ;;  %v18080_v46 = vsel %vm5779_vm6, %v5876_v47, %v5885_v15 }
 0x40c   : > { %13691 = vmatmul.mubr.bf16.gmra.mrb[8].mxu0 %v17584_v19  ;;  %21629 = vst [vmem:[#allocation85_spill] sm:$0xff] %v18061_v40  ;;  %v15464_v19 = vld [vmem:[%s21099_s6 + $0xe0] sm:$0xff]   ;;  %21631 = vst [vmem:[#allocation86_spill] sm:$0xff] %v18077_v49  ;;  %v5902_v48 = vrot.slane %v5900_v24, 6  ;;  %v5911_v40 = vrot.slane %v5909_v52, 6  ;;  %v5924_v28 = vshrl.u32 %v18066_v63, 16 }
 0x40d   : > { %13694 = vmatprep.mubr.bf16.mxu0 %v17589_v25  ;;  %13727 = vmatpush3.bf16.msra.mxu0 %v15462_v62  ;;  %v21630_v25 = vshrl.u32 %v17991_v31, 16  ;;  %v5894_v33 = vor.u32 %v5893_v43, %v5890_v51  ;;  %v21634_v49 = vshll.u32 %v17993_v21, 16  ;;  %v15465_v51 = vld [vmem:[%s21099_s6 + $0xe8] sm:$0xff]  }
 0x40e   : > { %13728 = vmatprep.subr.bf16.mxu0 %v15463_v56  ;;  %v5903_v30 = vor.u32 %v5902_v48, %v5899_v6  ;;  %v5912_v55 = vor.u32 %v5911_v40, %v5908_v36  ;;  %v5929_v6 = vrot.slane %v5927_v10, 6  ;;  %v2644_v36 = vld [vmem:[#allocation2 + $0x90] sm:$0xf] }
 0x40f   : > { %v5917_v62 = vrot.slane %v21630_v25, 5  ;;  %v21633_v25 = vshrl.u32 %v17993_v21, 16  ;;  %v5938_v47 = vrot.slane %v21634_v49, 6  ;;  %v18094_v24 = vsel %vm5779_vm6, %v5885_v15, %v5894_v33  ;;  %v15468_v15 = vld [vmem:[%s21099_s6 + $0x100] sm:$0xff]  }
 0x410   : > { %v18097_v43 = vsel %vm5779_vm6, %v5894_v33, %v5903_v30  ;;  %v18103_v49 = vsel %vm5779_vm6, %v5903_v30, %v5912_v55  ;;  %v3184_v33 = vld [vmem:[#allocation2 + $0x8] sm:$0xf8] }
 0x411   : > { %13729 = vmatpush3.bf16.msra.mxu0 %v15463_v56  ;;  %v5935_v12 = vrot.slane %v21633_v25, 5  ;;  %v5921_v42 = vor.u32 %v5920_v1, %v5917_v62  ;;  %v5926_v56 = vrot.slane %v5924_v28, 5  ;;  %v15466_v1 = vld [vmem:[%s21099_s6 + $0xf0] sm:$0xff]   ;;  %v2825_v28 = vshrl.u32 %v2644_v36, 16 }
 0x412   : > { %13730 = vmatprep.subr.bf16.mxu0 %v15464_v19  ;;  %v3221_v30 = vshrl.u32 %v3184_v33, 16 }
 0x413   : > { %v18099_v52 = vor.u32 %v5938_v47, %v5935_v12  ;;  %v18106_v48 = vsel %vm5779_vm6, %v5912_v55, %v5921_v42  ;;  %v5930_v40 = vor.u32 %v5929_v6, %v5926_v56  ;;  %v2827_v25 = vrot.slane %v2825_v28, 3 }
 0x414   : > { %13695 = vmatmul.mubr.bf16.gmra.mrb[12].mxu0 %v17596_v54  ;;  %v3223_v12 = vrot.slane %v3221_v30, 3 }
 0x415   : > { %13698 = vmatprep.mubr.bf16.mxu0 %v17603_v26  ;;  %13731 = vmatpush3.bf16.msra.mxu0 %v15464_v19  ;;  %v18113_v10 = vsel %vm5779_vm6, %v5921_v42, %v5930_v40  ;;  %v18117_v54 = vsel %vm5779_vm6, %v5930_v40, %v18099_v52  ;;  %v15467_v26 = vld [vmem:[%s21099_s6 + $0xf8] sm:$0xff]   ;;  %v21636_v19 = vshll.u32 %v17680_v44, 16 }
 0x416   : > { %13732 = vmatprep.subr.bf16.mxu0 %v15465_v51 }
 0x417   : > { %v2821_v62 = vrot.slane %v21636_v19, 4 }
 0x419   : > { %13733 = vmatpush3.bf16.msra.mxu0 %v15465_v51  ;;  %v21638_v51 = vshrl.u32 %v17682_v34, 16 }
 0x41a   : > { %13734 = vmatprep.subr.bf16.mxu0 %v15466_v1 }
 0x41b   : > { %v3231_v55 = vrot.slane %v21638_v51, 3 }
 0x41c   : > { %13699 = vmatmul.mubr.bf16.gmra.mrb[16].mxu0 %v17610_v59  ;;  %v21635_v59 = vshrl.u32 %v17680_v44, 16 }
 0x41d   : > { %13702 = vmatprep.mubr.bf16.mxu0 %v17618_v38  ;;  %13735 = vmatpush3.bf16.msra.mxu0 %v15466_v1 }
 0x41e   : > { %13736 = vmatprep.subr.bf16.mxu0 %v15467_v26  ;;  %v2818_v38 = vrot.slane %v21635_v59, 3  ;;  %v21641_v59 = vshll.u32 %v17684_v3, 16 }
 0x421   : > { %13737 = vmatpush3.bf16.msra.mxu0 %v15467_v26 }
 0x422   : > { %13774 = vmatprep.subr.bf16.mxu0 %v15468_v15 }
 0x424   : > { %13703 = vmatmul.mubr.bf16.gmra.mrb[20].mxu0 %v17625_v13  ;;  %v2828_v13 = vshll.u32 %v2644_v36, 16 }
 0x425   : > { %13706 = vmatprep.mubr.bf16.mxu0 %v17632_v16  ;;  %v18137_v16 = vor.u32 %v2821_v62, %v2818_v38  ;;  %v3243_v38 = vrot.slane %v21641_v59, 4  ;;  %v21642_v62 = vshrl.u32 %v17686_v39, 16 }
 0x427   : > { %v3249_v36 = vrot.slane %v21642_v62, 3 }
 0x42c   : > { %13707 = vmatmul.mubr.bf16.gmra.mrb[24].mxu0 %v17639_v53  ;;  %v3224_v53 = vshll.u32 %v3184_v33, 16  ;;  %v21643_v33 = vshll.u32 %v17686_v39, 16  ;;  %v21646_v39 = vld [vmem:[#allocation31_spill] sm:$0xff] }
 0x42d   : > { %13710 = vmatprep.mubr.bf16.mxu0 %v17649_v23  ;;  %v2830_v23 = vrot.slane %v2828_v13, 4 }
 0x42e   : > { %v3226_v47 = vrot.slane %v3224_v53, 4  ;;  %v3252_v28 = vrot.slane %v21643_v33, 4  ;;  %v15469_v53 = vld [vmem:[%s21099_s6 + $0x108] sm:$0xff]  }
 0x42f   : > { %v2831_v56 = vor.u32 %v2830_v23, %v2827_v25 }
 0x430   : > { %v3227_v6 = vor.u32 %v3226_v47, %v3223_v12  ;;  %v3253_v30 = vor.u32 %v3252_v28, %v3249_v36  ;;  %v21645_v12 = vshll.u32 %v17688_v18, 16  ;;  %v21647_v47 = vshrl.u32 %v21646_v39, 16  ;;  %v15472_v28 = vld [vmem:[%s21099_s6 + $0x120] sm:$0xff]  }
 0x431   : > { %v2832_v1 = vsel %vm2662_vm4, %v18137_v16, %v2831_v56  ;;  %v21653_v36 = vshll.u32 %v17703_v35, 16 }
 0x432   : > { %v3267_v51 = vrot.slane %v21647_v47, 3  ;;  %v21657_v47 = vshll.u32 %v17711_v17, 16 }
 0x433   : > { %v3288_v33 = vrot.slane %v21653_v36, 4  ;;  %v21662_v36 = vshrl.u32 %v17726_v32, 16 }
 0x434   : > { %13711 = vmatmul.mubr.bf16.gmra.mrb[28].mxu0 %v17652_v14  ;;  %v21637_v14 = vld [vmem:[#allocation30_spill] sm:$0xff] }
 0x435   : > { %13714 = vmatprep.mubr.bf16.mxu0 %v17657_v20  ;;  %v2823_v44 = vsel %vm2662_vm4, %v21637_v14, %v18137_v16  ;;  %v21639_v20 = vshll.u32 %v17682_v34, 16  ;;  %v3261_v14 = vrot.slane %v21645_v12, 4 }
 0x437   : > { %v3234_v42 = vrot.slane %v21639_v20, 4 }
 0x439   : > { %v3235_v40 = vor.u32 %v3234_v42, %v3231_v55  ;;  %v21648_v55 = vshll.u32 %v21646_v39, 16  ;;  %v15470_v42 = vld [vmem:[%s21099_s6 + $0x110] sm:$0xff]  }
 0x43b   : > { %v3236_v19 = vsel %vm2662_vm4, %v3227_v6, %v3235_v40  ;;  %v3270_v20 = vrot.slane %v21648_v55, 4  ;;  %v15474_v55 = vld [vmem:[%s21099_s6 + $0x130] sm:$0xff]  }
 0x43c   : > { %13715 = vmatmul.mubr.bf16.gmra.mrb[32].mxu0 %v17668_v22  ;;  %v21640_v22 = vshrl.u32 %v17684_v3, 16  ;;  %v21644_v3 = vshrl.u32 %v17688_v18, 16  ;;  %v15471_v18 = vld [vmem:[%s21099_s6 + $0x118] sm:$0xff]  }
 0x43d   : > { %13718 = vmatprep.mubr.bf16.mxu0 %v2823_v44  ;;  %v3271_v6 = vor.u32 %v3270_v20, %v3267_v51  ;;  %v3306_v51 = vrot.slane %v21657_v47, 4 }
 0x43e   : > { %v3240_v26 = vrot.slane %v21640_v22, 3  ;;  %v3258_v23 = vrot.slane %v21644_v3, 3 }
 0x440   : > { %v3244_v13 = vor.u32 %v3243_v38, %v3240_v26  ;;  %v3262_v56 = vor.u32 %v3261_v14, %v3258_v23  ;;  %v21655_v23 = vshll.u32 %v17709_v60, 16 }
 0x442   : > { %v3245_v25 = vsel %vm2662_vm4, %v3235_v40, %v3244_v13  ;;  %v3254_v44 = vsel %vm2662_vm4, %v3244_v13, %v3253_v30  ;;  %v3263_v40 = vsel %vm2662_vm4, %v3253_v30, %v3262_v56  ;;  %v3272_v38 = vsel %vm2662_vm4, %v3262_v56, %v3271_v6 }
 0x443   : > { %v3297_v12 = vrot.slane %v21655_v23, 4 }
 0x444   : > { %13719 = vmatmul.mubr.bf16.gmra.mrb[36].mxu0 %v2832_v1  ;;  %v21649_v1 = vld [vmem:[#allocation34_spill] sm:$0xff] }
 0x445   : > { %13738 = vmatprep.mubr.bf16.mxu0 %v3236_v19  ;;  %v21650_v22 = vshrl.u32 %v21649_v1, 16  ;;  %v21652_v19 = vshrl.u32 %v17703_v35, 16  ;;  %v21654_v35 = vshrl.u32 %v17709_v60, 16  ;;  %v15475_v60 = vld [vmem:[%s21099_s6 + $0x138] sm:$0xff]  }
 0x447   : > { %v3276_v26 = vrot.slane %v21650_v22, 3  ;;  %v3285_v62 = vrot.slane %v21652_v19, 3  ;;  %v3294_v3 = vrot.slane %v21654_v35, 3  ;;  %v21660_v22 = vshrl.u32 %v17720_v50, 16 }
 0x449   : > { %v3289_v30 = vor.u32 %v3288_v33, %v3285_v62  ;;  %v3298_v20 = vor.u32 %v3297_v12, %v3294_v3  ;;  %v3330_v33 = vrot.slane %v21662_v36, 3 }
 0x44b   : > { %v3299_v56 = vsel %vm2662_vm4, %v3289_v30, %v3298_v20 }
 0x44c   : > { %13739 = vmatmul.mubr.bf16.vlgmr.msra.gmra.mrb[4].mxu0 %v3245_v25 }
 0x44d   : > { %13775 = vmatpush3.bf16.msra.mxu0 %v15468_v15  ;;  %13742 = vmatprep.mubr.bf16.mxu0 %v3254_v44  ;;  %v21651_v15 = vshll.u32 %v21649_v1, 16  ;;  %v21656_v44 = vshrl.u32 %v17711_v17, 16  ;;  %v21658_v17 = vshrl.u32 %v17718_v58, 16 }
 0x44e   : > { %13776 = vmatprep.subr.bf16.mxu0 %v15469_v53 }
 0x44f   : > { %v3279_v59 = vrot.slane %v21651_v15, 4  ;;  %v3303_v39 = vrot.slane %v21656_v44, 3  ;;  %v21661_v15 = vshll.u32 %v17720_v50, 16 }
 0x451   : > { %13777 = vmatpush3.bf16.msra.mxu0 %v15469_v53  ;;  %v3280_v13 = vor.u32 %v3279_v59, %v3276_v26  ;;  %v15473_v53 = vld [vmem:[%s21099_s6 + $0x128] sm:$0xff]   ;;  %v3321_v26 = vrot.slane %v21660_v22, 3  ;;  %v3324_v59 = vrot.slane %v21661_v15, 4 }
 0x452   : > { %13778 = vmatprep.subr.bf16.mxu0 %v15470_v42 }
 0x453   : > { %v3281_v25 = vsel %vm2662_vm4, %v3271_v6, %v3280_v13  ;;  %v3290_v14 = vsel %vm2662_vm4, %v3280_v13, %v3289_v30  ;;  %v3312_v6 = vrot.slane %v21658_v17, 3  ;;  %v3325_v62 = vor.u32 %v3324_v59, %v3321_v26 }
 0x454   : > { %13743 = vmatmul.mubr.bf16.gmra.mrb[8].mxu0 %v3263_v40  ;;  %v21664_v30 = vshrl.u32 %v17757_v45, 16 }
 0x455   : > { %13746 = vmatprep.mubr.bf16.mxu0 %v3272_v38  ;;  %13779 = vmatpush3.bf16.msra.mxu0 %v15470_v42  ;;  %v3307_v42 = vor.u32 %v3306_v51, %v3303_v39  ;;  %v15476_v38 = vld [vmem:[%s21099_s6 + $0x140] sm:$0xff]   ;;  %v21668_v51 = vshrl.u32 %v17761_v37, 16 }
 0x456   : > { %13780 = vmatprep.subr.bf16.mxu0 %v15471_v18 }
 0x457   : > { %v3308_v1 = vsel %vm2662_vm4, %v3298_v20, %v3307_v42 }
 0x459   : > { %13781 = vmatpush3.bf16.msra.mxu0 %v15471_v18  ;;  %v21659_v18 = vshll.u32 %v17718_v58, 16 }
 0x45a   : > { %13782 = vmatprep.subr.bf16.mxu0 %v15472_v28 }
 0x45b   : > { %v3315_v40 = vrot.slane %v21659_v18, 4  ;;  %v21671_v18 = vshll.u32 %v17770_v5, 16 }
 0x45c   : > { %13747 = vmatmul.mubr.bf16.gmra.mrb[12].mxu0 %v3281_v25  ;;  %v21665_v25 = vshll.u32 %v17757_v45, 16  ;;  %v21669_v45 = vshll.u32 %v17761_v37, 16 }
 0x45d   : > { %13750 = vmatprep.mubr.bf16.mxu0 %v3290_v14  ;;  %13783 = vmatpush3.bf16.msra.mxu0 %v15472_v28  ;;  %v3316_v19 = vor.u32 %v3315_v40, %v3312_v6  ;;  %v21663_v28 = vshll.u32 %v17726_v32, 16  ;;  %v21666_v14 = vshrl.u32 %v17759_v11, 16  ;;  %v21667_v32 = vshll.u32 %v17759_v11, 16 }
 0x45e   : > { %13784 = vmatprep.subr.bf16.mxu0 %v15473_v53  ;;  %v3342_v35 = vrot.slane %v21665_v25, 4  ;;  %v3360_v20 = vrot.slane %v21669_v45, 4  ;;  %v21670_v11 = vshrl.u32 %v17770_v5, 16  ;;  %v3378_v40 = vrot.slane %v21671_v18, 4  ;;  %v15478_v25 = vld [vmem:[%s21099_s6 + $0x150] sm:$0xff]   ;;  %v21682_v45 = vld [vmem:[#allocation55_spill] sm:$0xff] }
 0x45f   : > { %v3317_v58 = vsel %vm2662_vm4, %v3307_v42, %v3316_v19  ;;  %v3333_v50 = vrot.slane %v21663_v28, 4  ;;  %v3326_v13 = vsel %vm2662_vm4, %v3316_v19, %v3325_v62  ;;  %v3348_v44 = vrot.slane %v21666_v14, 3  ;;  %v21678_v14 = vld [vmem:[#allocation46_spill] sm:$0xff]  ;;  %v21687_v18 = vld [vmem:[#allocation60_spill] sm:$0xff] }
 0x460   : > { %v3351_v39 = vrot.slane %v21667_v32, 4  ;;  %v3375_v6 = vrot.slane %v21670_v11, 3  ;;  %v15483_v32 = vld [vmem:[%s21099_s6 + $0x178] sm:$0xff]  }
 0x461   : > { %13785 = vmatpush3.bf16.msra.mxu0 %v15473_v53  ;;  %v3339_v53 = vrot.slane %v21664_v30, 3  ;;  %v3334_v3 = vor.u32 %v3333_v50, %v3330_v33  ;;  %v21672_v50 = vrot.slane %v17682_v34, 4  ;;  %v15477_v30 = vld [vmem:[%s21099_s6 + $0x148] sm:$0xff]   ;;  %v15479_v34 = vld [vmem:[%s21099_s6 + $0x158] sm:$0xff]  }
 0x462   : > { %13786 = vmatprep.subr.bf16.mxu0 %v15474_v55  ;;  %v3352_v42 = vor.u32 %v3351_v39, %v3348_v44  ;;  %v3379_v37 = vor.u32 %v3378_v40, %v3375_v6  ;;  %v15482_v44 = vld [vmem:[%s21099_s6 + $0x170] sm:$0xff]   ;;  %v21679_v39 = vld [vmem:[#allocation47_spill] sm:$0xff] }
 0x463   : > { %v3343_v23 = vor.u32 %v3342_v35, %v3339_v53  ;;  %v3335_v12 = vsel %vm2662_vm4, %v3325_v62, %v3334_v3  ;;  %v21673_v53 = vld [vmem:[#allocation35_spill] sm:$0xff] }
 0x464   : > { %13751 = vmatmul.mubr.bf16.gmra.mrb[16].mxu0 %v3299_v56  ;;  %v3380_v62 = vsel %vm2662_vm4, %v18137_v16, %v3379_v37  ;;  %v21675_v35 = vld [vmem:[#allocation39_spill] sm:$0xff] }
 0x465   : > { %13754 = vmatprep.mubr.bf16.mxu0 %v3308_v1  ;;  %13787 = vmatpush3.bf16.msra.mxu0 %v15474_v55  ;;  %v3344_v47 = vsel %vm2662_vm4, %v3334_v3, %v3343_v23  ;;  %v3357_v55 = vrot.slane %v21668_v51, 3  ;;  %v3353_v56 = vsel %vm2662_vm4, %v3343_v23, %v3352_v42  ;;  %v3202_v1 = vld [vmem:[#allocation2 + $0x98] sm:$0xf]  ;;  %v21676_v3 = vld [vmem:[#allocation42_spill] sm:$0xff]  ;;  %v15481_v23 = vld [vmem:[%s21099_s6 + $0x168] sm:$0xff]  }
 0x466   : > { %13788 = vmatprep.subr.bf16.mxu0 %v15475_v60  ;;  %v3382_v22 = vshrl.u32 %v3202_v1, 16  ;;  %v3385_v26 = vshll.u32 %v3202_v1, 16  ;;  %v15484_v51 = vld [vmem:[%s21099_s6 + $0x180] sm:$0xff]   ;;  %v3759_v40 = vld [vmem:[#allocation2 + $0x98] sm:$0xf] }
 0x468   : > { %v3384_v59 = vrot.slane %v3382_v22, 3  ;;  %v3387_v19 = vrot.slane %v3385_v26, 4  ;;  %v21688_v26 = vld [vmem:[#allocation61_spill] sm:$0xff] }
 0x469   : > { %13789 = vmatpush3.bf16.msra.mxu0 %v15475_v60  ;;  %v3361_v60 = vor.u32 %v3360_v20, %v3357_v55  ;;  %v21681_v55 = vld [vmem:[#allocation51_spill] sm:$0xff]  ;;  %v21683_v20 = vld [vmem:[#allocation56_spill] sm:$0xff] }
 0x46a   : > { %13826 = vmatprep.subr.bf16.mxu0 %v15476_v38  ;;  %v3388_v36 = vor.u32 %v3387_v19, %v3384_v59  ;;  %v21689_v59 = vrot.slane %v17770_v5, 4  ;;  %v15486_v5 = vld [vmem:[%s21099_s6 + $0x190] sm:$0xff]  }
 0x46b   : > { %v3362_v17 = vsel %vm2662_vm4, %v3352_v42, %v3361_v60  ;;  %v3371_v15 = vsel %vm2662_vm4, %v3361_v60, %v18137_v16  ;;  %v21674_v16 = vld [vmem:[#allocation38_spill] sm:$0xff]  ;;  %v21684_v42 = vld [vmem:[#allocation57_spill] sm:$0xff] }
 0x46c   : > { %13755 = vmatmul.mubr.bf16.gmra.mrb[20].mxu0 %v3317_v58  ;;  %v3741_v58 = vld [vmem:[#allocation2 + $0x8] sm:$0xf0]  ;;  %v3389_v28 = vsel %vm2662_vm4, %v3379_v37, %v3388_v36  ;;  %v21685_v60 = vld [vmem:[#allocation58_spill] sm:$0xff]  ;;  %v3831_v37 = vrot.slane %v3759_v40, 4  ;;  %v21690_v36 = vld [vmem:[#allocation63_spill] sm:$0xff] }
 0x46d   : > { %13758 = vmatprep.mubr.bf16.mxu0 %v3326_v13  ;;  %v3796_v33 = vrot.slane %v3741_v58, 4  ;;  %v15485_v58 = vld [vmem:[%s21099_s6 + $0x188] sm:$0xff]   ;;  %v6390_v40 = vld [vmem:[%s21101_s8 + $0x18] sm:$0xff] }
 0x46e   : > { %v3832_v19 = vsel %vm1623_vm1, %v21689_v59, %v3831_v37 }
 0x46f   : > { %v3798_v13 = vsel %vm1623_vm1, %v3796_v33, %v21672_v50  ;;  %v21691_v33 = vld [vmem:[#allocation65_spill] sm:$0xff]  ;;  %v21693_v50 = vld [vmem:[#allocation66_spill] sm:$0xff] }
 0x474   : > { %13759 = vmatmul.mubr.bf16.gmra.mrb[24].mxu0 %v3335_v12  ;;  %v21677_v12 = vld [vmem:[#allocation43_spill] sm:$0xff] }
 0x475   : > { %13762 = vmatprep.mubr.bf16.mxu0 %v3344_v47  ;;  %v21680_v47 = vld [vmem:[#allocation50_spill] sm:$0xff] }
 0x47c   : > { %13763 = vmatmul.mubr.bf16.gmra.mrb[28].mxu0 %v3353_v56  ;;  %v21686_v56 = vld [vmem:[#allocation59_spill] sm:$0xff] }
 0x47d   : > { %13766 = vmatprep.mubr.bf16.mxu0 %v3362_v17  ;;  %v4184_v17 = vld [vmem:[#allocation2 + $0x8] sm:$0xf0] }
 0x47e   : > { %v4222_v11 = vshrl.u32 %v4184_v17, 16  ;;  %v4225_v6 = vshll.u32 %v4184_v17, 16 }
 0x480   : > { %v4224_v1 = vrot.slane %v4222_v11, 4  ;;  %v4227_v22 = vrot.slane %v4225_v6, 5  ;;  %v21701_v6 = vld [vmem:[#allocation75_spill] sm:$0xff] }
 0x484   : > { %13767 = vmatmul.mubr.bf16.gmra.mrb[32].mxu0 %v3371_v15  ;;  %v4228_v15 = vor.u32 %v4227_v22, %v4224_v1  ;;  %v6391_v22 = vld [vmem:[%s21101_s8 + $0x20] sm:$0xff] }
 0x485   : > { %13770 = vmatprep.mubr.bf16.mxu0 %v3380_v62 }
 0x486   : > { %v4237_v62 = vsel %vm4220_vm5, %v4228_v15, %v17845_v41  ;;  %v15487_v41 = vld [vmem:[%s21099_s6 + $0x198] sm:$0xff]  }
 0x48c   : > { %13771 = vmatmul.mubr.bf16.gmra.mrb[36].mxu0 %v3389_v28  ;;  %v21692_v28 = vld [vmem:[#allocation64_spill] sm:$0xff] }
 0x48d   : > { %13790 = vmatprep.mubr.bf16.mxu0 %v3798_v13  ;;  %v15488_v13 = vld [vmem:[%s21099_s6 + $0x1a0] sm:$0xff]  }
 0x494   : > { %13791 = vmatmul.mubr.bf16.vlgmr.msra.gmra.mrb[4].mxu0 %v21673_v53  ;;  %v21694_v53 = vld [vmem:[#allocation67_spill] sm:$0xff] }
 0x495   : > { %13827 = vmatpush3.bf16.msra.mxu0 %v15476_v38  ;;  %13794 = vmatprep.mubr.bf16.mxu0 %v21674_v16  ;;  %v15480_v38 = vld [vmem:[%s21099_s6 + $0x160] sm:$0xff]   ;;  %v15490_v16 = vld [vmem:[%s21099_s6 + $0x1b0] sm:$0xff]  }
 0x496   : > { %13828 = vmatprep.subr.bf16.mxu0 %v15477_v30 }
 0x499   : > { %13829 = vmatpush3.bf16.msra.mxu0 %v15477_v30  ;;  %v15489_v30 = vld [vmem:[%s21099_s6 + $0x1a8] sm:$0xff]  }
 0x49a   : > { %13830 = vmatprep.subr.bf16.mxu0 %v15478_v25 }
 0x49c   : > { %13795 = vmatmul.mubr.bf16.gmra.mrb[8].mxu0 %v21675_v35  ;;  %v21696_v35 = vld [vmem:[#allocation69_spill] sm:$0xff] }
 0x49d   : > { %13798 = vmatprep.mubr.bf16.mxu0 %v21676_v3  ;;  %13831 = vmatpush3.bf16.msra.mxu0 %v15478_v25  ;;  %v15491_v25 = vld [vmem:[%s21099_s6 + $0x1b8] sm:$0xff]   ;;  %v15492_v3 = vld [vmem:[%s21099_s6 + $0x1c0] sm:$0xff]  }
 0x49e   : > { %13832 = vmatprep.subr.bf16.mxu0 %v15479_v34 }
 0x4a1   : > { %13833 = vmatpush3.bf16.msra.mxu0 %v15479_v34  ;;  %v21695_v34 = vld [vmem:[#allocation68_spill] sm:$0xff] }
 0x4a2   : > { %13834 = vmatprep.subr.bf16.mxu0 %v15480_v38 }
 0x4a4   : > { %13799 = vmatmul.mubr.bf16.gmra.mrb[12].mxu0 %v21677_v12  ;;  %v21698_v12 = vld [vmem:[#allocation72_spill] sm:$0xff] }
 0x4a5   : > { %13802 = vmatprep.mubr.bf16.mxu0 %v21678_v14  ;;  %13835 = vmatpush3.bf16.msra.mxu0 %v15480_v38  ;;  %v21697_v38 = vld [vmem:[#allocation70_spill] sm:$0xff] }
 0x4a6   : > { %13836 = vmatprep.subr.bf16.mxu0 %v15481_v23  ;;  %v4742_v14 = vld [vmem:[#allocation2 + $0x10] sm:$0xf0] }
 0x4a9   : > { %13837 = vmatpush3.bf16.msra.mxu0 %v15481_v23  ;;  %v4202_v23 = vld [vmem:[#allocation2 + $0x98] sm:$0x1f] }
 0x4aa   : > { %13838 = vmatprep.subr.bf16.mxu0 %v15482_v44 }
 0x4ac   : > { %13803 = vmatmul.mubr.bf16.gmra.mrb[16].mxu0 %v21679_v39 }
 0x4ad   : > { %13806 = vmatprep.mubr.bf16.mxu0 %v21680_v47  ;;  %13839 = vmatpush3.bf16.msra.mxu0 %v15482_v44  ;;  %v6387_v44 = vld [vmem:[%s21101_s8] sm:$0xff]  ;;  %v4383_v47 = vshrl.u32 %v4202_v23, 16 }
 0x4ae   : > { %13840 = vmatprep.subr.bf16.mxu0 %v15483_v32 }
 0x4b1   : > { %13841 = vmatpush3.bf16.msra.mxu0 %v15483_v32  ;;  %v6388_v32 = vld [vmem:[%s21101_s8 + $0x8] sm:$0xff] }
 0x4b2   : > { %13878 = vmatprep.subr.bf16.mxu0 %v15484_v51  ;;  %v14742_v39 = vpack.c.bf16 %v6388_v32, %v6387_v44  ;;  %v6398_v44 = vld [vmem:[%s21101_s8 + $0x58] sm:$0xff]  ;;  %v15494_v32 = vld [vmem:[%s21099_s6 + $0x1d0] sm:$0xff]  }
 0x4b4   : > { %13807 = vmatmul.mubr.bf16.gmra.mrb[20].mxu0 %v21681_v55  ;;  %v4779_v55 = vshrl.u32 %v4742_v14, 16  ;;  %14743 = vmatpush3.bf16.msra.mxu1 %v14742_v39 }
 0x4b5   : > { %13810 = vmatprep.mubr.bf16.mxu0 %v21682_v45  ;;  %v4782_v45 = vshll.u32 %v4742_v14, 16  ;;  %v6397_v14 = vld [vmem:[%s21101_s8 + $0x50] sm:$0xff] }
 0x4b6   : > { %v4781_v17 = vrot.slane %v4779_v55, 4  ;;  %v6402_v55 = vld [vmem:[%s21101_s8 + $0x78] sm:$0xff] }
 0x4b7   : > { %v4784_v11 = vrot.slane %v4782_v45, 5  ;;  %v6380_v45 = vld [vmem:[%s557_s26] sm:$0x1] }
 0x4b9   : > { %v4785_v15 = vor.u32 %v4784_v11, %v4781_v17  ;;  %v15498_v17 = vld [vmem:[%s21099_s6 + $0x1f0] sm:$0xff]   ;;  %v15499_v11 = vld [vmem:[%s21099_s6 + $0x1f8] sm:$0xff]  }
 0x4bc   : > { %13811 = vmatmul.mubr.bf16.gmra.mrb[24].mxu0 %v21683_v20  ;;  %v21699_v20 = vmov 0.0|0.0  }
 0x4bd   : > { %13814 = vmatprep.mubr.bf16.mxu0 %v21684_v42  ;;  %14744 = vmatprep.subr.bf16.mxu1 %v21699_v20  ;;  %v4385_v42 = vrot.slane %v4383_v47, 4  ;;  %v15495_v47 = vld [vmem:[%s21099_s6 + $0x1d8] sm:$0xff]  }
 0x4c4   : > { %13815 = vmatmul.mubr.bf16.gmra.mrb[28].mxu0 %v21685_v60 }
 0x4c5   : > { %13818 = vmatprep.mubr.bf16.mxu0 %v21686_v56  ;;  %v21700_v56 = vld [vmem:[#allocation74_spill] sm:$0xff] }
 0x4cc   : > { %13819 = vmatmul.mubr.bf16.gmra.mrb[32].mxu0 %v21687_v18  ;;  %v6389_v18 = vld [vmem:[%s21101_s8 + $0x10] sm:$0xff] }
 0x4cd   : > { %13822 = vmatprep.mubr.bf16.mxu0 %v21688_v26  ;;  %v14745_v1 = vpack.c.bf16 %v6390_v40, %v6389_v18  ;;  %v6392_v26 = vld [vmem:[%s21101_s8 + $0x28] sm:$0xff] }
 0x4ce   : > { %v14748_v59 = vpack.c.bf16 %v6392_v26, %v6391_v22  ;;  %v21707_v26 = vmov 0.0  }
 0x4cf   : > { %14746 = vmatpush3.bf16.msra.mxu1 %v14745_v1  ;;  %v21706_v1 = vshll.u32 %v17991_v31, 16 }
 0x4d0   : > { %14747 = vmatprep.subr.bf16.mxu1 %v21699_v20 }
 0x4d1   : > { %v4918_v22 = vrot.slane %v21706_v1, 5  ;;  %v15884_v1 = vld [vmem:[#allocation2 + $0x58] sm:$0xff] }
 0x4d3   : > { %14749 = vmatpush3.bf16.msra.mxu1 %v14748_v59  ;;  %v21710_v59 = vshll.u32 %v17993_v21, 16 }
 0x4d4   : > { %13823 = vmatmul.mubr.bf16.gmra.mrb[36].mxu0 %v3832_v19  ;;  %v21702_v19 = vld [vmem:[#allocation73_spill] sm:$0xff]  ;;  %14750 = vmatprep.subr.bf16.mxu1 %v21699_v20 }
 0x4d5   : > { %13842 = vmatprep.mubr.bf16.mxu0 %v4237_v62 }
 0x4dc   : > { %13843 = vmatmul.mubr.bf16.vlgmr.msra.gmra.mrb[4].mxu0 %v21690_v36 }
 0x4dd   : > { %13879 = vmatpush3.bf16.msra.mxu0 %v15484_v51  ;;  %13846 = vmatprep.mubr.bf16.mxu0 %v21691_v33  ;;  %v4386_v51 = vshll.u32 %v4202_v23, 16  ;;  %v15493_v23 = vld [vmem:[%s21099_s6 + $0x1c8] sm:$0xff]  }
 0x4de   : > { %13880 = vmatprep.subr.bf16.mxu0 %v15485_v58 }
 0x4df   : > { %v4388_v60 = vrot.slane %v4386_v51, 5  ;;  %v6401_v51 = vld [vmem:[%s21101_s8 + $0x70] sm:$0xff] }
 0x4e1   : > { %13881 = vmatpush3.bf16.msra.mxu0 %v15485_v58  ;;  %v4389_v37 = vor.u32 %v4388_v60, %v4385_v42  ;;  %v21703_v58 = vld [vmem:[#allocation62_spill] sm:$0xff]  ;;  %v6381_v42 = vsub.f32 0.0, %v6380_v45 }
 0x4e2   : > { %13882 = vmatprep.subr.bf16.mxu0 %v15486_v5  ;;  %v4794_v36 = vsel %vm4220_vm5, %v4785_v15, %v21703_v58 }
 0x4e3   : > { %v4390_v62 = vsel %vm4220_vm5, %v21702_v19, %v4389_v37  ;;  %v6382_v60 = vmul.f32 1.442695, %v6381_v42  ;;  %v15503_v42 = vld [vmem:[%s21099_s6 + $0x218] sm:$0xff]  }
 0x4e4   : > { %13847 = vmatmul.mubr.bf16.gmra.mrb[8].mxu0 %v21692_v28 }
 0x4e5   : > { %13850 = vmatprep.mubr.bf16.mxu0 %v21693_v50  ;;  %13883 = vmatpush3.bf16.msra.mxu0 %v15486_v5  ;;  %v6393_v5 = vld [vmem:[%s21101_s8 + $0x30] sm:$0xff]  ;;  %15726 = vpow2.f32 %v6382_v60 }
 0x4e6   : > { %13884 = vmatprep.subr.bf16.mxu0 %v15487_v41 }
 0x4e9   : > { %13885 = vmatpush3.bf16.msra.mxu0 %v15487_v41  ;;  %v6394_v41 = vld [vmem:[%s21101_s8 + $0x38] sm:$0xff] }
 0x4ea   : > { %13886 = vmatprep.subr.bf16.mxu0 %v15488_v13 }
 0x4ec   : > { %13851 = vmatmul.mubr.bf16.gmra.mrb[12].mxu0 %v21694_v53 }
 0x4ed   : > { %13854 = vmatprep.mubr.bf16.mxu0 %v17910_v2  ;;  %13887 = vmatpush3.bf16.msra.mxu0 %v15488_v13  ;;  %v14751_v13 = vpack.c.bf16 %v6394_v41, %v6393_v5 }
 0x4ee   : > { %13888 = vmatprep.subr.bf16.mxu0 %v15489_v30 }
 0x4ef   : > { %14752 = vmatpush3.bf16.msra.mxu1 %v14751_v13 }
 0x4f0   : > { %14753 = vmatprep.subr.bf16.mxu1 %v21699_v20 }
 0x4f1   : > { %13889 = vmatpush3.bf16.msra.mxu0 %v15489_v30  ;;  %v6395_v30 = vld [vmem:[%s21101_s8 + $0x40] sm:$0xff] }
 0x4f2   : > { %13890 = vmatprep.subr.bf16.mxu0 %v15490_v16 }
 0x4f4   : > { %13855 = vmatmul.mubr.bf16.gmra.mrb[16].mxu0 %v21695_v34 }
 0x4f5   : > { %13858 = vmatprep.mubr.bf16.mxu0 %v21696_v35  ;;  %13891 = vmatpush3.bf16.msra.mxu0 %v15490_v16  ;;  %v6396_v16 = vld [vmem:[%s21101_s8 + $0x48] sm:$0xff] }
 0x4f6   : > { %13892 = vmatprep.subr.bf16.mxu0 %v15491_v25 }
 0x4f9   : > { %13893 = vmatpush3.bf16.msra.mxu0 %v15491_v25  ;;  %v14754_v25 = vpack.c.bf16 %v6396_v16, %v6395_v30  ;;  %v5299_v30 = vld [vmem:[#allocation2 + $0x10] sm:$0xe0] }
 0x4fa   : > { %13930 = vmatprep.subr.bf16.mxu0 %v15492_v3 }
 0x4fb   : > { %14755 = vmatpush3.bf16.msra.mxu1 %v14754_v25  ;;  %v5355_v25 = vrot.slane %v5299_v30, 5  ;;  %v5743_v30 = vld [vmem:[#allocation2 + $0x10] sm:$0xe0] }
 0x4fc   : > { %13859 = vmatmul.mubr.bf16.gmra.mrb[20].mxu0 %v21697_v38  ;;  %14756 = vmatprep.subr.bf16.mxu1 %v21699_v20 }
 0x4fd   : > { %13862 = vmatprep.mubr.bf16.mxu0 %v17945_v0 }
 0x504   : > { %13863 = vmatmul.mubr.bf16.gmra.mrb[24].mxu0 %v17952_v27 }
 0x505   : > { %13866 = vmatprep.mubr.bf16.mxu0 %v17959_v61 }
 0x50c   : > { %13867 = vmatmul.mubr.bf16.gmra.mrb[28].mxu0 %v17967_v7 }
 0x50d   : > { %13870 = vmatprep.mubr.bf16.mxu0 %v21698_v12 }
 0x514   : > { %13871 = vmatmul.mubr.bf16.gmra.mrb[32].mxu0 %v21700_v56  ;;  %v15497_v56 = vld [vmem:[%s21099_s6 + $0x1e8] sm:$0xff]  }
 0x515   : > { %13874 = vmatprep.mubr.bf16.mxu0 %v21701_v6  ;;  %v15727_v6 = vpop.eup %15726 }
 0x51c   : > { %13875 = vmatmul.mubr.bf16.gmra.mrb[36].mxu0 %v4390_v62  ;;  %v4936_v62 = vrot.slane %v21710_v59, 5 }
 0x51d   : > { %13894 = vmatprep.mubr.bf16.mxu0 %v4794_v36 }
 0x524   : > { %13895 = vmatmul.mubr.bf16.vlgmr.msra.gmra.mrb[4].mxu0 %v21691_v33  ;;  %v14757_v33 = vpack.c.bf16 %v6398_v44, %v6397_v14 }
 0x525   : > { %13931 = vmatpush3.bf16.msra.mxu0 %v15492_v3  ;;  %13898 = vmatprep.mubr.bf16.mxu0 %v21692_v28  ;;  %v6399_v28 = vld [vmem:[%s21101_s8 + $0x60] sm:$0xff]  ;;  %v6400_v3 = vld [vmem:[%s21101_s8 + $0x68] sm:$0xff] }
 0x526   : > { %13932 = vmatprep.subr.bf16.mxu0 %v15493_v23  ;;  %14758 = vmatpush3.bf16.msra.mxu1 %v14757_v33  ;;  %v14760_v39 = vpack.c.bf16 %v6400_v3, %v6399_v28  ;;  %v15879_v28 = vld [vmem:[#allocation2 + $0x28] sm:$0xff] }
 0x527   : > { %14759 = vmatprep.subr.bf16.mxu1 %v21699_v20  ;;  %v5360_v3 = vrot.slane %v15879_v28, 5 }
 0x529   : > { %13933 = vmatpush3.bf16.msra.mxu0 %v15493_v23 }
 0x52a   : > { %13934 = vmatprep.subr.bf16.mxu0 %v15494_v32  ;;  %14761 = vmatpush3.bf16.msra.mxu1 %v14760_v39 }
 0x52b   : > { %14762 = vmatprep.subr.bf16.mxu1 %v21699_v20 }
 0x52c   : > { %13899 = vmatmul.mubr.bf16.gmra.mrb[8].mxu0 %v21693_v50  ;;  %v15496_v50 = vld [vmem:[%s21099_s6 + $0x1e0] sm:$0xff]  }
 0x52d   : > { %13902 = vmatprep.mubr.bf16.mxu0 %v21694_v53  ;;  %13935 = vmatpush3.bf16.msra.mxu0 %v15494_v32  ;;  %v14763_v53 = vpack.c.bf16 %v6402_v55, %v6401_v51  ;;  %v15878_v32 = vld [vmem:[#allocation2 + $0x20] sm:$0xff]  ;;  %v15502_v51 = vld [vmem:[%s21099_s6 + $0x210] sm:$0xff]  }
 0x52e   : > { %13936 = vmatprep.subr.bf16.mxu0 %v15495_v47  ;;  %v5358_v33 = vrot.slane %v15878_v32, 5  ;;  %v15880_v55 = vld [vmem:[#allocation2 + $0x30] sm:$0xff] }
 0x52f   : > { %14764 = vmatpush3.bf16.msra.mxu1 %v14763_v53  ;;  %v15881_v53 = vld [vmem:[#allocation2 + $0x38] sm:$0xff] }
 0x530   : > { %14765 = vmatprep.subr.bf16.mxu1 %v21699_v20 }
 0x531   : > { %13937 = vmatpush3.bf16.msra.mxu0 %v15495_v47  ;;  %v5361_v47 = vsel %vm5354_vm7, %v5358_v33, %v5360_v3 }
 0x532   : > { %13938 = vmatprep.subr.bf16.mxu0 %v15496_v50 }
 0x534   : > { %13903 = vmatmul.mubr.bf16.gmra.mrb[12].mxu0 %v17910_v2  ;;  %v15500_v2 = vld [vmem:[%s21099_s6 + $0x200] sm:$0xff]  }
 0x535   : > { %13906 = vmatprep.mubr.bf16.mxu0 %v21695_v34  ;;  %13939 = vmatpush3.bf16.msra.mxu0 %v15496_v50  ;;  %v6384_v34 = vadd.f32 1.0, %v15727_v6  ;;  %v5362_v50 = vrot.slane %v15880_v55, 5  ;;  %v21715_v55 = vld [vmem:[#allocation79_spill] sm:$0xff] }
 0x536   : > { %13940 = vmatprep.subr.bf16.mxu0 %v15497_v56 }
 0x537   : > { %15728 = vrcp.f32 %v6384_v34  ;;  %v5363_v60 = vsel %vm5354_vm7, %v5360_v3, %v5362_v50  ;;  %v15505_v34 = vld [vmem:[%s21099_s6 + $0x228] sm:$0xff]  }
 0x539   : > { %13941 = vmatpush3.bf16.msra.mxu0 %v15497_v56 }
 0x53a   : > { %13942 = vmatprep.subr.bf16.mxu0 %v15498_v17 }
 0x53c   : > { %13907 = vmatmul.mubr.bf16.gmra.mrb[16].mxu0 %v21696_v35  ;;  %v21705_v35 = vshrl.u32 %v17991_v31, 16  ;;  %v4760_v31 = vld [vmem:[#allocation2 + $0xa0] sm:$0x1f] }
 0x53d   : > { %13910 = vmatprep.mubr.bf16.mxu0 %v21697_v38  ;;  %13943 = vmatpush3.bf16.msra.mxu0 %v15498_v17  ;;  %v4940_v58 = vshrl.u32 %v4760_v31, 16  ;;  %v15504_v17 = vld [vmem:[%s21099_s6 + $0x220] sm:$0xff]  }
 0x53e   : > { %13944 = vmatprep.subr.bf16.mxu0 %v15499_v11  ;;  %v4915_v38 = vrot.slane %v21705_v35, 4  ;;  %v15506_v35 = vld [vmem:[%s21099_s6 + $0x230] sm:$0xff]  }
 0x53f   : > { %v4942_v41 = vrot.slane %v4940_v58, 4  ;;  %v5380_v58 = vrot.slane %v18042_v9, 5  ;;  %v15886_v9 = vld [vmem:[#allocation2 + $0x98] sm:$0xff] }
 0x540   : > { %v4919_v37 = vor.u32 %v4918_v22, %v4915_v38  ;;  %v15883_v38 = vld [vmem:[#allocation2 + $0x50] sm:$0xff]  ;;  %v5372_v22 = vrot.slane %v15884_v1, 5 }
 0x541   : > { %13945 = vmatpush3.bf16.msra.mxu0 %v15499_v11  ;;  %v15729_v18 = vpop.eup %15728  ;;  %v15882_v11 = vld [vmem:[#allocation2 + $0x40] sm:$0xff]  ;;  %v6522_v1 = vld [vmem:[%s21105_s12 + $0x30] sm:$0xff] }
 0x542   : > { %13982 = vmatprep.subr.bf16.mxu0 %v15500_v2  ;;  %v6386_v40 = vmul.f32 %v15729_v18, %v6380_v45  ;;  %v4929_v5 = vsel %vm4220_vm5, %v4919_v37, %v21702_v19  ;;  %v5364_v45 = vrot.slane %v15881_v53, 5  ;;  %v5366_v6 = vrot.slane %v15882_v11, 5  ;;  %v21717_v53 = vld [vmem:[#allocation81_spill] sm:$0xff] }
 0x544   : > { %13911 = vmatmul.mubr.bf16.gmra.mrb[20].mxu0 %v17945_v0  ;;  %14067 = vmatmul.mubr.f32.vlgmr.msra.gmra.mrb[2].mxu1 %v6386_v40  ;;  %v21708_v0 = vld [vmem:[#allocation71_spill] sm:$0xff]  ;;  %v5365_v56 = vsel %vm5354_vm7, %v5362_v50, %v5364_v45  ;;  %v5367_v18 = vsel %vm5354_vm7, %v5364_v45, %v5366_v6  ;;  %v21716_v50 = vld [vmem:[#allocation80_spill] sm:$0xff] }
 0x545   : > { %13914 = vmatprep.mubr.bf16.mxu0 %v17952_v27  ;;  %14101 = vmatprep.mubr.msk.f32.mxu1 %vm15949_vm0, %v21707_v26  ;;  %v4920_v27 = vsel %vm4220_vm5, %v21708_v0, %v4919_v37  ;;  %v15507_v37 = vld [vmem:[%s21099_s6 + $0x238] sm:$0xff]  }
 0x546   : > { %v21718_v45 = vld [vmem:[#allocation83_spill] sm:$0xff] }
 0x54c   : > { %13915 = vmatmul.mubr.bf16.gmra.mrb[24].mxu0 %v17959_v61  ;;  %v21709_v61 = vshrl.u32 %v17993_v21, 16  ;;  %v15877_v21 = vld [vmem:[#allocation2 + $0x18] sm:$0xff] }
 0x54d   : > { %13918 = vmatprep.mubr.bf16.mxu0 %v17967_v7  ;;  %v4943_v7 = vshll.u32 %v4760_v31, 16  ;;  %v5356_v23 = vrot.slane %v15877_v21, 5  ;;  %v5378_v31 = vrot.slane %v18033_v29, 5  ;;  %v5386_v29 = vrot.slane %v18066_v63, 5 }
 0x54e   : > { %v4933_v15 = vrot.slane %v21709_v61, 4  ;;  %v5374_v61 = vrot.slane %v18026_v57, 5  ;;  %v21711_v57 = vld [vmem:[#allocation82_spill] sm:$0xff]  ;;  %v5784_v21 = vshll.u32 %v5743_v30, 16 }
 0x54f   : > { %v4945_v13 = vrot.slane %v4943_v7, 5  ;;  %v5357_v44 = vsel %vm5354_vm7, %v5355_v25, %v5356_v23  ;;  %v5359_v39 = vsel %vm5354_vm7, %v5356_v23, %v5358_v33  ;;  %v5781_v25 = vshrl.u32 %v5743_v30, 16  ;;  %v21722_v30 = vld [vmem:[#allocation54_spill] sm:$0xff] }
 0x550   : > { %v4937_v36 = vor.u32 %v4936_v62, %v4933_v15  ;;  %v5376_v15 = vrot.slane %v18031_v4, 5  ;;  %v5375_v59 = vsel %vm5354_vm7, %v5372_v22, %v5374_v61  ;;  %v15885_v4 = vld [vmem:[#allocation2 + $0x88] sm:$0xff]  ;;  %v5786_v33 = vrot.slane %v5784_v21, 6 }
 0x551   : > { %v4946_v16 = vor.u32 %v4945_v13, %v4942_v41  ;;  %v5384_v41 = vrot.slane %v15885_v4, 5  ;;  %v5783_v32 = vrot.slane %v5781_v25, 5 }
 0x552   : > { %v5377_v62 = vsel %vm5354_vm7, %v5374_v61, %v5376_v15  ;;  %v5379_v7 = vsel %vm5354_vm7, %v5376_v15, %v5378_v31  ;;  %v6525_v61 = vld [vmem:[%s21105_s12 + $0x48] sm:$0xff] }
 0x553   : > { %v4947_v14 = vsel %vm4220_vm5, %v4937_v36, %v4946_v16  ;;  %v5388_v16 = vrot.slane %v15886_v9, 5  ;;  %v5387_v23 = vsel %vm5354_vm7, %v5384_v41, %v5386_v29  ;;  %v5787_v3 = vor.u32 %v5786_v33, %v5783_v32 }
 0x554   : > { %13919 = vmatmul.mubr.bf16.gmra.mrb[28].mxu0 %v21698_v12  ;;  %v4938_v12 = vsel %vm4220_vm5, %v21702_v19, %v4937_v36  ;;  %v15501_v19 = vld [vmem:[%s21099_s6 + $0x208] sm:$0xff]   ;;  %v5381_v36 = vsel %vm5354_vm7, %v5378_v31, %v5380_v58 }
 0x555   : > { %13922 = vmatprep.mubr.bf16.mxu0 %v4920_v27 }
 0x55c   : > { %13923 = vmatmul.mubr.bf16.gmra.mrb[32].mxu0 %v4929_v5  ;;  %v5382_v5 = vrot.slane %v21711_v57, 5  ;;  %v6530_v57 = vld [vmem:[%s21105_s12 + $0x70] sm:$0xff] }
 0x55d   : > { %13926 = vmatprep.mubr.bf16.mxu0 %v4938_v12 }
 0x55e   : > { %v5383_v13 = vsel %vm5354_vm7, %v5380_v58, %v5382_v5  ;;  %v5385_v12 = vsel %vm5354_vm7, %v5382_v5, %v5384_v41  ;;  %v6528_v58 = vld [vmem:[%s21105_s12 + $0x60] sm:$0xff]  ;;  %v6531_v5 = vld [vmem:[%s21105_s12 + $0x78] sm:$0xff] }
 0x55f   : > { %v18601_v4 = vpack.c.bf16 %v6531_v5, %v6530_v57  ;;  %v6403_v41 = vld [vmem:[%s21102_s9] sm:$0x1] }
 0x560   : > { %v21730_v5 = vld [vmem:[#allocation12_spill] sm:$0xff] }
 0x564   : > { %13927 = vmatmul.mubr.bf16.gmra.mrb[36].mxu0 %v4947_v14  ;;  %v5389_v14 = vsel %vm5354_vm7, %v5386_v29, %v5388_v16 }
 0x565   : > { %13946 = vmatprep.mubr.bf16.mxu0 %v5357_v44  ;;  %v5317_v44 = vld [vmem:[#allocation2 + $0xa0] sm:$0x1f] }
 0x566   : > { %v5390_v28 = vrot.slane %v5317_v44, 5 }
 0x56c   : > { %13947 = vmatmul.mubr.bf16.vlgmr.msra.gmra.mrb[4].mxu0 %v5359_v39  ;;  %v21712_v39 = vld [vmem:[#allocation76_spill] sm:$0xff] }
 0x56d   : > { %13983 = vmatpush3.bf16.msra.mxu0 %v15500_v2  ;;  %13950 = vmatprep.mubr.bf16.mxu0 %v5361_v47  ;;  %v5368_v2 = vrot.slane %v18005_v8, 5  ;;  %v5370_v8 = vrot.slane %v15883_v38, 5  ;;  %v5796_v63 = vsel %vm5779_vm6, %v5787_v3, %v21712_v39  ;;  %v21713_v47 = vld [vmem:[#allocation77_spill] sm:$0xff]  ;;  %v6520_v38 = vld [vmem:[%s21105_s12 + $0x20] sm:$0xff] }
 0x56e   : > { %13984 = vmatprep.subr.bf16.mxu0 %v15501_v19 }
 0x56f   : > { %v5369_v40 = vsel %vm5354_vm7, %v5366_v6, %v5368_v2  ;;  %v5371_v0 = vsel %vm5354_vm7, %v5368_v2, %v5370_v8  ;;  %v5373_v27 = vsel %vm5354_vm7, %v5370_v8, %v5372_v22  ;;  %v6521_v8 = vld [vmem:[%s21105_s12 + $0x28] sm:$0xff] }
 0x570   : > { %v18555_v22 = vpack.c.bf16 %v6521_v8, %v6520_v38  ;;  %v21728_v8 = vld [vmem:[#allocation10_spill] sm:$0xff] }
 0x571   : > { %13985 = vmatpush3.bf16.msra.mxu0 %v15501_v19  ;;  %v5391_v19 = vsel %vm5354_vm7, %v5388_v16, %v5390_v28 }
 0x572   : > { %13986 = vmatprep.subr.bf16.mxu0 %v15502_v51 }
 0x574   : > { %13951 = vmatmul.mubr.bf16.gmra.mrb[8].mxu0 %v5363_v60  ;;  %v21720_v60 = vld [vmem:[#allocation85_spill] sm:$0xff] }
 0x575   : > { %13954 = vmatprep.mubr.bf16.mxu0 %v5365_v56  ;;  %13987 = vmatpush3.bf16.msra.mxu0 %v15502_v51  ;;  %v21714_v51 = vld [vmem:[#allocation78_spill] sm:$0xff] }
 0x576   : > { %13988 = vmatprep.subr.bf16.mxu0 %v15503_v42  ;;  %v21721_v56 = vld [vmem:[#allocation86_spill] sm:$0xff] }
 0x579   : > { %13989 = vmatpush3.bf16.msra.mxu0 %v15503_v42  ;;  %v21719_v42 = vld [vmem:[#allocation84_spill] sm:$0xff] }
 0x57a   : > { %13990 = vmatprep.subr.bf16.mxu0 %v15504_v17 }
 0x57c   : > { %13955 = vmatmul.mubr.bf16.gmra.mrb[12].mxu0 %v5367_v18 }
 0x57d   : > { %13958 = vmatprep.mubr.bf16.mxu0 %v5369_v40  ;;  %13991 = vmatpush3.bf16.msra.mxu0 %v15504_v17  ;;  %v5761_v17 = vld [vmem:[#allocation2 + $0xa0] sm:$0x3f]  ;;  %v6517_v40 = vld [vmem:[%s21105_s12 + $0x8] sm:$0xff] }
 0x57e   : > { %13992 = vmatprep.subr.bf16.mxu0 %v15505_v34  ;;  %v5942_v11 = vshrl.u32 %v5761_v17, 16  ;;  %v5945_v6 = vshll.u32 %v5761_v17, 16 }
 0x580   : > { %v5944_v2 = vrot.slane %v5942_v11, 5 }
 0x581   : > { %13993 = vmatpush3.bf16.msra.mxu0 %v15505_v34  ;;  %v5947_v34 = vrot.slane %v5945_v6, 6 }
 0x582   : > { %13994 = vmatprep.subr.bf16.mxu0 %v15506_v35 }
 0x583   : > { %v5948_v18 = vor.u32 %v5947_v34, %v5944_v2  ;;  %v21726_v2 = vld [vmem:[#allocation8_spill] sm:$0xff] }
 0x584   : > { %13959 = vmatmul.mubr.bf16.gmra.mrb[16].mxu0 %v5371_v0 }
 0x585   : > { %13962 = vmatprep.mubr.bf16.mxu0 %v5373_v27  ;;  %13995 = vmatpush3.bf16.msra.mxu0 %v15506_v35  ;;  %v6524_v27 = vld [vmem:[%s21105_s12 + $0x40] sm:$0xff] }
 0x586   : > { %13996 = vmatprep.subr.bf16.mxu0 %v15507_v37  ;;  %v18571_v15 = vpack.c.bf16 %v6525_v61, %v6524_v27  ;;  %v21729_v61 = vld [vmem:[#allocation13_spill] sm:$0xff] }
 0x589   : > { %13997 = vmatpush3.bf16.msra.mxu0 %v15507_v37  ;;  %v6523_v37 = vld [vmem:[%s21105_s12 + $0x38] sm:$0xff] }
 0x58a   : > { %v18561_v0 = vpack.c.bf16 %v6523_v37, %v6522_v1 }
 0x58c   : > { %13963 = vmatmul.mubr.bf16.gmra.mrb[20].mxu0 %v5375_v59  ;;  %v6526_v59 = vld [vmem:[%s21105_s12 + $0x50] sm:$0xff] }
 0x58d   : > { %13966 = vmatprep.mubr.bf16.mxu0 %v5377_v62  ;;  %v6527_v62 = vld [vmem:[%s21105_s12 + $0x58] sm:$0xff] }
 0x58e   : > { %v18581_v31 = vpack.c.bf16 %v6527_v62, %v6526_v59 }
 0x594   : > { %13967 = vmatmul.mubr.bf16.gmra.mrb[24].mxu0 %v5379_v7  ;;  %v6529_v7 = vld [vmem:[%s21105_s12 + $0x68] sm:$0xff] }
 0x595   : > { %13970 = vmatprep.mubr.bf16.mxu0 %v5381_v36  ;;  %v18591_v36 = vpack.c.bf16 %v6529_v7, %v6528_v58 }
 0x59c   : > { %13971 = vmatmul.mubr.bf16.gmra.mrb[28].mxu0 %v5383_v13 }
 0x59d   : > { %13974 = vmatprep.mubr.bf16.mxu0 %v5385_v12  ;;  %v18612_v12 = vld [vmem:[%s21100_s7] ss:$0 sm:$0xff] }
 0x5a4   : > { %13975 = vmatmul.mubr.bf16.gmra.mrb[32].mxu0 %v5387_v23 }
 0x5a5   : > { %13978 = vmatprep.mubr.bf16.mxu0 %v5389_v14 }
 0x5ac   : > { %13979 = vmatmul.mubr.bf16.gmra.mrb[36].mxu0 %v5391_v19  ;;  %v21723_v19 = vld [vmem:[#allocation7_spill] sm:$0xff] }
 0x5ad   : > { %13998 = vmatprep.mubr.bf16.mxu0 %v5796_v63 }
 0x5b4   : > { %13999 = vmatmul.mubr.bf16.vlgmr.msra.gmra.mrb[4].mxu0 %v21713_v47  ;;  %v21724_v47 = vld [vmem:[#allocation9_spill] sm:$0xff] }
 0x5b5   : > { %14002 = vmatprep.mubr.bf16.mxu0 %v21714_v51 }
 0x5bc   : > { %14003 = vmatmul.mubr.bf16.gmra.mrb[8].mxu0 %v21715_v55 }
 0x5bd   : > { %14006 = vmatprep.mubr.bf16.mxu0 %v21716_v50 }
 0x5c4   : > { %14007 = vmatmul.mubr.bf16.gmra.mrb[12].mxu0 %v21717_v53  ;;  %v21725_v53 = vld [vmem:[#allocation6_spill] sm:$0xff] }
 0x5c5   : > { %14010 = vmatprep.mubr.bf16.mxu0 %v21718_v45 }
 0x5cc   : > { %14011 = vmatmul.mubr.bf16.gmra.mrb[16].mxu0 %v21719_v42 }
 0x5cd   : > { %14014 = vmatprep.mubr.bf16.mxu0 %v21720_v60 }
 0x5d4   : > { %14015 = vmatmul.mubr.bf16.gmra.mrb[20].mxu0 %v21721_v56 }
 0x5d5   : > { %14018 = vmatprep.mubr.bf16.mxu0 %v18080_v46  ;;  %v5949_v46 = vsel %vm5779_vm6, %v18099_v52, %v5948_v18  ;;  %v6518_v52 = vld [vmem:[%s21105_s12 + $0x10] sm:$0xff] }
 0x5dc   : > { %14019 = vmatmul.mubr.bf16.gmra.mrb[24].mxu0 %v18094_v24  ;;  %v15887_v24 = vld [vmem:[%s16238_s0] sm:$0xff] }
 0x5dd   : > { %14022 = vmatprep.mubr.bf16.mxu0 %v18097_v43 }
 0x5e4   : > { %14023 = vmatmul.mubr.bf16.gmra.mrb[28].mxu0 %v18103_v49 }
 0x5e5   : > { %14026 = vmatprep.mubr.bf16.mxu0 %v18106_v48  ;;  %v6516_v48 = vld [vmem:[%s21105_s12] sm:$0xff] }
 0x5ec   : > { %14027 = vmatmul.mubr.bf16.gmra.mrb[32].mxu0 %v18113_v10  ;;  %v18532_v10 = vpack.c.bf16 %v6517_v40, %v6516_v48 }
 0x5ed   : > { %14030 = vmatprep.mubr.bf16.mxu0 %v18117_v54  ;;  %v6519_v54 = vld [vmem:[%s21105_s12 + $0x18] sm:$0xff] }
 0x5ee   : > { %14767 = vmatpush3.bf16.msra.mxu1 %v18532_v10  ;;  %v18542_v35 = vpack.c.bf16 %v6519_v54, %v6518_v52 }
 0x5ef   : > { %14768 = vmatprep.subr.bf16.mxu1 %v21699_v20 }
 0x5f2   : > { %14770 = vmatpush3.bf16.msra.mxu1 %v18542_v35 }
 0x5f3   : > { %14771 = vmatprep.subr.bf16.mxu1 %v21699_v20 }
 0x5f4   : > { %14031 = vmatmul.mubr.bf16.gmra.mrb[36].mxu0 %v5949_v46 }
 0x5f5   : > { %14639 = vmatprep.mubr.f32.mxu0 %v15887_v24 }
 0x5f6   : > { %14773 = vmatpush3.bf16.msra.mxu1 %v18555_v22 }
 0x5f7   : > { %14774 = vmatprep.subr.bf16.mxu1 %v21699_v20 }
 0x5fa   : > { %14776 = vmatpush3.bf16.msra.mxu1 %v18561_v0 }
 0x5fb   : > { %14777 = vmatprep.subr.bf16.mxu1 %v21699_v20 }
 0x5fe   : > { %14779 = vmatpush3.bf16.msra.mxu1 %v18571_v15 }
 0x5ff   : > { %14780 = vmatprep.subr.bf16.mxu1 %v21699_v20 }
 0x602   : > { %14782 = vmatpush3.bf16.msra.mxu1 %v18581_v31 }
 0x603   : > { %14783 = vmatprep.subr.bf16.mxu1 %v21699_v20 }
 0x606   : > { %14785 = vmatpush3.bf16.msra.mxu1 %v18591_v36 }
 0x607   : > { %14786 = vmatprep.subr.bf16.mxu1 %v21699_v20 }
 0x60a   : > { %14788 = vmatpush3.bf16.msra.mxu1 %v18601_v4 }
 0x60b   : > { %14789 = vmatprep.subr.bf16.mxu1 %v21699_v20 }
 0x617   : > { %v6470_v43 = vpop.f32.mrb[2].mxu1 }
 0x618   : > { %v14068_v49 = vpop.f32.mrb[3].mxu1  ;;  %v6471_v13 = vadd.f32 %v6470_v43, %v6403_v41 }
 0x619   : > { %v21727_v49 = vld [vmem:[#allocation11_spill] sm:$0xff] }
 0x61a   : > { %v18615_v29 = vrot.slane %v6471_v13, %v21722_v30 }
 0x687   : > { %v14000_v9 = vpop.f32.mrb[4].mxu0 }
 0x688   : > { %v6050_v16 = vpop.f32.mrb[5].mxu0  ;;  %v6346_v25 = vadd.f32 %v14000_v9, %v18612_v12 }
 0x689   : > { %v6344_v21 = vadd.f32 %v18612_v12, %v6050_v16  ;;  %v14001_v23 = vpop.f32.mrb[6].mxu0 }
 0x68a   : > { %v6053_v14 = vpop.f32.mrb[7].mxu0  ;;  %v6347_v32 = vadd.f32 %v14001_v23, %v18612_v12  ;;  %v18625_v28 = vadd.f32 %v18615_v29, %v6346_v25 }
 0x68b   : > { %v18620_v44 = vadd.f32 %v18615_v29, %v6344_v21  ;;  %v6345_v33 = vadd.f32 %v18612_v12, %v6053_v14  ;;  %v21731_v14 = vld [vmem:[#allocation15_spill] sm:$0xff] }
 0x68c   : > { %v18633_v63 = vadd.f32 %v18615_v29, %v6347_v32  ;;  %v6534_v45 = vmul.f32 %v18625_v28, %v21725_v53 }
 0x68d   : > { %v18628_v3 = vadd.f32 %v18615_v29, %v6345_v33  ;;  %v6532_v39 = vmul.f32 %v18620_v44, %v21723_v19 }
 0x68e   : > { %v6535_v34 = vmul.f32 %v18633_v63, %v21726_v2 }
 0x68f   : > { %v6533_v51 = vmul.f32 %v18628_v3, %v21724_v47  ;;  %v14004_v55 = vpop.f32.mrb[8].mxu0 }
 0x690   : > { %v6066_v50 = vpop.f32.mrb[9].mxu0  ;;  %v6350_v60 = vadd.f32 %v14004_v55, %v18612_v12 }
 0x691   : > { %v6568_v42 = vadd.f32 %v6533_v51, %v6532_v39  ;;  %v6348_v56 = vadd.f32 %v18612_v12, %v6066_v50  ;;  %v14005_v17 = vpop.f32.mrb[10].mxu0  ;;  %v21732_v50 = vld [vmem:[#allocation14_spill] sm:$0xff] }
 0x692   : > { %v6351_v11 = vadd.f32 %v14005_v17, %v18612_v12  ;;  %v6069_v6 = vpop.f32.mrb[11].mxu0  ;;  %v18649_v43 = vadd.f32 %v18615_v29, %v6350_v60 }
 0x693   : > { %v6569_v18 = vadd.f32 %v6568_v42, %v6534_v45  ;;  %v18645_v46 = vadd.f32 %v18615_v29, %v6348_v56  ;;  %v6349_v24 = vadd.f32 %v18612_v12, %v6069_v6  ;;  %v21733_v56 = vld [vmem:[#allocation17_spill] sm:$0xff] }
 0x694   : > { %v18657_v54 = vadd.f32 %v18615_v29, %v6351_v11  ;;  %v6538_v59 = vmul.f32 %v18649_v43, %v21729_v61 }
 0x695   : > { %v6536_v48 = vmul.f32 %v18645_v46, %v21727_v49  ;;  %v6570_v40 = vadd.f32 %v6569_v18, %v6535_v34  ;;  %v18654_v52 = vadd.f32 %v18615_v29, %v6349_v24 }
 0x696   : > { %v6539_v41 = vmul.f32 %v18657_v54, %v21730_v5 }
 0x697   : > { %v6571_v38 = vadd.f32 %v6570_v40, %v6536_v48  ;;  %v6537_v1 = vmul.f32 %v18654_v52, %v21728_v8  ;;  %v14008_v37 = vpop.f32.mrb[12].mxu0  ;;  %v21734_v40 = vld [vmem:[#allocation16_spill] sm:$0xff] }
 0x698   : > { %v6082_v27 = vpop.f32.mrb[13].mxu0  ;;  %v6354_v58 = vadd.f32 %v14008_v37, %v18612_v12 }
 0x699   : > { %v6572_v62 = vadd.f32 %v6571_v38, %v6537_v1  ;;  %v6352_v7 = vadd.f32 %v18612_v12, %v6082_v27  ;;  %v14009_v57 = vpop.f32.mrb[14].mxu0 }
 0x69a   : > { %v6085_v13 = vpop.f32.mrb[15].mxu0  ;;  %v6355_v25 = vadd.f32 %v14009_v57, %v18612_v12  ;;  %v18673_v23 = vadd.f32 %v18615_v29, %v6354_v58 }
 0x69b   : > { %v6573_v9 = vadd.f32 %v6572_v62, %v6538_v59  ;;  %v18668_v16 = vadd.f32 %v18615_v29, %v6352_v7  ;;  %v6353_v21 = vadd.f32 %v18612_v12, %v6085_v13  ;;  %v21735_v62 = vld [vmem:[#allocation19_spill] sm:$0xff] }
 0x69c   : > { %v18681_v55 = vadd.f32 %v18615_v29, %v6355_v25  ;;  %v6542_v17 = vmul.f32 %v18673_v23, %v21733_v56 }
 0x69d   : > { %v6540_v32 = vmul.f32 %v18668_v16, %v21731_v14  ;;  %v6574_v33 = vadd.f32 %v6573_v9, %v6539_v41  ;;  %v18678_v39 = vadd.f32 %v18615_v29, %v6353_v21  ;;  %v21736_v9 = vld [vmem:[#allocation18_spill] sm:$0xff] }
 0x69e   : > { %v6543_v38 = vmul.f32 %v18681_v55, %v21734_v40 }
 0x69f   : > { %v6575_v51 = vadd.f32 %v6574_v33, %v6540_v32  ;;  %v6541_v45 = vmul.f32 %v18678_v39, %v21732_v50  ;;  %v14012_v42 = vpop.f32.mrb[16].mxu0  ;;  %v21737_v33 = vld [vmem:[#allocation21_spill] sm:$0xff] }
 0x6a0   : > { %v6098_v60 = vpop.f32.mrb[17].mxu0  ;;  %v6358_v6 = vadd.f32 %v14012_v42, %v18612_v12 }
 0x6a1   : > { %v6576_v11 = vadd.f32 %v6575_v51, %v6541_v45  ;;  %v6356_v34 = vadd.f32 %v18612_v12, %v6098_v60  ;;  %v14013_v18 = vpop.f32.mrb[18].mxu0 }
 0x6a2   : > { %v6359_v24 = vadd.f32 %v14013_v18, %v18612_v12  ;;  %v6101_v48 = vpop.f32.mrb[19].mxu0  ;;  %v18697_v59 = vadd.f32 %v18615_v29, %v6358_v6 }
 0x6a3   : > { %v6577_v1 = vadd.f32 %v6576_v11, %v6542_v17  ;;  %v18693_v37 = vadd.f32 %v18615_v29, %v6356_v34  ;;  %v6357_v27 = vadd.f32 %v18612_v12, %v6101_v48  ;;  %v21738_v11 = vld [vmem:[#allocation20_spill] sm:$0xff] }
 0x6a4   : > { %v18705_v41 = vadd.f32 %v18615_v29, %v6359_v24  ;;  %v6546_v51 = vmul.f32 %v18697_v59, %v21737_v33 }
 0x6a5   : > { %v6544_v58 = vmul.f32 %v18693_v37, %v21735_v62  ;;  %v6578_v7 = vadd.f32 %v6577_v1, %v6543_v38  ;;  %v18702_v57 = vadd.f32 %v18615_v29, %v6357_v27  ;;  %v21740_v27 = vld [vmem:[#allocation23_spill] sm:$0xff] }
 0x6a6   : > { %v6547_v6 = vmul.f32 %v18705_v41, %v21738_v11 }
 0x6a7   : > { %v6579_v13 = vadd.f32 %v6578_v7, %v6544_v58  ;;  %v6545_v25 = vmul.f32 %v18702_v57, %v21736_v9  ;;  %v14016_v21 = vpop.f32.mrb[20].mxu0 }
 0x6a8   : > { %v6114_v32 = vpop.f32.mrb[21].mxu0  ;;  %v6362_v42 = vadd.f32 %v14016_v21, %v18612_v12 }
 0x6a9   : > { %v6580_v45 = vadd.f32 %v6579_v13, %v6545_v25  ;;  %v6360_v60 = vadd.f32 %v18612_v12, %v6114_v32  ;;  %v14017_v17 = vpop.f32.mrb[22].mxu0  ;;  %v21743_v32 = vld [vmem:[#allocation22_spill] sm:$0xff] }
 0x6aa   : > { %v6117_v34 = vpop.f32.mrb[23].mxu0  ;;  %v6363_v48 = vadd.f32 %v14017_v17, %v18612_v12  ;;  %v18721_v1 = vadd.f32 %v18615_v29, %v6362_v42  ;;  %v21744_v17 = vld [vmem:[#allocation25_spill] sm:$0xff] }
 0x6ab   : > { %v6581_v18 = vadd.f32 %v6580_v45, %v6546_v51  ;;  %v18716_v24 = vadd.f32 %v18615_v29, %v6360_v60  ;;  %v6361_v38 = vadd.f32 %v18612_v12, %v6117_v34 }
 0x6ac   : > { %21739 = vst [vmem:[#allocation30_spill] sm:$0xff] %v18721_v1  ;;  %v18729_v21 = vadd.f32 %v18615_v29, %v6363_v48  ;;  %v6550_v42 = vmul.f32 %v18721_v1, %v21744_v17 }
 0x6ad   : > { %v6548_v58 = vmul.f32 %v18716_v24, %v21740_v27  ;;  %v6582_v7 = vadd.f32 %v6581_v18, %v6547_v6  ;;  %v18726_v13 = vadd.f32 %v18615_v29, %v6361_v38 }
 0x6ae   : > { %21742 = vst [vmem:[#allocation34_spill] sm:$0xff] %v18729_v21 }
 0x6af   : > { %21741 = vst [vmem:[#allocation31_spill] sm:$0xff] %v18726_v13  ;;  %v6583_v25 = vadd.f32 %v6582_v7, %v6548_v58  ;;  %v6549_v51 = vmul.f32 %v18726_v13, %v21743_v32  ;;  %v14020_v45 = vpop.f32.mrb[24].mxu0  ;;  %v21745_v7 = vld [vmem:[#allocation24_spill] sm:$0xff] }
 0x6b0   : > { %v6130_v60 = vpop.f32.mrb[25].mxu0  ;;  %v6366_v11 = vadd.f32 %v14020_v45, %v18612_v12  ;;  %v6551_v48 = vmul.f32 %v18729_v21, %v21745_v7 }
 0x6b1   : > { %v6584_v34 = vadd.f32 %v6583_v25, %v6549_v51  ;;  %v6364_v6 = vadd.f32 %v18612_v12, %v6130_v60  ;;  %v14021_v18 = vpop.f32.mrb[26].mxu0  ;;  %v21748_v25 = vld [vmem:[#allocation27_spill] sm:$0xff] }
 0x6b2   : > { %v6367_v38 = vadd.f32 %v14021_v18, %v18612_v12  ;;  %v6133_v58 = vpop.f32.mrb[27].mxu0  ;;  %v18745_v17 = vadd.f32 %v18615_v29, %v6366_v11 }
 0x6b3   : > { %v6585_v27 = vadd.f32 %v6584_v34, %v6550_v42  ;;  %v18741_v32 = vadd.f32 %v18615_v29, %v6364_v6  ;;  %v6365_v13 = vadd.f32 %v18612_v12, %v6133_v58  ;;  %v21751_v42 = vld [vmem:[#allocation26_spill] sm:$0xff]  ;;  %v21752_v58 = vld [vmem:[#allocation29_spill] sm:$0xff] }
 0x6b4   : > { %21747 = vst [vmem:[#allocation38_spill] sm:$0xff] %v18745_v17  ;;  %v18753_v18 = vadd.f32 %v18615_v29, %v6367_v38  ;;  %v6554_v11 = vmul.f32 %v18745_v17, %v21752_v58 }
 0x6b5   : > { %21746 = vst [vmem:[#allocation35_spill] sm:$0xff] %v18741_v32  ;;  %v6552_v51 = vmul.f32 %v18741_v32, %v21748_v25  ;;  %v6586_v45 = vadd.f32 %v6585_v27, %v6551_v48  ;;  %v18750_v60 = vadd.f32 %v18615_v29, %v6365_v13  ;;  %v21753_v13 = vld [vmem:[#allocation28_spill] sm:$0xff] }
 0x6b6   : > { %21750 = vst [vmem:[#allocation42_spill] sm:$0xff] %v18753_v18  ;;  %v6555_v25 = vmul.f32 %v18753_v18, %v21753_v13 }
 0x6b7   : > { %21749 = vst [vmem:[#allocation39_spill] sm:$0xff] %v18750_v60  ;;  %v6587_v7 = vadd.f32 %v6586_v45, %v6552_v51  ;;  %v6553_v34 = vmul.f32 %v18750_v60, %v21751_v42  ;;  %v14024_v6 = vpop.f32.mrb[28].mxu0 }
 0x6b8   : > { %v6146_v21 = vpop.f32.mrb[29].mxu0  ;;  %v6370_v33 = vadd.f32 %v14024_v6, %v18612_v12 }
 0x6b9   : > { %v6588_v1 = vadd.f32 %v6587_v7, %v6553_v34  ;;  %v6368_v27 = vadd.f32 %v18612_v12, %v6146_v21  ;;  %v14025_v48 = vpop.f32.mrb[30].mxu0  ;;  %v21756_v7 = vld [vmem:[#allocation33_spill] sm:$0xff] }
 0x6ba   : > { %v6149_v38 = vpop.f32.mrb[31].mxu0  ;;  %v6371_v45 = vadd.f32 %v14025_v48, %v18612_v12  ;;  %v18769_v58 = vadd.f32 %v18615_v29, %v6370_v33 }
 0x6bb   : > { %v6589_v32 = vadd.f32 %v6588_v1, %v6554_v11  ;;  %v18764_v51 = vadd.f32 %v18615_v29, %v6368_v27  ;;  %v6369_v42 = vadd.f32 %v18612_v12, %v6149_v38  ;;  %v21759_v11 = vld [vmem:[#allocation32_spill] sm:$0xff]  ;;  %v21760_v38 = vld [vmem:[#allocation37_spill] sm:$0xff] }
 0x6bc   : > { %21755 = vst [vmem:[#allocation46_spill] sm:$0xff] %v18769_v58  ;;  %v18777_v1 = vadd.f32 %v18615_v29, %v6371_v45  ;;  %v6558_v33 = vmul.f32 %v18769_v58, %v21760_v38 }
 0x6bd   : > { %21754 = vst [vmem:[#allocation43_spill] sm:$0xff] %v18764_v51  ;;  %v6556_v34 = vmul.f32 %v18764_v51, %v21756_v7  ;;  %v6590_v21 = vadd.f32 %v6589_v32, %v6555_v25  ;;  %v18774_v6 = vadd.f32 %v18615_v29, %v6369_v42 }
 0x6be   : > { %21758 = vst [vmem:[#allocation50_spill] sm:$0xff] %v18777_v1 }
 0x6bf   : > { %21757 = vst [vmem:[#allocation47_spill] sm:$0xff] %v18774_v6  ;;  %v6591_v13 = vadd.f32 %v6590_v21, %v6556_v34  ;;  %v6557_v27 = vmul.f32 %v18774_v6, %v21759_v11  ;;  %v14028_v48 = vpop.f32.mrb[32].mxu0  ;;  %v21761_v21 = vld [vmem:[#allocation36_spill] sm:$0xff] }
 0x6c0   : > { %v6162_v18 = vpop.f32.mrb[33].mxu0  ;;  %v6374_v60 = vadd.f32 %v14028_v48, %v18612_v12  ;;  %v6559_v45 = vmul.f32 %v18777_v1, %v21761_v21 }
 0x6c1   : > { %v6592_v17 = vadd.f32 %v6591_v13, %v6557_v27  ;;  %v6372_v32 = vadd.f32 %v18612_v12, %v6162_v18  ;;  %v14029_v25 = vpop.f32.mrb[34].mxu0  ;;  %v21764_v13 = vld [vmem:[#allocation41_spill] sm:$0xff] }
 0x6c2   : > { %v6375_v42 = vadd.f32 %v14029_v25, %v18612_v12  ;;  %v6165_v34 = vpop.f32.mrb[35].mxu0  ;;  %v18793_v38 = vadd.f32 %v18615_v29, %v6374_v60 }
 0x6c3   : > { %v6593_v7 = vadd.f32 %v6592_v17, %v6558_v33  ;;  %v18789_v11 = vadd.f32 %v18615_v29, %v6372_v32  ;;  %v6373_v6 = vadd.f32 %v18612_v12, %v6165_v34  ;;  %v21766_v17 = vld [vmem:[#allocation40_spill] sm:$0xff]  ;;  %v21767_v34 = vld [vmem:[#allocation45_spill] sm:$0xff] }
 0x6c4   : > { %21763 = vst [vmem:[#allocation55_spill] sm:$0xff] %v18793_v38  ;;  %v18801_v25 = vadd.f32 %v18615_v29, %v6375_v42  ;;  %v6562_v60 = vmul.f32 %v18793_v38, %v21767_v34 }
 0x6c5   : > { %21762 = vst [vmem:[#allocation51_spill] sm:$0xff] %v18789_v11  ;;  %v6560_v27 = vmul.f32 %v18789_v11, %v21764_v13  ;;  %v6594_v18 = vadd.f32 %v6593_v7, %v6559_v45  ;;  %v18798_v48 = vadd.f32 %v18615_v29, %v6373_v6  ;;  %v21768_v6 = vld [vmem:[#allocation44_spill] sm:$0xff] }
 0x6c6   : > { %21765 = vst [vmem:[#allocation56_spill] sm:$0xff] %v18801_v25  ;;  %v6563_v13 = vmul.f32 %v18801_v25, %v21768_v6 }
 0x6c7   : > { %v6595_v21 = vadd.f32 %v6594_v18, %v6560_v27  ;;  %v6561_v33 = vmul.f32 %v18798_v48, %v21766_v17  ;;  %v14032_v32 = vpop.f32.mrb[36].mxu0 }
 0x6c8   : > { %v6178_v1 = vpop.f32.mrb[37].mxu0  ;;  %v6378_v51 = vadd.f32 %v14032_v32, %v18612_v12 }
 0x6c9   : > { %v6596_v58 = vadd.f32 %v6595_v21, %v6561_v33  ;;  %v6376_v7 = vadd.f32 %v18612_v12, %v6178_v1  ;;  %v14033_v45 = vpop.f32.mrb[38].mxu0  ;;  %v21770_v21 = vld [vmem:[#allocation49_spill] sm:$0xff] }
 0x6ca   : > { %v6181_v42 = vpop.f32.mrb[39].mxu0  ;;  %v6379_v18 = vadd.f32 %v14033_v45, %v18612_v12  ;;  %v18817_v34 = vadd.f32 %v18615_v29, %v6378_v51  ;;  %v21772_v45 = vld [vmem:[#allocation52_spill] sm:$0xff]  ;;  %v21773_v51 = vld [vmem:[#allocation53_spill] sm:$0xff] }
 0x6cb   : > { %v6597_v11 = vadd.f32 %v6596_v58, %v6562_v60  ;;  %v18812_v27 = vadd.f32 %v18615_v29, %v6376_v7  ;;  %v6377_v17 = vadd.f32 %v18612_v12, %v6181_v42  ;;  %v21771_v60 = vld [vmem:[#allocation48_spill] sm:$0xff] }
 0x6cc   : > { %v18825_v58 = vadd.f32 %v18615_v29, %v6379_v18  ;;  %v6566_v12 = vmul.f32 %v18817_v34, %v21772_v45 }
 0x6cd   : > { %21769 = vst [vmem:[#allocation57_spill] sm:$0xff] %v18812_v27  ;;  %v6564_v33 = vmul.f32 %v18812_v27, %v21770_v21  ;;  %v6598_v1 = vadd.f32 %v6597_v11, %v6563_v13  ;;  %v18822_v32 = vadd.f32 %v18615_v29, %v6377_v17 }
 0x6ce   : > { %v6567_v25 = vmul.f32 %v18825_v58, %v21773_v51 }
 0x6cf   : > { %v6599_v6 = vadd.f32 %v6598_v1, %v6564_v33  ;;  %v6565_v7 = vmul.f32 %v18822_v32, %v21771_v60 }
 0x6d1   : > { %v6600_v42 = vadd.f32 %v6599_v6, %v6565_v7 }
 0x6d3   : > { %v6601_v38 = vadd.f32 %v6600_v42, %v6566_v12 }
 0x6d5   : > { %v6602_v21 = vadd.f32 %v6601_v38, %v6567_v25 }
 0x6d7   : > { %v6603_v11 = vrot.slane %v6602_v21, 4 }
 0x6d9   : > { %v6604_v13 = vadd.f32 %v6603_v11, %v6602_v21 }
 0x6db   : > { %v6605_v17 = vrot.slane %v6604_v13, 2 }
 0x6dd   : > { %v6606_v27 = vadd.f32 %v6605_v17, %v6604_v13 }
 0x6df   : > { %v6607_v33 = vrot.slane %v6606_v27, 1 }
 0x6e1   : > { %v6608_v1 = vadd.f32 %v6607_v33, %v6606_v27 }
 0x6e3   : > { %14102 = vmatmul.mubr.f32.vlgmr.msra.gmra.mrb[4].mxu1 %v6608_v1 }
 0x6e4   : > { %14791 = vmatpush3.bf16.msra.mxu1 %v18532_v10  ;;  %14136 = vmatprep.mubr.msk.f32.mxu1 %vm15949_vm0, %v21707_v26 }
 0x6e5   : > { %14792 = vmatprep.subr.bf16.mxu1 %v21699_v20 }
 0x6e8   : > { %14794 = vmatpush3.bf16.msra.mxu1 %v18542_v35 }
 0x6e9   : > { %14795 = vmatprep.subr.bf16.mxu1 %v21699_v20 }
 0x6ec   : > { %14797 = vmatpush3.bf16.msra.mxu1 %v18555_v22 }
 0x6ed   : > { %14798 = vmatprep.subr.bf16.mxu1 %v21699_v20 }
 0x6f0   : > { %14800 = vmatpush3.bf16.msra.mxu1 %v18561_v0 }
 0x6f1   : > { %14801 = vmatprep.subr.bf16.mxu1 %v21699_v20 }
 0x6f4   : > { %14803 = vmatpush3.bf16.msra.mxu1 %v18571_v15 }
 0x6f5   : > { %14804 = vmatprep.subr.bf16.mxu1 %v21699_v20 }
 0x6f8   : > { %14806 = vmatpush3.bf16.msra.mxu1 %v18581_v31 }
 0x6f9   : > { %14807 = vmatprep.subr.bf16.mxu1 %v21699_v20 }
 0x6fc   : > { %14809 = vmatpush3.bf16.msra.mxu1 %v18591_v36 }
 0x6fd   : > { %14810 = vmatprep.subr.bf16.mxu1 %v21699_v20 }
 0x700   : > { %14812 = vmatpush3.bf16.msra.mxu1 %v18601_v4 }
 0x7b6   : > { %v6675_v26 = vpop.f32.mrb[4].mxu1 }
 0x7b7   : > { %v14103_v10 = vpop.f32.mrb[5].mxu1  ;;  %v18851_v35 = vrot.slane %v6675_v26, %v21722_v30 }
 0x7b9   : > { %v6683_v22 = vsub.f32 %v18620_v44, %v18851_v35  ;;  %v6684_v0 = vsub.f32 %v18628_v3, %v18851_v35  ;;  %v6685_v15 = vsub.f32 %v18625_v28, %v18851_v35  ;;  %v6686_v36 = vsub.f32 %v18633_v63, %v18851_v35 }
 0x7ba   : > { %v6687_v4 = vsub.f32 %v18645_v46, %v18851_v35  ;;  %v6688_v3 = vsub.f32 %v18654_v52, %v18851_v35  ;;  %v6689_v63 = vsub.f32 %v18649_v43, %v18851_v35  ;;  %v6690_v27 = vsub.f32 %v18657_v54, %v18851_v35 }
 0x7bb   : > { %v18860_v31 = vmul.f32 %v6683_v22, %v21723_v19  ;;  %v18863_v20 = vmul.f32 %v6684_v0, %v21724_v47  ;;  %v18870_v29 = vmul.f32 %v6685_v15, %v21725_v53  ;;  %v18879_v38 = vmul.f32 %v6686_v36, %v21726_v2 }
 0x7bc   : > { %v18884_v46 = vmul.f32 %v6687_v4, %v21727_v49  ;;  %v18891_v18 = vmul.f32 %v6688_v3, %v21728_v8  ;;  %v6691_v43 = vsub.f32 %v18668_v16, %v18851_v35  ;;  %v18898_v7 = vmul.f32 %v6689_v63, %v21729_v61 }
 0x7bd   : > { %v6755_v44 = vmul.f32 %v18860_v31, %v18860_v31  ;;  %v6756_v28 = vmul.f32 %v18863_v20, %v18863_v20  ;;  %v6757_v25 = vmul.f32 %v18870_v29, %v18870_v29  ;;  %v6758_v52 = vmul.f32 %v18879_v38, %v18879_v38 }
 0x7be   : > { %v6759_v12 = vmul.f32 %v18884_v46, %v18884_v46  ;;  %v6692_v54 = vsub.f32 %v18678_v39, %v18851_v35  ;;  %v18905_v11 = vmul.f32 %v6690_v27, %v21730_v5  ;;  %v6760_v13 = vmul.f32 %v18891_v18, %v18891_v18 }
 0x7bf   : > { %v6791_v6 = vadd.f32 %v6756_v28, %v6755_v44  ;;  %v6693_v16 = vsub.f32 %v18673_v23, %v18851_v35  ;;  %v18912_v33 = vmul.f32 %v6691_v43, %v21731_v14  ;;  %v6761_v1 = vmul.f32 %v18898_v7, %v18898_v7  ;;  %v21774_v43 = vld [vmem:[#allocation21_spill] sm:$0xff] }
 0x7c0   : > { %v6694_v39 = vsub.f32 %v18681_v55, %v18851_v35  ;;  %v18919_v10 = vmul.f32 %v6692_v54, %v21732_v50  ;;  %v6762_v22 = vmul.f32 %v18905_v11, %v18905_v11  ;;  %v6695_v23 = vsub.f32 %v18693_v37, %v18851_v35 }
 0x7c1   : > { %v6792_v21 = vadd.f32 %v6791_v6, %v6757_v25  ;;  %v18926_v15 = vmul.f32 %v6693_v16, %v21733_v56  ;;  %v6763_v36 = vmul.f32 %v18912_v33, %v18912_v33  ;;  %v6696_v55 = vsub.f32 %v18702_v57, %v18851_v35  ;;  %v21805_v56 = vld [vmem:[#allocation45_spill] sm:$0xff] }
 0x7c2   : > { %v18933_v44 = vmul.f32 %v6694_v39, %v21734_v40  ;;  %v6764_v28 = vmul.f32 %v18919_v10, %v18919_v10  ;;  %v6697_v37 = vsub.f32 %v18697_v59, %v18851_v35  ;;  %v18940_v63 = vmul.f32 %v6695_v23, %v21735_v62  ;;  %v21777_v39 = vld [vmem:[#allocation30_spill] sm:$0xff]  ;;  %v21801_v62 = vld [vmem:[#allocation41_spill] sm:$0xff]  ;;  %v21803_v40 = vld [vmem:[#allocation40_spill] sm:$0xff] }
 0x7c3   : > { %v6793_v42 = vadd.f32 %v6792_v21, %v6758_v52  ;;  %v6765_v25 = vmul.f32 %v18926_v15, %v18926_v15  ;;  %v6698_v57 = vsub.f32 %v18705_v41, %v18851_v35  ;;  %v18947_v27 = vmul.f32 %v6696_v55, %v21736_v9  ;;  %v21798_v9 = vld [vmem:[#allocation37_spill] sm:$0xff] }
 0x7c4   : > { %v6766_v52 = vmul.f32 %v18933_v44, %v18933_v44  ;;  %v6699_v59 = vsub.f32 %v18716_v24, %v18851_v35  ;;  %v6701_v24 = vsub.f32 %v21777_v39, %v18851_v35 }
 0x7c5   : > { %v6794_v17 = vadd.f32 %v6793_v42, %v6759_v12  ;;  %v18954_v12 = vmul.f32 %v6697_v37, %v21774_v43  ;;  %v6767_v42 = vmul.f32 %v18940_v63, %v18940_v63  ;;  %v21796_v43 = vld [vmem:[#allocation32_spill] sm:$0xff] }
 0x7c7   : > { %v6795_v26 = vadd.f32 %v6794_v17, %v6760_v13  ;;  %v21775_v13 = vld [vmem:[#allocation31_spill] sm:$0xff]  ;;  %v21776_v17 = vld [vmem:[#allocation20_spill] sm:$0xff]  ;;  %v6769_v23 = vmul.f32 %v18954_v12, %v18954_v12 }
 0x7c8   : > { %v6700_v41 = vsub.f32 %v21775_v13, %v18851_v35  ;;  %v18961_v16 = vmul.f32 %v6698_v57, %v21776_v17  ;;  %v21794_v17 = vld [vmem:[#allocation33_spill] sm:$0xff] }
 0x7c9   : > { %v6796_v0 = vadd.f32 %v6795_v26, %v6761_v1  ;;  %v6768_v1 = vmul.f32 %v18947_v27, %v18947_v27 }
 0x7ca   : > { %v6770_v37 = vmul.f32 %v18961_v16, %v18961_v16 }
 0x7cb   : > { %v6797_v4 = vadd.f32 %v6796_v0, %v6762_v22  ;;  %v21778_v22 = vld [vmem:[#allocation23_spill] sm:$0xff] }
 0x7cc   : > { %v18968_v0 = vmul.f32 %v6699_v59, %v21778_v22  ;;  %v21792_v22 = vld [vmem:[#allocation28_spill] sm:$0xff] }
 0x7cd   : > { %v6798_v3 = vadd.f32 %v6797_v4, %v6763_v36  ;;  %v21779_v4 = vld [vmem:[#allocation34_spill] sm:$0xff] }
 0x7ce   : > { %v6702_v55 = vsub.f32 %v21779_v4, %v18851_v35  ;;  %v6771_v59 = vmul.f32 %v18968_v0, %v18968_v0  ;;  %v21786_v4 = vld [vmem:[#allocation27_spill] sm:$0xff] }
 0x7cf   : > { %v6799_v6 = vadd.f32 %v6798_v3, %v6764_v28  ;;  %v21780_v28 = vld [vmem:[#allocation22_spill] sm:$0xff] }
 0x7d0   : > { %v18975_v3 = vmul.f32 %v6700_v41, %v21780_v28  ;;  %v21790_v28 = vld [vmem:[#allocation29_spill] sm:$0xff] }
 0x7d1   : > { %v6800_v21 = vadd.f32 %v6799_v6, %v6765_v25  ;;  %v21781_v6 = vld [vmem:[#allocation35_spill] sm:$0xff] }
 0x7d2   : > { %v6703_v57 = vsub.f32 %v21781_v6, %v18851_v35 }
 0x7d3   : > { %v6801_v54 = vadd.f32 %v6800_v21, %v6766_v52  ;;  %v21782_v52 = vld [vmem:[#allocation25_spill] sm:$0xff] }
 0x7d4   : > { %v18982_v21 = vmul.f32 %v6701_v24, %v21782_v52  ;;  %v18996_v24 = vmul.f32 %v6703_v57, %v21786_v4  ;;  %v21788_v52 = vld [vmem:[#allocation26_spill] sm:$0xff] }
 0x7d5   : > { %v6802_v26 = vadd.f32 %v6801_v54, %v6767_v42  ;;  %v21783_v54 = vld [vmem:[#allocation39_spill] sm:$0xff] }
 0x7d6   : > { %v6704_v13 = vsub.f32 %v21783_v54, %v18851_v35  ;;  %v6773_v6 = vmul.f32 %v18982_v21, %v18982_v21  ;;  %v6775_v4 = vmul.f32 %v18996_v24, %v18996_v24 }
 0x7d7   : > { %v6803_v36 = vadd.f32 %v6802_v26, %v6768_v1  ;;  %v21784_v1 = vld [vmem:[#allocation24_spill] sm:$0xff]  ;;  %v6772_v26 = vmul.f32 %v18975_v3, %v18975_v3 }
 0x7d8   : > { %v18989_v41 = vmul.f32 %v6702_v55, %v21784_v1  ;;  %v19003_v55 = vmul.f32 %v6704_v13, %v21788_v52 }
 0x7d9   : > { %v6804_v25 = vadd.f32 %v6803_v36, %v6769_v23  ;;  %v21785_v23 = vld [vmem:[#allocation38_spill] sm:$0xff] }
 0x7da   : > { %v6705_v36 = vsub.f32 %v21785_v23, %v18851_v35  ;;  %v6774_v1 = vmul.f32 %v18989_v41, %v18989_v41  ;;  %v6776_v52 = vmul.f32 %v19003_v55, %v19003_v55 }
 0x7db   : > { %v6805_v42 = vadd.f32 %v6804_v25, %v6770_v37  ;;  %v21787_v25 = vld [vmem:[#allocation42_spill] sm:$0xff] }
 0x7dc   : > { %v6706_v54 = vsub.f32 %v21787_v25, %v18851_v35  ;;  %v19010_v57 = vmul.f32 %v6705_v36, %v21790_v28 }
 0x7dd   : > { %v6806_v39 = vadd.f32 %v6805_v42, %v6771_v59  ;;  %v21789_v42 = vld [vmem:[#allocation43_spill] sm:$0xff] }
 0x7de   : > { %v6707_v23 = vsub.f32 %v21789_v42, %v18851_v35  ;;  %v19017_v13 = vmul.f32 %v6706_v54, %v21792_v22  ;;  %v6777_v28 = vmul.f32 %v19010_v57, %v19010_v57 }
 0x7df   : > { %v6807_v37 = vadd.f32 %v6806_v39, %v6772_v26  ;;  %v21791_v39 = vld [vmem:[#allocation47_spill] sm:$0xff] }
 0x7e0   : > { %v6708_v25 = vsub.f32 %v21791_v39, %v18851_v35  ;;  %v19024_v36 = vmul.f32 %v6707_v23, %v21794_v17  ;;  %v6778_v22 = vmul.f32 %v19017_v13, %v19017_v13 }
 0x7e1   : > { %v6808_v59 = vadd.f32 %v6807_v37, %v6773_v6  ;;  %v21793_v37 = vld [vmem:[#allocation46_spill] sm:$0xff] }
 0x7e2   : > { %v6709_v42 = vsub.f32 %v21793_v37, %v18851_v35  ;;  %v19031_v54 = vmul.f32 %v6708_v25, %v21796_v43  ;;  %v6779_v17 = vmul.f32 %v19024_v36, %v19024_v36 }
 0x7e3   : > { %v6809_v26 = vadd.f32 %v6808_v59, %v6774_v1  ;;  %v21795_v59 = vld [vmem:[#allocation50_spill] sm:$0xff] }
 0x7e4   : > { %v6710_v39 = vsub.f32 %v21795_v59, %v18851_v35  ;;  %v19038_v23 = vmul.f32 %v6709_v42, %v21798_v9  ;;  %v21799_v59 = vld [vmem:[#allocation36_spill] sm:$0xff]  ;;  %v6780_v43 = vmul.f32 %v19031_v54, %v19031_v54 }
 0x7e5   : > { %v6810_v6 = vadd.f32 %v6809_v26, %v6775_v4  ;;  %v21797_v26 = vld [vmem:[#allocation51_spill] sm:$0xff] }
 0x7e6   : > { %v6711_v37 = vsub.f32 %v21797_v26, %v18851_v35  ;;  %v19045_v25 = vmul.f32 %v6710_v39, %v21799_v59  ;;  %v6781_v9 = vmul.f32 %v19038_v23, %v19038_v23 }
 0x7e7   : > { %v6811_v1 = vadd.f32 %v6810_v6, %v6776_v52  ;;  %v6712_v6 = vsub.f32 %v18798_v48, %v18851_v35 }
 0x7e8   : > { %v19052_v42 = vmul.f32 %v6711_v37, %v21801_v62  ;;  %v6782_v59 = vmul.f32 %v19045_v25, %v19045_v25 }
 0x7e9   : > { %v6812_v4 = vadd.f32 %v6811_v1, %v6777_v28  ;;  %v21800_v1 = vld [vmem:[#allocation55_spill] sm:$0xff]  ;;  %v19059_v39 = vmul.f32 %v6712_v6, %v21803_v40 }
 0x7ea   : > { %v6713_v26 = vsub.f32 %v21800_v1, %v18851_v35  ;;  %v6783_v62 = vmul.f32 %v19052_v42, %v19052_v42 }
 0x7eb   : > { %v6813_v52 = vadd.f32 %v6812_v4, %v6778_v22  ;;  %v21802_v4 = vld [vmem:[#allocation56_spill] sm:$0xff]  ;;  %v6784_v40 = vmul.f32 %v19059_v39, %v19059_v39 }
 0x7ec   : > { %v6714_v48 = vsub.f32 %v21802_v4, %v18851_v35  ;;  %v19066_v37 = vmul.f32 %v6713_v26, %v21805_v56  ;;  %v21806_v4 = vld [vmem:[#allocation44_spill] sm:$0xff] }
 0x7ed   : > { %v6814_v28 = vadd.f32 %v6813_v52, %v6779_v17  ;;  %v21804_v52 = vld [vmem:[#allocation57_spill] sm:$0xff] }
 0x7ee   : > { %v6715_v1 = vsub.f32 %v21804_v52, %v18851_v35  ;;  %v19073_v6 = vmul.f32 %v6714_v48, %v21806_v4  ;;  %v21807_v52 = vld [vmem:[#allocation49_spill] sm:$0xff]  ;;  %v6785_v56 = vmul.f32 %v19066_v37, %v19066_v37 }
 0x7ef   : > { %v6815_v22 = vadd.f32 %v6814_v28, %v6780_v43  ;;  %v6716_v28 = vsub.f32 %v18822_v32, %v18851_v35  ;;  %v6718_v32 = vsub.f32 %v18825_v58, %v18851_v35 }
 0x7f0   : > { %v19080_v26 = vmul.f32 %v6715_v1, %v21807_v52 }
 0x7f1   : > { %v6816_v17 = vadd.f32 %v6815_v22, %v6781_v9  ;;  %v6717_v22 = vsub.f32 %v18817_v34, %v18851_v35  ;;  %v19087_v48 = vmul.f32 %v6716_v28, %v21771_v60  ;;  %v19097_v52 = vmul.f32 %v6718_v32, %v21773_v51 }
 0x7f2   : > { %v6787_v34 = vmul.f32 %v19080_v26, %v19080_v26 }
 0x7f3   : > { %v6817_v43 = vadd.f32 %v6816_v17, %v6782_v59  ;;  %v6786_v17 = vmul.f32 %v19073_v6, %v19073_v6 }
 0x7f5   : > { %v6818_v9 = vadd.f32 %v6817_v43, %v6783_v62  ;;  %v19092_v43 = vmul.f32 %v6717_v22, %v21772_v45 }
 0x7f7   : > { %v6819_v59 = vadd.f32 %v6818_v9, %v6784_v40  ;;  %v6788_v40 = vmul.f32 %v19087_v48, %v19087_v48  ;;  %v6789_v35 = vmul.f32 %v19092_v43, %v19092_v43 }
 0x7f9   : > { %v6820_v62 = vadd.f32 %v6819_v59, %v6785_v56  ;;  %v6790_v56 = vmul.f32 %v19097_v52, %v19097_v52 }
 0x7fb   : > { %v6821_v1 = vadd.f32 %v6820_v62, %v6786_v17 }
 0x7fd   : > { %v6822_v58 = vadd.f32 %v6821_v1, %v6787_v34  ;;  %v15508_v1 = vld [vmem:[%s21106_s13] sm:$0xff]  }
 0x7fe   : > { %14139 = vmatprep.subr.bf16.mxu1 %v15508_v1 }
 0x7ff   : > { %v6823_v28 = vadd.f32 %v6822_v58, %v6788_v40  ;;  %v15509_v40 = vld [vmem:[%s21106_s13 + $0x8] sm:$0xff]  }
 0x801   : > { %v6824_v9 = vadd.f32 %v6823_v28, %v6789_v35 }
 0x803   : > { %v6825_v22 = vadd.f32 %v6824_v9, %v6790_v56 }
 0x805   : > { %v6826_v59 = vrot.slane %v6825_v22, 4 }
 0x807   : > { %v6827_v45 = vadd.f32 %v6826_v59, %v6825_v22 }
 0x809   : > { %v6828_v60 = vrot.slane %v6827_v45, 2 }
 0x80b   : > { %v6829_v17 = vadd.f32 %v6828_v60, %v6827_v45  ;;  %v15510_v60 = vld [vmem:[%s21106_s13 + $0x10] sm:$0xff]  }
 0x80d   : > { %v6830_v62 = vrot.slane %v6829_v17, 1 }
 0x80f   : > { %v6831_v32 = vadd.f32 %v6830_v62, %v6829_v17 }
 0x811   : > { %14137 = vmatmul.mubr.f32.vlgmr.msra.gmra.mrb[6].mxu1 %v6831_v32 }
 0x812   : > { %14140 = vmatpush3.bf16.msra.mxu1 %v15508_v1 }
 0x813   : > { %14141 = vmatprep.subr.bf16.mxu1 %v15509_v40 }
 0x816   : > { %14142 = vmatpush3.bf16.msra.mxu1 %v15509_v40 }
 0x817   : > { %14143 = vmatprep.subr.bf16.mxu1 %v15510_v60 }
 0x81a   : > { %14144 = vmatpush3.bf16.msra.mxu1 %v15510_v60 }
 0x8e4   : > { %v6898_v51 = vpop.f32.mrb[6].mxu1 }
 0x8e5   : > { %v14138_v4 = vpop.f32.mrb[7].mxu1  ;;  %v6902_v50 = vmax.f32 %v6898_v51, 0.0 }
 0x8e6   : > { %v15512_v4 = vld [vmem:[%s21106_s13 + $0x20] sm:$0xff]  }
 0x8e7   : > { %v6903_v34 = vadd.f32 1e-05, %v6902_v50  ;;  %v15511_v50 = vld [vmem:[%s21106_s13 + $0x18] sm:$0xff]  }
 0x8e8   : > { %14145 = vmatprep.subr.bf16.mxu1 %v15511_v50 }
 0x8e9   : > { %15730 = vrsqrt.f32 %v6903_v34  ;;  %14146 = vmatpush3.bf16.msra.mxu1 %v15511_v50  ;;  %v15515_v50 = vld [vmem:[%s21106_s13 + $0x38] sm:$0xff]  }
 0x8ea   : > { %14147 = vmatprep.subr.bf16.mxu1 %v15512_v4 }
 0x8ed   : > { %14148 = vmatpush3.bf16.msra.mxu1 %v15512_v4 }
 0x8f3   : > { %v15731_v45 = vpop.eup %15730 }
 0x8f4   : > { %v6908_v51 = vrot.slane %v15731_v45, %v21722_v30 }
 0x8f6   : > { %v6909_v58 = vmul.f32 %v6908_v51, %v18860_v31  ;;  %v6910_v35 = vmul.f32 %v6908_v51, %v18863_v20  ;;  %v6911_v28 = vmul.f32 %v6908_v51, %v18870_v29  ;;  %v6912_v56 = vmul.f32 %v6908_v51, %v18879_v38 }
 0x8f7   : > { %v6913_v9 = vmul.f32 %v6908_v51, %v18884_v46  ;;  %v6914_v22 = vmul.f32 %v6908_v51, %v18891_v18  ;;  %v6915_v30 = vmul.f32 %v6908_v51, %v18898_v7  ;;  %v6916_v59 = vmul.f32 %v6908_v51, %v18905_v11  ;;  %v15513_v7 = vld [vmem:[%s21106_s13 + $0x28] sm:$0xff]  }
 0x8f8   : > { %v6917_v17 = vmul.f32 %v6908_v51, %v18912_v33  ;;  %v6918_v62 = vmul.f32 %v6908_v51, %v18919_v10  ;;  %v6919_v31 = vmul.f32 %v6908_v51, %v18926_v15  ;;  %v6920_v20 = vmul.f32 %v6908_v51, %v18933_v44  ;;  %14149 = vmatprep.subr.bf16.mxu1 %v15513_v7 }
 0x8f9   : > { %v6921_v29 = vmul.f32 %v6908_v51, %v18940_v63  ;;  %v6922_v38 = vmul.f32 %v6908_v51, %v18947_v27  ;;  %v6923_v46 = vmul.f32 %v6908_v51, %v18954_v12  ;;  %v6924_v18 = vmul.f32 %v6908_v51, %v18961_v16  ;;  %v19151_v16 = vld [vmem:[%s21103_s10] ss:$0 sm:$0xff]  ;;  %14150 = vmatpush3.bf16.msra.mxu1 %v15513_v7 }
 0x8fa   : > { %v6925_v11 = vmul.f32 %v6908_v51, %v18968_v0  ;;  %v6926_v33 = vmul.f32 %v6908_v51, %v18975_v3  ;;  %v6927_v10 = vmul.f32 %v6908_v51, %v18982_v21  ;;  %v6928_v15 = vmul.f32 %v6908_v51, %v18989_v41 }
 0x8fb   : > { %v6929_v44 = vmul.f32 %v6908_v51, %v18996_v24  ;;  %v6930_v63 = vmul.f32 %v6908_v51, %v19003_v55  ;;  %v6931_v27 = vmul.f32 %v6908_v51, %v19010_v57  ;;  %v6932_v12 = vmul.f32 %v6908_v51, %v19017_v13 }
 0x8fc   : > { %v6933_v0 = vmul.f32 %v6908_v51, %v19024_v36  ;;  %v6934_v3 = vmul.f32 %v6908_v51, %v19031_v54  ;;  %v6935_v21 = vmul.f32 %v6908_v51, %v19038_v23  ;;  %v6936_v41 = vmul.f32 %v6908_v51, %v19045_v25  ;;  %v15514_v36 = vld [vmem:[%s21106_s13 + $0x30] sm:$0xff]  }
 0x8fd   : > { %v6937_v24 = vmul.f32 %v6908_v51, %v19052_v42  ;;  %v6938_v55 = vmul.f32 %v6908_v51, %v19059_v39  ;;  %v6939_v57 = vmul.f32 %v6908_v51, %v19066_v37  ;;  %v6940_v13 = vmul.f32 %v6908_v51, %v19073_v6  ;;  %14151 = vmatprep.subr.bf16.mxu1 %v15514_v36 }
 0x8fe   : > { %v6941_v54 = vmul.f32 %v6908_v51, %v19080_v26  ;;  %v6942_v23 = vmul.f32 %v6908_v51, %v19087_v48  ;;  %v6943_v25 = vmul.f32 %v6908_v51, %v19092_v43  ;;  %v19168_v32 = vmul.f32 %v6908_v51, %v19097_v52  ;;  %v19181_v52 = vld [vmem:[%s21104_s11] ss:$0 sm:$0xff]  ;;  %14152 = vmatpush3.bf16.msra.mxu1 %v15514_v36 }
 0x8ff   : > { %v6951_v42 = vmul.f32 %v19151_v16, %v6909_v58  ;;  %v6952_v39 = vmul.f32 %v19151_v16, %v6910_v35  ;;  %v6953_v37 = vmul.f32 %v19151_v16, %v6911_v28  ;;  %v6954_v6 = vmul.f32 %v19151_v16, %v6912_v56  ;;  %14153 = vmatprep.subr.bf16.mxu1 %v15515_v50 }
 0x900   : > { %v6955_v34 = vmul.f32 %v19151_v16, %v6913_v9  ;;  %v6956_v1 = vmul.f32 %v19151_v16, %v6914_v22  ;;  %v6957_v26 = vmul.f32 %v19151_v16, %v6915_v30  ;;  %v6958_v48 = vmul.f32 %v19151_v16, %v6916_v59 }
 0x901   : > { %v6959_v43 = vmul.f32 %v19151_v16, %v6917_v17  ;;  %v6960_v40 = vmul.f32 %v19151_v16, %v6918_v62  ;;  %v6961_v60 = vmul.f32 %v19151_v16, %v6919_v31  ;;  %v6962_v45 = vmul.f32 %v19151_v16, %v6920_v20 }
 0x902   : > { %v6963_v51 = vmul.f32 %v19151_v16, %v6921_v29  ;;  %v6964_v4 = vmul.f32 %v19151_v16, %v6922_v38  ;;  %v6965_v58 = vmul.f32 %v19151_v16, %v6923_v46  ;;  %v6966_v35 = vmul.f32 %v19151_v16, %v6924_v18  ;;  %v19233_v46 = vld [vmem:[%s21106_s13 + $0x40] sm:$0xff]   ;;  %14154 = vmatpush3.bf16.msra.mxu1 %v15515_v50 }
 0x903   : > { %v19195_v28 = vmul.f32 %v19151_v16, %v6925_v11  ;;  %v19198_v56 = vmul.f32 %v19151_v16, %v6926_v33  ;;  %v19201_v9 = vmul.f32 %v19151_v16, %v6927_v10  ;;  %v19204_v22 = vmul.f32 %v19151_v16, %v6928_v15  ;;  %21808 = vst [vmem:[#allocation58_spill] sm:$0xff] %v19233_v46 }
 0x904   : > { %v19207_v30 = vmul.f32 %v19151_v16, %v6929_v44  ;;  %v19210_v59 = vadd.f32 %v19181_v52, %v6951_v42  ;;  %v19213_v17 = vadd.f32 %v19181_v52, %v6952_v39  ;;  %v19216_v62 = vadd.f32 %v19181_v52, %v6953_v37  ;;  %14191 = vmatprep.subr.bf16.mxu1 %v19233_v46 }
 0x905   : > { %v19219_v31 = vmul.f32 %v19151_v16, %v6930_v63  ;;  %v19222_v20 = vmul.f32 %v19151_v16, %v6931_v27  ;;  %v19225_v29 = vmul.f32 %v19151_v16, %v6932_v12  ;;  %v19228_v38 = vadd.f32 %v19181_v52, %v6954_v6 }
 0x906   : > { %v19236_v18 = vmul.f32 %v19151_v16, %v6933_v0  ;;  %v19239_v7 = vmul.f32 %v19151_v16, %v6934_v3  ;;  %v19242_v11 = vmul.f32 %v19151_v16, %v6935_v21  ;;  %v19245_v33 = vadd.f32 %v19181_v52, %v6955_v34 }
 0x907   : > { %v19248_v10 = vmul.f32 %v19151_v16, %v6936_v41  ;;  %v19251_v15 = vmul.f32 %v19151_v16, %v6937_v24  ;;  %v19254_v44 = vadd.f32 %v19181_v52, %v6956_v1  ;;  %v19257_v63 = vadd.f32 %v19181_v52, %v6957_v26 }
 0x908   : > { %v19260_v27 = vmul.f32 %v19151_v16, %v6938_v55  ;;  %v7029_v12 = vsub.f32 0.0, %v19210_v59  ;;  %v7030_v0 = vsub.f32 0.0, %v19213_v17  ;;  %v7031_v3 = vsub.f32 0.0, %v19216_v62 }
 0x909   : > { %v19266_v21 = vmul.f32 %v19151_v16, %v6939_v57  ;;  %v19269_v41 = vmul.f32 %v19151_v16, %v6940_v13  ;;  %v19272_v24 = vadd.f32 %v19181_v52, %v6958_v48  ;;  %v7032_v36 = vsub.f32 0.0, %v19228_v38 }
 0x90a   : > { %v19277_v55 = vmul.f32 %v19151_v16, %v6941_v54  ;;  %v19280_v42 = vmul.f32 %v19151_v16, %v6942_v23  ;;  %v19283_v39 = vadd.f32 %v19181_v52, %v6959_v43  ;;  %v7033_v57 = vsub.f32 0.0, %v19245_v33 }
 0x90b   : > { %v19287_v13 = vmul.f32 %v19151_v16, %v6943_v25  ;;  %v19290_v37 = vadd.f32 %v19181_v52, %v6960_v40  ;;  %v7034_v6 = vsub.f32 0.0, %v19254_v44  ;;  %v7035_v34 = vsub.f32 0.0, %v19257_v63 }
 0x90c   : > { %v19295_v54 = vadd.f32 %v19181_v52, %v6961_v60  ;;  %v7065_v23 = vmul.f32 1.442695, %v7029_v12  ;;  %v7067_v1 = vmul.f32 1.442695, %v7030_v0  ;;  %v7069_v26 = vmul.f32 1.442695, %v7031_v3 }
 0x90d   : > { %v19299_v48 = vmul.f32 %v19151_v16, %v19168_v32  ;;  %v19302_v25 = vadd.f32 %v19181_v52, %v6962_v45  ;;  %v7036_v43 = vsub.f32 0.0, %v19272_v24  ;;  %v7071_v40 = vmul.f32 1.442695, %v7032_v36 }
 0x90e   : > { %v19306_v50 = vadd.f32 %v19181_v52, %v6963_v51  ;;  %v7037_v46 = vsub.f32 0.0, %v19283_v39  ;;  %15732 = vpow2.f32 %v7065_v23  ;;  %v7073_v60 = vmul.f32 1.442695, %v7033_v57 }
 0x90f   : > { %v19310_v12 = vadd.f32 %v19181_v52, %v6964_v4  ;;  %v7038_v0 = vsub.f32 0.0, %v19290_v37  ;;  %15734 = vpow2.f32 %v7067_v1  ;;  %v7075_v16 = vmul.f32 1.442695, %v7034_v6 }
 0x910   : > { %v19314_v32 = vadd.f32 %v19181_v52, %v6965_v58  ;;  %v7039_v45 = vsub.f32 0.0, %v19295_v54  ;;  %15736 = vpow2.f32 %v7069_v26  ;;  %v7077_v3 = vmul.f32 1.442695, %v7035_v34 }
 0x911   : > { %v19318_v51 = vadd.f32 %v19181_v52, %v6966_v35  ;;  %v7040_v36 = vsub.f32 0.0, %v19302_v25  ;;  %15738 = vpow2.f32 %v7071_v40  ;;  %v7079_v57 = vmul.f32 1.442695, %v7036_v43 }
 0x912   : > { %v19323_v4 = vadd.f32 %v19181_v52, %v19195_v28  ;;  %v7041_v6 = vsub.f32 0.0, %v19306_v50  ;;  %15740 = vpow2.f32 %v7073_v60  ;;  %v7081_v58 = vmul.f32 1.442695, %v7037_v46 }
 0x913   : > { %21809 = vst [vmem:[#allocation59_spill] sm:$0xff] %v19318_v51  ;;  %v19328_v23 = vadd.f32 %v19181_v52, %v19198_v56  ;;  %v7042_v34 = vsub.f32 0.0, %v19310_v12  ;;  %15742 = vpow2.f32 %v7075_v16  ;;  %v7083_v35 = vmul.f32 1.442695, %v7038_v0 }
 0x914   : > { %21810 = vst [vmem:[#allocation60_spill] sm:$0xff] %v19323_v4  ;;  %v19333_v1 = vadd.f32 %v19181_v52, %v19201_v9  ;;  %v7043_v26 = vsub.f32 0.0, %v19314_v32  ;;  %15744 = vpow2.f32 %v7077_v3  ;;  %v7085_v28 = vmul.f32 1.442695, %v7039_v45 }
 0x915   : > { %21811 = vst [vmem:[#allocation61_spill] sm:$0xff] %v19328_v23  ;;  %v19338_v43 = vadd.f32 %v19181_v52, %v19204_v22  ;;  %v7044_v46 = vsub.f32 0.0, %v19318_v51  ;;  %15746 = vpow2.f32 %v7079_v57  ;;  %v7087_v56 = vmul.f32 1.442695, %v7040_v36 }
 0x916   : > { %21812 = vst [vmem:[#allocation63_spill] sm:$0xff] %v19333_v1  ;;  %v19343_v40 = vadd.f32 %v19181_v52, %v19207_v30  ;;  %v7045_v60 = vsub.f32 0.0, %v19323_v4  ;;  %15748 = vpow2.f32 %v7081_v58  ;;  %v7089_v9 = vmul.f32 1.442695, %v7041_v6 }
 0x917   : > { %21813 = vst [vmem:[#allocation65_spill] sm:$0xff] %v19338_v43  ;;  %v19348_v0 = vadd.f32 %v19181_v52, %v19219_v31  ;;  %v7046_v16 = vsub.f32 0.0, %v19328_v23  ;;  %15750 = vpow2.f32 %v7083_v35  ;;  %v7091_v22 = vmul.f32 1.442695, %v7042_v34 }
 0x918   : > { %21814 = vst [vmem:[#allocation64_spill] sm:$0xff] %v19343_v40  ;;  %v19351_v45 = vpop.eup %15732  ;;  %v19355_v3 = vadd.f32 %v19181_v52, %v19222_v20  ;;  %v7047_v30 = vsub.f32 0.0, %v19333_v1  ;;  %15752 = vpow2.f32 %v7085_v28  ;;  %v7093_v36 = vmul.f32 1.442695, %v7043_v26 }
 0x919   : > { %21815 = vst [vmem:[#allocation66_spill] sm:$0xff] %v19348_v0  ;;  %v19358_v57 = vpop.eup %15734  ;;  %v19362_v31 = vadd.f32 %v19181_v52, %v19225_v29  ;;  %v7048_v6 = vsub.f32 0.0, %v19338_v43  ;;  %15754 = vpow2.f32 %v7087_v56  ;;  %v7095_v58 = vmul.f32 1.442695, %v7044_v46 }
 0x91a   : > { %21816 = vst [vmem:[#allocation67_spill] sm:$0xff] %v19355_v3  ;;  %v19365_v34 = vpop.eup %15736  ;;  %v19369_v20 = vadd.f32 %v19181_v52, %v19236_v18  ;;  %v7049_v35 = vsub.f32 0.0, %v19343_v40  ;;  %15756 = vpow2.f32 %v7089_v9  ;;  %v7097_v26 = vmul.f32 1.442695, %v7045_v60 }
 0x91b   : > { %21817 = vst [vmem:[#allocation68_spill] sm:$0xff] %v19362_v31  ;;  %v19372_v28 = vpop.eup %15738  ;;  %v19376_v29 = vadd.f32 %v19181_v52, %v19239_v7  ;;  %v7050_v43 = vsub.f32 0.0, %v19348_v0  ;;  %15758 = vpow2.f32 %v7091_v22  ;;  %v7099_v46 = vmul.f32 1.442695, %v7046_v16 }
 0x91c   : > { %21818 = vst [vmem:[#allocation69_spill] sm:$0xff] %v19369_v20  ;;  %v19379_v56 = vpop.eup %15740  ;;  %v19383_v18 = vadd.f32 %v19181_v52, %v19242_v11  ;;  %v7051_v40 = vsub.f32 0.0, %v19355_v3  ;;  %15760 = vpow2.f32 %v7093_v36  ;;  %v7101_v60 = vmul.f32 1.442695, %v7047_v30 }
 0x91d   : > { %21819 = vst [vmem:[#allocation70_spill] sm:$0xff] %v19376_v29  ;;  %v19386_v9 = vpop.eup %15742  ;;  %v19390_v7 = vadd.f32 %v19181_v52, %v19248_v10  ;;  %v7052_v0 = vsub.f32 0.0, %v19362_v31  ;;  %15762 = vpow2.f32 %v7095_v58  ;;  %v7103_v16 = vmul.f32 1.442695, %v7048_v6 }
 0x91e   : > { %21820 = vst [vmem:[#allocation72_spill] sm:$0xff] %v19383_v18  ;;  %v19393_v22 = vpop.eup %15744  ;;  %v19397_v11 = vadd.f32 %v19181_v52, %v19251_v15  ;;  %v7053_v3 = vsub.f32 0.0, %v19369_v20  ;;  %15764 = vpow2.f32 %v7097_v26  ;;  %v7105_v30 = vmul.f32 1.442695, %v7049_v35 }
 0x91f   : > { %21821 = vst [vmem:[#allocation74_spill] sm:$0xff] %v19390_v7  ;;  %v19400_v36 = vpop.eup %15746  ;;  %v19404_v10 = vadd.f32 %v19181_v52, %v19260_v27  ;;  %v7054_v31 = vsub.f32 0.0, %v19376_v29  ;;  %15766 = vpow2.f32 %v7099_v46  ;;  %v7107_v6 = vmul.f32 1.442695, %v7050_v43 }
 0x920   : > { %21822 = vst [vmem:[#allocation75_spill] sm:$0xff] %v19397_v11  ;;  %v19407_v58 = vpop.eup %15748  ;;  %v19411_v15 = vadd.f32 %v19181_v52, %v19266_v21  ;;  %v7055_v20 = vsub.f32 0.0, %v19383_v18  ;;  %15768 = vpow2.f32 %v7101_v60  ;;  %v7109_v35 = vmul.f32 1.442695, %v7051_v40 }
 0x921   : > { %21823 = vst [vmem:[#allocation73_spill] sm:$0xff] %v19404_v10  ;;  %v19414_v26 = vpop.eup %15750  ;;  %v19418_v27 = vadd.f32 %v19181_v52, %v19269_v41  ;;  %v7056_v29 = vsub.f32 0.0, %v19390_v7  ;;  %15770 = vpow2.f32 %v7103_v16  ;;  %v7111_v43 = vmul.f32 1.442695, %v7052_v0 }
 0x922   : > { %21824 = vst [vmem:[#allocation62_spill] sm:$0xff] %v19411_v15  ;;  %v19421_v46 = vpop.eup %15752  ;;  %v19425_v21 = vadd.f32 %v19181_v52, %v19277_v55  ;;  %v7057_v18 = vsub.f32 0.0, %v19397_v11  ;;  %15772 = vpow2.f32 %v7105_v30  ;;  %v7113_v40 = vmul.f32 1.442695, %v7053_v3 }
 0x923   : > { %21825 = vst [vmem:[#allocation71_spill] sm:$0xff] %v19418_v27  ;;  %v19428_v60 = vpop.eup %15754  ;;  %v19432_v41 = vadd.f32 %v19181_v52, %v19280_v42  ;;  %v7058_v7 = vsub.f32 0.0, %v19404_v10  ;;  %15774 = vpow2.f32 %v7107_v6  ;;  %v7115_v0 = vmul.f32 1.442695, %v7054_v31 }
 0x924   : > { %21826 = vst [vmem:[#allocation82_spill] sm:$0xff] %v19425_v21  ;;  %v19435_v16 = vpop.eup %15756  ;;  %v19439_v55 = vadd.f32 %v19181_v52, %v19287_v13  ;;  %v7059_v11 = vsub.f32 0.0, %v19411_v15  ;;  %15776 = vpow2.f32 %v7109_v35  ;;  %v7117_v3 = vmul.f32 1.442695, %v7055_v20 }
 0x925   : > { %21827 = vst [vmem:[#allocation76_spill] sm:$0xff] %v19432_v41  ;;  %v19442_v30 = vpop.eup %15758  ;;  %v19446_v42 = vadd.f32 %v19181_v52, %v19299_v48  ;;  %v7060_v10 = vsub.f32 0.0, %v19418_v27  ;;  %15778 = vpow2.f32 %v7111_v43  ;;  %v7119_v31 = vmul.f32 1.442695, %v7056_v29 }
 0x926   : > { %21828 = vst [vmem:[#allocation77_spill] sm:$0xff] %v19439_v55  ;;  %v19449_v6 = vpop.eup %15760  ;;  %v7061_v1 = vsub.f32 0.0, %v19425_v21  ;;  %15780 = vpow2.f32 %v7113_v40  ;;  %v7121_v13 = vmul.f32 1.442695, %v7057_v18  ;;  %v7062_v20 = vsub.f32 0.0, %v19432_v41 }
 0x927   : > { %21829 = vst [vmem:[#allocation78_spill] sm:$0xff] %v19446_v42  ;;  %v19452_v23 = vpop.eup %15762  ;;  %15782 = vpow2.f32 %v7115_v0  ;;  %v7123_v35 = vmul.f32 1.442695, %v7058_v7  ;;  %v7063_v52 = vsub.f32 0.0, %v19439_v55  ;;  %v7125_v48 = vmul.f32 1.442695, %v7059_v11 }
 0x928   : > { %v19455_v15 = vpop.eup %15764  ;;  %15784 = vpow2.f32 %v7117_v3  ;;  %v7064_v29 = vsub.f32 0.0, %v19446_v42  ;;  %v7127_v27 = vmul.f32 1.442695, %v7060_v10  ;;  %v7129_v18 = vmul.f32 1.442695, %v7061_v1 }
 0x929   : > { %v15767_v43 = vpop.eup %15766  ;;  %15786 = vpow2.f32 %v7119_v31  ;;  %v7131_v4 = vmul.f32 1.442695, %v7062_v20  ;;  %v7394_v41 = vld [vmem:[#allocation3] sm:$0xfc]  ;;  %v7133_v7 = vmul.f32 1.442695, %v7063_v52 }
 0x92a   : > { %v15769_v21 = vpop.eup %15768  ;;  %15788 = vpow2.f32 %v7121_v13  ;;  %v7135_v55 = vmul.f32 1.442695, %v7064_v29  ;;  %v7137_v11 = vadd.f32 1.0, %v19351_v45  ;;  %v7430_v42 = vshrl.u32 %v7394_v41, 16 }
 0x92b   : > { %v15771_v40 = vpop.eup %15770  ;;  %15790 = vpow2.f32 %v7123_v35  ;;  %v7433_v31 = vshll.u32 %v7394_v41, 16  ;;  %v7138_v1 = vadd.f32 1.0, %v19358_v57  ;;  %v7139_v20 = vadd.f32 1.0, %v19365_v34 }
 0x92c   : > { %v15773_v0 = vpop.eup %15772  ;;  %15792 = vpow2.f32 %v7125_v48  ;;  %v7140_v52 = vadd.f32 1.0, %v19372_v28  ;;  %v7141_v48 = vadd.f32 1.0, %v19379_v56  ;;  %v19464_v29 = vrot.slane %v7430_v42, 2 }
 0x92d   : > { %v15775_v51 = vpop.eup %15774  ;;  %15794 = vpow2.f32 %v7127_v27  ;;  %v19466_v45 = vrot.slane %v7433_v31, 3  ;;  %v7145_v56 = vadd.f32 1.0, %v19407_v58  ;;  %v7146_v42 = vadd.f32 1.0, %v19414_v26 }
 0x92e   : > { %v15777_v3 = vpop.eup %15776  ;;  %15796 = vpow2.f32 %v7129_v18  ;;  %21830 = vst [vmem:[#allocation79_spill] sm:$0xff] %v19464_v29  ;;  %v7143_v18 = vadd.f32 1.0, %v19393_v22  ;;  %v7148_v31 = vadd.f32 1.0, %v19428_v60  ;;  %v7149_v22 = vadd.f32 1.0, %v19435_v16 }
 0x92f   : > { %v15779_v10 = vpop.eup %15778  ;;  %15798 = vpow2.f32 %v7131_v4  ;;  %21831 = vst [vmem:[#allocation80_spill] sm:$0xff] %v19466_v45  ;;  %v7142_v4 = vadd.f32 1.0, %v19386_v9  ;;  %v7147_v9 = vadd.f32 1.0, %v19421_v46  ;;  %v7152_v58 = vadd.f32 1.0, %v19452_v23 }
 0x930   : > { %v15781_v13 = vpop.eup %15780  ;;  %15800 = vpow2.f32 %v7133_v7  ;;  %v7155_v7 = vadd.f32 1.0, %v15769_v21  ;;  %v7156_v29 = vadd.f32 1.0, %v15771_v40  ;;  %v7157_v60 = vadd.f32 1.0, %v15773_v0 }
 0x931   : > { %v15783_v35 = vpop.eup %15782  ;;  %15802 = vpow2.f32 %v7135_v55  ;;  %v7144_v55 = vadd.f32 1.0, %v19400_v36  ;;  %v7150_v36 = vadd.f32 1.0, %v19442_v30  ;;  %v7158_v45 = vadd.f32 1.0, %v15775_v51 }
 0x932   : > { %v15785_v27 = vpop.eup %15784  ;;  %15804 = vrcp.f32 %v7137_v11  ;;  %v19484_v30 = vadd.f32 1.0, %v15779_v10 }
 0x933   : > { %v15787_v41 = vpop.eup %15786  ;;  %15806 = vrcp.f32 %v7138_v1 }
 0x934   : > { %v15789_v57 = vpop.eup %15788  ;;  %15808 = vrcp.f32 %v7139_v20  ;;  %v7151_v20 = vadd.f32 1.0, %v19449_v6  ;;  %v19486_v6 = vadd.f32 1.0, %v15781_v13  ;;  %v19492_v21 = vadd.f32 1.0, %v15787_v41 }
 0x935   : > { %v15791_v34 = vpop.eup %15790  ;;  %15810 = vrcp.f32 %v7140_v52  ;;  %v7153_v52 = vadd.f32 1.0, %v19455_v15  ;;  %v19490_v15 = vadd.f32 1.0, %v15785_v27  ;;  %v19494_v40 = vadd.f32 1.0, %v15789_v57 }
 0x936   : > { %v15793_v28 = vpop.eup %15792  ;;  %15812 = vrcp.f32 %v7141_v48  ;;  %v7154_v48 = vadd.f32 1.0, %v15767_v43  ;;  %v19496_v51 = vadd.f32 1.0, %v15791_v34 }
 0x937   : > { %v15795_v11 = vpop.eup %15794  ;;  %15814 = vrcp.f32 %v7142_v4  ;;  %v19482_v4 = vadd.f32 1.0, %v15777_v3  ;;  %v19499_v10 = vadd.f32 1.0, %v15793_v28 }
 0x938   : > { %v15797_v1 = vpop.eup %15796  ;;  %15816 = vrcp.f32 %v7143_v18  ;;  %v19488_v18 = vadd.f32 1.0, %v15783_v35  ;;  %v19501_v13 = vadd.f32 1.0, %v15795_v11 }
 0x939   : > { %v15799_v26 = vpop.eup %15798  ;;  %15818 = vrcp.f32 %v7144_v55  ;;  %v19504_v41 = vadd.f32 1.0, %v15797_v1 }
 0x93a   : > { %v15801_v46 = vpop.eup %15800  ;;  %15820 = vrcp.f32 %v7145_v56  ;;  %v19508_v56 = vadd.f32 1.0, %v15799_v26 }
 0x93b   : > { %v15803_v16 = vpop.eup %15802  ;;  %15822 = vrcp.f32 %v7146_v42  ;;  %v19512_v11 = vadd.f32 1.0, %v15801_v46 }
 0x93c   : > { %v15805_v23 = vpop.eup %15804  ;;  %15824 = vrcp.f32 %v7147_v9 }
 0x93d   : > { %v15807_v43 = vpop.eup %15806  ;;  %15826 = vrcp.f32 %v7148_v31  ;;  %v7209_v0 = vmul.f32 %v15805_v23, %v19210_v59 }
 0x93e   : > { %v15809_v3 = vpop.eup %15808  ;;  %15828 = vrcp.f32 %v7149_v22  ;;  %v7210_v35 = vmul.f32 %v15807_v43, %v19213_v17 }
 0x93f   : > { %v15811_v27 = vpop.eup %15810  ;;  %15830 = vrcp.f32 %v7150_v36  ;;  %v7211_v57 = vmul.f32 %v15809_v3, %v19216_v62  ;;  %v7245_v34 = vmul.f32 %v7209_v0, %v21723_v19  ;;  %v19518_v36 = vadd.f32 1.0, %v15803_v16 }
 0x940   : > { %v15813_v55 = vpop.eup %15812  ;;  %15832 = vrcp.f32 %v7151_v20  ;;  %v7212_v59 = vmul.f32 %v15811_v27, %v19228_v38  ;;  %v7246_v28 = vmul.f32 %v7210_v35, %v21724_v47  ;;  %v21835_v35 = vld [vmem:[#allocation19_spill] sm:$0xff] }
 0x941   : > { %v15815_v42 = vpop.eup %15814  ;;  %15834 = vrcp.f32 %v7152_v58  ;;  %v7213_v17 = vmul.f32 %v15813_v55, %v19245_v33  ;;  %v7247_v9 = vmul.f32 %v7211_v57, %v21725_v53  ;;  %v21837_v55 = vld [vmem:[#allocation18_spill] sm:$0xff] }
 0x942   : > { %v15817_v31 = vpop.eup %15816  ;;  %15836 = vrcp.f32 %v7153_v52  ;;  %v7214_v19 = vmul.f32 %v15815_v42, %v19254_v44  ;;  %v7248_v62 = vmul.f32 %v7212_v59, %v21726_v2  ;;  %v7285_v22 = vpack.c.bf16 %v7246_v28, %v7245_v34 }
 0x943   : > { %v15819_v1 = vpop.eup %15818  ;;  %15838 = vrcp.f32 %v7154_v48  ;;  %v7215_v47 = vmul.f32 %v15817_v31, %v19257_v63  ;;  %v7249_v38 = vmul.f32 %v7213_v17, %v21727_v49 }
 0x944   : > { %v15821_v20 = vpop.eup %15820  ;;  %15840 = vrcp.f32 %v7155_v7  ;;  %v7216_v33 = vmul.f32 %v15819_v1, %v19272_v24  ;;  %v7250_v53 = vmul.f32 %v7214_v19, %v21728_v8  ;;  %v7286_v58 = vpack.c.bf16 %v7248_v62, %v7247_v9 }
 0x945   : > { %v15823_v26 = vpop.eup %15822  ;;  %15842 = vrcp.f32 %v7156_v29  ;;  %v7217_v2 = vmul.f32 %v15821_v20, %v19283_v39  ;;  %v7251_v44 = vmul.f32 %v7215_v47, %v21729_v61  ;;  %v7321_v52 = vrot.slane %v7285_v22, 4  ;;  %v21841_v22 = vld [vmem:[#allocation20_spill] sm:$0xff] }
 0x946   : > { %v15825_v46 = vpop.eup %15824  ;;  %15844 = vrcp.f32 %v7157_v60  ;;  %v7218_v63 = vmul.f32 %v15823_v26, %v19290_v37  ;;  %v7252_v49 = vmul.f32 %v7216_v33, %v21730_v5  ;;  %v7287_v48 = vpack.c.bf16 %v7250_v53, %v7249_v38  ;;  %v21832_v60 = vld [vmem:[#allocation14_spill] sm:$0xff]  ;;  %v21843_v33 = vld [vmem:[#allocation23_spill] sm:$0xff] }
 0x947   : > { %v15827_v7 = vpop.eup %15826  ;;  %15846 = vrcp.f32 %v7158_v45  ;;  %v7219_v24 = vmul.f32 %v15825_v46, %v19295_v54  ;;  %v19530_v8 = vmul.f32 %v7217_v2, %v21731_v14  ;;  %v7322_v29 = vrot.slane %v7286_v58, 4  ;;  %7375 = vst [vmem:[#allocation3 + $0x8] sm:$0xf0] %v7321_v52  ;;  %v21833_v45 = vld [vmem:[#allocation17_spill] sm:$0xff] }
 0x948   : > { %v15829_v39 = vpop.eup %15828  ;;  %15848 = vrcp.f32 %v19482_v4  ;;  %v7220_v61 = vmul.f32 %v15827_v7, %v19302_v25  ;;  %v7254_v16 = vmul.f32 %v7218_v63, %v21832_v60  ;;  %v7288_v37 = vpack.c.bf16 %v7252_v49, %v7251_v44  ;;  %v21834_v25 = vld [vmem:[#allocation16_spill] sm:$0xff]  ;;  %v21845_v44 = vld [vmem:[#allocation22_spill] sm:$0xff]  ;;  %v21847_v7 = vld [vmem:[#allocation25_spill] sm:$0xff] }
 0x949   : > { %v15831_v23 = vpop.eup %15830  ;;  %15850 = vrcp.f32 %v19484_v30  ;;  %v7221_v5 = vmul.f32 %v15829_v39, %v19306_v50  ;;  %v19538_v54 = vmul.f32 %v7219_v24, %v21833_v45  ;;  %v19541_v14 = vsel %vm1623_vm1, %v7321_v52, %v7322_v29  ;;  %v21846_v49 = vld [vmem:[#allocation64_spill] sm:$0xff] }
 0x94a   : > { %v15833_v43 = vpop.eup %15832  ;;  %15852 = vrcp.f32 %v19486_v6  ;;  %v7222_v4 = vmul.f32 %v15831_v23, %v19310_v12  ;;  %v19546_v0 = vmul.f32 %v7220_v61, %v21834_v25  ;;  %v7289_v3 = vpack.c.bf16 %v7254_v16, %v19530_v8  ;;  %7376 = vst [vmem:[#allocation3 + $0x10] sm:$0xff] %v19541_v14  ;;  %v21836_v12 = vld [vmem:[#allocation59_spill] sm:$0xff]  ;;  %v21849_v39 = vld [vmem:[#allocation24_spill] sm:$0xff] }
 0x94b   : > { %v15835_v30 = vpop.eup %15834  ;;  %15854 = vrcp.f32 %v19488_v18  ;;  %v7223_v50 = vmul.f32 %v15833_v43, %v19314_v32  ;;  %v19553_v27 = vmul.f32 %v7221_v5, %v21835_v35  ;;  %v7324_v57 = vrot.slane %v7287_v48, 4  ;;  %v21838_v18 = vld [vmem:[#allocation60_spill] sm:$0xff]  ;;  %v21839_v32 = vld [vmem:[#allocation21_spill] sm:$0xff]  ;;  %v21851_v23 = vld [vmem:[#allocation27_spill] sm:$0xff] }
 0x94c   : > { %v15837_v34 = vpop.eup %15836  ;;  %15856 = vrcp.f32 %v19490_v15  ;;  %v7224_v6 = vmul.f32 %v15835_v30, %v21836_v12  ;;  %v7258_v59 = vmul.f32 %v7222_v4, %v21837_v55  ;;  %v7290_v28 = vpack.c.bf16 %v19546_v0, %v19538_v54  ;;  %v21840_v15 = vld [vmem:[#allocation61_spill] sm:$0xff]  ;;  %v21852_v43 = vld [vmem:[#allocation68_spill] sm:$0xff]  ;;  %v21853_v4 = vld [vmem:[#allocation26_spill] sm:$0xff] }
 0x94d   : > { %v15839_v42 = vpop.eup %15838  ;;  %15858 = vrcp.f32 %v19492_v21  ;;  %v7225_v17 = vmul.f32 %v15837_v34, %v21838_v18  ;;  %v7259_v9 = vmul.f32 %v7223_v50, %v21839_v32  ;;  %v19564_v31 = vsel %vm1623_vm1, %v7322_v29, %v7324_v57  ;;  %v21842_v21 = vld [vmem:[#allocation63_spill] sm:$0xff]  ;;  %v21848_v29 = vld [vmem:[#allocation66_spill] sm:$0xff]  ;;  %v21854_v50 = vld [vmem:[#allocation69_spill] sm:$0xff] }
 0x94e   : > { %v15841_v19 = vpop.eup %15840  ;;  %15860 = vrcp.f32 %v19494_v40  ;;  %v7226_v62 = vmul.f32 %v15839_v42, %v21840_v15  ;;  %v7260_v1 = vmul.f32 %v7224_v6, %v21841_v22  ;;  %v7291_v47 = vpack.c.bf16 %v7258_v59, %v19553_v27  ;;  %7377 = vst [vmem:[#allocation3 + $0x18] sm:$0xff] %v19564_v31  ;;  %v21844_v40 = vld [vmem:[#allocation65_spill] sm:$0xff]  ;;  %v21857_v6 = vld [vmem:[#allocation28_spill] sm:$0xff] }
 0x94f   : > { %v15843_v38 = vpop.eup %15842  ;;  %15862 = vrcp.f32 %v19496_v51  ;;  %v7227_v20 = vmul.f32 %v15841_v19, %v21842_v21  ;;  %v7261_v53 = vmul.f32 %v7225_v17, %v21843_v33  ;;  %v7326_v58 = vrot.slane %v7288_v37, 4  ;;  %v21855_v27 = vld [vmem:[#allocation29_spill] sm:$0xff]  ;;  %v21858_v18 = vld [vmem:[#allocation72_spill] sm:$0xff] }
 0x950   : > { %v15845_v26 = vpop.eup %15844  ;;  %15864 = vrcp.f32 %v19499_v10  ;;  %v7228_v2 = vmul.f32 %v15843_v38, %v21844_v40  ;;  %v7262_v52 = vmul.f32 %v7226_v62, %v21845_v44  ;;  %v7292_v46 = vpack.c.bf16 %v7260_v1, %v7259_v9  ;;  %v21860_v62 = vld [vmem:[#allocation74_spill] sm:$0xff]  ;;  %v21861_v1 = vld [vmem:[#allocation32_spill] sm:$0xff]  ;;  %v21864_v44 = vld [vmem:[#allocation73_spill] sm:$0xff] }
 0x951   : > { %v15847_v63 = vpop.eup %15846  ;;  %15866 = vrcp.f32 %v19501_v13  ;;  %v7229_v48 = vmul.f32 %v15845_v26, %v21846_v49  ;;  %v7263_v51 = vmul.f32 %v7227_v20, %v21847_v7  ;;  %v19581_v24 = vsel %vm1623_vm1, %v7324_v57, %v7326_v58  ;;  %v21850_v13 = vld [vmem:[#allocation67_spill] sm:$0xff] }
 0x952   : > { %v15849_v8 = vpop.eup %15848  ;;  %15868 = vrcp.f32 %v19504_v41  ;;  %v7230_v10 = vmul.f32 %v15847_v63, %v21848_v29  ;;  %v7264_v61 = vmul.f32 %v7228_v2, %v21849_v39  ;;  %v7293_v60 = vpack.c.bf16 %v7262_v52, %v7261_v53  ;;  %7378 = vst [vmem:[#allocation3 + $0x20] sm:$0xff] %v19581_v24  ;;  %v21867_v29 = vld [vmem:[#allocation41_spill] sm:$0xff] }
 0x953   : > { %v15851_v16 = vpop.eup %15850  ;;  %15870 = vrcp.f32 %v19508_v56  ;;  %v7231_v37 = vmul.f32 %v15849_v8, %v21850_v13  ;;  %v7265_v5 = vmul.f32 %v7229_v48, %v21851_v23  ;;  %v7328_v45 = vrot.slane %v7289_v3, 4  ;;  %v21856_v3 = vld [vmem:[#allocation70_spill] sm:$0xff]  ;;  %v21868_v13 = vld [vmem:[#allocation71_spill] sm:$0xff]  ;;  %v21869_v23 = vld [vmem:[#allocation40_spill] sm:$0xff] }
 0x954   : > { %v15853_v54 = vpop.eup %15852  ;;  %15872 = vrcp.f32 %v19512_v11  ;;  %v7232_v41 = vmul.f32 %v15851_v16, %v21852_v43  ;;  %v7266_v25 = vmul.f32 %v7230_v10, %v21853_v4  ;;  %v7294_v0 = vpack.c.bf16 %v7264_v61, %v7263_v51  ;;  %v21866_v51 = vld [vmem:[#allocation62_spill] sm:$0xff]  ;;  %v21871_v4 = vld [vmem:[#allocation45_spill] sm:$0xff] }
 0x955   : > { %v15855_v30 = vpop.eup %15854  ;;  %15874 = vrcp.f32 %v19518_v36  ;;  %v7233_v35 = vmul.f32 %v15853_v54, %v21854_v50  ;;  %v7267_v56 = vmul.f32 %v7231_v37, %v21855_v27  ;;  %v19597_v57 = vsel %vm1623_vm1, %v7326_v58, %v7328_v45  ;;  %v21859_v36 = vld [vmem:[#allocation33_spill] sm:$0xff]  ;;  %v21870_v43 = vld [vmem:[#allocation82_spill] sm:$0xff] }
 0x956   : > { %v15857_v34 = vpop.eup %15856  ;;  %v7234_v12 = vmul.f32 %v15855_v30, %v21856_v3  ;;  %v7268_v11 = vmul.f32 %v7232_v41, %v21857_v6  ;;  %v7295_v55 = vpack.c.bf16 %v7266_v25, %v7265_v5  ;;  %v7330_v59 = vrot.slane %v7290_v28, 4  ;;  %7379 = vst [vmem:[#allocation3 + $0x28] sm:$0xff] %v19597_v57  ;;  %v21862_v28 = vld [vmem:[#allocation75_spill] sm:$0xff]  ;;  %v21863_v58 = vld [vmem:[#allocation37_spill] sm:$0xff] }
 0x957   : > { %v15859_v42 = vpop.eup %15858  ;;  %v7235_v17 = vmul.f32 %v15857_v34, %v21858_v18  ;;  %v7269_v32 = vmul.f32 %v7233_v35, %v21859_v36  ;;  %v7332_v9 = vrot.slane %v7291_v47, 4  ;;  %v7334_v19 = vrot.slane %v7292_v46, 4  ;;  %v21865_v46 = vld [vmem:[#allocation36_spill] sm:$0xff]  ;;  %v19644_v36 = vld [vmem:[#allocation3 + $0x8] sm:$0xff] }
 0x958   : > { %v15861_v15 = vpop.eup %15860  ;;  %v7236_v22 = vmul.f32 %v15859_v42, %v21860_v62  ;;  %v7270_v38 = vmul.f32 %v7234_v12, %v21861_v1  ;;  %v7296_v21 = vpack.c.bf16 %v7268_v11, %v7267_v56  ;;  %v19607_v20 = vsel %vm1623_vm1, %v7328_v45, %v7330_v59  ;;  %v21872_v35 = vld [vmem:[#allocation76_spill] sm:$0xff]  ;;  %v21874_v11 = vld [vmem:[#allocation77_spill] sm:$0xff] }
 0x959   : > { %v15863_v33 = vpop.eup %15862  ;;  %v7237_v53 = vmul.f32 %v15861_v15, %v21862_v28  ;;  %v7271_v26 = vmul.f32 %v7235_v17, %v21863_v58  ;;  %v19612_v40 = vsel %vm1623_vm1, %v7330_v59, %v7332_v9  ;;  %v19615_v47 = vsel %vm1623_vm1, %v7332_v9, %v7334_v19  ;;  %7380 = vst [vmem:[#allocation3 + $0x30] sm:$0xff] %v19607_v20  ;;  %v21873_v56 = vld [vmem:[#allocation44_spill] sm:$0xff]  ;;  %v21875_v59 = vld [vmem:[#allocation49_spill] sm:$0xff] }
 0x95a   : > { %v15865_v2 = vpop.eup %15864  ;;  %v7238_v52 = vmul.f32 %v15863_v33, %v21864_v44  ;;  %v7272_v63 = vmul.f32 %v7236_v22, %v21865_v46  ;;  %v7297_v49 = vpack.c.bf16 %v7270_v38, %v7269_v32  ;;  %v7336_v48 = vrot.slane %v7293_v60, 4  ;;  %7381 = vst [vmem:[#allocation3 + $0x38] sm:$0xff] %v19612_v40  ;;  %7382 = vst [vmem:[#allocation3 + $0x40] sm:$0xff] %v19615_v47  ;;  %v21876_v32 = vld [vmem:[#allocation78_spill] sm:$0xff]  ;;  %v21878_v1 = vld [vmem:[#allocation52_spill] sm:$0xff] }
 0x95b   : > { %v15867_v7 = vpop.eup %15866  ;;  %v7239_v8 = vmul.f32 %v15865_v2, %v21866_v51  ;;  %v7273_v10 = vmul.f32 %v7237_v53, %v21867_v29  ;;  %v7338_v39 = vrot.slane %v7294_v0, 4  ;;  %v7340_v61 = vrot.slane %v7295_v55, 4  ;;  %v21879_v53 = vld [vmem:[#allocation53_spill] sm:$0xff] }
 0x95c   : > { %v15869_v16 = vpop.eup %15868  ;;  %v7240_v37 = vmul.f32 %v15867_v7, %v21868_v13  ;;  %v7274_v5 = vmul.f32 %v7238_v52, %v21869_v23  ;;  %v7298_v45 = vpack.c.bf16 %v7272_v63, %v7271_v26  ;;  %v19627_v54 = vsel %vm1623_vm1, %v7334_v19, %v7336_v48  ;;  %v21877_v19 = vld [vmem:[#allocation48_spill] sm:$0xff] }
 0x95d   : > { %v15871_v60 = vpop.eup %15870  ;;  %v7241_v41 = vmul.f32 %v15869_v16, %v21870_v43  ;;  %v7275_v25 = vmul.f32 %v7239_v8, %v21871_v4  ;;  %v19632_v30 = vsel %vm1623_vm1, %v7336_v48, %v7338_v39  ;;  %v19635_v0 = vsel %vm1623_vm1, %v7338_v39, %v7340_v61  ;;  %7383 = vst [vmem:[#allocation3 + $0x48] sm:$0xff] %v19627_v54 }
 0x95e   : > { %v15873_v50 = vpop.eup %15872  ;;  %v7242_v27 = vmul.f32 %v15871_v60, %v21872_v35  ;;  %v7276_v34 = vmul.f32 %v7240_v37, %v21873_v56  ;;  %v7299_v3 = vpack.c.bf16 %v7274_v5, %v7273_v10  ;;  %v7342_v12 = vrot.slane %v7296_v21, 4  ;;  %7384 = vst [vmem:[#allocation3 + $0x50] sm:$0xff] %v19632_v30  ;;  %7385 = vst [vmem:[#allocation3 + $0x58] sm:$0xff] %v19635_v0  ;;  %v21880_v35 = vld [vmem:[#allocation80_spill] sm:$0xff] }
 0x95f   : > { %v15875_v6 = vpop.eup %15874  ;;  %v7243_v55 = vmul.f32 %v15873_v50, %v21874_v11  ;;  %v7277_v42 = vmul.f32 %v7241_v41, %v21875_v59  ;;  %v7344_v18 = vrot.slane %v7297_v49, 4  ;;  %v7346_v17 = vrot.slane %v7298_v45, 4 }
 0x960   : > { %v7244_v9 = vmul.f32 %v15875_v6, %v21876_v32  ;;  %v7278_v15 = vmul.f32 %v7242_v27, %v21877_v19  ;;  %v7300_v62 = vpack.c.bf16 %v7276_v34, %v7275_v25  ;;  %v19649_v22 = vsel %vm1623_vm1, %v7340_v61, %v7342_v12  ;;  %v21881_v27 = vld [vmem:[#allocation79_spill] sm:$0xff]  ;;  %v15517_v6 = vld [vmem:[%s21106_s13 + $0x48] sm:$0xff]  }
 0x961   : > { %v7279_v38 = vmul.f32 %v7243_v55, %v21878_v1  ;;  %v19653_v21 = vsel %vm1623_vm1, %v7342_v12, %v7344_v18  ;;  %v19656_v33 = vsel %vm1623_vm1, %v7344_v18, %v7346_v17  ;;  %v7348_v28 = vrot.slane %v7299_v3, 4  ;;  %7386 = vst [vmem:[#allocation3 + $0x60] sm:$0xff] %v19649_v22  ;;  %v21883_v18 = vld [vmem:[#allocation58_spill] sm:$0xff] }
 0x962   : > { %v7280_v58 = vmul.f32 %v7244_v9, %v21879_v53  ;;  %v7301_v26 = vpack.c.bf16 %v7278_v15, %v7277_v42  ;;  %v7350_v2 = vrot.slane %v7300_v62, 4  ;;  %7387 = vst [vmem:[#allocation3 + $0x68] sm:$0xff] %v19653_v21  ;;  %7388 = vst [vmem:[#allocation3 + $0x70] sm:$0xff] %v19656_v33  ;;  %v7438_v44 = vshrl.u32 %v19644_v36, 16  ;;  %v15518_v15 = vld [vmem:[%s21106_s13 + $0x50] sm:$0xff]  }
 0x963   : > { %v19664_v52 = vsel %vm1623_vm1, %v7346_v17, %v7348_v28  ;;  %v7441_v46 = vshll.u32 %v19644_v36, 16  ;;  %v7447_v63 = vshrl.u32 %v19541_v14, 16  ;;  %v7450_v49 = vshll.u32 %v19541_v14, 16 }
 0x964   : > { %v7302_v48 = vpack.c.bf16 %v7280_v58, %v7279_v38  ;;  %v19670_v7 = vsel %vm1623_vm1, %v7348_v28, %v7350_v2  ;;  %v7352_v51 = vrot.slane %v7301_v26, 4  ;;  %7389 = vst [vmem:[#allocation3 + $0x78] sm:$0xff] %v19664_v52  ;;  %v7440_v8 = vrot.slane %v7438_v44, 2 }
 0x965   : > { %7390 = vst [vmem:[#allocation3 + $0x80] sm:$0xff] %v19670_v7  ;;  %v7443_v29 = vrot.slane %v7441_v46, 3  ;;  %v7449_v10 = vrot.slane %v7447_v63, 2  ;;  %v7452_v39 = vrot.slane %v7450_v49, 3  ;;  %v7456_v61 = vshrl.u32 %v19564_v31, 16 }
 0x966   : > { %v19684_v16 = vsel %vm1623_vm1, %v7350_v2, %v7352_v51  ;;  %v7354_v13 = vrot.slane %v7302_v48, 4  ;;  %v7459_v37 = vshll.u32 %v19564_v31, 16  ;;  %v7465_v23 = vshrl.u32 %v19581_v24, 16 }
 0x967   : > { %7391 = vst [vmem:[#allocation3 + $0x88] sm:$0xff] %v19684_v16  ;;  %v7444_v5 = vor.u32 %v7443_v29, %v7440_v8  ;;  %v7453_v45 = vor.u32 %v7452_v39, %v7449_v10  ;;  %v7458_v60 = vrot.slane %v7456_v61, 2  ;;  %v7468_v43 = vshll.u32 %v19581_v24, 16  ;;  %v15519_v8 = vld [vmem:[%s21106_s13 + $0x58] sm:$0xff]  }
 0x968   : > { %v7355_v41 = vsel %vm1623_vm1, %v7352_v51, %v7354_v13  ;;  %7393 = vst [vmem:[#allocation3 + $0x98] sm:$0xf] %v7354_v13  ;;  %v7461_v4 = vrot.slane %v7459_v37, 3  ;;  %v7467_v25 = vrot.slane %v7465_v23, 2  ;;  %v7474_v50 = vshrl.u32 %v19597_v57, 16 }
 0x969   : > { %7392 = vst [vmem:[#allocation3 + $0x90] sm:$0xff] %v7355_v41  ;;  %v21882_v56 = vor.u32 %v21880_v35, %v21881_v27  ;;  %v7454_v3 = vsel %vm1732_vm2, %v7444_v5, %v7453_v45  ;;  %v7470_v12 = vrot.slane %v7468_v43, 3  ;;  %v7477_v11 = vshll.u32 %v19597_v57, 16 }
 0x96a   : > { %v7462_v55 = vor.u32 %v7461_v4, %v7458_v60  ;;  %v7476_v59 = vrot.slane %v7474_v50, 2  ;;  %v7483_v32 = vshrl.u32 %v19607_v20, 16  ;;  %v7486_v9 = vshll.u32 %v19607_v20, 16 }
 0x96b   : > { %v7445_v34 = vsel %vm1732_vm2, %v21882_v56, %v7444_v5  ;;  %v7479_v42 = vrot.slane %v7477_v11, 3  ;;  %v7471_v19 = vor.u32 %v7470_v12, %v7467_v25  ;;  %v7492_v62 = vshrl.u32 %v19612_v40, 16 }
 0x96c   : > { %14155 = vmatprep.mubr.bf16.mxu1 %v7445_v34  ;;  %v7463_v17 = vsel %vm1732_vm2, %v7453_v45, %v7462_v55  ;;  %v7495_v1 = vshll.u32 %v19612_v40, 16  ;;  %v21331_v38 = vshrl.u32 %v19615_v47, 16  ;;  %v21330_v53 = vshll.u32 %v19615_v47, 16 }
 0x96d   : > { %14156 = vmatmul.mubr.bf16.vlgmr.msra.gmra.mrb[8].mxu1 %v7454_v3  ;;  %v7480_v28 = vor.u32 %v7479_v42, %v7476_v59  ;;  %v7485_v58 = vrot.slane %v7483_v32, 2  ;;  %v7488_v26 = vrot.slane %v7486_v9, 3  ;;  %v21329_v2 = vshrl.u32 %v19627_v54, 16 }
 0x96e   : > { %14192 = vmatpush3.bf16.msra.mxu1 %v21883_v18  ;;  %14159 = vmatprep.mubr.bf16.mxu1 %v7463_v17  ;;  %v21328_v48 = vshll.u32 %v19627_v54, 16  ;;  %v7472_v51 = vsel %vm1732_vm2, %v7462_v55, %v7471_v19  ;;  %v21327_v29 = vshrl.u32 %v19632_v30, 16  ;;  %v21326_v10 = vshll.u32 %v19632_v30, 16  ;;  %v15520_v55 = vld [vmem:[%s21106_s13 + $0x60] sm:$0xff]  }
 0x96f   : > { %14193 = vmatprep.subr.bf16.mxu1 %v15517_v6  ;;  %v21316_v39 = vshrl.u32 %v19635_v0, 16  ;;  %v7494_v13 = vrot.slane %v7492_v62, 2  ;;  %v7497_v5 = vrot.slane %v7495_v1, 3  ;;  %v7503_v45 = vrot.slane %v21331_v38, 2 }
 0x970   : > { %v21315_v60 = vshll.u32 %v19635_v0, 16  ;;  %v7481_v41 = vsel %vm1732_vm2, %v7471_v19, %v7480_v28  ;;  %v7506_v4 = vrot.slane %v21330_v53, 3  ;;  %v21325_v25 = vshrl.u32 %v19649_v22, 16 }
 0x971   : > { %v21324_v35 = vshll.u32 %v19649_v22, 16  ;;  %v7512_v27 = vrot.slane %v21329_v2, 2  ;;  %v7515_v56 = vrot.slane %v21328_v48, 3  ;;  %v7521_v34 = vrot.slane %v21327_v29, 2 }
 0x972   : > { %14194 = vmatpush3.bf16.msra.mxu1 %v15517_v6  ;;  %v7524_v3 = vrot.slane %v21326_v10, 3  ;;  %v7530_v12 = vrot.slane %v21316_v39, 2  ;;  %v7533_v6 = vrot.slane %v21315_v60, 3  ;;  %v7489_v59 = vor.u32 %v7488_v26, %v7485_v58  ;;  %v15521_v58 = vld [vmem:[%s21106_s13 + $0x68] sm:$0xff]  }
 0x973   : > { %14195 = vmatprep.subr.bf16.mxu1 %v15518_v15  ;;  %v7498_v42 = vor.u32 %v7497_v5, %v7494_v13  ;;  %v7507_v18 = vor.u32 %v7506_v4, %v7503_v45  ;;  %v7539_v17 = vrot.slane %v21325_v25, 2  ;;  %v7542_v19 = vrot.slane %v21324_v35, 3 }
 0x974   : > { %v7525_v60 = vor.u32 %v7524_v3, %v7521_v34  ;;  %v7534_v39 = vor.u32 %v7533_v6, %v7530_v12  ;;  %v7490_v26 = vsel %vm1732_vm2, %v7480_v28, %v7489_v59  ;;  %v21319_v13 = vshrl.u32 %v19656_v33, 16 }
 0x975   : > { %14160 = vmatmul.mubr.bf16.gmra.mrb[12].mxu1 %v7472_v51  ;;  %v21323_v51 = vshrl.u32 %v19653_v21, 16  ;;  %v21318_v5 = vshll.u32 %v19656_v33, 16  ;;  %v7508_v45 = vsel %vm1732_vm2, %v7498_v42, %v7507_v18  ;;  %v19778_v4 = vor.u32 %v7542_v19, %v7539_v17 }
 0x976   : > { %14163 = vmatprep.mubr.bf16.mxu1 %v7481_v41  ;;  %14196 = vmatpush3.bf16.msra.mxu1 %v15518_v15  ;;  %v7516_v15 = vor.u32 %v7515_v56, %v7512_v27  ;;  %v21317_v41 = vshll.u32 %v19653_v21, 16  ;;  %v21321_v34 = vshrl.u32 %v19664_v52, 16  ;;  %v19790_v12 = vsel %vm1732_vm2, %v7525_v60, %v7534_v39 }
 0x977   : > { %14197 = vmatprep.subr.bf16.mxu1 %v15519_v8  ;;  %v7548_v56 = vrot.slane %v21323_v51, 2  ;;  %v21322_v6 = vshll.u32 %v19664_v52, 16  ;;  %v7936_v17 = vrot.slane %v19541_v14, 3  ;;  %v19805_v19 = vsel %vm1732_vm2, %v7534_v39, %v19778_v4 }
 0x978   : > { %v7517_v27 = vsel %vm1732_vm2, %v7507_v18, %v7516_v15  ;;  %v7551_v28 = vrot.slane %v21317_v41, 3  ;;  %v19787_v3 = vsel %vm1732_vm2, %v7516_v15, %v7525_v60  ;;  %v7560_v18 = vrot.slane %v21318_v5, 3 }
 0x979   : > { %v7938_v60 = vrot.slane %v19564_v31, 3  ;;  %v19814_v5 = vrot.slane %v21321_v34, 2  ;;  %v19826_v15 = vrot.slane %v21322_v6, 3  ;;  %v7948_v6 = vrot.slane %v19615_v47, 3 }
 0x97a   : > { %14198 = vmatpush3.bf16.msra.mxu1 %v15519_v8  ;;  %v7499_v8 = vsel %vm1732_vm2, %v7489_v59, %v7498_v42  ;;  %v21320_v59 = vrot.slane %v19644_v36, 3  ;;  %v7557_v42 = vrot.slane %v21319_v13, 2  ;;  %v19810_v41 = vor.u32 %v7551_v28, %v7548_v56 }
 0x97b   : > { %14199 = vmatprep.subr.bf16.mxu1 %v15520_v55  ;;  %v19822_v39 = vsel %vm2237_vm3, %v7936_v17, %v7938_v60  ;;  %v7950_v51 = vrot.slane %v19627_v54, 3  ;;  %v7954_v25 = vrot.slane %v19635_v0, 3  ;;  %v7962_v29 = vrot.slane %v19664_v52, 3 }
 0x97c   : > { %v19819_v13 = vsel %vm2237_vm3, %v21320_v59, %v7936_v17  ;;  %v7944_v59 = vrot.slane %v19607_v20, 3  ;;  %v19838_v34 = vor.u32 %v7560_v18, %v7557_v42  ;;  %v7946_v17 = vrot.slane %v19612_v40, 3 }
 0x97d   : > { %14164 = vmatmul.mubr.bf16.gmra.mrb[16].mxu1 %v7490_v26  ;;  %v7940_v26 = vrot.slane %v19581_v24, 3  ;;  %v19856_v10 = vsel %vm2237_vm3, %v7948_v6, %v7950_v51  ;;  %v7964_v48 = vrot.slane %v19670_v7, 3  ;;  %v21332_v2 = vrot.slane %v19684_v16, 3 }
 0x97e   : > { %14167 = vmatprep.mubr.bf16.mxu1 %v7499_v8  ;;  %14200 = vmatpush3.bf16.msra.mxu1 %v15520_v55  ;;  %v15522_v55 = vld [vmem:[%s21106_s13 + $0x70] sm:$0xff]   ;;  %v7942_v8 = vrot.slane %v19597_v57, 3  ;;  %v19850_v42 = vsel %vm2237_vm3, %v7944_v59, %v7946_v17  ;;  %v19853_v18 = vsel %vm2237_vm3, %v7946_v17, %v7948_v6  ;;  %v7960_v6 = vrot.slane %v19656_v33, 3 }
 0x97f   : > { %14201 = vmatprep.subr.bf16.mxu1 %v15521_v58  ;;  %v19832_v56 = vsel %vm2237_vm3, %v7938_v60, %v7940_v26  ;;  %v7952_v60 = vrot.slane %v19632_v30, 3  ;;  %v19892_v38 = vsel %vm2237_vm3, %v7962_v29, %v7964_v48  ;;  %v7553_v14 = vsel %vm1732_vm2, %v19778_v4, %v19810_v41 }
 0x980   : > { %v19835_v28 = vsel %vm2237_vm3, %v7940_v26, %v7942_v8  ;;  %v19844_v35 = vsel %vm2237_vm3, %v7942_v8, %v7944_v59  ;;  %v7956_v26 = vrot.slane %v19649_v22, 3  ;;  %v19862_v8 = vld [vmem:[%s21106_s13 + $0x80] sm:$0xff]   ;;  %v8407_v31 = vrot.slane %v7477_v11, 4 }
 0x981   : > { %v8425_v57 = vrot.slane %v7495_v1, 4  ;;  %v21884_v11 = vshrl.u32 %v19615_v47, 16  ;;  %v21886_v40 = vshrl.u32 %v19627_v54, 16 }
 0x982   : > { %14202 = vmatpush3.bf16.msra.mxu1 %v15521_v58  ;;  %v15523_v58 = vld [vmem:[%s21106_s13 + $0x78] sm:$0xff]   ;;  %v19871_v59 = vsel %vm2237_vm3, %v7954_v25, %v7956_v26 }
 0x983   : > { %14203 = vmatprep.subr.bf16.mxu1 %v15522_v55  ;;  %v8440_v1 = vrot.slane %v21886_v40, 3 }
 0x985   : > { %14168 = vmatmul.mubr.bf16.gmra.mrb[20].mxu1 %v7508_v45  ;;  %v7958_v45 = vrot.slane %v19653_v21, 3 }
 0x986   : > { %14171 = vmatprep.mubr.bf16.mxu1 %v7517_v27  ;;  %14204 = vmatpush3.bf16.msra.mxu1 %v15522_v55  ;;  %v19865_v27 = vsel %vm2237_vm3, %v7950_v51, %v7952_v60  ;;  %v19868_v55 = vsel %vm2237_vm3, %v7952_v60, %v7954_v25  ;;  %v8368_v25 = vrot.slane %v7438_v44, 3  ;;  %v8371_v60 = vrot.slane %v7441_v46, 4 }
 0x987   : > { %14205 = vmatprep.subr.bf16.mxu1 %v15523_v58  ;;  %v19875_v17 = vsel %vm2237_vm3, %v7956_v26, %v7958_v45  ;;  %v19882_v53 = vsel %vm2237_vm3, %v7958_v45, %v7960_v6  ;;  %v19889_v26 = vsel %vm2237_vm3, %v7960_v6, %v7962_v29  ;;  %v19897_v51 = vsel %vm2237_vm3, %v7964_v48, %v21332_v2 }
 0x988   : > { %v8377_v45 = vrot.slane %v7447_v63, 3  ;;  %v7582_v44 = vshrl.u32 %v19684_v16, 16  ;;  %v19903_v46 = vor.u32 %v8371_v60, %v8368_v25  ;;  %v8386_v29 = vrot.slane %v7456_v61, 3 }
 0x989   : > { %v8389_v6 = vrot.slane %v7459_v37, 4  ;;  %v8395_v48 = vrot.slane %v7465_v23, 3  ;;  %v8398_v63 = vrot.slane %v7468_v43, 4  ;;  %v8404_v2 = vrot.slane %v7474_v50, 3 }
 0x98a   : > { %14206 = vmatpush3.bf16.msra.mxu1 %v15523_v58  ;;  %v8380_v58 = vrot.slane %v7450_v49, 4  ;;  %v8413_v61 = vrot.slane %v7483_v32, 3  ;;  %v8416_v23 = vrot.slane %v7486_v9, 4  ;;  %v8422_v43 = vrot.slane %v7492_v62, 3 }
 0x98b   : > { %14243 = vmatprep.subr.bf16.mxu1 %v19862_v8  ;;  %v8390_v24 = vor.u32 %v8389_v6, %v8386_v29  ;;  %v8399_v37 = vor.u32 %v8398_v63, %v8395_v48  ;;  %v8408_v4 = vor.u32 %v8407_v31, %v8404_v2  ;;  %v8431_v32 = vrot.slane %v21884_v11, 3 }
 0x98c   : > { %v8381_v49 = vor.u32 %v8380_v58, %v8377_v45  ;;  %v8417_v9 = vor.u32 %v8416_v23, %v8413_v61  ;;  %v21885_v62 = vshll.u32 %v19615_v47, 16  ;;  %v8426_v2 = vor.u32 %v8425_v57, %v8422_v43 }
 0x98d   : > { %14172 = vmatmul.mubr.bf16.gmra.mrb[24].mxu1 %v19787_v3  ;;  %v19942_v20 = vsel %vm2662_vm4, %v8390_v24, %v8399_v37  ;;  %v19947_v25 = vsel %vm2662_vm4, %v8399_v37, %v8408_v4  ;;  %v21887_v60 = vshll.u32 %v19627_v54, 16  ;;  %v21888_v6 = vshrl.u32 %v19632_v30, 16 }
 0x98e   : > { %14175 = vmatprep.mubr.bf16.mxu1 %v19790_v12  ;;  %v19932_v50 = vsel %vm2662_vm4, %v19903_v46, %v8381_v49  ;;  %v19939_v3 = vsel %vm2662_vm4, %v8381_v49, %v8390_v24  ;;  %v8434_v12 = vrot.slane %v21885_v62, 4  ;;  %v19954_v58 = vsel %vm2662_vm4, %v8408_v4, %v8417_v9 }
 0x98f   : > { %v8443_v45 = vrot.slane %v21887_v60, 4  ;;  %v8449_v48 = vrot.slane %v21888_v6, 3  ;;  %v21889_v47 = vshll.u32 %v19632_v30, 16  ;;  %v19961_v49 = vsel %vm2662_vm4, %v8417_v9, %v8426_v2 }
 0x990   : > { %v8435_v29 = vor.u32 %v8434_v12, %v8431_v32  ;;  %v21890_v61 = vshrl.u32 %v19635_v0, 16  ;;  %v21891_v54 = vshll.u32 %v19635_v0, 16  ;;  %v21892_v4 = vshrl.u32 %v19649_v22, 16 }
 0x991   : > { %v8452_v63 = vrot.slane %v21889_v47, 4  ;;  %v8444_v31 = vor.u32 %v8443_v45, %v8440_v1  ;;  %v21893_v30 = vshll.u32 %v19649_v22, 16  ;;  %v21894_v62 = vshrl.u32 %v19653_v21, 16 }
 0x992   : > { %v8458_v24 = vrot.slane %v21890_v61, 3  ;;  %v8461_v37 = vrot.slane %v21891_v54, 4  ;;  %v19968_v23 = vsel %vm2662_vm4, %v8426_v2, %v8435_v29  ;;  %v8467_v57 = vrot.slane %v21892_v4, 3 }
 0x993   : > { %v8453_v43 = vor.u32 %v8452_v63, %v8449_v48  ;;  %v8470_v11 = vrot.slane %v21893_v30, 4  ;;  %v19976_v32 = vsel %vm2662_vm4, %v8435_v29, %v8444_v31  ;;  %v8476_v0 = vrot.slane %v21894_v62, 3 }
 0x994   : > { %v8462_v9 = vor.u32 %v8461_v37, %v8458_v24  ;;  %v21895_v12 = vshll.u32 %v19653_v21, 16  ;;  %v21896_v22 = vshrl.u32 %v19656_v33, 16  ;;  %v21898_v48 = vshrl.u32 %v19664_v52, 16 }
 0x995   : > { %14176 = vmatmul.mubr.bf16.gmra.mrb[28].mxu1 %v19805_v19  ;;  %v19983_v40 = vsel %vm2662_vm4, %v8444_v31, %v8453_v43  ;;  %v8471_v1 = vor.u32 %v8470_v11, %v8467_v57  ;;  %v21897_v19 = vshll.u32 %v19656_v33, 16  ;;  %v21899_v21 = vshll.u32 %v19664_v52, 16 }
 0x996   : > { %v8479_v2 = vrot.slane %v21895_v12, 4  ;;  %14179 = vmatprep.mubr.bf16.mxu1 %v7553_v14  ;;  %v8485_v60 = vrot.slane %v21896_v22, 3  ;;  %v19990_v29 = vsel %vm2662_vm4, %v8453_v43, %v8462_v9  ;;  %v8494_v47 = vrot.slane %v21898_v48, 3 }
 0x997   : > { %v8488_v45 = vrot.slane %v21897_v19, 4  ;;  %v8497_v14 = vrot.slane %v21899_v21, 4  ;;  %v19997_v63 = vsel %vm2662_vm4, %v8462_v9, %v8471_v1  ;;  %v21900_v61 = vshrl.u32 %v19670_v7, 16 }
 0x998   : > { %v8480_v6 = vor.u32 %v8479_v2, %v8476_v0  ;;  %v21901_v33 = vshll.u32 %v19670_v7, 16  ;;  %v7570_v37 = vor.u32 %v19826_v15, %v19814_v5  ;;  %v7585_v43 = vshll.u32 %v19684_v16, 16 }
 0x999   : > { %v8489_v31 = vor.u32 %v8488_v45, %v8485_v60  ;;  %v8503_v24 = vrot.slane %v21900_v61, 3  ;;  %v8498_v52 = vor.u32 %v8497_v14, %v8494_v47  ;;  %v7562_v9 = vsel %vm1732_vm2, %v19810_v41, %v19838_v34  ;;  %v7412_v60 = vld [vmem:[#allocation3 + $0x90] sm:$0x7]  ;;  %v7878_v14 = vld [vmem:[#allocation3] sm:$0xf8] }
 0x99a   : > { %v8506_v54 = vrot.slane %v21901_v33, 4  ;;  %v20007_v4 = vsel %vm2662_vm4, %v8471_v1, %v8480_v6  ;;  %v21903_v5 = vmov %v21900_v61  ;;  %v21904_v62 = vmov %v21901_v33  ;;  %v20038_v33 = vld [vmem:[#allocation3 + $0x88] sm:$0xff] }
 0x99b   : > { %v20010_v57 = vsel %vm2662_vm4, %v8480_v6, %v8489_v31  ;;  %v20015_v11 = vsel %vm2662_vm4, %v8489_v31, %v8498_v52  ;;  %v7575_v15 = vrot.slane %v21903_v5, 2  ;;  %v7578_v0 = vrot.slane %v21904_v62, 3  ;;  %v15525_v62 = vld [vmem:[%s21106_s13 + $0x88] sm:$0xff]  }
 0x99c   : > { %v20012_v30 = vor.u32 %v8506_v54, %v8503_v24  ;;  %v7571_v2 = vsel %vm1732_vm2, %v19838_v34, %v7570_v37  ;;  %v7584_v1 = vrot.slane %v7582_v44, 2  ;;  %v7587_v22 = vrot.slane %v7585_v43, 3  ;;  %v20040_v54 = vld [vmem:[#allocation3 + $0x10] sm:$0xff]  ;;  %v20044_v43 = vld [vmem:[#allocation3 + $0x20] sm:$0xff] }
 0x99d   : > { %14180 = vmatmul.mubr.bf16.gmra.mrb[32].mxu1 %v7562_v9  ;;  %v7579_v41 = vor.u32 %v7578_v0, %v7575_v15  ;;  %v7591_v19 = vshrl.u32 %v7412_v60, 16  ;;  %v7594_v45 = vshll.u32 %v7412_v60, 16  ;;  %v7933_v31 = vrot.slane %v7878_v14, 3  ;;  %v20050_v15 = vld [vmem:[#allocation3 + $0x30] sm:$0xff]  ;;  %v20061_v60 = vld [vmem:[#allocation3 + $0x40] sm:$0xff] }
 0x99e   : > { %21902 = vst [vmem:[#allocation81_spill] sm:$0xff] %v20012_v30  ;;  %v20026_v12 = vsel %vm2662_vm4, %v8498_v52, %v20012_v30  ;;  %14183 = vmatprep.mubr.bf16.mxu1 %v7571_v2  ;;  %v7588_v6 = vor.u32 %v7587_v22, %v7584_v1  ;;  %v21905_v61 = vrot.slane %v19644_v36, 3  ;;  %v20046_v52 = vld [vmem:[#allocation3 + $0x28] sm:$0xff]  ;;  %21906 = vst [vmem:[#allocation83_spill] sm:$0xff] %v20050_v15  ;;  %v20052_v36 = vld [vmem:[#allocation3 + $0x38] sm:$0xff]  ;;  %v21333_v5 = vrot.slane %v20040_v54, 4 }
 0x99f   : > { %v7580_v7 = vsel %vm1732_vm2, %v7570_v37, %v7579_v41  ;;  %v7593_v48 = vrot.slane %v7591_v19, 2  ;;  %v7596_v47 = vrot.slane %v7594_v45, 3  ;;  %v20042_v37 = vld [vmem:[#allocation3 + $0x18] sm:$0xff]  ;;  %21907 = vst [vmem:[#allocation84_spill] sm:$0xff] %v20052_v36  ;;  %v20115_v45 = vld [vmem:[#allocation3 + $0x70] sm:$0xff] }
 0x9a0   : > { %v7589_v21 = vsel %vm1732_vm2, %v7579_v41, %v7588_v6  ;;  %v7935_v24 = vsel %vm2237_vm3, %v7933_v31, %v21905_v61  ;;  %v20076_v31 = vld [vmem:[#allocation3 + $0x58] sm:$0xff]  ;;  %v9493_v9 = vrot.slane %v20042_v37, 4  ;;  %v20128_v2 = vld [vmem:[#allocation3 + $0x90] sm:$0xff] }
 0x9a1   : > { %v7597_v34 = vor.u32 %v7596_v47, %v7593_v48  ;;  %v20069_v48 = vld [vmem:[#allocation3 + $0x50] sm:$0xff]  ;;  %v9499_v47 = vrot.slane %v20050_v15, 4  ;;  %v20117_v19 = vld [vmem:[#allocation3 + $0x78] sm:$0xff] }
 0x9a2   : > { %v9507_v1 = vrot.slane %v20069_v48, 4 }
 0x9a3   : > { %v7598_v44 = vsel %vm1732_vm2, %v7588_v6, %v7597_v34  ;;  %v15526_v34 = vld [vmem:[%s21106_s13 + $0x90] sm:$0xff]   ;;  %v20101_v6 = vsel %vm1623_vm1, %v21333_v5, %v9493_v9  ;;  %v9503_v5 = vrot.slane %v20061_v60, 4 }
 0x9a4   : > { %21908 = vst [vmem:[#allocation85_spill] sm:$0xff] %v20101_v6 }
 0x9a5   : > { %14184 = vmatmul.mubr.bf16.gmra.mrb[36].mxu1 %v7580_v7  ;;  %v20067_v7 = vld [vmem:[#allocation3 + $0x48] sm:$0xff] }
 0x9a6   : > { %14187 = vmatprep.mubr.bf16.mxu1 %v7589_v21  ;;  %v15527_v21 = vld [vmem:[%s21106_s13 + $0x98] sm:$0xff]   ;;  %v9505_v61 = vrot.slane %v20067_v7, 4 }
 0x9a8   : > { %v20140_v30 = vsel %vm1623_vm1, %v9503_v5, %v9505_v61 }
 0x9a9   : > { %21914 = vst [vmem:[#allocation8_spill] sm:$0xff] %v20140_v30 }
 0x9ad   : > { %14188 = vmatmul.mubr.bf16.gmra.mrb[40].mxu1 %v7598_v44  ;;  %v20078_v44 = vld [vmem:[#allocation3 + $0x60] sm:$0xff] }
 0x9ae   : > { %14207 = vmatprep.mubr.bf16.mxu1 %v7935_v24  ;;  %v20084_v24 = vld [vmem:[#allocation3 + $0x68] sm:$0xff] }
 0x9b5   : > { %14208 = vmatmul.mubr.bf16.vlgmr.msra.gmra.mrb[8].mxu1 %v19819_v13  ;;  %v9501_v13 = vrot.slane %v20052_v36, 4 }
 0x9b6   : > { %14244 = vmatpush3.bf16.msra.mxu1 %v19862_v8  ;;  %14211 = vmatprep.mubr.bf16.mxu1 %v19822_v39  ;;  %v9495_v8 = vrot.slane %v20044_v43, 4  ;;  %v9497_v39 = vrot.slane %v20046_v52, 4 }
 0x9b7   : > { %14245 = vmatprep.subr.bf16.mxu1 %v15525_v62  ;;  %v20134_v14 = vsel %vm1623_vm1, %v9499_v47, %v9501_v13  ;;  %v20137_v6 = vsel %vm1623_vm1, %v9501_v13, %v9503_v5  ;;  %v9517_v13 = vrot.slane %v20117_v19, 4 }
 0x9b8   : > { %v20122_v41 = vsel %vm1623_vm1, %v9493_v9, %v9495_v8  ;;  %v20125_v22 = vsel %vm1623_vm1, %v9495_v8, %v9497_v39  ;;  %v20131_v0 = vsel %vm1623_vm1, %v9497_v39, %v9499_v47  ;;  %21912 = vst [vmem:[#allocation9_spill] sm:$0xff] %v20134_v14  ;;  %21913 = vst [vmem:[#allocation6_spill] sm:$0xff] %v20137_v6  ;;  %v9509_v8 = vrot.slane %v20076_v31, 4 }
 0x9b9   : > { %21909 = vst [vmem:[#allocation86_spill] sm:$0xff] %v20122_v41  ;;  %21910 = vst [vmem:[#allocation54_spill] sm:$0xff] %v20125_v22  ;;  %v20144_v9 = vsel %vm1623_vm1, %v9505_v61, %v9507_v1  ;;  %v9511_v22 = vrot.slane %v20078_v44, 4  ;;  %v9513_v39 = vrot.slane %v20084_v24, 4  ;;  %v9515_v47 = vrot.slane %v20115_v45, 4  ;;  %v15528_v61 = vld [vmem:[%s21106_s13 + $0xa0] sm:$0xff]  }
 0x9ba   : > { %14246 = vmatpush3.bf16.msra.mxu1 %v15525_v62  ;;  %v20119_v62 = vld [vmem:[#allocation3 + $0x80] sm:$0xff]  ;;  %21911 = vst [vmem:[#allocation7_spill] sm:$0xff] %v20131_v0  ;;  %21915 = vst [vmem:[#allocation11_spill] sm:$0xff] %v20144_v9  ;;  %v20158_v9 = vsel %vm1623_vm1, %v9507_v1, %v9509_v8  ;;  %v21934_v41 = vshrl.u32 %v20050_v15, 16 }
 0x9bb   : > { %14247 = vmatprep.subr.bf16.mxu1 %v15526_v34  ;;  %v9519_v5 = vrot.slane %v20119_v62, 4  ;;  %21916 = vst [vmem:[#allocation10_spill] sm:$0xff] %v20158_v9  ;;  %v20161_v30 = vsel %vm1623_vm1, %v9509_v8, %v9511_v22  ;;  %v20168_v6 = vsel %vm1623_vm1, %v9513_v39, %v9515_v47  ;;  %v20171_v14 = vsel %vm1623_vm1, %v9515_v47, %v9517_v13 }
 0x9bc   : > { %21917 = vst [vmem:[#allocation13_spill] sm:$0xff] %v20161_v30  ;;  %21919 = vst [vmem:[#allocation15_spill] sm:$0xff] %v20168_v6  ;;  %v21924_v47 = vshrl.u32 %v20040_v54, 16  ;;  %v21927_v8 = vshll.u32 %v20042_v37, 16 }
 0x9bd   : > { %14212 = vmatmul.mubr.bf16.gmra.mrb[12].mxu1 %v19832_v56  ;;  %v9521_v56 = vrot.slane %v20038_v33, 4  ;;  %21920 = vst [vmem:[#allocation31_spill] sm:$0xff] %v20171_v14  ;;  %v20174_v0 = vsel %vm1623_vm1, %v9517_v13, %v9519_v5  ;;  %v21925_v13 = vshll.u32 %v20040_v54, 16 }
 0x9be   : > { %14215 = vmatprep.mubr.bf16.mxu1 %v19835_v28  ;;  %14248 = vmatpush3.bf16.msra.mxu1 %v15526_v34  ;;  %v20164_v28 = vsel %vm1623_vm1, %v9511_v22, %v9513_v39  ;;  %v21335_v34 = vrot.slane %v20128_v2, 4  ;;  %21921 = vst [vmem:[#allocation30_spill] sm:$0xff] %v20174_v0  ;;  %v9925_v14 = vrot.slane %v21924_v47, 4  ;;  %v9937_v30 = vrot.slane %v21927_v8, 5  ;;  %v15529_v22 = vld [vmem:[%s21106_s13 + $0xa8] sm:$0xff]  }
 0x9bf   : > { %14249 = vmatprep.subr.bf16.mxu1 %v15527_v21  ;;  %21918 = vst [vmem:[#allocation12_spill] sm:$0xff] %v20164_v28  ;;  %v20177_v1 = vsel %vm1623_vm1, %v9519_v5, %v9521_v56  ;;  %v9928_v0 = vrot.slane %v21925_v13, 5  ;;  %v21926_v5 = vshrl.u32 %v20042_v37, 16  ;;  %v21931_v8 = vshll.u32 %v20044_v43, 16 }
 0x9c0   : > { %21922 = vst [vmem:[#allocation34_spill] sm:$0xff] %v20177_v1  ;;  %v20185_v39 = vsel %vm1623_vm1, %v9521_v56, %v21335_v34  ;;  %v21928_v34 = vshrl.u32 %v20044_v43, 16  ;;  %v21932_v28 = vshrl.u32 %v20046_v52, 16  ;;  %v21939_v56 = vshrl.u32 %v20061_v60, 16 }
 0x9c1   : > { %21923 = vst [vmem:[#allocation35_spill] sm:$0xff] %v20185_v39  ;;  %v9934_v1 = vrot.slane %v21926_v5, 4  ;;  %v20203_v39 = vor.u32 %v9928_v0, %v9925_v14  ;;  %v9946_v6 = vrot.slane %v21931_v8, 5  ;;  %v21935_v0 = vshll.u32 %v20050_v15, 16 }
 0x9c2   : > { %14250 = vmatpush3.bf16.msra.mxu1 %v15527_v21  ;;  %v9943_v13 = vrot.slane %v21928_v34, 4  ;;  %v9952_v9 = vrot.slane %v21932_v28, 4  ;;  %v21933_v21 = vshll.u32 %v20046_v52, 16  ;;  %v9961_v34 = vrot.slane %v21934_v41, 4  ;;  %v15530_v41 = vld [vmem:[%s21106_s13 + $0xb0] sm:$0xff]  }
 0x9c3   : > { %14251 = vmatprep.subr.bf16.mxu1 %v15528_v61  ;;  %21929 = vst [vmem:[#allocation39_spill] sm:$0xff] %v20203_v39  ;;  %v20205_v5 = vor.u32 %v9937_v30, %v9934_v1  ;;  %v9964_v30 = vrot.slane %v21935_v0, 5  ;;  %v21937_v28 = vshrl.u32 %v20052_v36, 16 }
 0x9c4   : > { %v9955_v47 = vrot.slane %v21933_v21, 5  ;;  %v21938_v21 = vshll.u32 %v20052_v36, 16 }
 0x9c5   : > { %21930 = vst [vmem:[#allocation38_spill] sm:$0xff] %v20205_v5  ;;  %14216 = vmatmul.mubr.bf16.gmra.mrb[16].mxu1 %v19844_v35  ;;  %v20223_v14 = vsel %vm4220_vm5, %v20203_v39, %v20205_v5  ;;  %v9947_v35 = vor.u32 %v9946_v6, %v9943_v13  ;;  %v9970_v1 = vrot.slane %v21937_v28, 4  ;;  %v9965_v0 = vor.u32 %v9964_v30, %v9961_v34 }
 0x9c6   : > { %14219 = vmatprep.mubr.bf16.mxu1 %v19850_v42  ;;  %14252 = vmatpush3.bf16.msra.mxu1 %v15528_v61  ;;  %21936 = vst [vmem:[#allocation42_spill] sm:$0xff] %v20223_v14  ;;  %v9973_v8 = vrot.slane %v21938_v21, 5  ;;  %v9956_v61 = vor.u32 %v9955_v47, %v9952_v9  ;;  %v9979_v39 = vrot.slane %v21939_v56, 4  ;;  %v21941_v28 = vshll.u32 %v20061_v60, 16 }
 0x9c7   : > { %14253 = vmatprep.subr.bf16.mxu1 %v15529_v22  ;;  %v20237_v6 = vsel %vm4220_vm5, %v20205_v5, %v9947_v35  ;;  %v21942_v14 = vshrl.u32 %v20067_v7, 16  ;;  %v21945_v47 = vshll.u32 %v20067_v7, 16  ;;  %v21946_v34 = vshrl.u32 %v20069_v48, 16 }
 0x9c8   : > { %21940 = vst [vmem:[#allocation43_spill] sm:$0xff] %v20237_v6  ;;  %v9974_v13 = vor.u32 %v9973_v8, %v9970_v1  ;;  %v9982_v21 = vrot.slane %v21941_v28, 5  ;;  %v20244_v15 = vsel %vm4220_vm5, %v9947_v35, %v9956_v61  ;;  %v20247_v9 = vsel %vm4220_vm5, %v9956_v61, %v9965_v0  ;;  %v15531_v61 = vld [vmem:[%s21106_s13 + $0xb8] sm:$0xff]  }
 0x9c9   : > { %v9988_v36 = vrot.slane %v21942_v14, 4  ;;  %21943 = vst [vmem:[#allocation47_spill] sm:$0xff] %v20244_v15  ;;  %21944 = vst [vmem:[#allocation46_spill] sm:$0xff] %v20247_v9  ;;  %v9991_v56 = vrot.slane %v21945_v47, 5  ;;  %v9997_v30 = vrot.slane %v21946_v34, 4  ;;  %v21948_v28 = vshll.u32 %v20069_v48, 16 }
 0x9ca   : > { %14254 = vmatpush3.bf16.msra.mxu1 %v15529_v22  ;;  %v20254_v1 = vsel %vm4220_vm5, %v9965_v0, %v9974_v13  ;;  %v9983_v8 = vor.u32 %v9982_v21, %v9979_v39  ;;  %v21949_v35 = vshrl.u32 %v20076_v31, 16  ;;  %v21950_v5 = vshll.u32 %v20076_v31, 16 }
 0x9cb   : > { %21947 = vst [vmem:[#allocation50_spill] sm:$0xff] %v20254_v1  ;;  %v10000_v14 = vrot.slane %v21948_v28, 5  ;;  %14255 = vmatprep.subr.bf16.mxu1 %v15530_v41  ;;  %v9992_v47 = vor.u32 %v9991_v56, %v9988_v36  ;;  %v21951_v22 = vshrl.u32 %v20078_v44, 16  ;;  %v21952_v39 = vshll.u32 %v20078_v44, 16 }
 0x9cc   : > { %v10006_v42 = vrot.slane %v21949_v35, 4  ;;  %v10009_v34 = vrot.slane %v21950_v5, 5  ;;  %v20270_v28 = vsel %vm4220_vm5, %v9974_v13, %v9983_v8  ;;  %v21953_v35 = vshrl.u32 %v20084_v24, 16 }
 0x9cd   : > { %v10015_v0 = vrot.slane %v21951_v22, 4  ;;  %v10018_v21 = vrot.slane %v21952_v39, 5  ;;  %v10001_v1 = vor.u32 %v10000_v14, %v9997_v30  ;;  %v21954_v15 = vshll.u32 %v20084_v24, 16  ;;  %14220 = vmatmul.mubr.bf16.gmra.mrb[20].mxu1 %v19853_v18 }
 0x9ce   : > { %v10024_v9 = vrot.slane %v21953_v35, 4  ;;  %v20278_v36 = vsel %vm4220_vm5, %v9983_v8, %v9992_v47  ;;  %v10010_v5 = vor.u32 %v10009_v34, %v10006_v42  ;;  %v21955_v22 = vshrl.u32 %v20115_v45, 16  ;;  %14223 = vmatprep.mubr.bf16.mxu1 %v19856_v10  ;;  %14256 = vmatpush3.bf16.msra.mxu1 %v15530_v41  ;;  %v20293_v42 = vld [vmem:[%s21106_s13 + $0xc0] sm:$0xff]  }
 0x9cf   : > { %v10027_v6 = vrot.slane %v21954_v15, 5  ;;  %v10019_v56 = vor.u32 %v10018_v21, %v10015_v0  ;;  %v20284_v13 = vsel %vm4220_vm5, %v9992_v47, %v10001_v1  ;;  %v21957_v14 = vshll.u32 %v20115_v45, 16  ;;  %14257 = vmatprep.subr.bf16.mxu1 %v15531_v61 }
 0x9d0   : > { %v10033_v39 = vrot.slane %v21955_v22, 4  ;;  %21956 = vst [vmem:[#allocation51_spill] sm:$0xff] %v20284_v13  ;;  %v21958_v18 = vshrl.u32 %v20117_v19, 16  ;;  %v20296_v8 = vsel %vm4220_vm5, %v10001_v1, %v10010_v5  ;;  %v21961_v41 = vshll.u32 %v20117_v19, 16 }
 0x9d1   : > { %v10028_v30 = vor.u32 %v10027_v6, %v10024_v9  ;;  %v10036_v15 = vrot.slane %v21957_v14, 5  ;;  %21959 = vst [vmem:[#allocation55_spill] sm:$0xff] %v20296_v8  ;;  %v20299_v10 = vsel %vm4220_vm5, %v10010_v5, %v10019_v56  ;;  %v21962_v9 = vshrl.u32 %v20119_v62, 16 }
 0x9d2   : > { %v10042_v35 = vrot.slane %v21958_v18, 4  ;;  %21960 = vst [vmem:[#allocation56_spill] sm:$0xff] %v20299_v10  ;;  %v10045_v6 = vrot.slane %v21961_v41, 5  ;;  %v21963_v21 = vshll.u32 %v20119_v62, 16  ;;  %v21964_v14 = vshrl.u32 %v20038_v33, 16  ;;  %14258 = vmatpush3.bf16.msra.mxu1 %v15531_v61 }
 0x9d3   : > { %v10051_v47 = vrot.slane %v21962_v9, 4  ;;  %v20306_v34 = vsel %vm4220_vm5, %v10019_v56, %v10028_v30  ;;  %v10037_v0 = vor.u32 %v10036_v15, %v10033_v39  ;;  %v21965_v5 = vshll.u32 %v20038_v33, 16  ;;  %14295 = vmatprep.subr.bf16.mxu1 %v20293_v42 }
 0x9d4   : > { %v10054_v22 = vrot.slane %v21963_v21, 5  ;;  %v10060_v1 = vrot.slane %v21964_v14, 4  ;;  %v10046_v18 = vor.u32 %v10045_v6, %v10042_v35  ;;  %v21966_v8 = vshrl.u32 %v20128_v2, 16  ;;  %v7896_v21 = vld [vmem:[#allocation3 + $0x90] sm:$0x7]  ;;  %v10993_v14 = vld [vmem:[#allocation3 + $0x18] sm:$0xff] }
 0x9d5   : > { %v10063_v10 = vrot.slane %v21965_v5, 5  ;;  %v21967_v13 = vshll.u32 %v20128_v2, 16  ;;  %v20319_v56 = vsel %vm4220_vm5, %v10028_v30, %v10037_v0  ;;  %14224 = vmatmul.mubr.bf16.gmra.mrb[24].mxu1 %v19865_v27  ;;  %v8321_v30 = vld [vmem:[#allocation3] sm:$0xf8]  ;;  %v11483_v5 = vshll.u32 %v10993_v14, 16 }
 0x9d6   : > { %v10069_v41 = vrot.slane %v21966_v8, 4  ;;  %v20321_v39 = vor.u32 %v10054_v22, %v10051_v47  ;;  %v20325_v15 = vsel %vm4220_vm5, %v10037_v0, %v10046_v18  ;;  %14227 = vmatprep.mubr.bf16.mxu1 %v19868_v55  ;;  %v8358_v27 = vshrl.u32 %v8321_v30, 16 }
 0x9d7   : > { %v10072_v9 = vrot.slane %v21967_v13, 5  ;;  %21969 = vst [vmem:[#allocation14_spill] sm:$0xff] %v20325_v15  ;;  %v10064_v35 = vor.u32 %v10063_v10, %v10060_v1  ;;  %v8361_v10 = vshll.u32 %v8321_v30, 16  ;;  %v7968_v22 = vrot.slane %v7896_v21, 3  ;;  %v10995_v1 = vld [vmem:[#allocation3 + $0x28] sm:$0xff] }
 0x9d8   : > { %21968 = vst [vmem:[#allocation57_spill] sm:$0xff] %v20321_v39  ;;  %v20331_v8 = vsel %vm4220_vm5, %v10046_v18, %v20321_v39  ;;  %v8360_v47 = vrot.slane %v8358_v27, 3  ;;  %v11480_v18 = vshrl.u32 %v10993_v14, 16  ;;  %v10997_v27 = vld [vmem:[#allocation3 + $0x38] sm:$0xff]  ;;  %v11501_v14 = vshll.u32 %v10995_v1, 16 }
 0x9d9   : > { %v20327_v6 = vor.u32 %v10072_v9, %v10069_v41  ;;  %21971 = vst [vmem:[#allocation16_spill] sm:$0xff] %v20331_v8  ;;  %v20336_v61 = vsel %vm4220_vm5, %v20321_v39, %v10064_v35  ;;  %v8363_v0 = vrot.slane %v8361_v10, 4 }
 0x9da   : > { %21972 = vst [vmem:[#allocation19_spill] sm:$0xff] %v20336_v61  ;;  %v11482_v10 = vrot.slane %v11480_v18, 5  ;;  %v11516_v61 = vshrl.u32 %v10997_v27, 16 }
 0x9db   : > { %21970 = vst [vmem:[#allocation17_spill] sm:$0xff] %v20327_v6  ;;  %v20340_v13 = vsel %vm4220_vm5, %v10064_v35, %v20327_v6  ;;  %v8364_v55 = vor.u32 %v8363_v0, %v8360_v47  ;;  %v11485_v47 = vrot.slane %v11483_v5, 6  ;;  %v10999_v6 = vld [vmem:[#allocation3 + $0x48] sm:$0xff] }
 0x9dc   : > { %21973 = vst [vmem:[#allocation59_spill] sm:$0xff] %v20340_v13  ;;  %v11503_v13 = vrot.slane %v11501_v14, 6  ;;  %v11518_v8 = vrot.slane %v11516_v61, 5  ;;  %v11534_v14 = vshrl.u32 %v10999_v6, 16 }
 0x9dd   : > { %14228 = vmatmul.mubr.bf16.gmra.mrb[28].mxu1 %v19871_v59  ;;  %v20349_v59 = vld [vmem:[#allocation3 + $0x88] sm:$0xff] }
 0x9de   : > { %14231 = vmatprep.mubr.bf16.mxu1 %v19875_v17  ;;  %v10994_v17 = vld [vmem:[#allocation3 + $0x20] sm:$0xff] }
 0x9df   : > { %v11489_v35 = vshrl.u32 %v10994_v17, 16  ;;  %v11492_v0 = vshll.u32 %v10994_v17, 16 }
 0x9e1   : > { %v11491_v21 = vrot.slane %v11489_v35, 5  ;;  %v11494_v9 = vrot.slane %v11492_v0, 6  ;;  %v11000_v35 = vld [vmem:[#allocation3 + $0x50] sm:$0xff] }
 0x9e3   : > { %v11495_v17 = vor.u32 %v11494_v9, %v11491_v21  ;;  %v11002_v9 = vld [vmem:[#allocation3 + $0x60] sm:$0xff] }
 0x9e5   : > { %14232 = vmatmul.mubr.bf16.gmra.mrb[32].mxu1 %v19882_v53  ;;  %v10996_v53 = vld [vmem:[#allocation3 + $0x30] sm:$0xff] }
 0x9e6   : > { %14235 = vmatprep.mubr.bf16.mxu1 %v19889_v26  ;;  %v21974_v26 = vrot.slane %v19684_v16, 3  ;;  %v11498_v16 = vshrl.u32 %v10995_v1, 16  ;;  %v11510_v39 = vshll.u32 %v10996_v53, 16 }
 0x9e8   : > { %v7969_v41 = vsel %vm2237_vm3, %v21974_v26, %v7968_v22  ;;  %v11507_v22 = vshrl.u32 %v10996_v53, 16  ;;  %v11512_v5 = vrot.slane %v11510_v39, 6  ;;  %v11001_v53 = vld [vmem:[#allocation3 + $0x58] sm:$0xff] }
 0x9e9   : > { %v11552_v18 = vshrl.u32 %v11001_v53, 16 }
 0x9ea   : > { %v11509_v30 = vrot.slane %v11507_v22, 5 }
 0x9ec   : > { %v11513_v0 = vor.u32 %v11512_v5, %v11509_v30  ;;  %v11003_v30 = vld [vmem:[#allocation3 + $0x68] sm:$0xff] }
 0x9ed   : > { %14236 = vmatmul.mubr.bf16.gmra.mrb[36].mxu1 %v19892_v38  ;;  %v8373_v38 = vsel %vm2662_vm4, %v8364_v55, %v19903_v46  ;;  %v10998_v46 = vld [vmem:[#allocation3 + $0x40] sm:$0xff]  ;;  %v20361_v55 = vor.u32 %v11485_v47, %v11482_v10 }
 0x9ee   : > { %14239 = vmatprep.mubr.bf16.mxu1 %v19897_v51  ;;  %v20357_v51 = vld [vmem:[#allocation3 + $0x98] sm:$0xff]  ;;  %v11525_v15 = vshrl.u32 %v10998_v46, 16  ;;  %v11528_v26 = vshll.u32 %v10998_v46, 16  ;;  %v15533_v10 = vld [vmem:[%s21106_s13 + $0xc8] sm:$0xff]   ;;  %v11536_v46 = vrot.slane %v11534_v14, 5  ;;  %v11554_v14 = vrot.slane %v11552_v18, 5 }
 0x9ef   : > { %v20369_v47 = vsel %vm5779_vm6, %v20361_v55, %v11495_v17 }
 0x9f0   : > { %v11530_v61 = vrot.slane %v11528_v26, 6  ;;  %v11555_v26 = vshll.u32 %v11001_v53, 16  ;;  %v15535_v53 = vld [vmem:[%s21106_s13 + $0xd8] sm:$0xff]  }
 0x9f5   : > { %14240 = vmatmul.mubr.bf16.gmra.mrb[40].mxu1 %v7969_v41  ;;  %v11500_v41 = vrot.slane %v11498_v16, 5 }
 0x9f6   : > { %14259 = vmatprep.mubr.bf16.mxu1 %v8373_v38  ;;  %v11519_v38 = vshll.u32 %v10997_v27, 16  ;;  %v11537_v27 = vshll.u32 %v10999_v6, 16 }
 0x9f7   : > { %v11504_v1 = vor.u32 %v11503_v13, %v11500_v41  ;;  %v11527_v13 = vrot.slane %v11525_v15, 5  ;;  %v11543_v41 = vshrl.u32 %v11000_v35, 16  ;;  %v11004_v15 = vld [vmem:[#allocation3 + $0x70] sm:$0xff] }
 0x9f8   : > { %v11521_v16 = vrot.slane %v11519_v38, 6  ;;  %v11539_v38 = vrot.slane %v11537_v27, 6  ;;  %v11564_v27 = vshll.u32 %v11002_v9, 16 }
 0x9f9   : > { %v20372_v39 = vsel %vm5779_vm6, %v11495_v17, %v11504_v1  ;;  %v20376_v21 = vsel %vm5779_vm6, %v11504_v1, %v11513_v0  ;;  %v11531_v5 = vor.u32 %v11530_v61, %v11527_v13  ;;  %v11546_v17 = vshll.u32 %v11000_v35, 16  ;;  %v11005_v35 = vld [vmem:[#allocation3 + $0x78] sm:$0xff] }
 0x9fa   : > { %21975 = vst [vmem:[#allocation18_spill] sm:$0xff] %v20372_v39  ;;  %21976 = vst [vmem:[#allocation60_spill] sm:$0xff] %v20376_v21  ;;  %v11522_v22 = vor.u32 %v11521_v16, %v11518_v8  ;;  %v11545_v8 = vrot.slane %v11543_v41, 5  ;;  %v11561_v1 = vshrl.u32 %v11002_v9, 16  ;;  %v11557_v13 = vrot.slane %v11555_v26, 6 }
 0x9fb   : > { %v11548_v16 = vrot.slane %v11546_v17, 6  ;;  %v11570_v21 = vshrl.u32 %v11003_v30, 16  ;;  %v11579_v41 = vshrl.u32 %v11004_v15, 16  ;;  %v11566_v18 = vrot.slane %v11564_v27, 6 }
 0x9fc   : > { %v20384_v6 = vsel %vm5779_vm6, %v11513_v0, %v11522_v22  ;;  %v11563_v61 = vrot.slane %v11561_v1, 5  ;;  %v11582_v17 = vshll.u32 %v11004_v15, 16 }
 0x9fd   : > { %14260 = vmatmul.mubr.bf16.vlgmr.msra.gmra.mrb[8].mxu1 %v19932_v50  ;;  %v15534_v50 = vld [vmem:[%s21106_s13 + $0xd0] sm:$0xff]   ;;  %21977 = vst [vmem:[#allocation21_spill] sm:$0xff] %v20384_v6  ;;  %v11549_v0 = vor.u32 %v11548_v16, %v11545_v8  ;;  %v11573_v6 = vshll.u32 %v11003_v30, 16  ;;  %v11581_v26 = vrot.slane %v11579_v41, 5  ;;  %v11591_v16 = vshll.u32 %v11005_v35, 16 }
 0x9fe   : > { %14296 = vmatpush3.bf16.msra.mxu1 %v20293_v42  ;;  %14263 = vmatprep.mubr.bf16.mxu1 %v19939_v3  ;;  %v20387_v42 = vsel %vm5779_vm6, %v11522_v22, %v11531_v5  ;;  %v11540_v3 = vor.u32 %v11539_v38, %v11536_v46  ;;  %v11006_v22 = vld [vmem:[#allocation3 + $0x80] sm:$0xff]  ;;  %v11558_v46 = vor.u32 %v11557_v13, %v11554_v14  ;;  %v11572_v38 = vrot.slane %v11570_v21, 5  ;;  %v20403_v14 = vld [vmem:[#allocation3 + $0x90] sm:$0xff] }
 0x9ff   : > { %14297 = vmatprep.subr.bf16.mxu1 %v15533_v10  ;;  %v11567_v8 = vor.u32 %v11566_v18, %v11563_v61  ;;  %v11584_v1 = vrot.slane %v11582_v17, 6  ;;  %v11600_v13 = vshll.u32 %v11006_v22, 16  ;;  %v11593_v27 = vrot.slane %v11591_v16, 6 }
 0xa00   : > { %v20390_v39 = vsel %vm5779_vm6, %v11531_v5, %v11540_v3  ;;  %v20396_v9 = vsel %vm5779_vm6, %v11540_v3, %v11549_v0  ;;  %v11588_v5 = vshrl.u32 %v11005_v35, 16  ;;  %v20400_v30 = vsel %vm5779_vm6, %v11549_v0, %v11558_v46 }
 0xa01   : > { %v11597_v3 = vshrl.u32 %v11006_v22, 16  ;;  %v11585_v61 = vor.u32 %v11584_v1, %v11581_v26  ;;  %v21978_v35 = vshrl.u32 %v20349_v59, 16  ;;  %v11602_v41 = vrot.slane %v11600_v13, 6 }
 0xa02   : > { %14298 = vmatpush3.bf16.msra.mxu1 %v15533_v10  ;;  %v11575_v10 = vrot.slane %v11573_v6, 6  ;;  %v11590_v15 = vrot.slane %v11588_v5, 5  ;;  %v20409_v6 = vsel %vm5779_vm6, %v11558_v46, %v11567_v8  ;;  %v21979_v22 = vshll.u32 %v20349_v59, 16 }
 0xa03   : > { %14299 = vmatprep.subr.bf16.mxu1 %v15534_v50  ;;  %v11599_v0 = vrot.slane %v11597_v3, 5  ;;  %v11615_v46 = vshrl.u32 %v20403_v14, 16  ;;  %v21980_v1 = vshrl.u32 %v20357_v51, 16  ;;  %v21981_v16 = vshll.u32 %v20357_v51, 16 }
 0xa04   : > { %v11576_v21 = vor.u32 %v11575_v10, %v11572_v38  ;;  %v11611_v18 = vrot.slane %v21979_v22, 6  ;;  %v11594_v17 = vor.u32 %v11593_v27, %v11590_v15  ;;  %v11618_v10 = vshll.u32 %v20403_v14, 16 }
 0xa05   : > { %14264 = vmatmul.mubr.bf16.gmra.mrb[12].mxu1 %v19942_v20  ;;  %v15536_v20 = vld [vmem:[%s21106_s13 + $0xe0] sm:$0xff]   ;;  %v11603_v26 = vor.u32 %v11602_v41, %v11599_v0  ;;  %v11629_v3 = vrot.slane %v21981_v16, 6  ;;  %v11617_v13 = vrot.slane %v11615_v46, 5  ;;  %v8878_v46 = vld [vmem:[#allocation3 + $0x8] sm:$0xf8]  ;;  %v21985_v16 = vshrl.u32 %v20040_v54, 16 }
 0xa06   : > { %14267 = vmatprep.mubr.bf16.mxu1 %v19947_v25  ;;  %14300 = vmatpush3.bf16.msra.mxu1 %v15534_v50  ;;  %v11608_v25 = vrot.slane %v21978_v35, 5  ;;  %v20414_v50 = vsel %vm5779_vm6, %v11567_v8, %v11576_v21  ;;  %v20419_v38 = vsel %vm5779_vm6, %v11576_v21, %v11585_v61  ;;  %v11626_v8 = vrot.slane %v21980_v1, 5  ;;  %v15537_v21 = vld [vmem:[%s21106_s13 + $0xe8] sm:$0xff]  }
 0xa07   : > { %14301 = vmatprep.subr.bf16.mxu1 %v15535_v53  ;;  %v20431_v15 = vsel %vm5779_vm6, %v11585_v61, %v11594_v17  ;;  %v11620_v27 = vrot.slane %v11618_v10, 6  ;;  %v15538_v61 = vld [vmem:[%s21106_s13 + $0xf0] sm:$0xff]  }
 0xa08   : > { %v11612_v5 = vor.u32 %v11611_v18, %v11608_v25  ;;  %v20439_v25 = vor.u32 %v11629_v3, %v11626_v8  ;;  %v8925_v3 = vrot.slane %v21985_v16, 3 }
 0xa09   : > { %v11621_v0 = vor.u32 %v11620_v27, %v11617_v13 }
 0xa0a   : > { %14302 = vmatpush3.bf16.msra.mxu1 %v15535_v53  ;;  %v20434_v53 = vsel %vm5779_vm6, %v11594_v17, %v11603_v26  ;;  %v20437_v35 = vsel %vm5779_vm6, %v11603_v26, %v11612_v5  ;;  %v8339_v17 = vld [vmem:[#allocation3 + $0x90] sm:$0xf]  ;;  %v8915_v26 = vshrl.u32 %v8878_v46, 16 }
 0xa0b   : > { %14303 = vmatprep.subr.bf16.mxu1 %v15536_v20  ;;  %v20447_v41 = vsel %vm5779_vm6, %v11612_v5, %v11621_v0  ;;  %v20451_v22 = vsel %vm5779_vm6, %v11621_v0, %v20439_v25  ;;  %v8519_v10 = vshrl.u32 %v8339_v17, 16 }
 0xa0c   : > { %v8917_v1 = vrot.slane %v8915_v26, 3 }
 0xa0d   : > { %14268 = vmatmul.mubr.bf16.gmra.mrb[16].mxu1 %v19954_v58  ;;  %v15539_v58 = vld [vmem:[%s21106_s13 + $0xf8] sm:$0xff]   ;;  %v8521_v5 = vrot.slane %v8519_v10, 3 }
 0xa0e   : > { %14271 = vmatprep.mubr.bf16.mxu1 %v19961_v49  ;;  %14304 = vmatpush3.bf16.msra.mxu1 %v15536_v20  ;;  %v15540_v49 = vld [vmem:[%s21106_s13 + $0x100] sm:$0xff]   ;;  %v21983_v20 = vshll.u32 %v20038_v33, 16 }
 0xa0f   : > { %14305 = vmatprep.subr.bf16.mxu1 %v15537_v21 }
 0xa10   : > { %v8515_v18 = vrot.slane %v21983_v20, 4 }
 0xa12   : > { %14306 = vmatpush3.bf16.msra.mxu1 %v15537_v21 }
 0xa13   : > { %14307 = vmatprep.subr.bf16.mxu1 %v15538_v61 }
 0xa15   : > { %14272 = vmatmul.mubr.bf16.gmra.mrb[20].mxu1 %v19968_v23  ;;  %v21982_v23 = vshrl.u32 %v20038_v33, 16 }
 0xa16   : > { %14275 = vmatprep.mubr.bf16.mxu1 %v19976_v32  ;;  %14308 = vmatpush3.bf16.msra.mxu1 %v15538_v61 }
 0xa17   : > { %14309 = vmatprep.subr.bf16.mxu1 %v15539_v58  ;;  %v8512_v32 = vrot.slane %v21982_v23, 3  ;;  %v21988_v23 = vshll.u32 %v20042_v37, 16 }
 0xa1a   : > { %14310 = vmatpush3.bf16.msra.mxu1 %v15539_v58 }
 0xa1b   : > { %14347 = vmatprep.subr.bf16.mxu1 %v15540_v49 }
 0xa1d   : > { %14276 = vmatmul.mubr.bf16.gmra.mrb[24].mxu1 %v19983_v40  ;;  %v8522_v40 = vshll.u32 %v8339_v17, 16 }
 0xa1e   : > { %14279 = vmatprep.mubr.bf16.mxu1 %v19990_v29  ;;  %v20471_v29 = vor.u32 %v8515_v18, %v8512_v32  ;;  %v8937_v32 = vrot.slane %v21988_v23, 4  ;;  %v21989_v18 = vshrl.u32 %v20044_v43, 16 }
 0xa20   : > { %v8943_v17 = vrot.slane %v21989_v18, 3 }
 0xa25   : > { %14280 = vmatmul.mubr.bf16.gmra.mrb[28].mxu1 %v19997_v63  ;;  %v8918_v63 = vshll.u32 %v8878_v46, 16  ;;  %v21990_v46 = vshll.u32 %v20044_v43, 16  ;;  %v21993_v43 = vld [vmem:[#allocation83_spill] sm:$0xff] }
 0xa26   : > { %14283 = vmatprep.mubr.bf16.mxu1 %v20007_v4  ;;  %v8524_v4 = vrot.slane %v8522_v40, 4 }
 0xa27   : > { %v8920_v8 = vrot.slane %v8918_v63, 4  ;;  %v8946_v10 = vrot.slane %v21990_v46, 4  ;;  %v15541_v63 = vld [vmem:[%s21106_s13 + $0x108] sm:$0xff]  }
 0xa28   : > { %v8525_v13 = vor.u32 %v8524_v4, %v8521_v5 }
 0xa29   : > { %v8921_v27 = vor.u32 %v8920_v8, %v8917_v1  ;;  %v8947_v26 = vor.u32 %v8946_v10, %v8943_v17  ;;  %v21992_v1 = vshll.u32 %v20046_v52, 16  ;;  %v21994_v8 = vshrl.u32 %v21993_v43, 16  ;;  %v15544_v10 = vld [vmem:[%s21106_s13 + $0x120] sm:$0xff]  }
 0xa2a   : > { %v8526_v61 = vsel %vm2662_vm4, %v20471_v29, %v8525_v13  ;;  %v22000_v17 = vshll.u32 %v20061_v60, 16 }
 0xa2b   : > { %v8961_v16 = vrot.slane %v21994_v8, 3  ;;  %v22004_v8 = vshll.u32 %v20069_v48, 16 }
 0xa2c   : > { %v8982_v46 = vrot.slane %v22000_v17, 4  ;;  %v22009_v17 = vshrl.u32 %v20084_v24, 16 }
 0xa2d   : > { %14284 = vmatmul.mubr.bf16.gmra.mrb[32].mxu1 %v20010_v57  ;;  %v21984_v57 = vld [vmem:[#allocation81_spill] sm:$0xff] }
 0xa2e   : > { %14287 = vmatprep.mubr.bf16.mxu1 %v20015_v11  ;;  %v8517_v33 = vsel %vm2662_vm4, %v21984_v57, %v20471_v29  ;;  %v21986_v11 = vshll.u32 %v20040_v54, 16  ;;  %v8955_v57 = vrot.slane %v21992_v1, 4 }
 0xa30   : > { %v8928_v21 = vrot.slane %v21986_v11, 4 }
 0xa32   : > { %v8929_v0 = vor.u32 %v8928_v21, %v8925_v3  ;;  %v21995_v3 = vshll.u32 %v21993_v43, 16  ;;  %v15542_v21 = vld [vmem:[%s21106_s13 + $0x110] sm:$0xff]  }
 0xa34   : > { %v8930_v20 = vsel %vm2662_vm4, %v8921_v27, %v8929_v0  ;;  %v8964_v11 = vrot.slane %v21995_v3, 4  ;;  %v15546_v3 = vld [vmem:[%s21106_s13 + $0x130] sm:$0xff]  }
 0xa35   : > { %14288 = vmatmul.mubr.bf16.gmra.mrb[36].mxu1 %v20026_v12  ;;  %v21987_v12 = vshrl.u32 %v20042_v37, 16  ;;  %v21991_v37 = vshrl.u32 %v20046_v52, 16  ;;  %v15543_v52 = vld [vmem:[%s21106_s13 + $0x118] sm:$0xff]  }
 0xa36   : > { %14291 = vmatprep.mubr.bf16.mxu1 %v8517_v33  ;;  %v8965_v27 = vor.u32 %v8964_v11, %v8961_v16  ;;  %v9000_v16 = vrot.slane %v22004_v8, 4 }
 0xa37   : > { %v8934_v58 = vrot.slane %v21987_v12, 3  ;;  %v8952_v4 = vrot.slane %v21991_v37, 3 }
 0xa39   : > { %v8938_v40 = vor.u32 %v8937_v32, %v8934_v58  ;;  %v8956_v13 = vor.u32 %v8955_v57, %v8952_v4  ;;  %v22002_v4 = vshll.u32 %v20067_v7, 16 }
 0xa3b   : > { %v8939_v5 = vsel %vm2662_vm4, %v8929_v0, %v8938_v40  ;;  %v8948_v33 = vsel %vm2662_vm4, %v8938_v40, %v8947_v26  ;;  %v8957_v0 = vsel %vm2662_vm4, %v8947_v26, %v8956_v13  ;;  %v8966_v32 = vsel %vm2662_vm4, %v8956_v13, %v8965_v27 }
 0xa3c   : > { %v8991_v1 = vrot.slane %v22002_v4, 4 }
 0xa3d   : > { %14292 = vmatmul.mubr.bf16.gmra.mrb[40].mxu1 %v8526_v61  ;;  %v21996_v61 = vld [vmem:[#allocation84_spill] sm:$0xff] }
 0xa3e   : > { %14311 = vmatprep.mubr.bf16.mxu1 %v8930_v20  ;;  %v21997_v12 = vshrl.u32 %v21996_v61, 16  ;;  %v21999_v20 = vshrl.u32 %v20061_v60, 16  ;;  %v22001_v60 = vshrl.u32 %v20067_v7, 16  ;;  %v15547_v7 = vld [vmem:[%s21106_s13 + $0x138] sm:$0xff]  }
 0xa40   : > { %v8970_v58 = vrot.slane %v21997_v12, 3  ;;  %v8979_v18 = vrot.slane %v21999_v20, 3  ;;  %v8988_v37 = vrot.slane %v22001_v60, 3  ;;  %v22007_v12 = vshrl.u32 %v20078_v44, 16 }
 0xa42   : > { %v8983_v26 = vor.u32 %v8982_v46, %v8979_v18  ;;  %v8992_v11 = vor.u32 %v8991_v1, %v8988_v37  ;;  %v9024_v46 = vrot.slane %v22009_v17, 3 }
 0xa44   : > { %v8993_v13 = vsel %vm2662_vm4, %v8983_v26, %v8992_v11 }
 0xa45   : > { %14312 = vmatmul.mubr.bf16.vlgmr.msra.gmra.mrb[8].mxu1 %v8939_v5 }
 0xa46   : > { %14348 = vmatpush3.bf16.msra.mxu1 %v15540_v49  ;;  %14315 = vmatprep.mubr.bf16.mxu1 %v8948_v33  ;;  %v21998_v49 = vshll.u32 %v21996_v61, 16  ;;  %v22003_v33 = vshrl.u32 %v20069_v48, 16  ;;  %v22005_v48 = vshrl.u32 %v20076_v31, 16 }
 0xa47   : > { %14349 = vmatprep.subr.bf16.mxu1 %v15541_v63 }
 0xa48   : > { %v8973_v23 = vrot.slane %v21998_v49, 4  ;;  %v8997_v43 = vrot.slane %v22003_v33, 3  ;;  %v22008_v49 = vshll.u32 %v20078_v44, 16 }
 0xa4a   : > { %14350 = vmatpush3.bf16.msra.mxu1 %v15541_v63  ;;  %v8974_v40 = vor.u32 %v8973_v23, %v8970_v58  ;;  %v15545_v63 = vld [vmem:[%s21106_s13 + $0x128] sm:$0xff]   ;;  %v9015_v58 = vrot.slane %v22007_v12, 3  ;;  %v9018_v23 = vrot.slane %v22008_v49, 4 }
 0xa4b   : > { %14351 = vmatprep.subr.bf16.mxu1 %v15542_v21 }
 0xa4c   : > { %v8975_v5 = vsel %vm2662_vm4, %v8965_v27, %v8974_v40  ;;  %v8984_v57 = vsel %vm2662_vm4, %v8974_v40, %v8983_v26  ;;  %v9006_v27 = vrot.slane %v22005_v48, 3  ;;  %v9019_v18 = vor.u32 %v9018_v23, %v9015_v58 }
 0xa4d   : > { %14316 = vmatmul.mubr.bf16.gmra.mrb[12].mxu1 %v8957_v0  ;;  %v22011_v26 = vshrl.u32 %v20115_v45, 16 }
 0xa4e   : > { %14319 = vmatprep.mubr.bf16.mxu1 %v8966_v32  ;;  %14352 = vmatpush3.bf16.msra.mxu1 %v15542_v21  ;;  %v9001_v21 = vor.u32 %v9000_v16, %v8997_v43  ;;  %v15548_v32 = vld [vmem:[%s21106_s13 + $0x140] sm:$0xff]   ;;  %v22015_v16 = vshrl.u32 %v20119_v62, 16 }
 0xa4f   : > { %14353 = vmatprep.subr.bf16.mxu1 %v15543_v52 }
 0xa50   : > { %v9002_v61 = vsel %vm2662_vm4, %v8992_v11, %v9001_v21 }
 0xa52   : > { %14354 = vmatpush3.bf16.msra.mxu1 %v15543_v52  ;;  %v22006_v52 = vshll.u32 %v20076_v31, 16 }
 0xa53   : > { %14355 = vmatprep.subr.bf16.mxu1 %v15544_v10 }
 0xa54   : > { %v9009_v0 = vrot.slane %v22006_v52, 4  ;;  %v22018_v52 = vshll.u32 %v20128_v2, 16 }
 0xa55   : > { %14320 = vmatmul.mubr.bf16.gmra.mrb[16].mxu1 %v8975_v5  ;;  %v22012_v5 = vshll.u32 %v20115_v45, 16  ;;  %v22016_v45 = vshll.u32 %v20119_v62, 16 }
 0xa56   : > { %14323 = vmatprep.mubr.bf16.mxu1 %v8984_v57  ;;  %14356 = vmatpush3.bf16.msra.mxu1 %v15544_v10  ;;  %v9010_v20 = vor.u32 %v9009_v0, %v9006_v27  ;;  %v22010_v10 = vshll.u32 %v20084_v24, 16  ;;  %v22013_v57 = vshrl.u32 %v20117_v19, 16  ;;  %v22014_v24 = vshll.u32 %v20117_v19, 16 }
 0xa57   : > { %14357 = vmatprep.subr.bf16.mxu1 %v15545_v63  ;;  %v9036_v60 = vrot.slane %v22012_v5, 4  ;;  %v9054_v11 = vrot.slane %v22016_v45, 4  ;;  %v22017_v19 = vshrl.u32 %v20128_v2, 16  ;;  %v9072_v0 = vrot.slane %v22018_v52, 4  ;;  %v15550_v5 = vld [vmem:[%s21106_s13 + $0x150] sm:$0xff]   ;;  %v22029_v45 = vld [vmem:[#allocation13_spill] sm:$0xff] }
 0xa58   : > { %v9011_v31 = vsel %vm2662_vm4, %v9001_v21, %v9010_v20  ;;  %v9027_v44 = vrot.slane %v22010_v10, 4  ;;  %v9020_v40 = vsel %vm2662_vm4, %v9010_v20, %v9019_v18  ;;  %v9042_v33 = vrot.slane %v22013_v57, 3  ;;  %v22025_v57 = vld [vmem:[#allocation6_spill] sm:$0xff] }
 0xa59   : > { %v9045_v43 = vrot.slane %v22014_v24, 4  ;;  %v9069_v27 = vrot.slane %v22017_v19, 3  ;;  %v15555_v24 = vld [vmem:[%s21106_s13 + $0x178] sm:$0xff]   ;;  %v22034_v52 = vld [vmem:[#allocation34_spill] sm:$0xff] }
 0xa5a   : > { %14358 = vmatpush3.bf16.msra.mxu1 %v15545_v63  ;;  %v9033_v63 = vrot.slane %v22011_v26, 3  ;;  %v9028_v37 = vor.u32 %v9027_v44, %v9024_v46  ;;  %v22019_v44 = vrot.slane %v20040_v54, 4  ;;  %v15549_v26 = vld [vmem:[%s21106_s13 + $0x148] sm:$0xff]   ;;  %v15551_v54 = vld [vmem:[%s21106_s13 + $0x158] sm:$0xff]  }
 0xa5b   : > { %14359 = vmatprep.subr.bf16.mxu1 %v15546_v3  ;;  %v9046_v21 = vor.u32 %v9045_v43, %v9042_v33  ;;  %v9073_v62 = vor.u32 %v9072_v0, %v9069_v27  ;;  %v15554_v33 = vld [vmem:[%s21106_s13 + $0x170] sm:$0xff]   ;;  %v22026_v43 = vld [vmem:[#allocation8_spill] sm:$0xff] }
 0xa5c   : > { %v9037_v4 = vor.u32 %v9036_v60, %v9033_v63  ;;  %v9029_v1 = vsel %vm2662_vm4, %v9019_v18, %v9028_v37  ;;  %v22020_v63 = vld [vmem:[#allocation85_spill] sm:$0xff]  ;;  %v22022_v60 = vld [vmem:[#allocation54_spill] sm:$0xff]  ;;  %v9453_v0 = vld [vmem:[#allocation3 + $0x98] sm:$0xf] }
 0xa5d   : > { %14324 = vmatmul.mubr.bf16.gmra.mrb[20].mxu1 %v8993_v13  ;;  %v9074_v18 = vsel %vm2662_vm4, %v20471_v29, %v9073_v62 }
 0xa5e   : > { %14327 = vmatprep.mubr.bf16.mxu1 %v9002_v61  ;;  %14360 = vmatpush3.bf16.msra.mxu1 %v15546_v3  ;;  %v9038_v8 = vsel %vm2662_vm4, %v9028_v37, %v9037_v4  ;;  %v9051_v3 = vrot.slane %v22015_v16, 3  ;;  %v9047_v13 = vsel %vm2662_vm4, %v9037_v4, %v9046_v21  ;;  %v8896_v61 = vld [vmem:[#allocation3 + $0x98] sm:$0xf]  ;;  %v22023_v37 = vld [vmem:[#allocation7_spill] sm:$0xff]  ;;  %v15553_v4 = vld [vmem:[%s21106_s13 + $0x168] sm:$0xff]  }
 0xa5f   : > { %14361 = vmatprep.subr.bf16.mxu1 %v15547_v7  ;;  %v9076_v12 = vshrl.u32 %v8896_v61, 16  ;;  %v9079_v58 = vshll.u32 %v8896_v61, 16  ;;  %v15556_v16 = vld [vmem:[%s21106_s13 + $0x180] sm:$0xff]  }
 0xa61   : > { %v9078_v23 = vrot.slane %v9076_v12, 3  ;;  %v9081_v20 = vrot.slane %v9079_v58, 4  ;;  %v22035_v58 = vld [vmem:[#allocation35_spill] sm:$0xff] }
 0xa62   : > { %14362 = vmatpush3.bf16.msra.mxu1 %v15547_v7  ;;  %v9055_v7 = vor.u32 %v9054_v11, %v9051_v3  ;;  %v22028_v3 = vld [vmem:[#allocation10_spill] sm:$0xff]  ;;  %v22030_v11 = vld [vmem:[#allocation12_spill] sm:$0xff] }
 0xa63   : > { %14399 = vmatprep.subr.bf16.mxu1 %v15548_v32  ;;  %v9082_v17 = vor.u32 %v9081_v20, %v9078_v23  ;;  %v22036_v23 = vrot.slane %v20128_v2, 4  ;;  %v15558_v2 = vld [vmem:[%s21106_s13 + $0x190] sm:$0xff]  }
 0xa64   : > { %v9056_v48 = vsel %vm2662_vm4, %v9046_v21, %v9055_v7  ;;  %v9065_v49 = vsel %vm2662_vm4, %v9055_v7, %v20471_v29  ;;  %v22021_v29 = vld [vmem:[#allocation86_spill] sm:$0xff]  ;;  %v22031_v21 = vld [vmem:[#allocation15_spill] sm:$0xff] }
 0xa65   : > { %14328 = vmatmul.mubr.bf16.gmra.mrb[24].mxu1 %v9011_v31  ;;  %v9435_v31 = vld [vmem:[#allocation3 + $0x8] sm:$0xf0]  ;;  %v9083_v10 = vsel %vm2662_vm4, %v9073_v62, %v9082_v17  ;;  %v22032_v7 = vld [vmem:[#allocation31_spill] sm:$0xff]  ;;  %v9525_v62 = vrot.slane %v9453_v0, 4  ;;  %v15557_v17 = vld [vmem:[%s21106_s13 + $0x188] sm:$0xff]  }
 0xa66   : > { %14331 = vmatprep.mubr.bf16.mxu1 %v9020_v40  ;;  %v9490_v46 = vrot.slane %v9435_v31, 4  ;;  %v12079_v0 = vld [vmem:[%s21108_s15 + $0x40] sm:$0xff] }
 0xa67   : > { %v9526_v20 = vsel %vm1623_vm1, %v22036_v23, %v9525_v62 }
 0xa68   : > { %v9492_v40 = vsel %vm1623_vm1, %v9490_v46, %v22019_v44  ;;  %v22038_v46 = vld [vmem:[#allocation42_spill] sm:$0xff]  ;;  %v15559_v44 = vld [vmem:[%s21106_s13 + $0x198] sm:$0xff]  }
 0xa6d   : > { %14332 = vmatmul.mubr.bf16.gmra.mrb[28].mxu1 %v9029_v1  ;;  %v22024_v1 = vld [vmem:[#allocation9_spill] sm:$0xff] }
 0xa6e   : > { %14335 = vmatprep.mubr.bf16.mxu1 %v9038_v8  ;;  %v22027_v8 = vld [vmem:[#allocation11_spill] sm:$0xff] }
 0xa75   : > { %14336 = vmatmul.mubr.bf16.gmra.mrb[32].mxu1 %v9047_v13  ;;  %v22033_v13 = vld [vmem:[#allocation30_spill] sm:$0xff] }
 0xa76   : > { %14339 = vmatprep.mubr.bf16.mxu1 %v9056_v48  ;;  %v9878_v48 = vld [vmem:[#allocation3 + $0x8] sm:$0xf0] }
 0xa77   : > { %v9915_v19 = vshrl.u32 %v9878_v48, 16  ;;  %v9918_v27 = vshll.u32 %v9878_v48, 16  ;;  %v22046_v48 = vld [vmem:[#allocation14_spill] sm:$0xff] }
 0xa79   : > { %v9917_v61 = vrot.slane %v9915_v19, 4  ;;  %v9920_v12 = vrot.slane %v9918_v27, 5  ;;  %v9896_v19 = vld [vmem:[#allocation3 + $0x98] sm:$0x1f] }
 0xa7a   : > { %v22047_v27 = vld [vmem:[#allocation16_spill] sm:$0xff]  ;;  %v10079_v62 = vshll.u32 %v9896_v19, 16 }
 0xa7d   : > { %14340 = vmatmul.mubr.bf16.gmra.mrb[36].mxu1 %v9065_v49  ;;  %v9921_v49 = vor.u32 %v9920_v12, %v9917_v61  ;;  %v12080_v61 = vld [vmem:[%s21108_s15 + $0x48] sm:$0xff] }
 0xa7e   : > { %14343 = vmatprep.mubr.bf16.mxu1 %v9074_v18  ;;  %v22037_v18 = vld [vmem:[#allocation39_spill] sm:$0xff]  ;;  %v14829_v12 = vpack.c.bf16 %v12080_v61, %v12079_v0  ;;  %v15891_v0 = vld [vmem:[%s16238_s0 + $0x20] sm:$0xff]  ;;  %v15570_v61 = vld [vmem:[%s21106_s13 + $0x1f0] sm:$0xff]  }
 0xa7f   : > { %v9930_v31 = vsel %vm4220_vm5, %v9921_v49, %v22037_v18  ;;  %v10081_v18 = vrot.slane %v10079_v62, 5  ;;  %v15895_v62 = vld [vmem:[%s16238_s0 + $0x40] sm:$0xff] }
 0xa85   : > { %14344 = vmatmul.mubr.bf16.gmra.mrb[40].mxu1 %v9083_v10  ;;  %v22039_v10 = vld [vmem:[#allocation43_spill] sm:$0xff] }
 0xa86   : > { %14363 = vmatprep.mubr.bf16.mxu1 %v9492_v40  ;;  %v22040_v40 = vld [vmem:[#allocation47_spill] sm:$0xff] }
 0xa8d   : > { %14364 = vmatmul.mubr.bf16.vlgmr.msra.gmra.mrb[8].mxu1 %v22020_v63  ;;  %v12071_v63 = vld [vmem:[%s21108_s15] sm:$0xff] }
 0xa8e   : > { %14400 = vmatpush3.bf16.msra.mxu1 %v15548_v32  ;;  %14367 = vmatprep.mubr.bf16.mxu1 %v22021_v29  ;;  %v15552_v32 = vld [vmem:[%s21106_s13 + $0x160] sm:$0xff]   ;;  %v12072_v29 = vld [vmem:[%s21108_s15 + $0x8] sm:$0xff] }
 0xa8f   : > { %14401 = vmatprep.subr.bf16.mxu1 %v15549_v26 }
 0xa92   : > { %14402 = vmatpush3.bf16.msra.mxu1 %v15549_v26  ;;  %v22041_v26 = vld [vmem:[#allocation46_spill] sm:$0xff] }
 0xa93   : > { %14403 = vmatprep.subr.bf16.mxu1 %v15550_v5 }
 0xa95   : > { %14368 = vmatmul.mubr.bf16.gmra.mrb[12].mxu1 %v22022_v60  ;;  %v15561_v60 = vld [vmem:[%s21106_s13 + $0x1a8] sm:$0xff]  }
 0xa96   : > { %14371 = vmatprep.mubr.bf16.mxu1 %v22023_v37  ;;  %14404 = vmatpush3.bf16.msra.mxu1 %v15550_v5  ;;  %v15560_v5 = vld [vmem:[%s21106_s13 + $0x1a0] sm:$0xff]   ;;  %v22042_v37 = vld [vmem:[#allocation50_spill] sm:$0xff] }
 0xa97   : > { %14405 = vmatprep.subr.bf16.mxu1 %v15551_v54 }
 0xa9a   : > { %14406 = vmatpush3.bf16.msra.mxu1 %v15551_v54  ;;  %v14813_v54 = vpack.c.bf16 %v12072_v29, %v12071_v63  ;;  %v12082_v63 = vld [vmem:[%s21108_s15 + $0x58] sm:$0xff] }
 0xa9b   : > { %14407 = vmatprep.subr.bf16.mxu1 %v15552_v32 }
 0xa9c   : > { %14814 = vmatprep.subr.bf16.mxu0 %v14813_v54 }
 0xa9d   : > { %14372 = vmatmul.mubr.bf16.gmra.mrb[16].mxu1 %v22024_v1  ;;  %14816 = vmatpush3.bf16.msra.mxu0 %v14813_v54  ;;  %v15562_v1 = vld [vmem:[%s21106_s13 + $0x1b0] sm:$0xff]  }
 0xa9e   : > { %14375 = vmatprep.mubr.bf16.mxu1 %v22025_v57  ;;  %14408 = vmatpush3.bf16.msra.mxu1 %v15552_v32  ;;  %v12073_v32 = vld [vmem:[%s21108_s15 + $0x10] sm:$0xff] }
 0xa9f   : > { %14409 = vmatprep.subr.bf16.mxu1 %v15553_v4 }
 0xaa2   : > { %14410 = vmatpush3.bf16.msra.mxu1 %v15553_v4  ;;  %v12074_v4 = vld [vmem:[%s21108_s15 + $0x18] sm:$0xff] }
 0xaa3   : > { %14411 = vmatprep.subr.bf16.mxu1 %v15554_v33  ;;  %v14817_v57 = vpack.c.bf16 %v12074_v4, %v12073_v32  ;;  %v22051_v4 = vld [vmem:[#allocation38_spill] sm:$0xff] }
 0xaa5   : > { %14376 = vmatmul.mubr.bf16.gmra.mrb[20].mxu1 %v22026_v43  ;;  %14818 = vmatprep.subr.bf16.mxu0 %v14817_v57  ;;  %v12075_v43 = vld [vmem:[%s21108_s15 + $0x20] sm:$0xff] }
 0xaa6   : > { %14379 = vmatprep.mubr.bf16.mxu1 %v22027_v8  ;;  %14412 = vmatpush3.bf16.msra.mxu1 %v15554_v33  ;;  %v15563_v33 = vld [vmem:[%s21106_s13 + $0x1b8] sm:$0xff]   ;;  %v12076_v8 = vld [vmem:[%s21108_s15 + $0x28] sm:$0xff] }
 0xaa7   : > { %14413 = vmatprep.subr.bf16.mxu1 %v15555_v24  ;;  %14820 = vmatpush3.bf16.msra.mxu0 %v14817_v57  ;;  %v12083_v57 = vld [vmem:[%s21108_s15 + $0x60] sm:$0xff] }
 0xaaa   : > { %14414 = vmatpush3.bf16.msra.mxu1 %v15555_v24  ;;  %v22043_v24 = vld [vmem:[#allocation51_spill] sm:$0xff] }
 0xaab   : > { %14451 = vmatprep.subr.bf16.mxu1 %v15556_v16 }
 0xaad   : > { %14380 = vmatmul.mubr.bf16.gmra.mrb[24].mxu1 %v22028_v3  ;;  %v14821_v3 = vpack.c.bf16 %v12076_v8, %v12075_v43  ;;  %v15565_v8 = vld [vmem:[%s21106_s13 + $0x1c8] sm:$0xff]  }
 0xaae   : > { %14383 = vmatprep.mubr.bf16.mxu1 %v22029_v45  ;;  %v22044_v45 = vld [vmem:[#allocation55_spill] sm:$0xff] }
 0xaaf   : > { %14822 = vmatprep.subr.bf16.mxu0 %v14821_v3 }
 0xab0   : > { %14824 = vmatpush3.bf16.msra.mxu0 %v14821_v3  ;;  %v12085_v3 = vld [vmem:[%s21108_s15 + $0x70] sm:$0xff] }
 0xab5   : > { %14384 = vmatmul.mubr.bf16.gmra.mrb[28].mxu1 %v22030_v11  ;;  %v22045_v11 = vld [vmem:[#allocation56_spill] sm:$0xff] }
 0xab6   : > { %14387 = vmatprep.mubr.bf16.mxu1 %v22031_v21  ;;  %v12077_v21 = vld [vmem:[%s21108_s15 + $0x30] sm:$0xff] }
 0xabd   : > { %14388 = vmatmul.mubr.bf16.gmra.mrb[32].mxu1 %v22032_v7  ;;  %v12078_v7 = vld [vmem:[%s21108_s15 + $0x38] sm:$0xff] }
 0xabe   : > { %14391 = vmatprep.mubr.bf16.mxu1 %v22033_v13  ;;  %v14825_v13 = vpack.c.bf16 %v12078_v7, %v12077_v21  ;;  %v12086_v21 = vld [vmem:[%s21108_s15 + $0x78] sm:$0xff]  ;;  %v15566_v7 = vld [vmem:[%s21106_s13 + $0x1d0] sm:$0xff]  }
 0xac0   : > { %14826 = vmatprep.subr.bf16.mxu0 %v14825_v13 }
 0xac1   : > { %14828 = vmatpush3.bf16.msra.mxu0 %v14825_v13  ;;  %v14841_v13 = vpack.c.bf16 %v12086_v21, %v12085_v3  ;;  %v15910_v21 = vld [vmem:[%s16238_s0 + $0xb8] sm:$0xff] }
 0xac2   : > { %14830 = vmatprep.subr.bf16.mxu0 %v14829_v12 }
 0xac5   : > { %14392 = vmatmul.mubr.bf16.gmra.mrb[36].mxu1 %v22034_v52  ;;  %v10435_v52 = vld [vmem:[#allocation3 + $0x10] sm:$0xf0]  ;;  %14832 = vmatpush3.bf16.msra.mxu0 %v14829_v12  ;;  %v15893_v12 = vld [vmem:[%s16238_s0 + $0x30] sm:$0xff] }
 0xac6   : > { %14395 = vmatprep.mubr.bf16.mxu1 %v22035_v58  ;;  %v10076_v58 = vshrl.u32 %v9896_v19, 16  ;;  %v10472_v49 = vshrl.u32 %v10435_v52, 16  ;;  %v10475_v23 = vshll.u32 %v10435_v52, 16  ;;  %v15889_v19 = vld [vmem:[%s16238_s0 + $0x10] sm:$0xff]  ;;  %v15890_v52 = vld [vmem:[%s16238_s0 + $0x18] sm:$0xff] }
 0xacd   : > { %14396 = vmatmul.mubr.bf16.gmra.mrb[40].mxu1 %v9526_v20  ;;  %v10078_v20 = vrot.slane %v10076_v58, 4  ;;  %v15894_v58 = vld [vmem:[%s16238_s0 + $0x38] sm:$0xff] }
 0xace   : > { %14415 = vmatprep.mubr.bf16.mxu1 %v9930_v31  ;;  %v22048_v31 = vld [vmem:[#allocation19_spill] sm:$0xff] }
 0xad5   : > { %14416 = vmatmul.mubr.bf16.vlgmr.msra.gmra.mrb[8].mxu1 %v22038_v46  ;;  %v10477_v46 = vrot.slane %v10475_v23, 5  ;;  %v15897_v23 = vld [vmem:[%s16238_s0 + $0x50] sm:$0xff] }
 0xad6   : > { %14452 = vmatpush3.bf16.msra.mxu1 %v15556_v16  ;;  %14419 = vmatprep.mubr.bf16.mxu1 %v22039_v10  ;;  %v15564_v16 = vld [vmem:[%s21106_s13 + $0x1c0] sm:$0xff]  }
 0xad7   : > { %14453 = vmatprep.subr.bf16.mxu1 %v15557_v17 }
 0xada   : > { %14454 = vmatpush3.bf16.msra.mxu1 %v15557_v17  ;;  %v10474_v17 = vrot.slane %v10472_v49, 4  ;;  %v20768_v49 = vld [vmem:[%s21106_s13 + $0x200] sm:$0xff]  }
 0xadb   : > { %14455 = vmatprep.subr.bf16.mxu1 %v15558_v2 }
 0xadc   : > { %v10478_v54 = vor.u32 %v10477_v46, %v10474_v17  ;;  %v15903_v17 = vld [vmem:[%s16238_s0 + $0x80] sm:$0xff]  ;;  %v22052_v46 = vshrl.u32 %v20349_v59, 16 }
 0xadd   : > { %14420 = vmatmul.mubr.bf16.gmra.mrb[12].mxu1 %v22040_v40 }
 0xade   : > { %14423 = vmatprep.mubr.bf16.mxu1 %v22041_v26  ;;  %14456 = vmatpush3.bf16.msra.mxu1 %v15558_v2  ;;  %v22049_v2 = vld [vmem:[#allocation59_spill] sm:$0xff] }
 0xadf   : > { %14457 = vmatprep.subr.bf16.mxu1 %v15559_v44 }
 0xae2   : > { %14458 = vmatpush3.bf16.msra.mxu1 %v15559_v44  ;;  %v12081_v44 = vld [vmem:[%s21108_s15 + $0x50] sm:$0xff] }
 0xae3   : > { %14459 = vmatprep.subr.bf16.mxu1 %v15560_v5  ;;  %v14833_v29 = vpack.c.bf16 %v12082_v63, %v12081_v44  ;;  %v15904_v63 = vld [vmem:[%s16238_s0 + $0x88] sm:$0xff] }
 0xae5   : > { %14424 = vmatmul.mubr.bf16.gmra.mrb[16].mxu1 %v22042_v37  ;;  %14834 = vmatprep.subr.bf16.mxu0 %v14833_v29 }
 0xae6   : > { %14427 = vmatprep.mubr.bf16.mxu1 %v20270_v28  ;;  %14460 = vmatpush3.bf16.msra.mxu1 %v15560_v5  ;;  %v10082_v5 = vor.u32 %v10081_v18, %v10078_v20  ;;  %v15898_v20 = vld [vmem:[%s16238_s0 + $0x58] sm:$0xff]  ;;  %v15901_v18 = vld [vmem:[%s16238_s0 + $0x70] sm:$0xff] }
 0xae7   : > { %14461 = vmatprep.subr.bf16.mxu1 %v15561_v60  ;;  %14836 = vmatpush3.bf16.msra.mxu0 %v14833_v29 }
 0xaea   : > { %14462 = vmatpush3.bf16.msra.mxu1 %v15561_v60  ;;  %v22050_v60 = vld [vmem:[#allocation17_spill] sm:$0xff] }
 0xaeb   : > { %14463 = vmatprep.subr.bf16.mxu1 %v15562_v1  ;;  %v10083_v32 = vsel %vm4220_vm5, %v22050_v60, %v10082_v5  ;;  %v15906_v5 = vld [vmem:[%s16238_s0 + $0x98] sm:$0xff] }
 0xaed   : > { %14428 = vmatmul.mubr.bf16.gmra.mrb[20].mxu1 %v20278_v36 }
 0xaee   : > { %14431 = vmatprep.mubr.bf16.mxu1 %v22043_v24  ;;  %14464 = vmatpush3.bf16.msra.mxu1 %v15562_v1  ;;  %v10487_v1 = vsel %vm4220_vm5, %v10478_v54, %v22051_v4  ;;  %v15907_v54 = vld [vmem:[%s16238_s0 + $0xa0] sm:$0xff] }
 0xaef   : > { %14465 = vmatprep.subr.bf16.mxu1 %v15563_v33 }
 0xaf2   : > { %14466 = vmatpush3.bf16.msra.mxu1 %v15563_v33  ;;  %v12084_v33 = vld [vmem:[%s21108_s15 + $0x68] sm:$0xff] }
 0xaf3   : > { %14503 = vmatprep.subr.bf16.mxu1 %v15564_v16  ;;  %v14837_v43 = vpack.c.bf16 %v12084_v33, %v12083_v57  ;;  %v10453_v57 = vld [vmem:[#allocation3 + $0xa0] sm:$0x1f] }
 0xaf4   : > { %v15908_v33 = vld [vmem:[%s16238_s0 + $0xa8] sm:$0xff]  ;;  %v10636_v3 = vshll.u32 %v10453_v57, 16 }
 0xaf5   : > { %14432 = vmatmul.mubr.bf16.gmra.mrb[24].mxu1 %v22044_v45  ;;  %14838 = vmatprep.subr.bf16.mxu0 %v14837_v43 }
 0xaf6   : > { %14435 = vmatprep.mubr.bf16.mxu1 %v22045_v11  ;;  %14840 = vmatpush3.bf16.msra.mxu0 %v14837_v43  ;;  %v15909_v43 = vld [vmem:[%s16238_s0 + $0xb0] sm:$0xff] }
 0xaf7   : > { %14842 = vmatprep.subr.bf16.mxu0 %v14841_v13 }
 0xafa   : > { %14844 = vmatpush3.bf16.msra.mxu0 %v14841_v13 }
 0xafd   : > { %14436 = vmatmul.mubr.bf16.gmra.mrb[28].mxu1 %v20306_v34 }
 0xafe   : > { %14439 = vmatprep.mubr.bf16.mxu1 %v20319_v56 }
 0xb05   : > { %14440 = vmatmul.mubr.bf16.gmra.mrb[32].mxu1 %v22046_v48 }
 0xb06   : > { %14443 = vmatprep.mubr.bf16.mxu1 %v22047_v27 }
 0xb0d   : > { %14444 = vmatmul.mubr.bf16.gmra.mrb[36].mxu1 %v22048_v31  ;;  %v15902_v31 = vld [vmem:[%s16238_s0 + $0x78] sm:$0xff] }
 0xb0e   : > { %14447 = vmatprep.mubr.bf16.mxu1 %v22049_v2  ;;  %v10608_v2 = vrot.slane %v22052_v46, 4 }
 0xb15   : > { %14448 = vmatmul.mubr.bf16.gmra.mrb[40].mxu1 %v10083_v32  ;;  %v22055_v32 = vshrl.u32 %v20357_v51, 16 }
 0xb16   : > { %14467 = vmatprep.mubr.bf16.mxu1 %v10487_v1 }
 0xb17   : > { %v10626_v4 = vrot.slane %v22055_v32, 4 }
 0xb1d   : > { %14468 = vmatmul.mubr.bf16.vlgmr.msra.gmra.mrb[8].mxu1 %v22039_v10  ;;  %v15567_v10 = vld [vmem:[%s21106_s13 + $0x1d8] sm:$0xff]  }
 0xb1e   : > { %14504 = vmatpush3.bf16.msra.mxu1 %v15564_v16  ;;  %14471 = vmatprep.mubr.bf16.mxu1 %v22040_v40  ;;  %v15888_v40 = vld [vmem:[%s16238_s0 + $0x8] sm:$0xff]  ;;  %v15568_v16 = vld [vmem:[%s21106_s13 + $0x1e0] sm:$0xff]  }
 0xb1f   : > { %14505 = vmatprep.subr.bf16.mxu1 %v15565_v8  ;;  %14640 = vmatmul.mubr.f32.vlgmr.msra.gmra.mrb[2].mxu0 %v15888_v40 }
 0xb20   : > { %14642 = vmatprep.mubr.f32.mxu0 %v15889_v19  ;;  %v10992_v19 = vld [vmem:[#allocation3 + $0x10] sm:$0xe0] }
 0xb22   : > { %14506 = vmatpush3.bf16.msra.mxu1 %v15565_v8  ;;  %v10633_v8 = vshrl.u32 %v10453_v57, 16  ;;  %v15929_v57 = vld [vmem:[#allocation3 + $0x48] sm:$0xff] }
 0xb23   : > { %14507 = vmatprep.subr.bf16.mxu1 %v15566_v7  ;;  %14643 = vmatmul.mubr.f32.gmra.mrb[40].mxu0 %v15890_v52  ;;  %v15913_v52 = vld [vmem:[%s16238_s0 + $0xd0] sm:$0xff] }
 0xb24   : > { %14645 = vmatprep.mubr.f32.mxu0 %v15891_v0  ;;  %v10635_v13 = vrot.slane %v10633_v8, 4 }
 0xb25   : > { %14472 = vmatmul.mubr.bf16.gmra.mrb[12].mxu1 %v22041_v26  ;;  %v15569_v26 = vld [vmem:[%s21106_s13 + $0x1e8] sm:$0xff]  }
 0xb26   : > { %14475 = vmatprep.mubr.bf16.mxu1 %v22042_v37  ;;  %14508 = vmatpush3.bf16.msra.mxu1 %v15566_v7  ;;  %v15892_v37 = vld [vmem:[%s16238_s0 + $0x28] sm:$0xff]  ;;  %v15911_v7 = vld [vmem:[%s16238_s0 + $0xc0] sm:$0xff] }
 0xb27   : > { %14509 = vmatprep.subr.bf16.mxu1 %v15567_v10  ;;  %14646 = vmatmul.mubr.f32.gmra.mrb[42].mxu0 %v15892_v37  ;;  %v15914_v37 = vld [vmem:[#allocation3 + $0x18] sm:$0xff] }
 0xb28   : > { %14648 = vmatprep.mubr.f32.mxu0 %v15893_v12  ;;  %v15915_v12 = vld [vmem:[%s16238_s0 + $0xd8] sm:$0xff] }
 0xb2a   : > { %14510 = vmatpush3.bf16.msra.mxu1 %v15567_v10  ;;  %v10638_v10 = vrot.slane %v10636_v3, 5 }
 0xb2b   : > { %14511 = vmatprep.subr.bf16.mxu1 %v15568_v16  ;;  %14649 = vmatmul.mubr.f32.gmra.mrb[44].mxu0 %v15894_v58  ;;  %v15916_v58 = vld [vmem:[%s16238_s0 + $0xe0] sm:$0xff] }
 0xb2c   : > { %14651 = vmatprep.mubr.f32.mxu0 %v15895_v62  ;;  %v10639_v0 = vor.u32 %v10638_v10, %v10635_v13  ;;  %v15579_v10 = vld [vmem:[%s21106_s13 + $0x238] sm:$0xff]  }
 0xb2d   : > { %14476 = vmatmul.mubr.bf16.gmra.mrb[16].mxu1 %v20270_v28  ;;  %v15571_v28 = vld [vmem:[%s21106_s13 + $0x1f8] sm:$0xff]  }
 0xb2e   : > { %14479 = vmatprep.mubr.bf16.mxu1 %v20278_v36  ;;  %14512 = vmatpush3.bf16.msra.mxu1 %v15568_v16  ;;  %v15896_v36 = vld [vmem:[%s16238_s0 + $0x48] sm:$0xff] }
 0xb2f   : > { %14513 = vmatprep.subr.bf16.mxu1 %v15569_v26  ;;  %14652 = vmatmul.mubr.f32.gmra.mrb[46].mxu0 %v15896_v36  ;;  %v15912_v16 = vld [vmem:[%s16238_s0 + $0xc8] sm:$0xff]  ;;  %v15918_v36 = vld [vmem:[%s16238_s0 + $0xf0] sm:$0xff] }
 0xb30   : > { %14654 = vmatprep.mubr.f32.mxu0 %v15897_v23  ;;  %v15919_v23 = vld [vmem:[#allocation3 + $0x20] sm:$0xff] }
 0xb32   : > { %14514 = vmatpush3.bf16.msra.mxu1 %v15569_v26  ;;  %v11047_v26 = vrot.slane %v10992_v19, 5  ;;  %v15932_v19 = vld [vmem:[#allocation3 + $0x60] sm:$0xff] }
 0xb33   : > { %14515 = vmatprep.subr.bf16.mxu1 %v15570_v61  ;;  %14655 = vmatmul.mubr.f32.gmra.mrb[48].mxu0 %v15898_v20  ;;  %v11050_v20 = vrot.slane %v15919_v23, 5  ;;  %v15936_v23 = vld [vmem:[#allocation3 + $0x80] sm:$0xff] }
 0xb35   : > { %14480 = vmatmul.mubr.bf16.gmra.mrb[20].mxu1 %v22043_v24  ;;  %v15899_v24 = vld [vmem:[%s16238_s0 + $0x60] sm:$0xff] }
 0xb36   : > { %14483 = vmatprep.mubr.bf16.mxu1 %v22044_v45  ;;  %14516 = vmatpush3.bf16.msra.mxu1 %v15570_v61  ;;  %v15900_v45 = vld [vmem:[%s16238_s0 + $0x68] sm:$0xff]  ;;  %v11048_v61 = vrot.slane %v15914_v37, 5 }
 0xb37   : > { %14517 = vmatprep.subr.bf16.mxu1 %v15571_v28  ;;  %14657 = vmatprep.mubr.f32.mxu0 %v15899_v24  ;;  %v15920_v24 = vld [vmem:[#allocation3 + $0x28] sm:$0xff] }
 0xb38   : > { %14658 = vmatmul.mubr.f32.gmra.mrb[50].mxu0 %v15900_v45  ;;  %v11049_v62 = vsel %vm5354_vm7, %v11047_v26, %v11048_v61  ;;  %v11052_v45 = vrot.slane %v15920_v24, 5  ;;  %v11051_v46 = vsel %vm5354_vm7, %v11048_v61, %v11050_v20  ;;  %v15937_v24 = vld [vmem:[#allocation3 + $0x88] sm:$0xff] }
 0xb39   : > { %14660 = vmatprep.mubr.f32.mxu0 %v15901_v18  ;;  %v15921_v18 = vld [vmem:[%s16238_s0 + $0xf8] sm:$0xff] }
 0xb3a   : > { %14518 = vmatpush3.bf16.msra.mxu1 %v15571_v28  ;;  %v15917_v28 = vld [vmem:[%s16238_s0 + $0xe8] sm:$0xff] }
 0xb3b   : > { %14555 = vmatprep.subr.bf16.mxu1 %v20768_v49 }
 0xb3c   : > { %14661 = vmatmul.mubr.f32.gmra.mrb[52].mxu0 %v15902_v31  ;;  %v15922_v31 = vld [vmem:[%s16238_s0 + $0x100] sm:$0xff] }
 0xb3d   : > { %14484 = vmatmul.mubr.bf16.gmra.mrb[24].mxu1 %v22045_v11  ;;  %14663 = vmatprep.mubr.f32.mxu0 %v15903_v17  ;;  %v22053_v11 = vshll.u32 %v20349_v59, 16  ;;  %v15573_v17 = vld [vmem:[%s21106_s13 + $0x208] sm:$0xff]  }
 0xb3e   : > { %14487 = vmatprep.mubr.bf16.mxu1 %v20306_v34  ;;  %v15905_v34 = vld [vmem:[%s16238_s0 + $0x90] sm:$0xff] }
 0xb3f   : > { %v10611_v44 = vrot.slane %v22053_v11, 5  ;;  %v15923_v11 = vld [vmem:[%s16238_s0 + $0x108] sm:$0xff] }
 0xb40   : > { %14664 = vmatmul.mubr.f32.gmra.mrb[54].mxu0 %v15904_v63  ;;  %v15924_v63 = vld [vmem:[%s16238_s0 + $0x110] sm:$0xff] }
 0xb41   : > { %14666 = vmatprep.mubr.f32.mxu0 %v15905_v34  ;;  %v10612_v29 = vor.u32 %v10611_v44, %v10608_v2  ;;  %v11053_v2 = vsel %vm5354_vm7, %v11050_v20, %v11052_v45  ;;  %v15574_v44 = vld [vmem:[%s21106_s13 + $0x210] sm:$0xff]   ;;  %v15925_v34 = vld [vmem:[#allocation3 + $0x30] sm:$0xff]  ;;  %v11074_v20 = vrot.slane %v15936_v23, 5 }
 0xb44   : > { %14667 = vmatmul.mubr.f32.gmra.mrb[56].mxu0 %v15906_v5  ;;  %v15926_v5 = vld [vmem:[#allocation3 + $0x38] sm:$0xff] }
 0xb45   : > { %14488 = vmatmul.mubr.bf16.gmra.mrb[28].mxu1 %v20319_v56  ;;  %14669 = vmatprep.mubr.f32.mxu0 %v15907_v54  ;;  %v22054_v56 = vld [vmem:[#allocation57_spill] sm:$0xff]  ;;  %v11056_v54 = vrot.slane %v15926_v5, 5 }
 0xb46   : > { %14491 = vmatprep.mubr.bf16.mxu1 %v22046_v48  ;;  %v10613_v59 = vsel %vm4220_vm5, %v22054_v56, %v10612_v29  ;;  %v22056_v48 = vshll.u32 %v20357_v51, 16  ;;  %v10622_v51 = vsel %vm4220_vm5, %v10612_v29, %v22050_v60  ;;  %v11054_v29 = vrot.slane %v15925_v34, 5  ;;  %v15927_v56 = vld [vmem:[%s16238_s0 + $0x118] sm:$0xff]  ;;  %v11010_v5 = vld [vmem:[#allocation3 + $0xa0] sm:$0x1f]  ;;  %s20955_s0 = scalar_lea.vmem %s21110_s17, %s15421_s30 }
 0xb48   : > { %v10629_v1 = vrot.slane %v22056_v48, 5  ;;  %14670 = vmatmul.mubr.f32.gmra.mrb[58].mxu0 %v15908_v33  ;;  %v11057_v32 = vsel %vm5354_vm7, %v11054_v29, %v11056_v54  ;;  %v15928_v48 = vld [vmem:[#allocation3 + $0x40] sm:$0xff]  ;;  %v11060_v33 = vrot.slane %v15929_v57, 5 }
 0xb49   : > { %14672 = vmatprep.mubr.f32.mxu0 %v15909_v43  ;;  %v15577_v43 = vld [vmem:[%s21106_s13 + $0x228] sm:$0xff]  }
 0xb4c   : > { %14673 = vmatmul.mubr.f32.gmra.mrb[60].mxu0 %v15910_v21  ;;  %v15930_v21 = vld [vmem:[#allocation3 + $0x50] sm:$0xff] }
 0xb4d   : > { %14492 = vmatmul.mubr.bf16.gmra.mrb[32].mxu1 %v22047_v27  ;;  %v10630_v27 = vor.u32 %v10629_v1, %v10626_v4  ;;  %14675 = vmatprep.mubr.f32.mxu0 %v15911_v7  ;;  %v15576_v4 = vld [vmem:[%s21106_s13 + $0x220] sm:$0xff]   ;;  %v11058_v1 = vrot.slane %v15928_v48, 5  ;;  %v11062_v7 = vrot.slane %v15930_v21, 5 }
 0xb4e   : > { %14495 = vmatprep.mubr.bf16.mxu1 %v10613_v59  ;;  %v11055_v59 = vsel %vm5354_vm7, %v11052_v45, %v11054_v29  ;;  %v11076_v45 = vrot.slane %v15937_v24, 5  ;;  %v22058_v48 = vld [vmem:[#allocation60_spill] sm:$0xff] }
 0xb4f   : > { %v10631_v40 = vsel %vm4220_vm5, %v22050_v60, %v10630_v27  ;;  %v10640_v60 = vsel %vm4220_vm5, %v10630_v27, %v10639_v0  ;;  %v11059_v8 = vsel %vm5354_vm7, %v11056_v54, %v11058_v1  ;;  %v11061_v3 = vsel %vm5354_vm7, %v11058_v1, %v11060_v33  ;;  %v15578_v27 = vld [vmem:[%s21106_s13 + $0x230] sm:$0xff]   ;;  %v22059_v1 = vld [vmem:[#allocation21_spill] sm:$0xff] }
 0xb50   : > { %14676 = vmatmul.mubr.f32.gmra.mrb[62].mxu0 %v15912_v16  ;;  %v15933_v0 = vld [vmem:[#allocation3 + $0x68] sm:$0xff] }
 0xb51   : > { %14678 = vmatprep.mubr.f32.mxu0 %v15913_v52  ;;  %v11066_v52 = vrot.slane %v15932_v19, 5  ;;  %v11068_v26 = vrot.slane %v15933_v0, 5 }
 0xb53   : > { %v11069_v61 = vsel %vm5354_vm7, %v11066_v52, %v11068_v26 }
 0xb54   : > { %14679 = vmatmul.mubr.f32.gmra.mrb[64].mxu0 %v15915_v12  ;;  %v15934_v12 = vld [vmem:[#allocation3 + $0x70] sm:$0xff] }
 0xb55   : > { %14496 = vmatmul.mubr.bf16.gmra.mrb[36].mxu1 %v10622_v51  ;;  %14681 = vmatprep.mubr.f32.mxu0 %v15916_v58  ;;  %v15931_v51 = vld [vmem:[#allocation3 + $0x58] sm:$0xff]  ;;  %v11070_v58 = vrot.slane %v15934_v12, 5 }
 0xb56   : > { %14499 = vmatprep.mubr.bf16.mxu1 %v10631_v40  ;;  %v11064_v13 = vrot.slane %v15931_v51, 5  ;;  %v11063_v40 = vsel %vm5354_vm7, %v11060_v33, %v11062_v7 }
 0xb58   : > { %14682 = vmatmul.mubr.f32.gmra.mrb[66].mxu0 %v15917_v28  ;;  %v11065_v16 = vsel %vm5354_vm7, %v11062_v7, %v11064_v13  ;;  %v11067_v37 = vsel %vm5354_vm7, %v11064_v13, %v11066_v52  ;;  %v11071_v28 = vsel %vm5354_vm7, %v11068_v26, %v11070_v58 }
 0xb59   : > { %14684 = vmatprep.mubr.f32.mxu0 %v15918_v36 }
 0xb5c   : > { %14685 = vmatmul.mubr.f32.gmra.mrb[68].mxu0 %v15921_v18 }
 0xb5d   : > { %14500 = vmatmul.mubr.bf16.gmra.mrb[40].mxu1 %v10640_v60  ;;  %14687 = vmatprep.mubr.f32.mxu0 %v15922_v31  ;;  %v15935_v60 = vld [vmem:[#allocation3 + $0x78] sm:$0xff]  ;;  %v11077_v31 = vsel %vm5354_vm7, %v11074_v20, %v11076_v45 }
 0xb5e   : > { %14519 = vmatprep.mubr.bf16.mxu1 %v11049_v62  ;;  %v11072_v62 = vrot.slane %v15935_v60, 5 }
 0xb60   : > { %14688 = vmatmul.mubr.f32.gmra.mrb[70].mxu0 %v15923_v11  ;;  %v11073_v36 = vsel %vm5354_vm7, %v11070_v58, %v11072_v62  ;;  %v11075_v18 = vsel %vm5354_vm7, %v11072_v62, %v11074_v20 }
 0xb61   : > { %14690 = vmatprep.mubr.f32.mxu0 %v15924_v63 }
 0xb64   : > { %14691 = vmatmul.mubr.f32.gmra.mrb[72].mxu0 %v15927_v56 }
 0xb65   : > { %14520 = vmatmul.mubr.bf16.vlgmr.msra.gmra.mrb[8].mxu1 %v11051_v46  ;;  %v11078_v46 = vrot.slane %v20403_v14, 5 }
 0xb66   : > { %14556 = vmatpush3.bf16.msra.mxu1 %v20768_v49  ;;  %14523 = vmatprep.mubr.bf16.mxu1 %v11053_v2  ;;  %v15575_v49 = vld [vmem:[%s21106_s13 + $0x218] sm:$0xff]   ;;  %v15938_v2 = vld [vmem:[#allocation3 + $0x98] sm:$0xff] }
 0xb67   : > { %14557 = vmatprep.subr.bf16.mxu1 %v15573_v17  ;;  %v11080_v11 = vrot.slane %v15938_v2, 5  ;;  %v11079_v34 = vsel %vm5354_vm7, %v11076_v45, %v11078_v46  ;;  %v20939_v45 = vld [vmem:[%s21109_s16] ss:$0 sm:$0xff] }
 0xb69   : > { %v11081_v29 = vsel %vm5354_vm7, %v11078_v46, %v11080_v11 }
 0xb6a   : > { %14558 = vmatpush3.bf16.msra.mxu1 %v15573_v17  ;;  %v11435_v17 = vld [vmem:[#allocation3 + $0x10] sm:$0xe0] }
 0xb6b   : > { %14559 = vmatprep.subr.bf16.mxu1 %v15574_v44  ;;  %v11475_v63 = vshll.u32 %v11435_v17, 16 }
 0xb6d   : > { %14524 = vmatmul.mubr.bf16.gmra.mrb[12].mxu1 %v11055_v59  ;;  %v11477_v56 = vrot.slane %v11475_v63, 6 }
 0xb6e   : > { %14527 = vmatprep.mubr.bf16.mxu1 %v11057_v32  ;;  %14560 = vmatpush3.bf16.msra.mxu1 %v15574_v44  ;;  %v11472_v44 = vshrl.u32 %v11435_v17, 16 }
 0xb6f   : > { %14561 = vmatprep.subr.bf16.mxu1 %v15575_v49 }
 0xb70   : > { %v11474_v54 = vrot.slane %v11472_v44, 5 }
 0xb72   : > { %14562 = vmatpush3.bf16.msra.mxu1 %v15575_v49  ;;  %v11082_v49 = vrot.slane %v11010_v5, 5  ;;  %v11478_v59 = vor.u32 %v11477_v56, %v11474_v54 }
 0xb73   : > { %14563 = vmatprep.subr.bf16.mxu1 %v15576_v4 }
 0xb74   : > { %v11083_v32 = vsel %vm5354_vm7, %v11080_v11, %v11082_v49  ;;  %v11487_v14 = vsel %vm5779_vm6, %v11478_v59, %v20361_v55  ;;  %v11453_v55 = vld [vmem:[#allocation3 + $0xa0] sm:$0x3f] }
 0xb75   : > { %14528 = vmatmul.mubr.bf16.gmra.mrb[16].mxu1 %v11059_v8 }
 0xb76   : > { %14531 = vmatprep.mubr.bf16.mxu1 %v11061_v3  ;;  %14564 = vmatpush3.bf16.msra.mxu1 %v15576_v4  ;;  %v22057_v4 = vld [vmem:[#allocation18_spill] sm:$0xff] }
 0xb77   : > { %14565 = vmatprep.subr.bf16.mxu1 %v15577_v43 }
 0xb7a   : > { %14566 = vmatpush3.bf16.msra.mxu1 %v15577_v43 }
 0xb7b   : > { %14567 = vmatprep.subr.bf16.mxu1 %v15578_v27 }
 0xb7d   : > { %14532 = vmatmul.mubr.bf16.gmra.mrb[20].mxu1 %v11063_v40 }
 0xb7e   : > { %14535 = vmatprep.mubr.bf16.mxu1 %v11065_v16  ;;  %14568 = vmatpush3.bf16.msra.mxu1 %v15578_v27 }
 0xb7f   : > { %14569 = vmatprep.subr.bf16.mxu1 %v15579_v10 }
 0xb82   : > { %14570 = vmatpush3.bf16.msra.mxu1 %v15579_v10 }
 0xb85   : > { %14536 = vmatmul.mubr.bf16.gmra.mrb[24].mxu1 %v11067_v37 }
 0xb86   : > { %14539 = vmatprep.mubr.bf16.mxu1 %v11069_v61 }
 0xb8d   : > { %14540 = vmatmul.mubr.bf16.gmra.mrb[28].mxu1 %v11071_v28 }
 0xb8e   : > { %14543 = vmatprep.mubr.bf16.mxu1 %v11073_v36 }
 0xb95   : > { %14544 = vmatmul.mubr.bf16.gmra.mrb[32].mxu1 %v11075_v18  ;;  %v20944_v18 = vld [vmem:[%s21107_s14] ss:$0 sm:$0xff] }
 0xb96   : > { %14547 = vmatprep.mubr.bf16.mxu1 %v11077_v31 }
 0xb9d   : > { %14548 = vmatmul.mubr.bf16.gmra.mrb[36].mxu1 %v11079_v34 }
 0xb9e   : > { %14551 = vmatprep.mubr.bf16.mxu1 %v11081_v29 }
 0xba5   : > { %14552 = vmatmul.mubr.bf16.gmra.mrb[40].mxu1 %v11083_v32 }
 0xba6   : > { %14571 = vmatprep.mubr.bf16.mxu1 %v11487_v14 }
 0xbad   : > { %14572 = vmatmul.mubr.bf16.vlgmr.msra.gmra.mrb[8].mxu1 %v20369_v47  ;;  %v11633_v47 = vshrl.u32 %v11453_v55, 16 }
 0xbae   : > { %14575 = vmatprep.mubr.bf16.mxu1 %v22057_v4 }
 0xbb5   : > { %14576 = vmatmul.mubr.bf16.gmra.mrb[12].mxu1 %v22058_v48 }
 0xbb6   : > { %14579 = vmatprep.mubr.bf16.mxu1 %v22059_v1 }
 0xbbd   : > { %14580 = vmatmul.mubr.bf16.gmra.mrb[16].mxu1 %v20387_v42  ;;  %v11636_v42 = vshll.u32 %v11453_v55, 16 }
 0xbbe   : > { %14583 = vmatprep.mubr.bf16.mxu1 %v20390_v39  ;;  %v11635_v39 = vrot.slane %v11633_v47, 5 }
 0xbbf   : > { %v11638_v57 = vrot.slane %v11636_v42, 6 }
 0xbc5   : > { %14584 = vmatmul.mubr.bf16.gmra.mrb[20].mxu1 %v20396_v9  ;;  %v11639_v9 = vor.u32 %v11638_v57, %v11635_v39 }
 0xbc6   : > { %14587 = vmatprep.mubr.bf16.mxu1 %v20400_v30 }
 0xbc7   : > { %v11640_v30 = vsel %vm5779_vm6, %v20439_v25, %v11639_v9 }
 0xbcd   : > { %14588 = vmatmul.mubr.bf16.gmra.mrb[24].mxu1 %v20409_v6 }
 0xbce   : > { %14591 = vmatprep.mubr.bf16.mxu1 %v20414_v50 }
 0xbd5   : > { %14592 = vmatmul.mubr.bf16.gmra.mrb[28].mxu1 %v20419_v38 }
 0xbd6   : > { %14595 = vmatprep.mubr.bf16.mxu1 %v20431_v15 }
 0xbdd   : > { %14596 = vmatmul.mubr.bf16.gmra.mrb[32].mxu1 %v20434_v53 }
 0xbde   : > { %14599 = vmatprep.mubr.bf16.mxu1 %v20437_v35 }
 0xbe5   : > { %14600 = vmatmul.mubr.bf16.gmra.mrb[36].mxu1 %v20447_v41 }
 0xbe6   : > { %14603 = vmatprep.mubr.bf16.mxu1 %v20451_v22 }
 0xbed   : > { %14604 = vmatmul.mubr.bf16.gmra.mrb[40].mxu1 %v11640_v30 }
 0xbf2   : > { %v14641_v6 = vpop.f32.mrb[2].mxu0 }
 0xbf3   : > { %v12160_v50 = vpop.f32.mrb[3].mxu0  ;;  %v12166_v56 = vadd.f32 %v14641_v6, %v20939_v45 }
 0xbf4   : > { %v12161_v44 = vadd.f32 %v20939_v45, %v12160_v50 }
 0xbf6   : > { %v14644_v38 = vpop.f32.mrb[40].mxu0 }
 0xbf7   : > { %v12170_v15 = vpop.f32.mrb[41].mxu0  ;;  %v12176_v46 = vadd.f32 %v14644_v38, %v20939_v45 }
 0xbf8   : > { %v12171_v31 = vadd.f32 %v20939_v45, %v12170_v15 }
 0xbfa   : > { %v20878_v53 = vpop.f32.mrb[42].mxu0 }
 0xbfb   : > { %v12180_v35 = vpop.f32.mrb[43].mxu0  ;;  %v12186_v50 = vadd.f32 %v20878_v53, %v20939_v45 }
 0xbfc   : > { %v12181_v42 = vadd.f32 %v20939_v45, %v12180_v35 }
 0xbfe   : > { %v14650_v33 = vpop.f32.mrb[44].mxu0 }
 0xbff   : > { %v12190_v43 = vpop.f32.mrb[45].mxu0  ;;  %v12196_v1 = vadd.f32 %v14650_v33, %v20939_v45 }
 0xc00   : > { %v12191_v4 = vadd.f32 %v20939_v45, %v12190_v43 }
 0xc02   : > { %v20880_v8 = vpop.f32.mrb[46].mxu0 }
 0xc03   : > { %v20882_v3 = vpop.f32.mrb[47].mxu0 }
 0xc06   : > { %v20884_v41 = vpop.f32.mrb[48].mxu0 }
 0xc07   : > { %v20886_v22 = vpop.f32.mrb[49].mxu0 }
 0xc08   : > { %v12211_v35 = vadd.f32 %v20939_v45, %v20886_v22 }
 0xc0b   : > { %v20888_v27 = vpop.f32.mrb[50].mxu0 }
 0xc0c   : > { %v20890_v25 = vpop.f32.mrb[51].mxu0 }
 0xc0f   : > { %v20892_v21 = vpop.f32.mrb[52].mxu0 }
 0xc10   : > { %v20894_v7 = vpop.f32.mrb[53].mxu0 }
 0xc13   : > { %v20896_v51 = vpop.f32.mrb[54].mxu0 }
 0xc14   : > { %v20898_v13 = vpop.f32.mrb[55].mxu0 }
 0xc17   : > { %v20900_v10 = vpop.f32.mrb[56].mxu0 }
 0xc18   : > { %v20902_v40 = vpop.f32.mrb[57].mxu0 }
 0xc1b   : > { %v20904_v16 = vpop.f32.mrb[58].mxu0 }
 0xc1c   : > { %v20906_v19 = vpop.f32.mrb[59].mxu0 }
 0xc1f   : > { %v20908_v52 = vpop.f32.mrb[60].mxu0 }
 0xc20   : > { %v20910_v0 = vpop.f32.mrb[61].mxu0 }
 0xc23   : > { %v20912_v26 = vpop.f32.mrb[62].mxu0 }
 0xc24   : > { %v20914_v37 = vpop.f32.mrb[63].mxu0 }
 0xc27   : > { %v20916_v61 = vpop.f32.mrb[64].mxu0 }
 0xc28   : > { %v20918_v12 = vpop.f32.mrb[65].mxu0 }
 0xc2b   : > { %v20920_v58 = vpop.f32.mrb[66].mxu0 }
 0xc2c   : > { %v20922_v60 = vpop.f32.mrb[67].mxu0 }
 0xc2f   : > { %v20924_v62 = vpop.f32.mrb[68].mxu0 }
 0xc30   : > { %v20926_v28 = vpop.f32.mrb[69].mxu0 }
 0xc33   : > { %v20928_v36 = vpop.f32.mrb[70].mxu0 }
 0xc34   : > { %v20930_v23 = vpop.f32.mrb[71].mxu0 }
 0xc37   : > { %v20932_v20 = vpop.f32.mrb[72].mxu0 }
 0xc38   : > { %v20934_v24 = vpop.f32.mrb[73].mxu0 }
 0xc80   : > { %v14573_v17 = vpop.f32.mrb[8].mxu1 }
 0xc81   : > { %v12037_v2 = vadd.f32 %v14573_v17, %v20944_v18  ;;  %v11741_v11 = vpop.f32.mrb[9].mxu1  ;;  %v12216_v17 = vadd.f32 %v20884_v41, %v20939_v45 }
 0xc82   : > { %v12035_v63 = vadd.f32 %v20944_v18, %v11741_v11  ;;  %v14574_v34 = vpop.f32.mrb[10].mxu1 }
 0xc83   : > { %v12341_v29 = vadd.f32 %v12171_v31, %v12037_v2  ;;  %v12038_v5 = vadd.f32 %v14574_v34, %v20944_v18  ;;  %v11744_v54 = vpop.f32.mrb[11].mxu1  ;;  %v12201_v2 = vadd.f32 %v20939_v45, %v20882_v3  ;;  %v12231_v3 = vadd.f32 %v20939_v45, %v20894_v7 }
 0xc84   : > { %v12339_v49 = vadd.f32 %v12161_v44, %v12035_v63  ;;  %v12036_v59 = vadd.f32 %v20944_v18, %v11744_v54 }
 0xc85   : > { %12377 = vst [vmem:[%s20955_s0 + $0x10] sm:$0xff] %v12341_v29  ;;  %v12342_v32 = vadd.f32 %v12176_v46, %v12038_v5  ;;  %v12206_v29 = vadd.f32 %v20880_v8, %v20939_v45 }
 0xc86   : > { %12375 = vst [vmem:[%s20955_s0] sm:$0xff] %v12339_v49  ;;  %v12340_v14 = vadd.f32 %v12166_v56, %v12036_v59  ;;  %v12236_v59 = vadd.f32 %v20892_v21, %v20939_v45 }
 0xc87   : > { %12378 = vst [vmem:[%s20955_s0 + $0x18] sm:$0xff] %v12342_v32 }
 0xc88   : > { %12376 = vst [vmem:[%s20955_s0 + $0x8] sm:$0xff] %v12340_v14  ;;  %v14577_v48 = vpop.f32.mrb[12].mxu1  ;;  %v12221_v14 = vadd.f32 %v20939_v45, %v20890_v25  ;;  %v12251_v25 = vadd.f32 %v20939_v45, %v20902_v40 }
 0xc89   : > { %v12041_v55 = vadd.f32 %v14577_v48, %v20944_v18  ;;  %v11757_v47 = vpop.f32.mrb[13].mxu1 }
 0xc8a   : > { %v12039_v39 = vadd.f32 %v20944_v18, %v11757_v47  ;;  %v14578_v57 = vpop.f32.mrb[14].mxu1  ;;  %v12226_v47 = vadd.f32 %v20888_v27, %v20939_v45 }
 0xc8b   : > { %v12345_v9 = vadd.f32 %v12191_v4, %v12041_v55  ;;  %v12042_v30 = vadd.f32 %v14578_v57, %v20944_v18  ;;  %v11760_v6 = vpop.f32.mrb[15].mxu1 }
 0xc8c   : > { %v12343_v38 = vadd.f32 %v12181_v42, %v12039_v39  ;;  %v12040_v15 = vadd.f32 %v20944_v18, %v11760_v6 }
 0xc8d   : > { %12381 = vst [vmem:[%s20955_s0 + $0x30] sm:$0xff] %v12345_v9  ;;  %v12346_v33 = vadd.f32 %v12196_v1, %v12042_v30  ;;  %v12256_v30 = vadd.f32 %v20900_v10, %v20939_v45 }
 0xc8e   : > { %12379 = vst [vmem:[%s20955_s0 + $0x20] sm:$0xff] %v12343_v38  ;;  %v12344_v43 = vadd.f32 %v12186_v50, %v12040_v15  ;;  %v12241_v50 = vadd.f32 %v20939_v45, %v20898_v13  ;;  %v12271_v13 = vadd.f32 %v20939_v45, %v20910_v0 }
 0xc8f   : > { %12382 = vst [vmem:[%s20955_s0 + $0x38] sm:$0xff] %v12346_v33 }
 0xc90   : > { %12380 = vst [vmem:[%s20955_s0 + $0x28] sm:$0xff] %v12344_v43  ;;  %v14581_v31 = vpop.f32.mrb[16].mxu1 }
 0xc91   : > { %v12045_v53 = vadd.f32 %v14581_v31, %v20944_v18  ;;  %v11773_v46 = vpop.f32.mrb[17].mxu1 }
 0xc92   : > { %v12043_v11 = vadd.f32 %v20944_v18, %v11773_v46  ;;  %v14582_v44 = vpop.f32.mrb[18].mxu1 }
 0xc93   : > { %v12349_v63 = vadd.f32 %v12211_v35, %v12045_v53  ;;  %v12046_v22 = vadd.f32 %v14582_v44, %v20944_v18  ;;  %v11776_v34 = vpop.f32.mrb[19].mxu1  ;;  %v12246_v35 = vadd.f32 %v20896_v51, %v20939_v45  ;;  %v12261_v44 = vadd.f32 %v20939_v45, %v20906_v19 }
 0xc94   : > { %v12347_v5 = vadd.f32 %v12201_v2, %v12043_v11  ;;  %v12044_v41 = vadd.f32 %v20944_v18, %v11776_v34  ;;  %v12276_v2 = vadd.f32 %v20908_v52, %v20939_v45  ;;  %v12291_v19 = vadd.f32 %v20939_v45, %v20918_v12 }
 0xc95   : > { %12385 = vst [vmem:[%s20955_s0 + $0x50] sm:$0xff] %v12349_v63  ;;  %v12350_v54 = vadd.f32 %v12216_v17, %v12046_v22 }
 0xc96   : > { %12383 = vst [vmem:[%s20955_s0 + $0x40] sm:$0xff] %v12347_v5  ;;  %v12348_v56 = vadd.f32 %v12206_v29, %v12044_v41  ;;  %v12266_v5 = vadd.f32 %v20904_v16, %v20939_v45 }
 0xc97   : > { %12386 = vst [vmem:[%s20955_s0 + $0x58] sm:$0xff] %v12350_v54 }
 0xc98   : > { %12384 = vst [vmem:[%s20955_s0 + $0x48] sm:$0xff] %v12348_v56  ;;  %v14585_v49 = vpop.f32.mrb[20].mxu1 }
 0xc99   : > { %v12049_v8 = vadd.f32 %v14585_v49, %v20944_v18  ;;  %v11789_v32 = vpop.f32.mrb[21].mxu1  ;;  %v12296_v49 = vadd.f32 %v20916_v61, %v20939_v45 }
 0xc9a   : > { %v12047_v4 = vadd.f32 %v20944_v18, %v11789_v32  ;;  %v14586_v48 = vpop.f32.mrb[22].mxu1 }
 0xc9b   : > { %v12353_v1 = vadd.f32 %v12231_v3, %v12049_v8  ;;  %v12050_v7 = vadd.f32 %v14586_v48, %v20944_v18  ;;  %v11792_v55 = vpop.f32.mrb[23].mxu1  ;;  %v12281_v8 = vadd.f32 %v20939_v45, %v20914_v37  ;;  %v12311_v37 = vadd.f32 %v20939_v45, %v20926_v28 }
 0xc9c   : > { %v12351_v42 = vadd.f32 %v12221_v14, %v12047_v4  ;;  %v12048_v21 = vadd.f32 %v20944_v18, %v11792_v55 }
 0xc9d   : > { %12389 = vst [vmem:[%s20955_s0 + $0x70] sm:$0xff] %v12353_v1  ;;  %v12354_v39 = vadd.f32 %v12236_v59, %v12050_v7  ;;  %v12286_v1 = vadd.f32 %v20912_v26, %v20939_v45 }
 0xc9e   : > { %12387 = vst [vmem:[%s20955_s0 + $0x60] sm:$0xff] %v12351_v42  ;;  %v12352_v57 = vadd.f32 %v12226_v47, %v12048_v21  ;;  %v12316_v21 = vadd.f32 %v20924_v62, %v20939_v45 }
 0xc9f   : > { %12390 = vst [vmem:[%s20955_s0 + $0x78] sm:$0xff] %v12354_v39 }
 0xca0   : > { %12388 = vst [vmem:[%s20955_s0 + $0x68] sm:$0xff] %v12352_v57  ;;  %v14589_v9 = vpop.f32.mrb[24].mxu1  ;;  %v12301_v57 = vadd.f32 %v20939_v45, %v20922_v60  ;;  %v12331_v60 = vadd.f32 %v20939_v45, %v20934_v24 }
 0xca1   : > { %v12053_v27 = vadd.f32 %v14589_v9, %v20944_v18  ;;  %v11805_v6 = vpop.f32.mrb[25].mxu1 }
 0xca2   : > { %v12051_v38 = vadd.f32 %v20944_v18, %v11805_v6  ;;  %v14590_v15 = vpop.f32.mrb[26].mxu1  ;;  %v12306_v6 = vadd.f32 %v20920_v58, %v20939_v45 }
 0xca3   : > { %v12357_v33 = vadd.f32 %v12251_v25, %v12053_v27  ;;  %v12054_v40 = vadd.f32 %v14590_v15, %v20944_v18  ;;  %v11808_v43 = vpop.f32.mrb[27].mxu1 }
 0xca4   : > { %v12355_v31 = vadd.f32 %v12241_v50, %v12051_v38  ;;  %v12052_v10 = vadd.f32 %v20944_v18, %v11808_v43 }
 0xca5   : > { %12393 = vst [vmem:[%s20955_s0 + $0x90] sm:$0xff] %v12357_v33  ;;  %v12358_v17 = vadd.f32 %v12256_v30, %v12054_v40  ;;  %v12336_v40 = vadd.f32 %v20932_v20, %v20939_v45 }
 0xca6   : > { %12391 = vst [vmem:[%s20955_s0 + $0x80] sm:$0xff] %v12355_v31  ;;  %v12356_v53 = vadd.f32 %v12246_v35, %v12052_v10  ;;  %v12321_v35 = vadd.f32 %v20939_v45, %v20930_v23 }
 0xca7   : > { %12394 = vst [vmem:[%s20955_s0 + $0x98] sm:$0xff] %v12358_v17 }
 0xca8   : > { %12392 = vst [vmem:[%s20955_s0 + $0x88] sm:$0xff] %v12356_v53  ;;  %v14593_v46 = vpop.f32.mrb[28].mxu1 }
 0xca9   : > { %v12057_v51 = vadd.f32 %v14593_v46, %v20944_v18  ;;  %v11821_v11 = vpop.f32.mrb[29].mxu1 }
 0xcaa   : > { %v12055_v63 = vadd.f32 %v20944_v18, %v11821_v11  ;;  %v14594_v22 = vpop.f32.mrb[30].mxu1 }
 0xcab   : > { %v12361_v34 = vadd.f32 %v12271_v13, %v12057_v51  ;;  %v12058_v0 = vadd.f32 %v14594_v22, %v20944_v18  ;;  %v11824_v29 = vpop.f32.mrb[31].mxu1  ;;  %v12326_v13 = vadd.f32 %v20928_v36, %v20939_v45 }
 0xcac   : > { %v12359_v41 = vadd.f32 %v12261_v44, %v12055_v63  ;;  %v12056_v52 = vadd.f32 %v20944_v18, %v11824_v29 }
 0xcad   : > { %12397 = vst [vmem:[%s20955_s0 + $0xb0] sm:$0xff] %v12361_v34  ;;  %v12362_v54 = vadd.f32 %v12276_v2, %v12058_v0 }
 0xcae   : > { %12395 = vst [vmem:[%s20955_s0 + $0xa0] sm:$0xff] %v12359_v41  ;;  %v12360_v56 = vadd.f32 %v12266_v5, %v12056_v52 }
 0xcaf   : > { %12398 = vst [vmem:[%s20955_s0 + $0xb8] sm:$0xff] %v12362_v54 }
 0xcb0   : > { %12396 = vst [vmem:[%s20955_s0 + $0xa8] sm:$0xff] %v12360_v56  ;;  %v14597_v3 = vpop.f32.mrb[32].mxu1 }
 0xcb1   : > { %v12061_v16 = vadd.f32 %v14597_v3, %v20944_v18  ;;  %v11837_v59 = vpop.f32.mrb[33].mxu1 }
 0xcb2   : > { %v12059_v32 = vadd.f32 %v20944_v18, %v11837_v59  ;;  %v14598_v14 = vpop.f32.mrb[34].mxu1 }
 0xcb3   : > { %v12365_v4 = vadd.f32 %v12291_v19, %v12061_v16  ;;  %v12062_v12 = vadd.f32 %v14598_v14, %v20944_v18  ;;  %v11840_v48 = vpop.f32.mrb[35].mxu1 }
 0xcb4   : > { %v12363_v7 = vadd.f32 %v12281_v8, %v12059_v32  ;;  %v12060_v61 = vadd.f32 %v20944_v18, %v11840_v48 }
 0xcb5   : > { %12401 = vst [vmem:[%s20955_s0 + $0xd0] sm:$0xff] %v12365_v4  ;;  %v12366_v55 = vadd.f32 %v12296_v49, %v12062_v12 }
 0xcb6   : > { %12399 = vst [vmem:[%s20955_s0 + $0xc0] sm:$0xff] %v12363_v7  ;;  %v12364_v47 = vadd.f32 %v12286_v1, %v12060_v61 }
 0xcb7   : > { %12402 = vst [vmem:[%s20955_s0 + $0xd8] sm:$0xff] %v12366_v55 }
 0xcb8   : > { %12400 = vst [vmem:[%s20955_s0 + $0xc8] sm:$0xff] %v12364_v47  ;;  %v14601_v42 = vpop.f32.mrb[36].mxu1 }
 0xcb9   : > { %v12065_v26 = vadd.f32 %v14601_v42, %v20944_v18  ;;  %v11853_v39 = vpop.f32.mrb[37].mxu1 }
 0xcba   : > { %v12063_v25 = vadd.f32 %v20944_v18, %v11853_v39  ;;  %v14602_v9 = vpop.f32.mrb[38].mxu1 }
 0xcbb   : > { %v12369_v30 = vadd.f32 %v12311_v37, %v12065_v26  ;;  %v12066_v28 = vadd.f32 %v14602_v9, %v20944_v18  ;;  %v11856_v27 = vpop.f32.mrb[39].mxu1 }
 0xcbc   : > { %v12367_v50 = vadd.f32 %v12301_v57, %v12063_v25  ;;  %v12064_v62 = vadd.f32 %v20944_v18, %v11856_v27 }
 0xcbd   : > { %12405 = vst [vmem:[%s20955_s0 + $0xf0] sm:$0xff] %v12369_v30  ;;  %v12370_v38 = vadd.f32 %v12316_v21, %v12066_v28 }
 0xcbe   : > { %12403 = vst [vmem:[%s20955_s0 + $0xe0] sm:$0xff] %v12367_v50  ;;  %v12368_v15 = vadd.f32 %v12306_v6, %v12064_v62 }
 0xcbf   : > { %12406 = vst [vmem:[%s20955_s0 + $0xf8] sm:$0xff] %v12370_v38 }
 0xcc0   : > { %12404 = vst [vmem:[%s20955_s0 + $0xe8] sm:$0xff] %v12368_v15  ;;  %v14605_v33 = vpop.f32.mrb[40].mxu1 }
 0xcc1   : > { %v12069_v58 = vadd.f32 %v14605_v33, %v20944_v18  ;;  %v11869_v43 = vpop.f32.mrb[41].mxu1 }
 0xcc2   : > { %v12067_v31 = vadd.f32 %v20944_v18, %v11869_v43  ;;  %v14606_v10 = vpop.f32.mrb[42].mxu1 }
 0xcc3   : > { %v12373_v17 = vadd.f32 %v12331_v60, %v12069_v58  ;;  %v12070_v24 = vadd.f32 %v14606_v10, %v20944_v18  ;;  %v11872_v53 = vpop.f32.mrb[43].mxu1 }
 0xcc4   : > { %v12371_v46 = vadd.f32 %v12321_v35, %v12067_v31  ;;  %v12068_v20 = vadd.f32 %v20944_v18, %v11872_v53 }
 0xcc5   : > { %12409 = vst [vmem:[%s20955_s0 + $0x110] sm:$0xff] %v12373_v17  ;;  %v12374_v2 = vadd.f32 %v12336_v40, %v12070_v24 }
 0xcc6   : > { %12407 = vst [vmem:[%s20955_s0 + $0x100] sm:$0xff] %v12371_v46  ;;  %v12372_v51 = vadd.f32 %v12326_v13, %v12068_v20 }
 0xcc7   : > { %12410 = vst [vmem:[%s20955_s0 + $0x118] sm:$0xff] %v12374_v2 }
 0xcc8   : > { %12408 = vst [vmem:[%s20955_s0 + $0x108] sm:$0xff] %v12372_v51 }
 0xcc9 PF: > { %s27_s24 = sadd.s32 1, %s15945_s24  }
 0xcca   : > { %p24_p4 = scmp.ge.s32.totalorder %s27_s24, 4  }
 0xccc   :  { %26 = sbr.rel (!%p24_p4) target bundleno = 3 (0x3), region = 137 }

</bundles_post_ra>
